<compile_context>
chip_gen: v6e
topology: v6e:2x2x1
jax: 0.10.0
libtpu: 0.0.40
codegen_flags: <defaults>
</compile_context>

<pallas_src>
import functools

import numpy as np
import jax
import jax.numpy as jnp
from jax.experimental import pallas as pl
from jax.experimental.pallas import tpu as pltpu

LANE = 128
SUB = 8


def _ceil_to(x, m):
    return -(-x // m) * m


def _vmem_spec():
    return pl.BlockSpec(memory_space=pltpu.MemorySpace.VMEM)


# ---------------------------------------------------------------------------
# Fused forward kernel (whole network in one pallas_call).
# ---------------------------------------------------------------------------
def _fused_forward_kernel(
    p1_ref, masks_ref, avg_ref,
    w1_ref, b1_ref,
    w21_ref, b21_ref, w22_ref, b22_ref,
    w31_ref, b31_ref, w32_ref, b32_ref,
    w41_ref, b41_ref, w42_ref, b42_ref,
    wf1_ref, bf1_ref, wf2_ref, bf2_ref, wf3_ref, bf3_ref,
    o_ref,
    pad_ref,
    *, n_img):
    f32 = jnp.float32
    rows = 9 * n_img                     # pixels after maxpool: N * 3 * 3
    grp = _ceil_to(rows, SUB)            # sublane-aligned row-group stride

    # ---- conv1 + ReLU: ONE im2col matmul over all (pool-tap, pixel) rows ----
    c1 = jnp.dot(p1_ref[...], w1_ref[...], preferred_element_type=f32)
    c1 = jnp.maximum(c1 + b1_ref[...], 0.0)              # [9*grp, 128]

    # ---- maxpool(3, 2) = max over the 9 tap groups, then the extra ReLU ----
    m = c1[0:grp, :]
    for t in range(1, 9):
        m = jnp.maximum(m, c1[t * grp:(t + 1) * grp, :])
    x = jnp.maximum(m[:rows, :], 0.0)                    # [rows, 128]

    # Zero the whole padded-activation scratch once; only the interior rows
    # [4, 4+rows) are ever rewritten, so the shift border stays zero.
    pad_ref[...] = jnp.zeros(pad_ref.shape, f32)

    def conv3x3(x_in, w_ref, b_ref):
        """3x3 / stride 1 / pad 1 conv on an [rows, Cin] activation."""
        cin = x_in.shape[1]
        pad_ref[4:4 + rows, 0:cin] = x_in                # interior of padded map
        slabs = []
        t = 0
        for dh in (-1, 0, 1):
            for dw in (-1, 0, 1):
                k = 3 * dh + dw                          # flat row shift
                shifted = pad_ref[4 + k:4 + k + rows, 0:cin]
                slabs.append(shifted * masks_ref[t])     # zero spatially-invalid taps
                t += 1
        patches = jnp.concatenate(slabs, axis=1)         # [rows, 9*cin]
        out = jnp.dot(patches, w_ref[...], preferred_element_type=f32)
        return jnp.maximum(out + b_ref[...], 0.0)

    x = conv3x3(x, w21_ref, b21_ref)                     # [rows, 128] (64 real)
    x = conv3x3(x, w22_ref, b22_ref)                     # [rows, 128] (64 real)
    x = conv3x3(x, w31_ref, b31_ref)                     # [rows, 128]
    x = conv3x3(x, w32_ref, b32_ref)                     # [rows, 128]
    x = conv3x3(x, w41_ref, b41_ref)                     # [rows, 256]
    x = conv3x3(x, w42_ref, b42_ref)                     # [rows, 256]

    # ---- head: adaptive avg-pool (1,1) as a tiny matmul, then fc1/fc2/fc3 ----
    feat = jnp.dot(avg_ref[...], x, preferred_element_type=f32)      # [N, 256]
    h = jnp.dot(feat, wf1_ref[...], preferred_element_type=f32) + bf1_ref[...]
    h = jnp.maximum(h, 0.0)                                          # [N, 128]
    h = jnp.dot(h, wf2_ref[...], preferred_element_type=f32) + bf2_ref[...]
    h = jnp.maximum(h, 0.0)                                          # [N, 64]
    # fc3 (64 -> 1): elementwise mul + lane reduction (avoids an Nx1 matmul)
    out = jnp.sum(h * wf3_ref[...], axis=-1, keepdims=True) + bf3_ref[...]
    o_ref[...] = out.astype(o_ref.dtype)                             # [N, 1]


# ---------------------------------------------------------------------------
# Wrapper-side layout plumbing (pure data movement, no FLOPs).
# ---------------------------------------------------------------------------
def _conv1_pool_patches(x_nhwc):
    """im2col for conv1 (5x5, stride 2, pad 1), grouped by maxpool(3,2) tap.

    Row (t*grp + n*9 + ph*3 + pw) holds the conv1 input patch that feeds
    maxpool tap t=(i,j) of pooled output pixel (n, ph, pw).
    """
    N, H, W, Cin = x_nhwc.shape
    KH = KW = 5
    stride = 2
    Ho = (H + 2 - KH) // stride + 1
    Wo = (W + 2 - KW) // stride + 1
    assert Ho == 7 and Wo == 7, "kernel assumes a 16x16 input (7x7 conv1 grid)"

    xpad = jnp.pad(x_nhwc, ((0, 0), (1, 1), (1, 1), (0, 0)))
    taps = []
    for kh in range(KH):
        for kw in range(KW):
            taps.append(xpad[:, kh:kh + stride * (Ho - 1) + 1:stride,
                                kw:kw + stride * (Wo - 1) + 1:stride, :])
    pf = jnp.stack(taps, axis=3).reshape(N, Ho, Wo, KH * KW * Cin)

    rows = N * 9
    grp = _ceil_to(rows, SUB)
    feat = KH * KW * Cin
    kpad = _ceil_to(feat, LANE)
    groups = []
    for i in range(3):
        for j in range(3):
            g = pf[:, i:i + 5:2, j:j + 5:2, :].reshape(rows, feat)
            g = jnp.pad(g, ((0, grp - rows), (0, kpad - feat)))
            groups.append(g)
    return jnp.concatenate(groups, axis=0)               # [9*grp, kpad]


def _make_masks(n_img):
    rows = 9 * n_img
    m = np.zeros((9, rows, 1), np.float32)
    t = 0
    for dh in (-1, 0, 1):
        for dw in (-1, 0, 1):
            for p in range(rows):
                h = (p // 3) % 3
                w = p % 3
                if 0 <= h + dh <= 2 and 0 <= w + dw <= 2:
                    m[t, p, 0] = 1.0
            t += 1
    return jnp.asarray(m)


def _make_avg(n_img):
    rows = 9 * n_img
    a = np.zeros((n_img, rows), np.float32)
    for n in range(n_img):
        a[n, n * 9:(n + 1) * 9] = 1.0 / 9.0
    return jnp.asarray(a)


def _pack_conv1(w, b, cout_pad):
    kh, kw, cin, cout = w.shape
    feat = kh * kw * cin
    kpad = _ceil_to(feat, LANE)
    wp = jnp.pad(w.reshape(feat, cout), ((0, kpad - feat), (0, cout_pad - cout)))
    bp = jnp.pad(b, (0, cout_pad - cout)).reshape(1, cout_pad)
    return wp, bp


def _pack_conv3x3(w, b, cin_pad, cout_pad):
    kh, kw, cin, cout = w.shape
    wp = jnp.pad(w, ((0, 0), (0, 0), (0, cin_pad - cin), (0, cout_pad - cout)))
    wp = wp.reshape(9 * cin_pad, cout_pad)
    bp = jnp.pad(b, (0, cout_pad - cout)).reshape(1, cout_pad)
    return wp, bp


def pack_params(params, n_img):
    """Reshape/zero-pad all weights once into the layouts the kernel expects."""
    w1, b1 = _pack_conv1(*params["c1"], cout_pad=128)
    w21, b21 = _pack_conv3x3(*params["c21"], cin_pad=128, cout_pad=128)
    w22, b22 = _pack_conv3x3(*params["c22"], cin_pad=128, cout_pad=128)
    w31, b31 = _pack_conv3x3(*params["c31"], cin_pad=128, cout_pad=128)
    w32, b32 = _pack_conv3x3(*params["c32"], cin_pad=128, cout_pad=128)
    w41, b41 = _pack_conv3x3(*params["c41"], cin_pad=128, cout_pad=256)
    w42, b42 = _pack_conv3x3(*params["c42"], cin_pad=256, cout_pad=256)
    wf1, bf1 = params["fc1"][0], params["fc1"][1].reshape(1, -1)
    wf2, bf2 = params["fc2"][0], params["fc2"][1].reshape(1, -1)
    wf3 = params["fc3"][0].reshape(1, -1)
    bf3 = params["fc3"][1].reshape(1, 1)
    return dict(
        masks=_make_masks(n_img), avg=_make_avg(n_img),
        w1=w1, b1=b1, w21=w21, b21=b21, w22=w22, b22=b22,
        w31=w31, b31=b31, w32=w32, b32=b32,
        w41=w41, b41=b41, w42=w42, b42=b42,
        wf1=wf1, bf1=bf1, wf2=wf2, bf2=bf2, wf3=wf3, bf3=bf3)


# ---------------------------------------------------------------------------
# Full forward pass (matches MyModel.forward; Dropout/BatchNorm unused there).
# ---------------------------------------------------------------------------
@jax.jit
def forward(x_nchw, packed):
    n_img = x_nchw.shape[0]
    rows = 9 * n_img
    x_nhwc = jnp.transpose(x_nchw, (0, 2, 3, 1)).astype(jnp.float32)
    p1 = _conv1_pool_patches(x_nhwc)

    args = (p1, packed["masks"], packed["avg"],
            packed["w1"], packed["b1"],
            packed["w21"], packed["b21"], packed["w22"], packed["b22"],
            packed["w31"], packed["b31"], packed["w32"], packed["b32"],
            packed["w41"], packed["b41"], packed["w42"], packed["b42"],
            packed["wf1"], packed["bf1"], packed["wf2"], packed["bf2"],
            packed["wf3"], packed["bf3"])

    return pl.pallas_call(
        functools.partial(_fused_forward_kernel, n_img=n_img),
        out_shape=jax.ShapeDtypeStruct((n_img, 1), jnp.float32),
        in_specs=[_vmem_spec()] * len(args),
        out_specs=_vmem_spec(),
        scratch_shapes=[pltpu.VMEM((rows + 8, 256), jnp.float32)],
        compiler_params=pltpu.CompilerParams(vmem_limit_bytes=32 * 1024 * 1024),
    )(*args)


# ---------------------------------------------------------------------------
# Parameters (deterministic init, PyTorch-style fan-in uniform bounds).
# ---------------------------------------------------------------------------
def _init_conv(key, kh, kw, cin, cout):
    kw_, kb_ = jax.random.split(key)
    bound = 1.0 / (cin * kh * kw) ** 0.5
    w = jax.random.uniform(kw_, (kh, kw, cin, cout), jnp.float32, -bound, bound)
    b = jax.random.uniform(kb_, (cout,), jnp.float32, -bound, bound)
    return w, b


def _init_fc(key, cin, cout):
    kw_, kb_ = jax.random.split(key)
    bound = 1.0 / cin ** 0.5
    w = jax.random.uniform(kw_, (cin, cout), jnp.float32, -bound, bound)
    b = jax.random.uniform(kb_, (cout,), jnp.float32, -bound, bound)
    return w, b


def init_params(key, channels):
    ks = jax.random.split(key, 10)
    p = {}
    p["c1"] = _init_conv(ks[0], 5, 5, channels, 64)
    p["c21"] = _init_conv(ks[1], 3, 3, 64, 64)
    p["c22"] = _init_conv(ks[2], 3, 3, 64, 64)
    p["c31"] = _init_conv(ks[3], 3, 3, 64, 128)
    p["c32"] = _init_conv(ks[4], 3, 3, 128, 128)
    p["c41"] = _init_conv(ks[5], 3, 3, 128, 256)
    p["c42"] = _init_conv(ks[6], 3, 3, 256, 256)
    p["fc1"] = _init_fc(ks[7], 256, 128)
    p["fc2"] = _init_fc(ks[8], 128, 64)
    p["fc3"] = _init_fc(ks[9], 64, 1)
    return p


if __name__ == "__main__":
    key = jax.random.PRNGKey(0)
    k_x, k_p = jax.random.split(key)

    channels = 4
    N, H, W = 2, 16, 16
    x = jax.random.normal(k_x, (N, channels, H, W), jnp.float32)
    params = init_params(k_p, channels)
    packed = pack_params(params, N)

    out = forward(x, packed)
    out = jax.block_until_ready(out)
    assert out.shape == (N, 1), out.shape
    assert out.dtype == jnp.float32
    print("KERNEL_OK")
</pallas_src>

<mosaic_0001>
module attributes {stable_mosaic.version = 11 : i64} {
  func.func @_fused_forward_kernel(%arg0: memref<216x128xf32, #tpu.memory_space<vmem>>, %arg1: memref<9x18x1xf32, #tpu.memory_space<vmem>>, %arg2: memref<2x18xf32, #tpu.memory_space<vmem>>, %arg3: memref<128x128xf32, #tpu.memory_space<vmem>>, %arg4: memref<1x128xf32, #tpu.memory_space<vmem>>, %arg5: memref<1152x128xf32, #tpu.memory_space<vmem>>, %arg6: memref<1x128xf32, #tpu.memory_space<vmem>>, %arg7: memref<1152x128xf32, #tpu.memory_space<vmem>>, %arg8: memref<1x128xf32, #tpu.memory_space<vmem>>, %arg9: memref<1152x128xf32, #tpu.memory_space<vmem>>, %arg10: memref<1x128xf32, #tpu.memory_space<vmem>>, %arg11: memref<1152x128xf32, #tpu.memory_space<vmem>>, %arg12: memref<1x128xf32, #tpu.memory_space<vmem>>, %arg13: memref<1152x256xf32, #tpu.memory_space<vmem>>, %arg14: memref<1x256xf32, #tpu.memory_space<vmem>>, %arg15: memref<2304x256xf32, #tpu.memory_space<vmem>>, %arg16: memref<1x256xf32, #tpu.memory_space<vmem>>, %arg17: memref<256x128xf32, #tpu.memory_space<vmem>>, %arg18: memref<1x128xf32, #tpu.memory_space<vmem>>, %arg19: memref<128x64xf32, #tpu.memory_space<vmem>>, %arg20: memref<1x64xf32, #tpu.memory_space<vmem>>, %arg21: memref<1x64xf32, #tpu.memory_space<vmem>>, %arg22: memref<1x1xf32, #tpu.memory_space<vmem>>, %arg23: memref<2x1xf32, #tpu.memory_space<vmem>>, %arg24: memref<26x256xf32, #tpu.memory_space<vmem>>) attributes {dimension_semantics = [], scalar_prefetch = 0 : i64, scratch_operands = 1 : i64, tpu.core_type = #tpu.core_type<tc>} {
    %c0 = arith.constant 0 : index
    %c0_0 = arith.constant 0 : index
    %0 = vector.load %arg0[%c0, %c0_0] : memref<216x128xf32, #tpu.memory_space<vmem>>, vector<216x128xf32>
    %c0_1 = arith.constant 0 : index
    %c0_2 = arith.constant 0 : index
    %1 = vector.load %arg3[%c0_1, %c0_2] : memref<128x128xf32, #tpu.memory_space<vmem>>, vector<128x128xf32>
    %cst = arith.constant dense<0.000000e+00> : vector<216x128xf32>
    %2 = tpu.matmul %0, %1, %cst {dimension_numbers = #tpu.dot_dimension_numbers<[1], [0], [0], [1], [0, 0, 1, 1], [], []>} : vector<216x128xf32>, vector<128x128xf32>, vector<216x128xf32> -> vector<216x128xf32>
    %c0_3 = arith.constant 0 : index
    %c0_4 = arith.constant 0 : index
    %3 = vector.load %arg4[%c0_3, %c0_4] : memref<1x128xf32, #tpu.memory_space<vmem>>, vector<1x128xf32>
    %4 = vector.broadcast %3 : vector<1x128xf32> to vector<216x128xf32>
    %5 = arith.addf %2, %4 : vector<216x128xf32>
    %cst_5 = arith.constant 0.000000e+00 : f32
    %6 = vector.broadcast %cst_5 : f32 to vector<216x128xf32>
    %7 = arith.maximumf %5, %6 : vector<216x128xf32>
    %8 = vector.extract_strided_slice %7 {offsets = [0, 0], sizes = [24, 128], strides = [1, 1]} : vector<216x128xf32> to vector<24x128xf32>
    %9 = vector.extract_strided_slice %7 {offsets = [24, 0], sizes = [24, 128], strides = [1, 1]} : vector<216x128xf32> to vector<24x128xf32>
    %10 = arith.maximumf %8, %9 : vector<24x128xf32>
    %11 = vector.extract_strided_slice %7 {offsets = [48, 0], sizes = [24, 128], strides = [1, 1]} : vector<216x128xf32> to vector<24x128xf32>
    %12 = arith.maximumf %10, %11 : vector<24x128xf32>
    %13 = vector.extract_strided_slice %7 {offsets = [72, 0], sizes = [24, 128], strides = [1, 1]} : vector<216x128xf32> to vector<24x128xf32>
    %14 = arith.maximumf %12, %13 : vector<24x128xf32>
    %15 = vector.extract_strided_slice %7 {offsets = [96, 0], sizes = [24, 128], strides = [1, 1]} : vector<216x128xf32> to vector<24x128xf32>
    %16 = arith.maximumf %14, %15 : vector<24x128xf32>
    %17 = vector.extract_strided_slice %7 {offsets = [120, 0], sizes = [24, 128], strides = [1, 1]} : vector<216x128xf32> to vector<24x128xf32>
    %18 = arith.maximumf %16, %17 : vector<24x128xf32>
    %19 = vector.extract_strided_slice %7 {offsets = [144, 0], sizes = [24, 128], strides = [1, 1]} : vector<216x128xf32> to vector<24x128xf32>
    %20 = arith.maximumf %18, %19 : vector<24x128xf32>
    %21 = vector.extract_strided_slice %7 {offsets = [168, 0], sizes = [24, 128], strides = [1, 1]} : vector<216x128xf32> to vector<24x128xf32>
    %22 = arith.maximumf %20, %21 : vector<24x128xf32>
    %23 = vector.extract_strided_slice %7 {offsets = [192, 0], sizes = [24, 128], strides = [1, 1]} : vector<216x128xf32> to vector<24x128xf32>
    %24 = arith.maximumf %22, %23 : vector<24x128xf32>
    %25 = vector.extract_strided_slice %24 {offsets = [0, 0], sizes = [18, 128], strides = [1, 1]} : vector<24x128xf32> to vector<18x128xf32>
    %cst_6 = arith.constant 0.000000e+00 : f32
    %26 = vector.broadcast %cst_6 : f32 to vector<18x128xf32>
    %27 = arith.maximumf %25, %26 : vector<18x128xf32>
    %cst_7 = arith.constant 0.000000e+00 : f32
    %28 = vector.broadcast %cst_7 : f32 to vector<26x256xf32>
    %c0_8 = arith.constant 0 : index
    %c0_9 = arith.constant 0 : index
    %29 = vector.load %arg24[%c0_8, %c0_9] : memref<26x256xf32, #tpu.memory_space<vmem>>, vector<26x256xf32>
    tpu.vector_store %arg24[%c0_8, %c0_9], %28 {strides = array<i32>} : memref<26x256xf32, #tpu.memory_space<vmem>>, vector<26x256xf32>,
    %c4 = arith.constant 4 : index
    %c0_10 = arith.constant 0 : index
    %30 = vector.load %arg24[%c4, %c0_10] : memref<26x256xf32, #tpu.memory_space<vmem>>, vector<18x128xf32>
    tpu.vector_store %arg24[%c4, %c0_10], %27 {strides = array<i32>} : memref<26x256xf32, #tpu.memory_space<vmem>>, vector<18x128xf32>,
    %c0_11 = arith.constant 0 : index
    %c0_12 = arith.constant 0 : index
    %31 = vector.load %arg24[%c0_11, %c0_12] : memref<26x256xf32, #tpu.memory_space<vmem>>, vector<18x128xf32>
    %c0_13 = arith.constant 0 : index
    %c0_14 = arith.constant 0 : index
    %c0_15 = arith.constant 0 : index
    %32 = vector.load %arg1[%c0_13, %c0_14, %c0_15] : memref<9x18x1xf32, #tpu.memory_space<vmem>>, vector<1x18x1xf32>
    %33 = vector.shape_cast %32 : vector<1x18x1xf32> to vector<18x1xf32>
    %34 = vector.broadcast %33 : vector<18x1xf32> to vector<18x128xf32>
    %35 = arith.mulf %31, %34 : vector<18x128xf32>
    %c1 = arith.constant 1 : index
    %c0_16 = arith.constant 0 : index
    %36 = vector.load %arg24[%c1, %c0_16] : memref<26x256xf32, #tpu.memory_space<vmem>>, vector<18x128xf32>
    %c1_17 = arith.constant 1 : index
    %c0_18 = arith.constant 0 : index
    %c0_19 = arith.constant 0 : index
    %37 = vector.load %arg1[%c1_17, %c0_18, %c0_19] : memref<9x18x1xf32, #tpu.memory_space<vmem>>, vector<1x18x1xf32>
    %38 = vector.shape_cast %37 : vector<1x18x1xf32> to vector<18x1xf32>
    %39 = vector.broadcast %38 : vector<18x1xf32> to vector<18x128xf32>
    %40 = arith.mulf %36, %39 : vector<18x128xf32>
    %c2 = arith.constant 2 : index
    %c0_20 = arith.constant 0 : index
    %41 = vector.load %arg24[%c2, %c0_20] : memref<26x256xf32, #tpu.memory_space<vmem>>, vector<18x128xf32>
    %c2_21 = arith.constant 2 : index
    %c0_22 = arith.constant 0 : index
    %c0_23 = arith.constant 0 : index
    %42 = vector.load %arg1[%c2_21, %c0_22, %c0_23] : memref<9x18x1xf32, #tpu.memory_space<vmem>>, vector<1x18x1xf32>
    %43 = vector.shape_cast %42 : vector<1x18x1xf32> to vector<18x1xf32>
    %44 = vector.broadcast %43 : vector<18x1xf32> to vector<18x128xf32>
    %45 = arith.mulf %41, %44 : vector<18x128xf32>
    %c3 = arith.constant 3 : index
    %c0_24 = arith.constant 0 : index
    %46 = vector.load %arg24[%c3, %c0_24] : memref<26x256xf32, #tpu.memory_space<vmem>>, vector<18x128xf32>
    %c3_25 = arith.constant 3 : index
    %c0_26 = arith.constant 0 : index
    %c0_27 = arith.constant 0 : index
    %47 = vector.load %arg1[%c3_25, %c0_26, %c0_27] : memref<9x18x1xf32, #tpu.memory_space<vmem>>, vector<1x18x1xf32>
    %48 = vector.shape_cast %47 : vector<1x18x1xf32> to vector<18x1xf32>
    %49 = vector.broadcast %48 : vector<18x1xf32> to vector<18x128xf32>
    %50 = arith.mulf %46, %49 : vector<18x128xf32>
    %c4_28 = arith.constant 4 : index
    %c0_29 = arith.constant 0 : index
    %51 = vector.load %arg24[%c4_28, %c0_29] : memref<26x256xf32, #tpu.memory_space<vmem>>, vector<18x128xf32>
    %c4_30 = arith.constant 4 : index
    %c0_31 = arith.constant 0 : index
    %c0_32 = arith.constant 0 : index
    %52 = vector.load %arg1[%c4_30, %c0_31, %c0_32] : memref<9x18x1xf32, #tpu.memory_space<vmem>>, vector<1x18x1xf32>
    %53 = vector.shape_cast %52 : vector<1x18x1xf32> to vector<18x1xf32>
    %54 = vector.broadcast %53 : vector<18x1xf32> to vector<18x128xf32>
    %55 = arith.mulf %51, %54 : vector<18x128xf32>
    %c5 = arith.constant 5 : index
    %c0_33 = arith.constant 0 : index
    %56 = vector.load %arg24[%c5, %c0_33] : memref<26x256xf32, #tpu.memory_space<vmem>>, vector<18x128xf32>
    %c5_34 = arith.constant 5 : index
    %c0_35 = arith.constant 0 : index
    %c0_36 = arith.constant 0 : index
    %57 = vector.load %arg1[%c5_34, %c0_35, %c0_36] : memref<9x18x1xf32, #tpu.memory_space<vmem>>, vector<1x18x1xf32>
    %58 = vector.shape_cast %57 : vector<1x18x1xf32> to vector<18x1xf32>
    %59 = vector.broadcast %58 : vector<18x1xf32> to vector<18x128xf32>
    %60 = arith.mulf %56, %59 : vector<18x128xf32>
    %c6 = arith.constant 6 : index
    %c0_37 = arith.constant 0 : index
    %61 = vector.load %arg24[%c6, %c0_37] : memref<26x256xf32, #tpu.memory_space<vmem>>, vector<18x128xf32>
    %c6_38 = arith.constant 6 : index
    %c0_39 = arith.constant 0 : index
    %c0_40 = arith.constant 0 : index
    %62 = vector.load %arg1[%c6_38, %c0_39, %c0_40] : memref<9x18x1xf32, #tpu.memory_space<vmem>>, vector<1x18x1xf32>
    %63 = vector.shape_cast %62 : vector<1x18x1xf32> to vector<18x1xf32>
    %64 = vector.broadcast %63 : vector<18x1xf32> to vector<18x128xf32>
    %65 = arith.mulf %61, %64 : vector<18x128xf32>
    %c7 = arith.constant 7 : index
    %c0_41 = arith.constant 0 : index
    %66 = vector.load %arg24[%c7, %c0_41] : memref<26x256xf32, #tpu.memory_space<vmem>>, vector<18x128xf32>
    %c7_42 = arith.constant 7 : index
    %c0_43 = arith.constant 0 : index
    %c0_44 = arith.constant 0 : index
    %67 = vector.load %arg1[%c7_42, %c0_43, %c0_44] : memref<9x18x1xf32, #tpu.memory_space<vmem>>, vector<1x18x1xf32>
    %68 = vector.shape_cast %67 : vector<1x18x1xf32> to vector<18x1xf32>
    %69 = vector.broadcast %68 : vector<18x1xf32> to vector<18x128xf32>
    %70 = arith.mulf %66, %69 : vector<18x128xf32>
    %c8 = arith.constant 8 : index
    %c0_45 = arith.constant 0 : index
    %71 = vector.load %arg24[%c8, %c0_45] : memref<26x256xf32, #tpu.memory_space<vmem>>, vector<18x128xf32>
    %c8_46 = arith.constant 8 : index
    %c0_47 = arith.constant 0 : index
    %c0_48 = arith.constant 0 : index
    %72 = vector.load %arg1[%c8_46, %c0_47, %c0_48] : memref<9x18x1xf32, #tpu.memory_space<vmem>>, vector<1x18x1xf32>
    %73 = vector.shape_cast %72 : vector<1x18x1xf32> to vector<18x1xf32>
    %74 = vector.broadcast %73 : vector<18x1xf32> to vector<18x128xf32>
    %75 = arith.mulf %71, %74 : vector<18x128xf32>
    %76 = tpu.concatenate %35, %40, %45, %50, %55, %60, %65, %70, %75 in 1 : vector<18x128xf32>, vector<18x128xf32>, vector<18x128xf32>, vector<18x128xf32>, vector<18x128xf32>, vector<18x128xf32>, vector<18x128xf32>, vector<18x128xf32>, vector<18x128xf32> -> vector<18x1152xf32>
    %c0_49 = arith.constant 0 : index
    %c0_50 = arith.constant 0 : index
    %77 = vector.load %arg5[%c0_49, %c0_50] : memref<1152x128xf32, #tpu.memory_space<vmem>>, vector<1152x128xf32>
    %cst_51 = arith.constant dense<0.000000e+00> : vector<18x128xf32>
    %78 = tpu.matmul %76, %77, %cst_51 {dimension_numbers = #tpu.dot_dimension_numbers<[1], [0], [0], [1], [0, 0, 1, 1], [], []>} : vector<18x1152xf32>, vector<1152x128xf32>, vector<18x128xf32> -> vector<18x128xf32>
    %c0_52 = arith.constant 0 : index
    %c0_53 = arith.constant 0 : index
    %79 = vector.load %arg6[%c0_52, %c0_53] : memref<1x128xf32, #tpu.memory_space<vmem>>, vector<1x128xf32>
    %80 = vector.broadcast %79 : vector<1x128xf32> to vector<18x128xf32>
    %81 = arith.addf %78, %80 : vector<18x128xf32>
    %cst_54 = arith.constant 0.000000e+00 : f32
    %82 = vector.broadcast %cst_54 : f32 to vector<18x128xf32>
    %83 = arith.maximumf %81, %82 : vector<18x128xf32>
    %c4_55 = arith.constant 4 : index
    %c0_56 = arith.constant 0 : index
    %84 = vector.load %arg24[%c4_55, %c0_56] : memref<26x256xf32, #tpu.memory_space<vmem>>, vector<18x128xf32>
    tpu.vector_store %arg24[%c4_55, %c0_56], %83 {strides = array<i32>} : memref<26x256xf32, #tpu.memory_space<vmem>>, vector<18x128xf32>,
    %c0_57 = arith.constant 0 : index
    %c0_58 = arith.constant 0 : index
    %85 = vector.load %arg24[%c0_57, %c0_58] : memref<26x256xf32, #tpu.memory_space<vmem>>, vector<18x128xf32>
    %c0_59 = arith.constant 0 : index
    %c0_60 = arith.constant 0 : index
    %c0_61 = arith.constant 0 : index
    %86 = vector.load %arg1[%c0_59, %c0_60, %c0_61] : memref<9x18x1xf32, #tpu.memory_space<vmem>>, vector<1x18x1xf32>
    %87 = vector.shape_cast %86 : vector<1x18x1xf32> to vector<18x1xf32>
    %88 = vector.broadcast %87 : vector<18x1xf32> to vector<18x128xf32>
    %89 = arith.mulf %85, %88 : vector<18x128xf32>
    %c1_62 = arith.constant 1 : index
    %c0_63 = arith.constant 0 : index
    %90 = vector.load %arg24[%c1_62, %c0_63] : memref<26x256xf32, #tpu.memory_space<vmem>>, vector<18x128xf32>
    %c1_64 = arith.constant 1 : index
    %c0_65 = arith.constant 0 : index
    %c0_66 = arith.constant 0 : index
    %91 = vector.load %arg1[%c1_64, %c0_65, %c0_66] : memref<9x18x1xf32, #tpu.memory_space<vmem>>, vector<1x18x1xf32>
    %92 = vector.shape_cast %91 : vector<1x18x1xf32> to vector<18x1xf32>
    %93 = vector.broadcast %92 : vector<18x1xf32> to vector<18x128xf32>
    %94 = arith.mulf %90, %93 : vector<18x128xf32>
    %c2_67 = arith.constant 2 : index
    %c0_68 = arith.constant 0 : index
    %95 = vector.load %arg24[%c2_67, %c0_68] : memref<26x256xf32, #tpu.memory_space<vmem>>, vector<18x128xf32>
    %c2_69 = arith.constant 2 : index
    %c0_70 = arith.constant 0 : index
    %c0_71 = arith.constant 0 : index
    %96 = vector.load %arg1[%c2_69, %c0_70, %c0_71] : memref<9x18x1xf32, #tpu.memory_space<vmem>>, vector<1x18x1xf32>
    %97 = vector.shape_cast %96 : vector<1x18x1xf32> to vector<18x1xf32>
    %98 = vector.broadcast %97 : vector<18x1xf32> to vector<18x128xf32>
    %99 = arith.mulf %95, %98 : vector<18x128xf32>
    %c3_72 = arith.constant 3 : index
    %c0_73 = arith.constant 0 : index
    %100 = vector.load %arg24[%c3_72, %c0_73] : memref<26x256xf32, #tpu.memory_space<vmem>>, vector<18x128xf32>
    %c3_74 = arith.constant 3 : index
    %c0_75 = arith.constant 0 : index
    %c0_76 = arith.constant 0 : index
    %101 = vector.load %arg1[%c3_74, %c0_75, %c0_76] : memref<9x18x1xf32, #tpu.memory_space<vmem>>, vector<1x18x1xf32>
    %102 = vector.shape_cast %101 : vector<1x18x1xf32> to vector<18x1xf32>
    %103 = vector.broadcast %102 : vector<18x1xf32> to vector<18x128xf32>
    %104 = arith.mulf %100, %103 : vector<18x128xf32>
    %c4_77 = arith.constant 4 : index
    %c0_78 = arith.constant 0 : index
    %105 = vector.load %arg24[%c4_77, %c0_78] : memref<26x256xf32, #tpu.memory_space<vmem>>, vector<18x128xf32>
    %c4_79 = arith.constant 4 : index
    %c0_80 = arith.constant 0 : index
    %c0_81 = arith.constant 0 : index
    %106 = vector.load %arg1[%c4_79, %c0_80, %c0_81] : memref<9x18x1xf32, #tpu.memory_space<vmem>>, vector<1x18x1xf32>
    %107 = vector.shape_cast %106 : vector<1x18x1xf32> to vector<18x1xf32>
    %108 = vector.broadcast %107 : vector<18x1xf32> to vector<18x128xf32>
    %109 = arith.mulf %105, %108 : vector<18x128xf32>
    %c5_82 = arith.constant 5 : index
    %c0_83 = arith.constant 0 : index
    %110 = vector.load %arg24[%c5_82, %c0_83] : memref<26x256xf32, #tpu.memory_space<vmem>>, vector<18x128xf32>
    %c5_84 = arith.constant 5 : index
    %c0_85 = arith.constant 0 : index
    %c0_86 = arith.constant 0 : index
    %111 = vector.load %arg1[%c5_84, %c0_85, %c0_86] : memref<9x18x1xf32, #tpu.memory_space<vmem>>, vector<1x18x1xf32>
    %112 = vector.shape_cast %111 : vector<1x18x1xf32> to vector<18x1xf32>
    %113 = vector.broadcast %112 : vector<18x1xf32> to vector<18x128xf32>
    %114 = arith.mulf %110, %113 : vector<18x128xf32>
    %c6_87 = arith.constant 6 : index
    %c0_88 = arith.constant 0 : index
    %115 = vector.load %arg24[%c6_87, %c0_88] : memref<26x256xf32, #tpu.memory_space<vmem>>, vector<18x128xf32>
    %c6_89 = arith.constant 6 : index
    %c0_90 = arith.constant 0 : index
    %c0_91 = arith.constant 0 : index
    %116 = vector.load %arg1[%c6_89, %c0_90, %c0_91] : memref<9x18x1xf32, #tpu.memory_space<vmem>>, vector<1x18x1xf32>
    %117 = vector.shape_cast %116 : vector<1x18x1xf32> to vector<18x1xf32>
    %118 = vector.broadcast %117 : vector<18x1xf32> to vector<18x128xf32>
    %119 = arith.mulf %115, %118 : vector<18x128xf32>
    %c7_92 = arith.constant 7 : index
    %c0_93 = arith.constant 0 : index
    %120 = vector.load %arg24[%c7_92, %c0_93] : memref<26x256xf32, #tpu.memory_space<vmem>>, vector<18x128xf32>
    %c7_94 = arith.constant 7 : index
    %c0_95 = arith.constant 0 : index
    %c0_96 = arith.constant 0 : index
    %121 = vector.load %arg1[%c7_94, %c0_95, %c0_96] : memref<9x18x1xf32, #tpu.memory_space<vmem>>, vector<1x18x1xf32>
    %122 = vector.shape_cast %121 : vector<1x18x1xf32> to vector<18x1xf32>
    %123 = vector.broadcast %122 : vector<18x1xf32> to vector<18x128xf32>
    %124 = arith.mulf %120, %123 : vector<18x128xf32>
    %c8_97 = arith.constant 8 : index
    %c0_98 = arith.constant 0 : index
    %125 = vector.load %arg24[%c8_97, %c0_98] : memref<26x256xf32, #tpu.memory_space<vmem>>, vector<18x128xf32>
    %c8_99 = arith.constant 8 : index
    %c0_100 = arith.constant 0 : index
    %c0_101 = arith.constant 0 : index
    %126 = vector.load %arg1[%c8_99, %c0_100, %c0_101] : memref<9x18x1xf32, #tpu.memory_space<vmem>>, vector<1x18x1xf32>
    %127 = vector.shape_cast %126 : vector<1x18x1xf32> to vector<18x1xf32>
    %128 = vector.broadcast %127 : vector<18x1xf32> to vector<18x128xf32>
    %129 = arith.mulf %125, %128 : vector<18x128xf32>
    %130 = tpu.concatenate %89, %94, %99, %104, %109, %114, %119, %124, %129 in 1 : vector<18x128xf32>, vector<18x128xf32>, vector<18x128xf32>, vector<18x128xf32>, vector<18x128xf32>, vector<18x128xf32>, vector<18x128xf32>, vector<18x128xf32>, vector<18x128xf32> -> vector<18x1152xf32>
    %c0_102 = arith.constant 0 : index
    %c0_103 = arith.constant 0 : index
    %131 = vector.load %arg7[%c0_102, %c0_103] : memref<1152x128xf32, #tpu.memory_space<vmem>>, vector<1152x128xf32>
    %cst_104 = arith.constant dense<0.000000e+00> : vector<18x128xf32>
    %132 = tpu.matmul %130, %131, %cst_104 {dimension_numbers = #tpu.dot_dimension_numbers<[1], [0], [0], [1], [0, 0, 1, 1], [], []>} : vector<18x1152xf32>, vector<1152x128xf32>, vector<18x128xf32> -> vector<18x128xf32>
    %c0_105 = arith.constant 0 : index
    %c0_106 = arith.constant 0 : index
    %133 = vector.load %arg8[%c0_105, %c0_106] : memref<1x128xf32, #tpu.memory_space<vmem>>, vector<1x128xf32>
    %134 = vector.broadcast %133 : vector<1x128xf32> to vector<18x128xf32>
    %135 = arith.addf %132, %134 : vector<18x128xf32>
    %cst_107 = arith.constant 0.000000e+00 : f32
    %136 = vector.broadcast %cst_107 : f32 to vector<18x128xf32>
    %137 = arith.maximumf %135, %136 : vector<18x128xf32>
    %c4_108 = arith.constant 4 : index
    %c0_109 = arith.constant 0 : index
    %138 = vector.load %arg24[%c4_108, %c0_109] : memref<26x256xf32, #tpu.memory_space<vmem>>, vector<18x128xf32>
    tpu.vector_store %arg24[%c4_108, %c0_109], %137 {strides = array<i32>} : memref<26x256xf32, #tpu.memory_space<vmem>>, vector<18x128xf32>,
    %c0_110 = arith.constant 0 : index
    %c0_111 = arith.constant 0 : index
    %139 = vector.load %arg24[%c0_110, %c0_111] : memref<26x256xf32, #tpu.memory_space<vmem>>, vector<18x128xf32>
    %c0_112 = arith.constant 0 : index
    %c0_113 = arith.constant 0 : index
    %c0_114 = arith.constant 0 : index
    %140 = vector.load %arg1[%c0_112, %c0_113, %c0_114] : memref<9x18x1xf32, #tpu.memory_space<vmem>>, vector<1x18x1xf32>
    %141 = vector.shape_cast %140 : vector<1x18x1xf32> to vector<18x1xf32>
    %142 = vector.broadcast %141 : vector<18x1xf32> to vector<18x128xf32>
    %143 = arith.mulf %139, %142 : vector<18x128xf32>
    %c1_115 = arith.constant 1 : index
    %c0_116 = arith.constant 0 : index
    %144 = vector.load %arg24[%c1_115, %c0_116] : memref<26x256xf32, #tpu.memory_space<vmem>>, vector<18x128xf32>
    %c1_117 = arith.constant 1 : index
    %c0_118 = arith.constant 0 : index
    %c0_119 = arith.constant 0 : index
    %145 = vector.load %arg1[%c1_117, %c0_118, %c0_119] : memref<9x18x1xf32, #tpu.memory_space<vmem>>, vector<1x18x1xf32>
    %146 = vector.shape_cast %145 : vector<1x18x1xf32> to vector<18x1xf32>
    %147 = vector.broadcast %146 : vector<18x1xf32> to vector<18x128xf32>
    %148 = arith.mulf %144, %147 : vector<18x128xf32>
    %c2_120 = arith.constant 2 : index
    %c0_121 = arith.constant 0 : index
    %149 = vector.load %arg24[%c2_120, %c0_121] : memref<26x256xf32, #tpu.memory_space<vmem>>, vector<18x128xf32>
    %c2_122 = arith.constant 2 : index
    %c0_123 = arith.constant 0 : index
    %c0_124 = arith.constant 0 : index
    %150 = vector.load %arg1[%c2_122, %c0_123, %c0_124] : memref<9x18x1xf32, #tpu.memory_space<vmem>>, vector<1x18x1xf32>
    %151 = vector.shape_cast %150 : vector<1x18x1xf32> to vector<18x1xf32>
    %152 = vector.broadcast %151 : vector<18x1xf32> to vector<18x128xf32>
    %153 = arith.mulf %149, %152 : vector<18x128xf32>
    %c3_125 = arith.constant 3 : index
    %c0_126 = arith.constant 0 : index
    %154 = vector.load %arg24[%c3_125, %c0_126] : memref<26x256xf32, #tpu.memory_space<vmem>>, vector<18x128xf32>
    %c3_127 = arith.constant 3 : index
    %c0_128 = arith.constant 0 : index
    %c0_129 = arith.constant 0 : index
    %155 = vector.load %arg1[%c3_127, %c0_128, %c0_129] : memref<9x18x1xf32, #tpu.memory_space<vmem>>, vector<1x18x1xf32>
    %156 = vector.shape_cast %155 : vector<1x18x1xf32> to vector<18x1xf32>
    %157 = vector.broadcast %156 : vector<18x1xf32> to vector<18x128xf32>
    %158 = arith.mulf %154, %157 : vector<18x128xf32>
    %c4_130 = arith.constant 4 : index
    %c0_131 = arith.constant 0 : index
    %159 = vector.load %arg24[%c4_130, %c0_131] : memref<26x256xf32, #tpu.memory_space<vmem>>, vector<18x128xf32>
    %c4_132 = arith.constant 4 : index
    %c0_133 = arith.constant 0 : index
    %c0_134 = arith.constant 0 : index
    %160 = vector.load %arg1[%c4_132, %c0_133, %c0_134] : memref<9x18x1xf32, #tpu.memory_space<vmem>>, vector<1x18x1xf32>
    %161 = vector.shape_cast %160 : vector<1x18x1xf32> to vector<18x1xf32>
    %162 = vector.broadcast %161 : vector<18x1xf32> to vector<18x128xf32>
    %163 = arith.mulf %159, %162 : vector<18x128xf32>
    %c5_135 = arith.constant 5 : index
    %c0_136 = arith.constant 0 : index
    %164 = vector.load %arg24[%c5_135, %c0_136] : memref<26x256xf32, #tpu.memory_space<vmem>>, vector<18x128xf32>
    %c5_137 = arith.constant 5 : index
    %c0_138 = arith.constant 0 : index
    %c0_139 = arith.constant 0 : index
    %165 = vector.load %arg1[%c5_137, %c0_138, %c0_139] : memref<9x18x1xf32, #tpu.memory_space<vmem>>, vector<1x18x1xf32>
    %166 = vector.shape_cast %165 : vector<1x18x1xf32> to vector<18x1xf32>
    %167 = vector.broadcast %166 : vector<18x1xf32> to vector<18x128xf32>
    %168 = arith.mulf %164, %167 : vector<18x128xf32>
    %c6_140 = arith.constant 6 : index
    %c0_141 = arith.constant 0 : index
    %169 = vector.load %arg24[%c6_140, %c0_141] : memref<26x256xf32, #tpu.memory_space<vmem>>, vector<18x128xf32>
    %c6_142 = arith.constant 6 : index
    %c0_143 = arith.constant 0 : index
    %c0_144 = arith.constant 0 : index
    %170 = vector.load %arg1[%c6_142, %c0_143, %c0_144] : memref<9x18x1xf32, #tpu.memory_space<vmem>>, vector<1x18x1xf32>
    %171 = vector.shape_cast %170 : vector<1x18x1xf32> to vector<18x1xf32>
    %172 = vector.broadcast %171 : vector<18x1xf32> to vector<18x128xf32>
    %173 = arith.mulf %169, %172 : vector<18x128xf32>
    %c7_145 = arith.constant 7 : index
    %c0_146 = arith.constant 0 : index
    %174 = vector.load %arg24[%c7_145, %c0_146] : memref<26x256xf32, #tpu.memory_space<vmem>>, vector<18x128xf32>
    %c7_147 = arith.constant 7 : index
    %c0_148 = arith.constant 0 : index
    %c0_149 = arith.constant 0 : index
    %175 = vector.load %arg1[%c7_147, %c0_148, %c0_149] : memref<9x18x1xf32, #tpu.memory_space<vmem>>, vector<1x18x1xf32>
    %176 = vector.shape_cast %175 : vector<1x18x1xf32> to vector<18x1xf32>
    %177 = vector.broadcast %176 : vector<18x1xf32> to vector<18x128xf32>
    %178 = arith.mulf %174, %177 : vector<18x128xf32>
    %c8_150 = arith.constant 8 : index
    %c0_151 = arith.constant 0 : index
    %179 = vector.load %arg24[%c8_150, %c0_151] : memref<26x256xf32, #tpu.memory_space<vmem>>, vector<18x128xf32>
    %c8_152 = arith.constant 8 : index
    %c0_153 = arith.constant 0 : index
    %c0_154 = arith.constant 0 : index
    %180 = vector.load %arg1[%c8_152, %c0_153, %c0_154] : memref<9x18x1xf32, #tpu.memory_space<vmem>>, vector<1x18x1xf32>
    %181 = vector.shape_cast %180 : vector<1x18x1xf32> to vector<18x1xf32>
    %182 = vector.broadcast %181 : vector<18x1xf32> to vector<18x128xf32>
    %183 = arith.mulf %179, %182 : vector<18x128xf32>
    %184 = tpu.concatenate %143, %148, %153, %158, %163, %168, %173, %178, %183 in 1 : vector<18x128xf32>, vector<18x128xf32>, vector<18x128xf32>, vector<18x128xf32>, vector<18x128xf32>, vector<18x128xf32>, vector<18x128xf32>, vector<18x128xf32>, vector<18x128xf32> -> vector<18x1152xf32>
    %c0_155 = arith.constant 0 : index
    %c0_156 = arith.constant 0 : index
    %185 = vector.load %arg9[%c0_155, %c0_156] : memref<1152x128xf32, #tpu.memory_space<vmem>>, vector<1152x128xf32>
    %cst_157 = arith.constant dense<0.000000e+00> : vector<18x128xf32>
    %186 = tpu.matmul %184, %185, %cst_157 {dimension_numbers = #tpu.dot_dimension_numbers<[1], [0], [0], [1], [0, 0, 1, 1], [], []>} : vector<18x1152xf32>, vector<1152x128xf32>, vector<18x128xf32> -> vector<18x128xf32>
    %c0_158 = arith.constant 0 : index
    %c0_159 = arith.constant 0 : index
    %187 = vector.load %arg10[%c0_158, %c0_159] : memref<1x128xf32, #tpu.memory_space<vmem>>, vector<1x128xf32>
    %188 = vector.broadcast %187 : vector<1x128xf32> to vector<18x128xf32>
    %189 = arith.addf %186, %188 : vector<18x128xf32>
    %cst_160 = arith.constant 0.000000e+00 : f32
    %190 = vector.broadcast %cst_160 : f32 to vector<18x128xf32>
    %191 = arith.maximumf %189, %190 : vector<18x128xf32>
    %c4_161 = arith.constant 4 : index
    %c0_162 = arith.constant 0 : index
    %192 = vector.load %arg24[%c4_161, %c0_162] : memref<26x256xf32, #tpu.memory_space<vmem>>, vector<18x128xf32>
    tpu.vector_store %arg24[%c4_161, %c0_162], %191 {strides = array<i32>} : memref<26x256xf32, #tpu.memory_space<vmem>>, vector<18x128xf32>,
    %c0_163 = arith.constant 0 : index
    %c0_164 = arith.constant 0 : index
    %193 = vector.load %arg24[%c0_163, %c0_164] : memref<26x256xf32, #tpu.memory_space<vmem>>, vector<18x128xf32>
    %c0_165 = arith.constant 0 : index
    %c0_166 = arith.constant 0 : index
    %c0_167 = arith.constant 0 : index
    %194 = vector.load %arg1[%c0_165, %c0_166, %c0_167] : memref<9x18x1xf32, #tpu.memory_space<vmem>>, vector<1x18x1xf32>
    %195 = vector.shape_cast %194 : vector<1x18x1xf32> to vector<18x1xf32>
    %196 = vector.broadcast %195 : vector<18x1xf32> to vector<18x128xf32>
    %197 = arith.mulf %193, %196 : vector<18x128xf32>
    %c1_168 = arith.constant 1 : index
    %c0_169 = arith.constant 0 : index
    %198 = vector.load %arg24[%c1_168, %c0_169] : memref<26x256xf32, #tpu.memory_space<vmem>>, vector<18x128xf32>
    %c1_170 = arith.constant 1 : index
    %c0_171 = arith.constant 0 : index
    %c0_172 = arith.constant 0 : index
    %199 = vector.load %arg1[%c1_170, %c0_171, %c0_172] : memref<9x18x1xf32, #tpu.memory_space<vmem>>, vector<1x18x1xf32>
    %200 = vector.shape_cast %199 : vector<1x18x1xf32> to vector<18x1xf32>
    %201 = vector.broadcast %200 : vector<18x1xf32> to vector<18x128xf32>
    %202 = arith.mulf %198, %201 : vector<18x128xf32>
    %c2_173 = arith.constant 2 : index
    %c0_174 = arith.constant 0 : index
    %203 = vector.load %arg24[%c2_173, %c0_174] : memref<26x256xf32, #tpu.memory_space<vmem>>, vector<18x128xf32>
    %c2_175 = arith.constant 2 : index
    %c0_176 = arith.constant 0 : index
    %c0_177 = arith.constant 0 : index
    %204 = vector.load %arg1[%c2_175, %c0_176, %c0_177] : memref<9x18x1xf32, #tpu.memory_space<vmem>>, vector<1x18x1xf32>
    %205 = vector.shape_cast %204 : vector<1x18x1xf32> to vector<18x1xf32>
    %206 = vector.broadcast %205 : vector<18x1xf32> to vector<18x128xf32>
    %207 = arith.mulf %203, %206 : vector<18x128xf32>
    %c3_178 = arith.constant 3 : index
    %c0_179 = arith.constant 0 : index
    %208 = vector.load %arg24[%c3_178, %c0_179] : memref<26x256xf32, #tpu.memory_space<vmem>>, vector<18x128xf32>
    %c3_180 = arith.constant 3 : index
    %c0_181 = arith.constant 0 : index
    %c0_182 = arith.constant 0 : index
    %209 = vector.load %arg1[%c3_180, %c0_181, %c0_182] : memref<9x18x1xf32, #tpu.memory_space<vmem>>, vector<1x18x1xf32>
    %210 = vector.shape_cast %209 : vector<1x18x1xf32> to vector<18x1xf32>
    %211 = vector.broadcast %210 : vector<18x1xf32> to vector<18x128xf32>
    %212 = arith.mulf %208, %211 : vector<18x128xf32>
    %c4_183 = arith.constant 4 : index
    %c0_184 = arith.constant 0 : index
    %213 = vector.load %arg24[%c4_183, %c0_184] : memref<26x256xf32, #tpu.memory_space<vmem>>, vector<18x128xf32>
    %c4_185 = arith.constant 4 : index
    %c0_186 = arith.constant 0 : index
    %c0_187 = arith.constant 0 : index
    %214 = vector.load %arg1[%c4_185, %c0_186, %c0_187] : memref<9x18x1xf32, #tpu.memory_space<vmem>>, vector<1x18x1xf32>
    %215 = vector.shape_cast %214 : vector<1x18x1xf32> to vector<18x1xf32>
    %216 = vector.broadcast %215 : vector<18x1xf32> to vector<18x128xf32>
    %217 = arith.mulf %213, %216 : vector<18x128xf32>
    %c5_188 = arith.constant 5 : index
    %c0_189 = arith.constant 0 : index
    %218 = vector.load %arg24[%c5_188, %c0_189] : memref<26x256xf32, #tpu.memory_space<vmem>>, vector<18x128xf32>
    %c5_190 = arith.constant 5 : index
    %c0_191 = arith.constant 0 : index
    %c0_192 = arith.constant 0 : index
    %219 = vector.load %arg1[%c5_190, %c0_191, %c0_192] : memref<9x18x1xf32, #tpu.memory_space<vmem>>, vector<1x18x1xf32>
    %220 = vector.shape_cast %219 : vector<1x18x1xf32> to vector<18x1xf32>
    %221 = vector.broadcast %220 : vector<18x1xf32> to vector<18x128xf32>
    %222 = arith.mulf %218, %221 : vector<18x128xf32>
    %c6_193 = arith.constant 6 : index
    %c0_194 = arith.constant 0 : index
    %223 = vector.load %arg24[%c6_193, %c0_194] : memref<26x256xf32, #tpu.memory_space<vmem>>, vector<18x128xf32>
    %c6_195 = arith.constant 6 : index
    %c0_196 = arith.constant 0 : index
    %c0_197 = arith.constant 0 : index
    %224 = vector.load %arg1[%c6_195, %c0_196, %c0_197] : memref<9x18x1xf32, #tpu.memory_space<vmem>>, vector<1x18x1xf32>
    %225 = vector.shape_cast %224 : vector<1x18x1xf32> to vector<18x1xf32>
    %226 = vector.broadcast %225 : vector<18x1xf32> to vector<18x128xf32>
    %227 = arith.mulf %223, %226 : vector<18x128xf32>
    %c7_198 = arith.constant 7 : index
    %c0_199 = arith.constant 0 : index
    %228 = vector.load %arg24[%c7_198, %c0_199] : memref<26x256xf32, #tpu.memory_space<vmem>>, vector<18x128xf32>
    %c7_200 = arith.constant 7 : index
    %c0_201 = arith.constant 0 : index
    %c0_202 = arith.constant 0 : index
    %229 = vector.load %arg1[%c7_200, %c0_201, %c0_202] : memref<9x18x1xf32, #tpu.memory_space<vmem>>, vector<1x18x1xf32>
    %230 = vector.shape_cast %229 : vector<1x18x1xf32> to vector<18x1xf32>
    %231 = vector.broadcast %230 : vector<18x1xf32> to vector<18x128xf32>
    %232 = arith.mulf %228, %231 : vector<18x128xf32>
    %c8_203 = arith.constant 8 : index
    %c0_204 = arith.constant 0 : index
    %233 = vector.load %arg24[%c8_203, %c0_204] : memref<26x256xf32, #tpu.memory_space<vmem>>, vector<18x128xf32>
    %c8_205 = arith.constant 8 : index
    %c0_206 = arith.constant 0 : index
    %c0_207 = arith.constant 0 : index
    %234 = vector.load %arg1[%c8_205, %c0_206, %c0_207] : memref<9x18x1xf32, #tpu.memory_space<vmem>>, vector<1x18x1xf32>
    %235 = vector.shape_cast %234 : vector<1x18x1xf32> to vector<18x1xf32>
    %236 = vector.broadcast %235 : vector<18x1xf32> to vector<18x128xf32>
    %237 = arith.mulf %233, %236 : vector<18x128xf32>
    %238 = tpu.concatenate %197, %202, %207, %212, %217, %222, %227, %232, %237 in 1 : vector<18x128xf32>, vector<18x128xf32>, vector<18x128xf32>, vector<18x128xf32>, vector<18x128xf32>, vector<18x128xf32>, vector<18x128xf32>, vector<18x128xf32>, vector<18x128xf32> -> vector<18x1152xf32>
    %c0_208 = arith.constant 0 : index
    %c0_209 = arith.constant 0 : index
    %239 = vector.load %arg11[%c0_208, %c0_209] : memref<1152x128xf32, #tpu.memory_space<vmem>>, vector<1152x128xf32>
    %cst_210 = arith.constant dense<0.000000e+00> : vector<18x128xf32>
    %240 = tpu.matmul %238, %239, %cst_210 {dimension_numbers = #tpu.dot_dimension_numbers<[1], [0], [0], [1], [0, 0, 1, 1], [], []>} : vector<18x1152xf32>, vector<1152x128xf32>, vector<18x128xf32> -> vector<18x128xf32>
    %c0_211 = arith.constant 0 : index
    %c0_212 = arith.constant 0 : index
    %241 = vector.load %arg12[%c0_211, %c0_212] : memref<1x128xf32, #tpu.memory_space<vmem>>, vector<1x128xf32>
    %242 = vector.broadcast %241 : vector<1x128xf32> to vector<18x128xf32>
    %243 = arith.addf %240, %242 : vector<18x128xf32>
    %cst_213 = arith.constant 0.000000e+00 : f32
    %244 = vector.broadcast %cst_213 : f32 to vector<18x128xf32>
    %245 = arith.maximumf %243, %244 : vector<18x128xf32>
    %c4_214 = arith.constant 4 : index
    %c0_215 = arith.constant 0 : index
    %246 = vector.load %arg24[%c4_214, %c0_215] : memref<26x256xf32, #tpu.memory_space<vmem>>, vector<18x128xf32>
    tpu.vector_store %arg24[%c4_214, %c0_215], %245 {strides = array<i32>} : memref<26x256xf32, #tpu.memory_space<vmem>>, vector<18x128xf32>,
    %c0_216 = arith.constant 0 : index
    %c0_217 = arith.constant 0 : index
    %247 = vector.load %arg24[%c0_216, %c0_217] : memref<26x256xf32, #tpu.memory_space<vmem>>, vector<18x128xf32>
    %c0_218 = arith.constant 0 : index
    %c0_219 = arith.constant 0 : index
    %c0_220 = arith.constant 0 : index
    %248 = vector.load %arg1[%c0_218, %c0_219, %c0_220] : memref<9x18x1xf32, #tpu.memory_space<vmem>>, vector<1x18x1xf32>
    %249 = vector.shape_cast %248 : vector<1x18x1xf32> to vector<18x1xf32>
    %250 = vector.broadcast %249 : vector<18x1xf32> to vector<18x128xf32>
    %251 = arith.mulf %247, %250 : vector<18x128xf32>
    %c1_221 = arith.constant 1 : index
    %c0_222 = arith.constant 0 : index
    %252 = vector.load %arg24[%c1_221, %c0_222] : memref<26x256xf32, #tpu.memory_space<vmem>>, vector<18x128xf32>
    %c1_223 = arith.constant 1 : index
    %c0_224 = arith.constant 0 : index
    %c0_225 = arith.constant 0 : index
    %253 = vector.load %arg1[%c1_223, %c0_224, %c0_225] : memref<9x18x1xf32, #tpu.memory_space<vmem>>, vector<1x18x1xf32>
    %254 = vector.shape_cast %253 : vector<1x18x1xf32> to vector<18x1xf32>
    %255 = vector.broadcast %254 : vector<18x1xf32> to vector<18x128xf32>
    %256 = arith.mulf %252, %255 : vector<18x128xf32>
    %c2_226 = arith.constant 2 : index
    %c0_227 = arith.constant 0 : index
    %257 = vector.load %arg24[%c2_226, %c0_227] : memref<26x256xf32, #tpu.memory_space<vmem>>, vector<18x128xf32>
    %c2_228 = arith.constant 2 : index
    %c0_229 = arith.constant 0 : index
    %c0_230 = arith.constant 0 : index
    %258 = vector.load %arg1[%c2_228, %c0_229, %c0_230] : memref<9x18x1xf32, #tpu.memory_space<vmem>>, vector<1x18x1xf32>
    %259 = vector.shape_cast %258 : vector<1x18x1xf32> to vector<18x1xf32>
    %260 = vector.broadcast %259 : vector<18x1xf32> to vector<18x128xf32>
    %261 = arith.mulf %257, %260 : vector<18x128xf32>
    %c3_231 = arith.constant 3 : index
    %c0_232 = arith.constant 0 : index
    %262 = vector.load %arg24[%c3_231, %c0_232] : memref<26x256xf32, #tpu.memory_space<vmem>>, vector<18x128xf32>
    %c3_233 = arith.constant 3 : index
    %c0_234 = arith.constant 0 : index
    %c0_235 = arith.constant 0 : index
    %263 = vector.load %arg1[%c3_233, %c0_234, %c0_235] : memref<9x18x1xf32, #tpu.memory_space<vmem>>, vector<1x18x1xf32>
    %264 = vector.shape_cast %263 : vector<1x18x1xf32> to vector<18x1xf32>
    %265 = vector.broadcast %264 : vector<18x1xf32> to vector<18x128xf32>
    %266 = arith.mulf %262, %265 : vector<18x128xf32>
    %c4_236 = arith.constant 4 : index
    %c0_237 = arith.constant 0 : index
    %267 = vector.load %arg24[%c4_236, %c0_237] : memref<26x256xf32, #tpu.memory_space<vmem>>, vector<18x128xf32>
    %c4_238 = arith.constant 4 : index
    %c0_239 = arith.constant 0 : index
    %c0_240 = arith.constant 0 : index
    %268 = vector.load %arg1[%c4_238, %c0_239, %c0_240] : memref<9x18x1xf32, #tpu.memory_space<vmem>>, vector<1x18x1xf32>
    %269 = vector.shape_cast %268 : vector<1x18x1xf32> to vector<18x1xf32>
    %270 = vector.broadcast %269 : vector<18x1xf32> to vector<18x128xf32>
    %271 = arith.mulf %267, %270 : vector<18x128xf32>
    %c5_241 = arith.constant 5 : index
    %c0_242 = arith.constant 0 : index
    %272 = vector.load %arg24[%c5_241, %c0_242] : memref<26x256xf32, #tpu.memory_space<vmem>>, vector<18x128xf32>
    %c5_243 = arith.constant 5 : index
    %c0_244 = arith.constant 0 : index
    %c0_245 = arith.constant 0 : index
    %273 = vector.load %arg1[%c5_243, %c0_244, %c0_245] : memref<9x18x1xf32, #tpu.memory_space<vmem>>, vector<1x18x1xf32>
    %274 = vector.shape_cast %273 : vector<1x18x1xf32> to vector<18x1xf32>
    %275 = vector.broadcast %274 : vector<18x1xf32> to vector<18x128xf32>
    %276 = arith.mulf %272, %275 : vector<18x128xf32>
    %c6_246 = arith.constant 6 : index
    %c0_247 = arith.constant 0 : index
    %277 = vector.load %arg24[%c6_246, %c0_247] : memref<26x256xf32, #tpu.memory_space<vmem>>, vector<18x128xf32>
    %c6_248 = arith.constant 6 : index
    %c0_249 = arith.constant 0 : index
    %c0_250 = arith.constant 0 : index
    %278 = vector.load %arg1[%c6_248, %c0_249, %c0_250] : memref<9x18x1xf32, #tpu.memory_space<vmem>>, vector<1x18x1xf32>
    %279 = vector.shape_cast %278 : vector<1x18x1xf32> to vector<18x1xf32>
    %280 = vector.broadcast %279 : vector<18x1xf32> to vector<18x128xf32>
    %281 = arith.mulf %277, %280 : vector<18x128xf32>
    %c7_251 = arith.constant 7 : index
    %c0_252 = arith.constant 0 : index
    %282 = vector.load %arg24[%c7_251, %c0_252] : memref<26x256xf32, #tpu.memory_space<vmem>>, vector<18x128xf32>
    %c7_253 = arith.constant 7 : index
    %c0_254 = arith.constant 0 : index
    %c0_255 = arith.constant 0 : index
    %283 = vector.load %arg1[%c7_253, %c0_254, %c0_255] : memref<9x18x1xf32, #tpu.memory_space<vmem>>, vector<1x18x1xf32>
    %284 = vector.shape_cast %283 : vector<1x18x1xf32> to vector<18x1xf32>
    %285 = vector.broadcast %284 : vector<18x1xf32> to vector<18x128xf32>
    %286 = arith.mulf %282, %285 : vector<18x128xf32>
    %c8_256 = arith.constant 8 : index
    %c0_257 = arith.constant 0 : index
    %287 = vector.load %arg24[%c8_256, %c0_257] : memref<26x256xf32, #tpu.memory_space<vmem>>, vector<18x128xf32>
    %c8_258 = arith.constant 8 : index
    %c0_259 = arith.constant 0 : index
    %c0_260 = arith.constant 0 : index
    %288 = vector.load %arg1[%c8_258, %c0_259, %c0_260] : memref<9x18x1xf32, #tpu.memory_space<vmem>>, vector<1x18x1xf32>
    %289 = vector.shape_cast %288 : vector<1x18x1xf32> to vector<18x1xf32>
    %290 = vector.broadcast %289 : vector<18x1xf32> to vector<18x128xf32>
    %291 = arith.mulf %287, %290 : vector<18x128xf32>
    %292 = tpu.concatenate %251, %256, %261, %266, %271, %276, %281, %286, %291 in 1 : vector<18x128xf32>, vector<18x128xf32>, vector<18x128xf32>, vector<18x128xf32>, vector<18x128xf32>, vector<18x128xf32>, vector<18x128xf32>, vector<18x128xf32>, vector<18x128xf32> -> vector<18x1152xf32>
    %c0_261 = arith.constant 0 : index
    %c0_262 = arith.constant 0 : index
    %293 = vector.load %arg13[%c0_261, %c0_262] : memref<1152x256xf32, #tpu.memory_space<vmem>>, vector<1152x256xf32>
    %cst_263 = arith.constant dense<0.000000e+00> : vector<18x256xf32>
    %294 = tpu.matmul %292, %293, %cst_263 {dimension_numbers = #tpu.dot_dimension_numbers<[1], [0], [0], [1], [0, 0, 1, 1], [], []>} : vector<18x1152xf32>, vector<1152x256xf32>, vector<18x256xf32> -> vector<18x256xf32>
    %c0_264 = arith.constant 0 : index
    %c0_265 = arith.constant 0 : index
    %295 = vector.load %arg14[%c0_264, %c0_265] : memref<1x256xf32, #tpu.memory_space<vmem>>, vector<1x256xf32>
    %296 = vector.broadcast %295 : vector<1x256xf32> to vector<18x256xf32>
    %297 = arith.addf %294, %296 : vector<18x256xf32>
    %cst_266 = arith.constant 0.000000e+00 : f32
    %298 = vector.broadcast %cst_266 : f32 to vector<18x256xf32>
    %299 = arith.maximumf %297, %298 : vector<18x256xf32>
    %c4_267 = arith.constant 4 : index
    %c0_268 = arith.constant 0 : index
    %300 = vector.load %arg24[%c4_267, %c0_268] : memref<26x256xf32, #tpu.memory_space<vmem>>, vector<18x256xf32>
    tpu.vector_store %arg24[%c4_267, %c0_268], %299 {strides = array<i32>} : memref<26x256xf32, #tpu.memory_space<vmem>>, vector<18x256xf32>,
    %c0_269 = arith.constant 0 : index
    %c0_270 = arith.constant 0 : index
    %301 = vector.load %arg24[%c0_269, %c0_270] : memref<26x256xf32, #tpu.memory_space<vmem>>, vector<18x256xf32>
    %c0_271 = arith.constant 0 : index
    %c0_272 = arith.constant 0 : index
    %c0_273 = arith.constant 0 : index
    %302 = vector.load %arg1[%c0_271, %c0_272, %c0_273] : memref<9x18x1xf32, #tpu.memory_space<vmem>>, vector<1x18x1xf32>
    %303 = vector.shape_cast %302 : vector<1x18x1xf32> to vector<18x1xf32>
    %304 = vector.broadcast %303 : vector<18x1xf32> to vector<18x256xf32>
    %305 = arith.mulf %301, %304 : vector<18x256xf32>
    %c1_274 = arith.constant 1 : index
    %c0_275 = arith.constant 0 : index
    %306 = vector.load %arg24[%c1_274, %c0_275] : memref<26x256xf32, #tpu.memory_space<vmem>>, vector<18x256xf32>
    %c1_276 = arith.constant 1 : index
    %c0_277 = arith.constant 0 : index
    %c0_278 = arith.constant 0 : index
    %307 = vector.load %arg1[%c1_276, %c0_277, %c0_278] : memref<9x18x1xf32, #tpu.memory_space<vmem>>, vector<1x18x1xf32>
    %308 = vector.shape_cast %307 : vector<1x18x1xf32> to vector<18x1xf32>
    %309 = vector.broadcast %308 : vector<18x1xf32> to vector<18x256xf32>
    %310 = arith.mulf %306, %309 : vector<18x256xf32>
    %c2_279 = arith.constant 2 : index
    %c0_280 = arith.constant 0 : index
    %311 = vector.load %arg24[%c2_279, %c0_280] : memref<26x256xf32, #tpu.memory_space<vmem>>, vector<18x256xf32>
    %c2_281 = arith.constant 2 : index
    %c0_282 = arith.constant 0 : index
    %c0_283 = arith.constant 0 : index
    %312 = vector.load %arg1[%c2_281, %c0_282, %c0_283] : memref<9x18x1xf32, #tpu.memory_space<vmem>>, vector<1x18x1xf32>
    %313 = vector.shape_cast %312 : vector<1x18x1xf32> to vector<18x1xf32>
    %314 = vector.broadcast %313 : vector<18x1xf32> to vector<18x256xf32>
    %315 = arith.mulf %311, %314 : vector<18x256xf32>
    %c3_284 = arith.constant 3 : index
    %c0_285 = arith.constant 0 : index
    %316 = vector.load %arg24[%c3_284, %c0_285] : memref<26x256xf32, #tpu.memory_space<vmem>>, vector<18x256xf32>
    %c3_286 = arith.constant 3 : index
    %c0_287 = arith.constant 0 : index
    %c0_288 = arith.constant 0 : index
    %317 = vector.load %arg1[%c3_286, %c0_287, %c0_288] : memref<9x18x1xf32, #tpu.memory_space<vmem>>, vector<1x18x1xf32>
    %318 = vector.shape_cast %317 : vector<1x18x1xf32> to vector<18x1xf32>
    %319 = vector.broadcast %318 : vector<18x1xf32> to vector<18x256xf32>
    %320 = arith.mulf %316, %319 : vector<18x256xf32>
    %c4_289 = arith.constant 4 : index
    %c0_290 = arith.constant 0 : index
    %321 = vector.load %arg24[%c4_289, %c0_290] : memref<26x256xf32, #tpu.memory_space<vmem>>, vector<18x256xf32>
    %c4_291 = arith.constant 4 : index
    %c0_292 = arith.constant 0 : index
    %c0_293 = arith.constant 0 : index
    %322 = vector.load %arg1[%c4_291, %c0_292, %c0_293] : memref<9x18x1xf32, #tpu.memory_space<vmem>>, vector<1x18x1xf32>
    %323 = vector.shape_cast %322 : vector<1x18x1xf32> to vector<18x1xf32>
    %324 = vector.broadcast %323 : vector<18x1xf32> to vector<18x256xf32>
    %325 = arith.mulf %321, %324 : vector<18x256xf32>
    %c5_294 = arith.constant 5 : index
    %c0_295 = arith.constant 0 : index
    %326 = vector.load %arg24[%c5_294, %c0_295] : memref<26x256xf32, #tpu.memory_space<vmem>>, vector<18x256xf32>
    %c5_296 = arith.constant 5 : index
    %c0_297 = arith.constant 0 : index
    %c0_298 = arith.constant 0 : index
    %327 = vector.load %arg1[%c5_296, %c0_297, %c0_298] : memref<9x18x1xf32, #tpu.memory_space<vmem>>, vector<1x18x1xf32>
    %328 = vector.shape_cast %327 : vector<1x18x1xf32> to vector<18x1xf32>
    %329 = vector.broadcast %328 : vector<18x1xf32> to vector<18x256xf32>
    %330 = arith.mulf %326, %329 : vector<18x256xf32>
    %c6_299 = arith.constant 6 : index
    %c0_300 = arith.constant 0 : index
    %331 = vector.load %arg24[%c6_299, %c0_300] : memref<26x256xf32, #tpu.memory_space<vmem>>, vector<18x256xf32>
    %c6_301 = arith.constant 6 : index
    %c0_302 = arith.constant 0 : index
    %c0_303 = arith.constant 0 : index
    %332 = vector.load %arg1[%c6_301, %c0_302, %c0_303] : memref<9x18x1xf32, #tpu.memory_space<vmem>>, vector<1x18x1xf32>
    %333 = vector.shape_cast %332 : vector<1x18x1xf32> to vector<18x1xf32>
    %334 = vector.broadcast %333 : vector<18x1xf32> to vector<18x256xf32>
    %335 = arith.mulf %331, %334 : vector<18x256xf32>
    %c7_304 = arith.constant 7 : index
    %c0_305 = arith.constant 0 : index
    %336 = vector.load %arg24[%c7_304, %c0_305] : memref<26x256xf32, #tpu.memory_space<vmem>>, vector<18x256xf32>
    %c7_306 = arith.constant 7 : index
    %c0_307 = arith.constant 0 : index
    %c0_308 = arith.constant 0 : index
    %337 = vector.load %arg1[%c7_306, %c0_307, %c0_308] : memref<9x18x1xf32, #tpu.memory_space<vmem>>, vector<1x18x1xf32>
    %338 = vector.shape_cast %337 : vector<1x18x1xf32> to vector<18x1xf32>
    %339 = vector.broadcast %338 : vector<18x1xf32> to vector<18x256xf32>
    %340 = arith.mulf %336, %339 : vector<18x256xf32>
    %c8_309 = arith.constant 8 : index
    %c0_310 = arith.constant 0 : index
    %341 = vector.load %arg24[%c8_309, %c0_310] : memref<26x256xf32, #tpu.memory_space<vmem>>, vector<18x256xf32>
    %c8_311 = arith.constant 8 : index
    %c0_312 = arith.constant 0 : index
    %c0_313 = arith.constant 0 : index
    %342 = vector.load %arg1[%c8_311, %c0_312, %c0_313] : memref<9x18x1xf32, #tpu.memory_space<vmem>>, vector<1x18x1xf32>
    %343 = vector.shape_cast %342 : vector<1x18x1xf32> to vector<18x1xf32>
    %344 = vector.broadcast %343 : vector<18x1xf32> to vector<18x256xf32>
    %345 = arith.mulf %341, %344 : vector<18x256xf32>
    %346 = tpu.concatenate %305, %310, %315, %320, %325, %330, %335, %340, %345 in 1 : vector<18x256xf32>, vector<18x256xf32>, vector<18x256xf32>, vector<18x256xf32>, vector<18x256xf32>, vector<18x256xf32>, vector<18x256xf32>, vector<18x256xf32>, vector<18x256xf32> -> vector<18x2304xf32>
    %c0_314 = arith.constant 0 : index
    %c0_315 = arith.constant 0 : index
    %347 = vector.load %arg15[%c0_314, %c0_315] : memref<2304x256xf32, #tpu.memory_space<vmem>>, vector<2304x256xf32>
    %cst_316 = arith.constant dense<0.000000e+00> : vector<18x256xf32>
    %348 = tpu.matmul %346, %347, %cst_316 {dimension_numbers = #tpu.dot_dimension_numbers<[1], [0], [0], [1], [0, 0, 1, 1], [], []>} : vector<18x2304xf32>, vector<2304x256xf32>, vector<18x256xf32> -> vector<18x256xf32>
    %c0_317 = arith.constant 0 : index
    %c0_318 = arith.constant 0 : index
    %349 = vector.load %arg16[%c0_317, %c0_318] : memref<1x256xf32, #tpu.memory_space<vmem>>, vector<1x256xf32>
    %350 = vector.broadcast %349 : vector<1x256xf32> to vector<18x256xf32>
    %351 = arith.addf %348, %350 : vector<18x256xf32>
    %cst_319 = arith.constant 0.000000e+00 : f32
    %352 = vector.broadcast %cst_319 : f32 to vector<18x256xf32>
    %353 = arith.maximumf %351, %352 : vector<18x256xf32>
    %c0_320 = arith.constant 0 : index
    %c0_321 = arith.constant 0 : index
    %354 = vector.load %arg2[%c0_320, %c0_321] : memref<2x18xf32, #tpu.memory_space<vmem>>, vector<2x18xf32>
    %cst_322 = arith.constant dense<0.000000e+00> : vector<2x256xf32>
    %355 = tpu.matmul %354, %353, %cst_322 {dimension_numbers = #tpu.dot_dimension_numbers<[1], [0], [0], [1], [0, 0, 1, 1], [], []>} : vector<2x18xf32>, vector<18x256xf32>, vector<2x256xf32> -> vector<2x256xf32>
    %c0_323 = arith.constant 0 : index
    %c0_324 = arith.constant 0 : index
    %356 = vector.load %arg17[%c0_323, %c0_324] : memref<256x128xf32, #tpu.memory_space<vmem>>, vector<256x128xf32>
    %cst_325 = arith.constant dense<0.000000e+00> : vector<2x128xf32>
    %357 = tpu.matmul %355, %356, %cst_325 {dimension_numbers = #tpu.dot_dimension_numbers<[1], [0], [0], [1], [0, 0, 1, 1], [], []>} : vector<2x256xf32>, vector<256x128xf32>, vector<2x128xf32> -> vector<2x128xf32>
    %c0_326 = arith.constant 0 : index
    %c0_327 = arith.constant 0 : index
    %358 = vector.load %arg18[%c0_326, %c0_327] : memref<1x128xf32, #tpu.memory_space<vmem>>, vector<1x128xf32>
    %359 = vector.broadcast %358 : vector<1x128xf32> to vector<2x128xf32>
    %360 = arith.addf %357, %359 : vector<2x128xf32>
    %cst_328 = arith.constant 0.000000e+00 : f32
    %361 = vector.broadcast %cst_328 : f32 to vector<2x128xf32>
    %362 = arith.maximumf %360, %361 : vector<2x128xf32>
    %c0_329 = arith.constant 0 : index
    %c0_330 = arith.constant 0 : index
    %363 = vector.load %arg19[%c0_329, %c0_330] : memref<128x64xf32, #tpu.memory_space<vmem>>, vector<128x64xf32>
    %cst_331 = arith.constant dense<0.000000e+00> : vector<2x64xf32>
    %364 = tpu.matmul %362, %363, %cst_331 {dimension_numbers = #tpu.dot_dimension_numbers<[1], [0], [0], [1], [0, 0, 1, 1], [], []>} : vector<2x128xf32>, vector<128x64xf32>, vector<2x64xf32> -> vector<2x64xf32>
    %c0_332 = arith.constant 0 : index
    %c0_333 = arith.constant 0 : index
    %365 = vector.load %arg20[%c0_332, %c0_333] : memref<1x64xf32, #tpu.memory_space<vmem>>, vector<1x64xf32>
    %366 = vector.broadcast %365 : vector<1x64xf32> to vector<2x64xf32>
    %367 = arith.addf %364, %366 : vector<2x64xf32>
    %cst_334 = arith.constant 0.000000e+00 : f32
    %368 = vector.broadcast %cst_334 : f32 to vector<2x64xf32>
    %369 = arith.maximumf %367, %368 : vector<2x64xf32>
    %c0_335 = arith.constant 0 : index
    %c0_336 = arith.constant 0 : index
    %370 = vector.load %arg21[%c0_335, %c0_336] : memref<1x64xf32, #tpu.memory_space<vmem>>, vector<1x64xf32>
    %371 = vector.broadcast %370 : vector<1x64xf32> to vector<2x64xf32>
    %372 = arith.mulf %369, %371 : vector<2x64xf32>
    %cst_337 = arith.constant dense<0.000000e+00> : vector<2xf32>
    %373 = vector.multi_reduction <add>, %372, %cst_337 [1] : vector<2x64xf32> to vector<2xf32>
    %374 = vector.shape_cast %373 : vector<2xf32> to vector<2x1xf32>
    %c0_338 = arith.constant 0 : index
    %c0_339 = arith.constant 0 : index
    %375 = vector.load %arg22[%c0_338, %c0_339] : memref<1x1xf32, #tpu.memory_space<vmem>>, vector<1x1xf32>
    %376 = vector.broadcast %375 : vector<1x1xf32> to vector<2x1xf32>
    %377 = arith.addf %374, %376 : vector<2x1xf32>
    %c0_340 = arith.constant 0 : index
    %c0_341 = arith.constant 0 : index
    %378 = vector.load %arg23[%c0_340, %c0_341] : memref<2x1xf32, #tpu.memory_space<vmem>>, vector<2x1xf32>
    tpu.vector_store %arg23[%c0_340, %c0_341], %377 {strides = array<i32>} : memref<2x1xf32, #tpu.memory_space<vmem>>, vector<2x1xf32>,
    return
  }
}

</mosaic_0001>

<bundles_post_ra>
// kernel: forward.1
= control target key start
LH: loop header
LB: loop body
LE: loop exit
PB: predicated region body
PF: predicated region fallthrough
CT: control target
= control target key end

     0   :  { %v8482_v0 = vmov 0   ;;  %v15181_v1 = vmov 0.0   ;;  %vm8484_vm0 = vmmov 0   ;;  %vm445_vm1 = vcmask 1040384   ;;  %s15151_s3 = inlined_call_operand.vmem [shape: f32[128,128], index: 3, kind: input, shape index: {}]   ;;  %s15152_s1 = inlined_call_operand.vmem [shape: f32[9,18,1], index: 1, kind: input, shape index: {}]   ;;  %s15153_s0 = inlined_call_operand.vmem [shape: f32[216,128], index: 0, kind: input, shape index: {}]   ;;  %s15154_s5 = inlined_call_operand.vmem [shape: f32[1152,128], index: 5, kind: input, shape index: {}]   ;;  %s15155_s4 = inlined_call_operand.vmem [shape: f32[1,128], index: 4, kind: input, shape index: {}]   ;;  %s15156_s7 = inlined_call_operand.vmem [shape: f32[1152,128], index: 7, kind: input, shape index: {}]   ;;  %s15157_s6 = inlined_call_operand.vmem [shape: f32[1,128], index: 6, kind: input, shape index: {}]   ;;  %s15158_s9 = inlined_call_operand.vmem [shape: f32[1152,128], index: 9, kind: input, shape index: {}]   ;;  %s15159_s8 = inlined_call_operand.vmem [shape: f32[1,128], index: 8, kind: input, shape index: {}]   ;;  %s15160_s11 = inlined_call_operand.vmem [shape: f32[1152,128], index: 11, kind: input, shape index: {}]   ;;  %s15161_s10 = inlined_call_operand.vmem [shape: f32[1,128], index: 10, kind: input, shape index: {}]   ;;  %s15162_s13 = inlined_call_operand.vmem [shape: f32[1152,256], index: 13, kind: input, shape index: {}]   ;;  %s15163_s12 = inlined_call_operand.vmem [shape: f32[1,128], index: 12, kind: input, shape index: {}]   ;;  %s15164_s15 = inlined_call_operand.vmem [shape: f32[2304,256], index: 15, kind: input, shape index: {}]   ;;  %s15165_s14 = inlined_call_operand.vmem [shape: f32[1,256], index: 14, kind: input, shape index: {}]   ;;  %s15166_s17 = inlined_call_operand.vmem [shape: f32[256,128], index: 17, kind: input, shape index: {}]   ;;  %s15167_s16 = inlined_call_operand.vmem [shape: f32[1,256], index: 16, kind: input, shape index: {}]   ;;  %s15168_s2 = inlined_call_operand.vmem [shape: f32[2,18], index: 2, kind: input, shape index: {}]   ;;  %s15169_s19 = inlined_call_operand.vmem [shape: f32[128,64], index: 19, kind: input, shape index: {}]   ;;  %s15170_s18 = inlined_call_operand.vmem [shape: f32[1,128], index: 18, kind: input, shape index: {}]   ;;  %s15171_s22 = inlined_call_operand.<no memory space> [shape: f32[1,1], index: 22, kind: input, shape index: {}]   ;;  %s15172_s20 = inlined_call_operand.vmem [shape: f32[1,64], index: 20, kind: input, shape index: {}]   ;;  %s15173_s21 = inlined_call_operand.vmem [shape: f32[1,64], index: 21, kind: input, shape index: {}]   ;;  %s15174_s23 = inlined_call_operand.vmem [shape: f32[2,1], index: 23, kind: output, shape index: {}]  }
   0x1   :  { %15193 = sst [smem:[#allocation75_spill]] %s15151_s3  ;;  %8474 = vset.pattern.permute.xlu1 %v8482_v0  ;;  %8473 = vset.pattern.permute.xlu0 %v8482_v0  ;;  %380 = vst [vmem:[#allocation2 + $0x30] sm:$0xff] %v15181_v1  ;;  %381 = vst [vmem:[#allocation2] sm:$0xff] %v15181_v1  ;;  %vm391_vm2 = vcmask 1043456   ;;  %vm626_vm3 = vcmask 1046528   ;;  %vm505_vm4 = vcmask 1042432  }
   0x2   :  { %15194 = sst [smem:[#allocation76_spill]] %s15152_s1  ;;  %384 = vst [vmem:[#allocation2 + $0x8] sm:$0xff] %v15181_v1  ;;  %385 = vst [vmem:[#allocation2 + $0x20] sm:$0xff] %v15181_v1  ;;  %8158 = vmatprep.subr.mxu0 %v15181_v1  ;;  %8190 = vmatprep.mubr.msk.f32.mxu0 %vm8484_vm0, %v15181_v1  ;;  %vm564_vm5 = vcmask 1044480   ;;  %vm475_vm6 = vcmask 1041408   ;;  %vm594_vm7 = vcmask 1045504  }
   0x3   :  { %15195 = sst [smem:[#allocation77_spill]] %s15153_s0  ;;  %386 = vst [vmem:[#allocation2 + $0x28] sm:$0x3] %v15181_v1  ;;  %387 = vst [vmem:[#allocation2 + $0x38] sm:$0x3] %v15181_v1  ;;  %vm6864_vm8 = vcmask 146432  }
   0x4   :  { %15196 = sst [smem:[#allocation78_spill]] %s15154_s5  ;;  %vm7157_vm9 = vcmask 517120   ;;  %vm7169_vm10 = vcmask 1024  }
   0x5   :  { %15197 = sst [smem:[#allocation79_spill]] %s15155_s4 }
   0x6   :  { %15198 = sst [smem:[#allocation80_spill]] %s15156_s7 }
   0x7   :  { %15199 = sst [smem:[#allocation81_spill]] %s15157_s6 }
   0x8   :  { %15200 = sst [smem:[#allocation82_spill]] %s15158_s9 }
   0x9   :  { %s15201_s24 = sld [smem:[#allocation75_spill]] }
   0xa   :  { %s15202_s1 = sld [smem:[#allocation76_spill]] }
   0xb   :  { %s15203_s30 = sld [smem:[#allocation77_spill]] }
   0xc   :  { %s15204_s29 = sld [smem:[#allocation78_spill]] }
   0xd   :  { %s15232_s28 = sld [smem:[#allocation79_spill]] }
   0xe   :  { %s15278_s5 = sld [smem:[#allocation80_spill]] }
   0xf   :  { %v118_v2 = vld [vmem:[%s15201_s24 + $0x78] sm:$0xff]  ;;  %v117_v5 = vld [vmem:[%s15201_s24 + $0x70] sm:$0xff]  ;;  %v116_v7 = vld [vmem:[%s15201_s24 + $0x68] sm:$0xff]  ;;  %s15279_s26 = sld [smem:[#allocation81_spill]] }
  0x10   :  { %v8617_v3 = vld [vmem:[%s15202_s1 + $0x18] sm:$0xff]  ;;  %v8622_v4 = vld [vmem:[%s15202_s1] sm:$0xff]  ;;  %8159 = vmatpush3.msra.mxu0 %v118_v2  ;;  %v7178_v8 = vld [vmem:[%s15202_s1 + $0x28] sm:$0x3]  ;;  %s15305_s27 = sld [smem:[#allocation82_spill]] }
  0x11   :  { %435 = vperm.xlu0 %8473, %v8617_v3   ;;  %411 = vperm.xlu1 %8474, %v8622_v4   ;;  %v8633_v6 = vld [vmem:[%s15202_s1 + $0x20] sm:$0xff]  ;;  %v8652_v10 = vld [vmem:[%s15202_s1 + $0x8] sm:$0xff]  ;;  %v114_v11 = vld [vmem:[%s15201_s24 + $0x58] sm:$0xff] }
  0x12   :  { %8160 = vmatprep.subr.mxu0 %v15181_v1  ;;  %v115_v9 = vld [vmem:[%s15201_s24 + $0x60] sm:$0xff]  ;;  %v8661_v12 = vld [vmem:[%s15202_s1 + $0x48] sm:$0xff]  ;;  %v113_v13 = vld [vmem:[%s15201_s24 + $0x50] sm:$0xff] }
  0x13   :  { %8161 = vmatpush3.msra.mxu0 %v117_v5  ;;  %v8672_v14 = vld [vmem:[%s15202_s1 + $0x50] sm:$0xff]  ;;  %v112_v15 = vld [vmem:[%s15201_s24 + $0x48] sm:$0xff]  ;;  %v111_v17 = vld [vmem:[%s15201_s24 + $0x40] sm:$0xff] }
  0x14   :  { %8162 = vmatprep.subr.mxu0 %v15181_v1  ;;  %v8681_v16 = vld [vmem:[%s15202_s1 + $0x30] sm:$0xff]  ;;  %v8692_v18 = vld [vmem:[%s15202_s1 + $0x38] sm:$0xff]  ;;  %v108_v23 = vld [vmem:[%s15201_s24 + $0x28] sm:$0xff] }
  0x15   :  { %439 = vperm.xlu0 %8473, %v8633_v6   ;;  %8163 = vmatpush3.msra.mxu0 %v116_v7  ;;  %v110_v19 = vld [vmem:[%s15201_s24 + $0x38] sm:$0xff]  ;;  %v408_v20 = vld [vmem:[%s15202_s1 + $0x10] sm:$0x3]  ;;  %v7181_v24 = vld [vmem:[%s15202_s1 + $0x40] sm:$0x3] }
  0x16   :  { %443 = vperm.xlu1 %8474, %v7178_v8   ;;  %8164 = vmatprep.subr.mxu0 %v15181_v1  ;;  %v109_v21 = vld [vmem:[%s15201_s24 + $0x30] sm:$0xff]  ;;  %v7184_v22 = vld [vmem:[%s15202_s1 + $0x58] sm:$0x3]  ;;  %v107_v25 = vld [vmem:[%s15201_s24 + $0x20] sm:$0xff] }
  0x17   :  { %8165 = vmatpush3.msra.mxu0 %v115_v9  ;;  %v8723_v26 = vld [vmem:[%s15202_s1 + $0x78] sm:$0xff]  ;;  %v8732_v28 = vld [vmem:[%s15202_s1 + $0x80] sm:$0xff]  ;;  %v105_v29 = vld [vmem:[%s15201_s24 + $0x10] sm:$0xff] }
  0x18   :  { %8166 = vmatprep.subr.mxu0 %v15181_v1  ;;  %v106_v27 = vld [vmem:[%s15201_s24 + $0x18] sm:$0xff]  ;;  %v8743_v30 = vld [vmem:[%s15202_s1 + $0x60] sm:$0xff]  ;;  %v104_v31 = vld [vmem:[%s15201_s24 + $0x8] sm:$0xff] }
  0x19   :  { %416 = vperm.xlu0 %8473, %v8652_v10   ;;  %8167 = vmatpush3.msra.mxu0 %v114_v11  ;;  %v8752_v32 = vld [vmem:[%s15202_s1 + $0x68] sm:$0xff]  ;;  %v103_v33 = vld [vmem:[%s15201_s24] sm:$0xff]  ;;  %v7187_v36 = vld [vmem:[%s15202_s1 + $0x70] sm:$0x3] }
  0x1a   :  { %495 = vperm.xlu1 %8474, %v8661_v12   ;;  %8168 = vmatprep.subr.mxu0 %v15181_v1  ;;  %v76_v34 = vld [vmem:[%s15203_s30] sm:$0xff]  ;;  %v7190_v35 = vld [vmem:[%s15202_s1 + $0x88] sm:$0x3]  ;;  %v8783_v39 = vld [vmem:[%s15202_s1 + $0xb0] sm:$0xff] }
  0x1b   :  { %8169 = vmatpush3.msra.mxu0 %v113_v13  ;;  %v77_v37 = vld [vmem:[%s15203_s30 + $0x8] sm:$0xff]  ;;  %v78_v40 = vld [vmem:[%s15203_s30 + $0x10] sm:$0xff]  ;;  %v8801_v42 = vld [vmem:[%s15202_s1 + $0x98] sm:$0xff] }
  0x1c   :  { %8170 = vmatprep.subr.mxu0 %v15181_v1  ;;  %v8778_v38 = vld [vmem:[%s15202_s1 + $0xa8] sm:$0xff]  ;;  %v8796_v41 = vld [vmem:[%s15202_s1 + $0x90] sm:$0xff]  ;;  %v79_v43 = vld [vmem:[%s15203_s30 + $0x18] sm:$0xff] }
  0x1d   :  { %499 = vperm.xlu0 %8473, %v8672_v14   ;;  %8171 = vmatpush3.msra.mxu0 %v112_v15  ;;  %v7196_v44 = vld [vmem:[%s15202_s1 + $0xb8] sm:$0x3]  ;;  %v7193_v45 = vld [vmem:[%s15202_s1 + $0xa0] sm:$0x3]  ;;  %v8829_v48 = vld [vmem:[%s15202_s1 + $0xc8] sm:$0xff] }
  0x1e   :  { %465 = vperm.xlu1 %8474, %v8681_v16   ;;  %8172 = vmatprep.subr.mxu0 %v15181_v1  ;;  %v80_v46 = vld [vmem:[%s15203_s30 + $0x20] sm:$0xff]  ;;  %v81_v49 = vld [vmem:[%s15203_s30 + $0x28] sm:$0xff]  ;;  %v7199_v50 = vld [vmem:[%s15202_s1 + $0xd0] sm:$0x3] }
  0x1f   :  { %8173 = vmatpush3.msra.mxu0 %v111_v17  ;;  %v8824_v47 = vld [vmem:[%s15202_s1 + $0xc0] sm:$0xff]  ;;  %v82_v51 = vld [vmem:[%s15203_s30 + $0x30] sm:$0xff]  ;;  %v83_v52 = vld [vmem:[%s15203_s30 + $0x38] sm:$0xff] }
  0x20   :  { %8174 = vmatprep.subr.mxu0 %v15181_v1  ;;  %v7203_v53 = vld [vmem:[%s15202_s1 + $0x28] sm:$0x3]  ;;  %v84_v54 = vld [vmem:[%s15203_s30 + $0x40] sm:$0xff]  ;;  %v86_v56 = vld [vmem:[%s15203_s30 + $0x50] sm:$0xff] }
  0x21   :  { %469 = vperm.xlu0 %8473, %v8692_v18   ;;  %8175 = vmatpush3.msra.mxu0 %v110_v19  ;;  %v85_v55 = vld [vmem:[%s15203_s30 + $0x48] sm:$0xff]  ;;  %v87_v57 = vld [vmem:[%s15203_s30 + $0x58] sm:$0xff]  ;;  %v88_v58 = vld [vmem:[%s15203_s30 + $0x60] sm:$0xff] }
  0x22   :  { %421 = vperm.xlu1 %8474, %v408_v20   ;;  %8176 = vmatprep.subr.mxu0 %v15181_v1  ;;  %v1316_v59 = vld [vmem:[%s15202_s1 + $0x10] sm:$0x3]  ;;  %v7209_v60 = vld [vmem:[%s15202_s1 + $0x58] sm:$0x3]  ;;  %v89_v61 = vld [vmem:[%s15203_s30 + $0x68] sm:$0xff] }
  0x23   :  { %8177 = vmatpush3.msra.mxu0 %v109_v21  ;;  %v7206_v62 = vld [vmem:[%s15202_s1 + $0x40] sm:$0x3]  ;;  %v7215_v63 = vld [vmem:[%s15202_s1 + $0x88] sm:$0x3]  ;;  %v90_v0 = vld [vmem:[%s15203_s30 + $0x70] sm:$0xff] }
  0x24   :  { %8178 = vmatprep.subr.mxu0 %v15181_v1  ;;  %v7212_v2 = vld [vmem:[%s15202_s1 + $0x70] sm:$0x3]  ;;  %v91_v5 = vld [vmem:[%s15203_s30 + $0x78] sm:$0xff]  ;;  %v92_v7 = vld [vmem:[%s15203_s30 + $0x80] sm:$0xff] }
  0x25   :  { %503 = vperm.xlu0 %8473, %v7184_v22   ;;  %8179 = vmatpush3.msra.mxu0 %v108_v23  ;;  %v7221_v8 = vld [vmem:[%s15202_s1 + $0xb8] sm:$0x3]  ;;  %v93_v9 = vld [vmem:[%s15203_s30 + $0x88] sm:$0xff]  ;;  %v7218_v11 = vld [vmem:[%s15202_s1 + $0xa0] sm:$0x3] }
  0x26   :  { %473 = vperm.xlu1 %8474, %v7181_v24   ;;  %8180 = vmatprep.subr.mxu0 %v15181_v1  ;;  %v94_v13 = vld [vmem:[%s15203_s30 + $0x90] sm:$0xff]  ;;  %v95_v17 = vld [vmem:[%s15203_s30 + $0x98] sm:$0xff]  ;;  %v96_v19 = vld [vmem:[%s15203_s30 + $0xa0] sm:$0xff] }
  0x27   :  { %8181 = vmatpush3.msra.mxu0 %v107_v25  ;;  %v7224_v15 = vld [vmem:[%s15202_s1 + $0xd0] sm:$0x3]  ;;  %v7228_v20 = vld [vmem:[%s15202_s1 + $0x28] sm:$0x3]  ;;  %v99_v23 = vld [vmem:[%s15203_s30 + $0xb8] sm:$0xff] }
  0x28   :  { %8182 = vmatprep.subr.mxu0 %v15181_v1  ;;  %v97_v21 = vld [vmem:[%s15203_s30 + $0xa8] sm:$0xff]  ;;  %v98_v22 = vld [vmem:[%s15203_s30 + $0xb0] sm:$0xff] }
  0x29   :  { %554 = vperm.xlu0 %8473, %v8723_v26   ;;  %8183 = vmatpush3.msra.mxu0 %v106_v27  ;;  %v100_v27 = vld [vmem:[%s15203_s30 + $0xc0] sm:$0xff] }
  0x2a   :  { %558 = vperm.xlu1 %8474, %v8732_v28   ;;  %8184 = vmatprep.subr.mxu0 %v15181_v1 }
  0x2b   :  { %8185 = vmatpush3.msra.mxu0 %v105_v29 }
  0x2c   :  { %8186 = vmatprep.subr.mxu0 %v15181_v1 }
  0x2d   :  { %525 = vperm.xlu0 %8473, %v8743_v30   ;;  %8187 = vmatpush3.msra.mxu0 %v104_v31 }
  0x2e   :  { %529 = vperm.xlu1 %8474, %v8752_v32   ;;  %8188 = vmatprep.subr.mxu0 %v15181_v1 }
  0x2f   :  { %8189 = vmatpush3.msra.mxu0 %v103_v33  ;;  %v101_v33 = vld [vmem:[%s15203_s30 + $0xc8] sm:$0xff] }
  0x30   :  { %8191 = vmatmul.mubr.f32.vlgmr.msra.gmra.mxu0 %v76_v34  ;;  %8271 = vmatprep.subr.mxu0 %v15181_v1  ;;  %v2210_v34 = vld [vmem:[%s15202_s1 + $0x10] sm:$0x3] }
  0x31   :  { %562 = vperm.xlu0 %8473, %v7190_v35   ;;  %8193 = vmatprep.mubr.msk.f32.mxu0 %vm8484_vm0, %v15181_v1 }
  0x32   :  { %533 = vperm.xlu1 %8474, %v7187_v36  }
  0x34   :  { %8194 = vmatmul.mubr.f32.gmra.mxu0 %v77_v37  ;;  %v102_v37 = vld [vmem:[%s15203_s30 + $0xd0] sm:$0xff] }
  0x35   :  { %616 = vperm.xlu0 %8473, %v8778_v38   ;;  %8196 = vmatprep.mubr.msk.f32.mxu0 %vm8484_vm0, %v15181_v1 }
  0x36   :  { %620 = vperm.xlu1 %8474, %v8783_v39  }
  0x38   :  { %8197 = vmatmul.mubr.f32.gmra.mxu0 %v78_v40  ;;  %v7234_v40 = vld [vmem:[%s15202_s1 + $0x58] sm:$0x3] }
  0x39   :  { %584 = vperm.xlu0 %8473, %v8796_v41   ;;  %8199 = vmatprep.mubr.msk.f32.mxu0 %vm8484_vm0, %v15181_v1 }
  0x3a   :  { %588 = vperm.xlu1 %8474, %v8801_v42  }
  0x3c   :  { %8200 = vmatmul.mubr.f32.gmra.mxu0 %v79_v43  ;;  %v7231_v43 = vld [vmem:[%s15202_s1 + $0x40] sm:$0x3] }
  0x3d   :  { %624 = vperm.xlu0 %8473, %v7196_v44   ;;  %8202 = vmatprep.mubr.msk.f32.mxu0 %vm8484_vm0, %v15181_v1 }
  0x3e   :  { %592 = vperm.xlu1 %8474, %v7193_v45  }
  0x40   :  { %8203 = vmatmul.mubr.f32.gmra.mxu0 %v80_v46  ;;  %v7240_v46 = vld [vmem:[%s15202_s1 + $0x88] sm:$0x3] }
  0x41   :  { %647 = vperm.xlu0 %8473, %v8824_v47   ;;  %8205 = vmatprep.mubr.msk.f32.mxu0 %vm8484_vm0, %v15181_v1 }
  0x42   :  { %652 = vperm.xlu1 %8474, %v8829_v48  }
  0x44   :  { %8206 = vmatmul.mubr.f32.gmra.mxu0 %v81_v49  ;;  %v7237_v49 = vld [vmem:[%s15202_s1 + $0x70] sm:$0x3] }
  0x45   :  { %657 = vperm.xlu0 %8473, %v7199_v50   ;;  %8208 = vmatprep.mubr.msk.f32.mxu0 %vm8484_vm0, %v15181_v1 }
  0x46   :  { %1342 = vperm.xlu1 %8474, %v8617_v3  }
  0x48   :  { %8209 = vmatmul.mubr.f32.gmra.mxu0 %v82_v51 }
  0x49   :  { %1346 = vperm.xlu0 %8473, %v8633_v6   ;;  %8211 = vmatprep.mubr.msk.f32.mxu0 %vm8484_vm0, %v15181_v1 }
  0x4a   :  { %1319 = vperm.xlu1 %8474, %v8622_v4  }
  0x4c   :  { %8212 = vmatmul.mubr.f32.gmra.mxu0 %v83_v52 }
  0x4d   :  { %1350 = vperm.xlu0 %8473, %v7203_v53   ;;  %8214 = vmatprep.mubr.msk.f32.mxu0 %vm8484_vm0, %v15181_v1 }
  0x4e   :  { %1398 = vperm.xlu1 %8474, %v8661_v12  }
  0x50   :  { %8215 = vmatmul.mubr.f32.gmra.mxu0 %v84_v54 }
  0x51   :  { %1402 = vperm.xlu0 %8473, %v8672_v14   ;;  %8217 = vmatprep.mubr.msk.f32.mxu0 %vm8484_vm0, %v15181_v1 }
  0x52   :  { %1370 = vperm.xlu1 %8474, %v8681_v16  }
  0x54   :  { %8218 = vmatmul.mubr.f32.gmra.mxu0 %v85_v55 }
  0x55   :  { %1374 = vperm.xlu0 %8473, %v8692_v18   ;;  %8220 = vmatprep.mubr.msk.f32.mxu0 %vm8484_vm0, %v15181_v1 }
  0x56   :  { %1324 = vperm.xlu1 %8474, %v8652_v10  }
  0x58   :  { %8221 = vmatmul.mubr.f32.gmra.mxu0 %v86_v56  ;;  %v7246_v56 = vld [vmem:[%s15202_s1 + $0xb8] sm:$0x3] }
  0x59   :  { %1454 = vperm.xlu0 %8473, %v8723_v26   ;;  %8223 = vmatprep.mubr.msk.f32.mxu0 %vm8484_vm0, %v15181_v1 }
  0x5a   :  { %1458 = vperm.xlu1 %8474, %v8732_v28  }
  0x5c   :  { %8224 = vmatmul.mubr.f32.gmra.mxu0 %v87_v57  ;;  %v7243_v57 = vld [vmem:[%s15202_s1 + $0xa0] sm:$0x3] }
  0x5d   :  { %1426 = vperm.xlu0 %8473, %v8743_v30   ;;  %8226 = vmatprep.mubr.msk.f32.mxu0 %vm8484_vm0, %v15181_v1 }
  0x5e   :  { %1430 = vperm.xlu1 %8474, %v8752_v32  }
  0x60   :  { %8227 = vmatmul.mubr.f32.gmra.mxu0 %v88_v58 }
  0x61   :  { %1329 = vperm.xlu0 %8473, %v1316_v59   ;;  %8229 = vmatprep.mubr.msk.f32.mxu0 %vm8484_vm0, %v15181_v1 }
  0x62   :  { %1406 = vperm.xlu1 %8474, %v7209_v60  }
  0x64   :  { %8230 = vmatmul.mubr.f32.gmra.mxu0 %v89_v61 }
  0x65   :  { %1378 = vperm.xlu0 %8473, %v7206_v62   ;;  %8232 = vmatprep.mubr.msk.f32.mxu0 %vm8484_vm0, %v15181_v1  ;;  %v7249_v62 = vld [vmem:[%s15202_s1 + $0xd0] sm:$0x3] }
  0x66   :  { %1462 = vperm.xlu1 %8474, %v7215_v63  }
  0x68   :  { %8233 = vmatmul.mubr.f32.gmra.mxu0 %v90_v0 }
  0x69   :  { %1434 = vperm.xlu0 %8473, %v7212_v2   ;;  %8235 = vmatprep.mubr.msk.f32.mxu0 %vm8484_vm0, %v15181_v1 }
  0x6a   :  { %1512 = vperm.xlu1 %8474, %v8778_v38  }
  0x6c   :  { %8236 = vmatmul.mubr.f32.gmra.mxu0 %v91_v5 }
  0x6d   :  { %1516 = vperm.xlu0 %8473, %v8783_v39   ;;  %8238 = vmatprep.mubr.msk.f32.mxu0 %vm8484_vm0, %v15181_v1 }
  0x6e   :  { %1482 = vperm.xlu1 %8474, %v8796_v41  }
  0x70   :  { %8239 = vmatmul.mubr.f32.gmra.mxu0 %v92_v7  ;;  %v7253_v7 = vld [vmem:[%s15202_s1 + $0x28] sm:$0x3] }
  0x71   :  { %1486 = vperm.xlu0 %8473, %v8801_v42   ;;  %8241 = vmatprep.mubr.msk.f32.mxu0 %vm8484_vm0, %v15181_v1 }
  0x72   :  { %1520 = vperm.xlu1 %8474, %v7221_v8  }
  0x74   :  { %8242 = vmatmul.mubr.f32.gmra.mxu0 %v93_v9 }
  0x75   :  { %1490 = vperm.xlu0 %8473, %v7218_v11   ;;  %8244 = vmatprep.mubr.msk.f32.mxu0 %vm8484_vm0, %v15181_v1 }
  0x76   :  { %1541 = vperm.xlu1 %8474, %v8824_v47  }
  0x78   :  { %8245 = vmatmul.mubr.f32.gmra.mxu0 %v94_v13 }
  0x79   :  { %1546 = vperm.xlu0 %8473, %v8829_v48   ;;  %8247 = vmatprep.mubr.msk.f32.mxu0 %vm8484_vm0, %v15181_v1 }
  0x7a   :  { %1551 = vperm.xlu1 %8474, %v7224_v15  }
  0x7c   :  { %8248 = vmatmul.mubr.f32.gmra.mxu0 %v95_v17 }
  0x7d   :  { %2236 = vperm.xlu0 %8473, %v8617_v3   ;;  %8250 = vmatprep.mubr.msk.f32.mxu0 %vm8484_vm0, %v15181_v1 }
  0x7e   :  { %2240 = vperm.xlu1 %8474, %v8633_v6  }
  0x80   :  { %8251 = vmatmul.mubr.f32.gmra.mxu0 %v96_v19  ;;  %v886_v19 = vld [vmem:[%s15204_s29 + $0x478] sm:$0xff] }
  0x81   :  { %2213 = vperm.xlu0 %8473, %v8622_v4   ;;  %8253 = vmatprep.mubr.msk.f32.mxu0 %vm8484_vm0, %v15181_v1 }
  0x82   :  { %2244 = vperm.xlu1 %8474, %v7228_v20   ;;  %8272 = vmatpush3.msra.mxu0 %v886_v19  ;;  %v756_v19 = vld [vmem:[%s15204_s29 + $0x68] sm:$0xff] }
  0x83   :  { %8273 = vmatprep.subr.mxu0 %v15181_v1 }
  0x84   :  { %8254 = vmatmul.mubr.f32.gmra.mxu0 %v97_v21 }
  0x85   :  { %2292 = vperm.xlu0 %8473, %v8661_v12   ;;  %8256 = vmatprep.mubr.msk.f32.mxu0 %vm8484_vm0, %v15181_v1 }
  0x86   :  { %2296 = vperm.xlu1 %8474, %v8672_v14  }
  0x88   :  { %8257 = vmatmul.mubr.f32.gmra.mxu0 %v98_v22  ;;  %v885_v22 = vld [vmem:[%s15204_s29 + $0x470] sm:$0xff] }
  0x89   :  { %2264 = vperm.xlu0 %8473, %v8681_v16   ;;  %8259 = vmatprep.mubr.msk.f32.mxu0 %vm8484_vm0, %v15181_v1 }
  0x8a   :  { %2268 = vperm.xlu1 %8474, %v8692_v18   ;;  %8274 = vmatpush3.msra.mxu0 %v885_v22  ;;  %v882_v22 = vld [vmem:[%s15204_s29 + $0x458] sm:$0xff] }
  0x8b   :  { %8275 = vmatprep.subr.mxu0 %v15181_v1 }
  0x8c   :  { %v8986_v24 = vpop.permute.xlu0 %435  ;;  %v8988_v25 = vpop.permute.xlu1 %411  ;;  %8260 = vmatmul.mubr.f32.gmra.mxu0 %v99_v23  ;;  %v884_v23 = vld [vmem:[%s15204_s29 + $0x468] sm:$0xff] }
  0x8d   :  { %2218 = vperm.xlu0 %8473, %v8652_v10   ;;  %8262 = vmatprep.mubr.msk.f32.mxu0 %vm8484_vm0, %v15181_v1 }
  0x8e   :  { %2348 = vperm.xlu1 %8474, %v8723_v26   ;;  %8276 = vmatpush3.msra.mxu0 %v884_v23  ;;  %v7256_v23 = vld [vmem:[%s15202_s1 + $0x40] sm:$0x3] }
  0x8f   :  { %8277 = vmatprep.subr.mxu0 %v15181_v1 }
  0x90   :  { %v8997_v29 = vpop.permute.xlu0 %439  ;;  %8263 = vmatmul.mubr.f32.gmra.mxu0 %v100_v27 }
  0x91   :  { %v8999_v31 = vpop.permute.xlu1 %443  ;;  %2352 = vperm.xlu0 %8473, %v8732_v28   ;;  %8265 = vmatprep.mubr.msk.f32.mxu0 %vm8484_vm0, %v15181_v1 }
  0x92   :  { %2320 = vperm.xlu1 %8474, %v8743_v30  }
  0x94   :  { %v9011_v35 = vpop.permute.xlu0 %416  ;;  %8266 = vmatmul.mubr.f32.gmra.mxu0 %v101_v33  ;;  %v774_v33 = vld [vmem:[%s15204_s29 + $0xf8] sm:$0xff] }
  0x95   :  { %v9013_v36 = vpop.permute.xlu1 %495  ;;  %2324 = vperm.xlu0 %8473, %v8752_v32   ;;  %8268 = vmatprep.mubr.msk.f32.mxu0 %vm8484_vm0, %v15181_v1 }
  0x96   :  { %2223 = vperm.xlu1 %8474, %v2210_v34   ;;  %7374 = vmatprep.subr.mxu1 %v774_v33  ;;  %v771_v33 = vld [vmem:[%s15204_s29 + $0xe0] sm:$0xff] }
  0x98   :  { %v9027_v44 = vpop.permute.xlu0 %499  ;;  %8269 = vmatmul.mubr.f32.gmra.mxu0 %v102_v37  ;;  %v758_v37 = vld [vmem:[%s15204_s29 + $0x78] sm:$0xff] }
  0x99   :  { %v9029_v45 = vpop.permute.xlu1 %465  ;;  %2300 = vperm.xlu0 %8473, %v7234_v40   ;;  %8303 = vmatprep.mubr.msk.f32.mxu0 %vm8484_vm0, %v15181_v1  ;;  %v3104_v40 = vld [vmem:[%s15202_s1 + $0x10] sm:$0x3] }
  0x9a   :  { %2272 = vperm.xlu1 %8474, %v7231_v43   ;;  %7375 = vmatpush3.msra.mxu1 %v758_v37  ;;  %v773_v43 = vld [vmem:[%s15204_s29 + $0xf0] sm:$0xff]  ;;  %v7265_v37 = vld [vmem:[%s15202_s1 + $0x88] sm:$0x3] }
  0x9b   :  { %7376 = vmatprep.subr.mxu1 %v773_v43 }
  0x9c   :  { %v9039_v50 = vpop.permute.xlu0 %469 }
  0x9d   :  { %v9041_v51 = vpop.permute.xlu1 %421  ;;  %2356 = vperm.xlu0 %8473, %v7240_v46   ;;  %v883_v46 = vld [vmem:[%s15204_s29 + $0x460] sm:$0xff] }
  0x9e   :  { %2328 = vperm.xlu1 %8474, %v7237_v49   ;;  %v7259_v49 = vld [vmem:[%s15202_s1 + $0x58] sm:$0x3]  ;;  %8278 = vmatpush3.msra.mxu0 %v883_v46 }
  0x9f   :  { %8279 = vmatprep.subr.mxu0 %v15181_v1  ;;  %v770_v46 = vld [vmem:[%s15204_s29 + $0xd8] sm:$0xff] }
  0xa0   :  { %v9043_v52 = vpop.permute.xlu0 %503  ;;  %8280 = vmatpush3.msra.mxu0 %v882_v22  ;;  %v769_v22 = vld [vmem:[%s15204_s29 + $0xd0] sm:$0xff] }
  0xa1   :  { %v9045_v53 = vpop.permute.xlu1 %473  ;;  %2406 = vperm.xlu0 %8473, %v8778_v38   ;;  %8281 = vmatprep.subr.mxu0 %v15181_v1 }
  0xa2   :  { %2410 = vperm.xlu1 %8474, %v8783_v39  }
  0xa4   :  { %v9049_v54 = vpop.permute.xlu0 %554 }
  0xa5   :  { %v9051_v55 = vpop.permute.xlu1 %558  ;;  %2376 = vperm.xlu0 %8473, %v8796_v41  }
  0xa6   :  { %2380 = vperm.xlu1 %8474, %v8801_v42  }
  0xa8   :  { %v9061_v58 = vpop.permute.xlu0 %525 }
  0xa9   :  { %v9063_v59 = vpop.permute.xlu1 %529  ;;  %2414 = vperm.xlu0 %8473, %v7246_v56   ;;  %v757_v56 = vld [vmem:[%s15204_s29 + $0x70] sm:$0xff] }
  0xaa   :  { %2384 = vperm.xlu1 %8474, %v7243_v57   ;;  %7377 = vmatpush3.msra.mxu1 %v757_v56 }
  0xac   :  { %v9065_v60 = vpop.permute.xlu0 %562 }
  0xad   :  { %v9067_v61 = vpop.permute.xlu1 %533  ;;  %2435 = vperm.xlu0 %8473, %v8824_v47  }
  0xae   :  { %2440 = vperm.xlu1 %8474, %v8829_v48  }
  0xb0   :  { %v9074_v63 = vpop.permute.xlu0 %616 }
  0xb1   :  { %v9076_v0 = vpop.permute.xlu1 %620  ;;  %2445 = vperm.xlu0 %8473, %v7249_v62   ;;  %v772_v62 = vld [vmem:[%s15204_s29 + $0xe8] sm:$0xff] }
  0xb2   :  { %3130 = vperm.xlu1 %8474, %v8617_v3   ;;  %7378 = vmatprep.subr.mxu1 %v772_v62  ;;  %v754_v62 = vld [vmem:[%s15204_s29 + $0x58] sm:$0xff] }
  0xb3   :  { %7379 = vmatpush3.msra.mxu1 %v756_v19  ;;  %v7262_v19 = vld [vmem:[%s15202_s1 + $0x70] sm:$0x3] }
  0xb4   :  { %v9079_v2 = vpop.permute.xlu0 %584  ;;  %7380 = vmatprep.subr.mxu1 %v771_v33  ;;  %v753_v33 = vld [vmem:[%s15204_s29 + $0x50] sm:$0xff] }
  0xb5   :  { %v9081_v5 = vpop.permute.xlu1 %588  ;;  %3134 = vperm.xlu0 %8473, %v8633_v6  }
  0xb6   :  { %3107 = vperm.xlu1 %8474, %v8622_v4  }
  0xb8   :  { %v9088_v8 = vpop.permute.xlu0 %624 }
  0xb9   :  { %v9090_v9 = vpop.permute.xlu1 %592  ;;  %3138 = vperm.xlu0 %8473, %v7253_v7  }
  0xba   :  { %3186 = vperm.xlu1 %8474, %v8661_v12  }
  0xbc   :  { %v9093_v11 = vpop.permute.xlu0 %647 }
  0xbd   :  { %v9095_v13 = vpop.permute.xlu1 %652  ;;  %3190 = vperm.xlu0 %8473, %v8672_v14  }
  0xbe   :  { %3158 = vperm.xlu1 %8474, %v8681_v16  }
  0xc0   :  { %v9099_v15 = vpop.permute.xlu0 %657 }
  0xc1   :  { %v9101_v17 = vpop.permute.xlu1 %1342  ;;  %3162 = vperm.xlu0 %8473, %v8692_v18  }
  0xc2   :  { %3112 = vperm.xlu1 %8474, %v8652_v10  }
  0xc4   :  { %v9108_v20 = vpop.permute.xlu0 %1346 }
  0xc5   :  { %v9110_v21 = vpop.permute.xlu1 %1319  ;;  %3242 = vperm.xlu0 %8473, %v8723_v26  }
  0xc6   :  { %15205 = vst [vmem:[#allocation4_spill] sm:$0xff] %v9110_v21  ;;  %3246 = vperm.xlu1 %8474, %v8732_v28  }
  0xc8   :  { %v9122_v27 = vpop.permute.xlu0 %1350 }
  0xc9   :  { %15206 = vst [vmem:[#allocation5_spill] sm:$0xff] %v9122_v27  ;;  %v9127_v34 = vpop.permute.xlu1 %1398  ;;  %3214 = vperm.xlu0 %8473, %v8743_v30  }
  0xca   :  { %15207 = vst [vmem:[#allocation6_spill] sm:$0xff] %v9127_v34  ;;  %3218 = vperm.xlu1 %8474, %v8752_v32  }
  0xcc   :  { %v9150_v57 = vpop.permute.xlu0 %1402 }
  0xcd   :  { %15208 = vst [vmem:[#allocation7_spill] sm:$0xff] %v9150_v57  ;;  %v9155_v7 = vpop.permute.xlu1 %1370  ;;  %3117 = vperm.xlu0 %8473, %v3104_v40   ;;  %v755_v40 = vld [vmem:[%s15204_s29 + $0x60] sm:$0xff] }
  0xce   :  { %15209 = vst [vmem:[#allocation8_spill] sm:$0xff] %v9155_v7  ;;  %3194 = vperm.xlu1 %8474, %v7259_v49   ;;  %7381 = vmatpush3.msra.mxu1 %v755_v40  ;;  %v881_v49 = vld [vmem:[%s15204_s29 + $0x450] sm:$0xff]  ;;  %v768_v40 = vld [vmem:[%s15204_s29 + $0xc8] sm:$0xff] }
  0xcf   :  { %7382 = vmatprep.subr.mxu1 %v770_v46  ;;  %8282 = vmatpush3.msra.mxu0 %v881_v49  ;;  %v879_v49 = vld [vmem:[%s15204_s29 + $0x440] sm:$0xff] }
  0xd0   :  { %v9176_v43 = vpop.permute.xlu0 %1374  ;;  %7383 = vmatpush3.msra.mxu1 %v754_v62  ;;  %8283 = vmatprep.subr.mxu0 %v15181_v1  ;;  %v752_v62 = vld [vmem:[%s15204_s29 + $0x48] sm:$0xff] }
  0xd1   :  { %15210 = vst [vmem:[#allocation9_spill] sm:$0xff] %v9176_v43  ;;  %v9184_v56 = vpop.permute.xlu1 %1324  ;;  %3166 = vperm.xlu0 %8473, %v7256_v23   ;;  %v880_v23 = vld [vmem:[%s15204_s29 + $0x448] sm:$0xff]  ;;  %7384 = vmatprep.subr.mxu1 %v769_v22  ;;  %v767_v22 = vld [vmem:[%s15204_s29 + $0xc0] sm:$0xff] }
  0xd2   :  { %15211 = vst [vmem:[#allocation10_spill] sm:$0xff] %v9184_v56  ;;  %3250 = vperm.xlu1 %8474, %v7265_v37   ;;  %8284 = vmatpush3.msra.mxu0 %v880_v23  ;;  %v878_v23 = vld [vmem:[%s15204_s29 + $0x438] sm:$0xff]  ;;  %v751_v56 = vld [vmem:[%s15204_s29 + $0x40] sm:$0xff] }
  0xd3   :  { %7385 = vmatpush3.msra.mxu1 %v753_v33  ;;  %8285 = vmatprep.subr.mxu0 %v15181_v1 }
  0xd4   :  { %v9202_v37 = vpop.permute.xlu0 %1454  ;;  %7386 = vmatprep.subr.mxu1 %v768_v40  ;;  %8286 = vmatpush3.msra.mxu0 %v879_v49  ;;  %v766_v40 = vld [vmem:[%s15204_s29 + $0xb8] sm:$0xff]  ;;  %v877_v49 = vld [vmem:[%s15204_s29 + $0x430] sm:$0xff] }
  0xd5   :  { %15212 = vst [vmem:[#allocation11_spill] sm:$0xff] %v9202_v37  ;;  %v9208_v46 = vpop.permute.xlu1 %1458  ;;  %3222 = vperm.xlu0 %8473, %v7262_v19   ;;  %7387 = vmatpush3.msra.mxu1 %v752_v62  ;;  %v7271_v62 = vld [vmem:[%s15202_s1 + $0xb8] sm:$0x3]  ;;  %v748_v37 = vld [vmem:[%s15204_s29 + $0x28] sm:$0xff] }
  0xd6   :  { %15213 = vst [vmem:[#allocation12_spill] sm:$0xff] %v9208_v46  ;;  %3300 = vperm.xlu1 %8474, %v8778_v38   ;;  %8287 = vmatprep.subr.mxu0 %v15181_v1  ;;  %v750_v1 = vld [vmem:[%s15204_s29 + $0x38] sm:$0xff] }
  0xd7   :  { %7388 = vmatprep.subr.mxu1 %v767_v22  ;;  %8288 = vmatpush3.msra.mxu0 %v878_v23  ;;  %v765_v22 = vld [vmem:[%s15204_s29 + $0xb0] sm:$0xff] }
  0xd8   :  { %v9221_v19 = vpop.permute.xlu0 %1426  ;;  %7389 = vmatpush3.msra.mxu1 %v751_v56  ;;  %v876_v56 = vld [vmem:[%s15204_s29 + $0x428] sm:$0xff]  ;;  %v749_v23 = vld [vmem:[%s15204_s29 + $0x30] sm:$0xff] }
  0xd9   :  { %15214 = vst [vmem:[#allocation13_spill] sm:$0xff] %v9221_v19  ;;  %v9229_v33 = vpop.permute.xlu1 %1430  ;;  %3304 = vperm.xlu0 %8473, %v8783_v39   ;;  %v15217_v19 = vmov 0.0   ;;  %7390 = vmatprep.subr.mxu1 %v766_v40  ;;  %v7268_v40 = vld [vmem:[%s15202_s1 + $0xa0] sm:$0x3] }
  0xda   :  { %15215 = vst [vmem:[#allocation14_spill] sm:$0xff] %v9229_v33  ;;  %3270 = vperm.xlu1 %8474, %v8796_v41   ;;  %8289 = vmatprep.subr.mxu0 %v15217_v19 }
  0xdb   :  { %8290 = vmatpush3.msra.mxu0 %v877_v49  ;;  %7391 = vmatpush3.msra.mxu1 %v750_v1  ;;  %v764_v49 = vld [vmem:[%s15204_s29 + $0xa8] sm:$0xff] }
  0xdc   :  { %v9246_v33 = vpop.permute.xlu0 %1329  ;;  %8291 = vmatprep.subr.mxu0 %v15217_v19  ;;  %7392 = vmatprep.subr.mxu1 %v765_v22  ;;  %v763_v22 = vld [vmem:[%s15204_s29 + $0xa0] sm:$0xff] }
  0xdd   :  { %15216 = vst [vmem:[#allocation15_spill] sm:$0xff] %v9246_v33  ;;  %v9252_v46 = vpop.permute.xlu1 %1406  ;;  %3274 = vperm.xlu0 %8473, %v8801_v42   ;;  %8292 = vmatpush3.msra.mxu0 %v876_v56  ;;  %v874_v56 = vld [vmem:[%s15204_s29 + $0x418] sm:$0xff] }
  0xde   :  { %15218 = vst [vmem:[#allocation16_spill] sm:$0xff] %v9252_v46  ;;  %3308 = vperm.xlu1 %8474, %v7271_v62   ;;  %7393 = vmatpush3.msra.mxu1 %v749_v23  ;;  %v875_v62 = vld [vmem:[%s15204_s29 + $0x420] sm:$0xff]  ;;  %v7274_v23 = vld [vmem:[%s15202_s1 + $0xd0] sm:$0x3]  ;;  %v7318_v46 = vld [vmem:[%s15202_s1 + $0xa8] sm:$0xff] }
  0xdf   :  { %8293 = vmatprep.subr.mxu0 %v15217_v19  ;;  %7394 = vmatprep.subr.mxu1 %v764_v49  ;;  %v762_v49 = vld [vmem:[%s15204_s29 + $0x98] sm:$0xff] }
  0xe0   :  { %v9268_v33 = vpop.permute.xlu0 %1378  ;;  %8294 = vmatpush3.msra.mxu0 %v875_v62  ;;  %7395 = vmatpush3.msra.mxu1 %v748_v37  ;;  %v873_v37 = vld [vmem:[%s15204_s29 + $0x410] sm:$0xff]  ;;  %v746_v62 = vld [vmem:[%s15204_s29 + $0x18] sm:$0xff] }
  0xe1   :  { %15219 = vst [vmem:[#allocation17_spill] sm:$0xff] %v9268_v33  ;;  %v9276_v1 = vpop.permute.xlu1 %1462  ;;  %3278 = vperm.xlu0 %8473, %v7268_v40   ;;  %v747_v40 = vld [vmem:[%s15204_s29 + $0x20] sm:$0xff]  ;;  %8295 = vmatprep.subr.mxu0 %v15217_v19 }
  0xe2   :  { %15220 = vst [vmem:[#allocation18_spill] sm:$0xff] %v9276_v1  ;;  %3329 = vperm.xlu1 %8474, %v8824_v47   ;;  %7396 = vmatprep.subr.mxu1 %v763_v22  ;;  %v761_v22 = vld [vmem:[%s15204_s29 + $0x90] sm:$0xff] }
  0xe3   :  { %8296 = vmatpush3.msra.mxu0 %v874_v56  ;;  %7397 = vmatpush3.msra.mxu1 %v747_v40  ;;  %v745_v56 = vld [vmem:[%s15204_s29 + $0x10] sm:$0xff]  ;;  %v760_v40 = vld [vmem:[%s15204_s29 + $0x88] sm:$0xff] }
  0xe4   :  { %v9292_v1 = vpop.permute.xlu0 %1434  ;;  %8297 = vmatprep.subr.mxu0 %v15217_v19  ;;  %7398 = vmatprep.subr.mxu1 %v762_v49  ;;  %v871_v49 = vld [vmem:[%s15204_s29 + $0x400] sm:$0xff] }
  0xe5   :  { %15221 = vst [vmem:[#allocation19_spill] sm:$0xff] %v9292_v1  ;;  %v9298_v21 = vpop.permute.xlu1 %1512  ;;  %3334 = vperm.xlu0 %8473, %v8829_v48   ;;  %8298 = vmatpush3.msra.mxu0 %v873_v37  ;;  %v872_v48 = vld [vmem:[%s15204_s29 + $0x408] sm:$0xff] }
  0xe6   :  { %15222 = vst [vmem:[#allocation20_spill] sm:$0xff] %v9298_v21  ;;  %3339 = vperm.xlu1 %8474, %v7274_v23   ;;  %7399 = vmatpush3.msra.mxu1 %v746_v62  ;;  %v744_v37 = vld [vmem:[%s15204_s29 + $0x8] sm:$0xff] }
  0xe7   :  { %8299 = vmatprep.subr.mxu0 %v15217_v19  ;;  %7400 = vmatprep.subr.mxu1 %v761_v22  ;;  %v743_v22 = vld [vmem:[%s15204_s29] sm:$0xff] }
  0xe8   :  { %v9311_v1 = vpop.permute.xlu0 %1516  ;;  %8300 = vmatpush3.msra.mxu0 %v872_v48  ;;  %7401 = vmatpush3.msra.mxu1 %v745_v56 }
  0xe9   :  { %15223 = vst [vmem:[#allocation21_spill] sm:$0xff] %v9311_v1  ;;  %v9319_v23 = vpop.permute.xlu1 %1482  ;;  %4024 = vperm.xlu0 %8473, %v8617_v3   ;;  %8301 = vmatprep.subr.mxu0 %v15217_v19  ;;  %v806_v19 = vld [vmem:[%s15204_s29 + $0x1f8] sm:$0xff] }
  0xea   :  { %15224 = vst [vmem:[#allocation22_spill] sm:$0xff] %v9319_v23  ;;  %4028 = vperm.xlu1 %8474, %v8633_v6   ;;  %7402 = vmatprep.subr.mxu1 %v760_v40  ;;  %v759_v6 = vld [vmem:[%s15204_s29 + $0x80] sm:$0xff] }
  0xeb   :  { %8302 = vmatpush3.msra.mxu0 %v871_v49  ;;  %7403 = vmatpush3.msra.mxu1 %v744_v37 }
  0xec   :  { %v9333_v3 = vpop.permute.xlu0 %1486  ;;  %7404 = vmatprep.subr.mxu1 %v759_v6 }
  0xed   :  { %15225 = vst [vmem:[#allocation23_spill] sm:$0xff] %v9333_v3  ;;  %v9339_v62 = vpop.permute.xlu1 %1520  ;;  %4001 = vperm.xlu0 %8473, %v8622_v4   ;;  %7405 = vmatpush3.msra.mxu1 %v743_v22 }
  0xee   :  { %15226 = vst [vmem:[#allocation24_spill] sm:$0xff] %v9339_v62  ;;  %4080 = vperm.xlu1 %8474, %v8661_v12   ;;  %7415 = vmatprep.subr.mxu1 %v806_v19  ;;  %v7278_v12 = vld [vmem:[%s15202_s1 + $0x28] sm:$0x3] }
  0xf0   :  { %v9349_v48 = vpop.permute.xlu0 %1490  ;;  %v192_v40 = vpop.f32.mrf.mxu0 }
  0xf1   :  { %15227 = vst [vmem:[#allocation25_spill] sm:$0xff] %v9349_v48  ;;  %v9351_v56 = vpop.permute.xlu1 %1541  ;;  %4084 = vperm.xlu0 %8473, %v8672_v14   ;;  %v9368_v14 = vld [vmem:[%s15232_s28] ss:$0 sm:$0xff] }
  0xf2   :  { %15228 = vst [vmem:[#allocation26_spill] sm:$0xff] %v9351_v56  ;;  %4052 = vperm.xlu1 %8474, %v8681_v16   ;;  %v8192_v4 = vpop.f32.mrf.mxu0 }
  0xf4   :  { %v9358_v49 = vpop.permute.xlu0 %1546  ;;  %v197_v6 = vpop.f32.mrf.mxu0 }
  0xf5   :  { %15229 = vst [vmem:[#allocation27_spill] sm:$0xff] %v9358_v49  ;;  %v9360_v37 = vpop.permute.xlu1 %1551  ;;  %4056 = vperm.xlu0 %8473, %v8692_v18  }
  0xf6   :  { %15230 = vst [vmem:[#allocation28_spill] sm:$0xff] %v9360_v37  ;;  %4032 = vperm.xlu1 %8474, %v7278_v12   ;;  %v8195_v22 = vpop.f32.mrf.mxu0  ;;  %v193_v37 = vadd.f32 %v9368_v14, %v192_v40 }
  0xf8   :  { %v9363_v56 = vpop.permute.xlu0 %2236  ;;  %v202_v19 = vpop.f32.mrf.mxu0 }
  0xf9   :  { %15231 = vst [vmem:[#allocation29_spill] sm:$0xff] %v9363_v56  ;;  %v9370_v16 = vpop.permute.xlu1 %2240  ;;  %4006 = vperm.xlu0 %8473, %v8652_v10   ;;  %v3998_v10 = vld [vmem:[%s15202_s1 + $0x10] sm:$0x3] }
  0xfa   :  { %15233 = vst [vmem:[#allocation30_spill] sm:$0xff] %v9370_v16  ;;  %4136 = vperm.xlu1 %8474, %v8723_v26   ;;  %v8198_v4 = vpop.f32.mrf.mxu0  ;;  %v326_v26 = vmax.f32 %v193_v37, 0.0 }
  0xfb   :  { %v198_v4 = vadd.f32 %v9368_v14, %v197_v6 }
  0xfc   :  { %v9375_v18 = vpop.permute.xlu0 %2213  ;;  %v207_v22 = vpop.f32.mrf.mxu0 }
  0xfd   :  { %15234 = vst [vmem:[#allocation31_spill] sm:$0xff] %v9375_v18  ;;  %v9377_v12 = vpop.permute.xlu1 %2244  ;;  %4140 = vperm.xlu0 %8473, %v8732_v28   ;;  %v208_v56 = vadd.f32 %v9368_v14, %v207_v22  ;;  %v327_v6 = vmax.f32 %v198_v4, 0.0  ;;  %v203_v22 = vadd.f32 %v9368_v14, %v202_v19  ;;  %v7287_v19 = vld [vmem:[%s15202_s1 + $0x70] sm:$0x3] }
  0xfe   :  { %15235 = vst [vmem:[#allocation32_spill] sm:$0xff] %v9377_v12  ;;  %4108 = vperm.xlu1 %8474, %v8743_v30   ;;  %v8201_v16 = vpop.f32.mrf.mxu0 }
  0xff   :  { %v329_v40 = vmax.f32 %v208_v56, 0.0  ;;  %v7284_v16 = vld [vmem:[%s15202_s1 + $0x58] sm:$0x3]  ;;  %v7281_v56 = vld [vmem:[%s15202_s1 + $0x40] sm:$0x3]  ;;  %v328_v4 = vmax.f32 %v203_v22, 0.0 }
 0x100   :  { %v9386_v49 = vpop.permute.xlu0 %2292  ;;  %v212_v12 = vpop.f32.mrf.mxu0 }
 0x101   :  { %15236 = vst [vmem:[#allocation33_spill] sm:$0xff] %v9386_v49  ;;  %v9388_v18 = vpop.permute.xlu1 %2296  ;;  %4112 = vperm.xlu0 %8473, %v8752_v32   ;;  %v9391_v28 = vmax.f32 %v326_v26, %v329_v40  ;;  %v213_v30 = vadd.f32 %v9368_v14, %v212_v12  ;;  %v7290_v40 = vld [vmem:[%s15202_s1 + $0x88] sm:$0x3] }
 0x102   :  { %15237 = vst [vmem:[#allocation34_spill] sm:$0xff] %v9388_v18  ;;  %4011 = vperm.xlu1 %8474, %v3998_v10   ;;  %v8204_v37 = vpop.f32.mrf.mxu0 }
 0x103   :  { %v330_v18 = vmax.f32 %v213_v30, 0.0 }
 0x104   :  { %v9401_v49 = vpop.permute.xlu0 %2264  ;;  %v217_v26 = vpop.f32.mrf.mxu0 }
 0x105   :  { %15238 = vst [vmem:[#allocation35_spill] sm:$0xff] %v9401_v49  ;;  %v9403_v32 = vpop.permute.xlu1 %2268  ;;  %4088 = vperm.xlu0 %8473, %v7284_v16   ;;  %v9405_v12 = vmax.f32 %v327_v6, %v330_v18  ;;  %v218_v10 = vadd.f32 %v9368_v14, %v217_v26 }
 0x106   :  { %15239 = vst [vmem:[#allocation36_spill] sm:$0xff] %v9403_v32  ;;  %4060 = vperm.xlu1 %8474, %v7281_v56   ;;  %v8207_v37 = vpop.f32.mrf.mxu0 }
 0x107   :  { %v331_v30 = vmax.f32 %v218_v10, 0.0 }
 0x108   :  { %v9414_v49 = vpop.permute.xlu0 %2218  ;;  %v9418_v18 = vpop.f32.mrf.mxu0 }
 0x109   :  { %15240 = vst [vmem:[#allocation37_spill] sm:$0xff] %v9414_v49  ;;  %v9416_v32 = vpop.permute.xlu1 %2348  ;;  %4144 = vperm.xlu0 %8473, %v7290_v40   ;;  %v9420_v16 = vmax.f32 %v328_v4, %v331_v30  ;;  %v7296_v4 = vld [vmem:[%s15202_s1 + $0xb8] sm:$0x3] }
 0x10a   :  { %15241 = vst [vmem:[#allocation38_spill] sm:$0xff] %v9416_v32  ;;  %4116 = vperm.xlu1 %8474, %v7287_v19   ;;  %v8210_v56 = vpop.f32.mrf.mxu0 }
 0x10c   :  { %v9422_v6 = vpop.permute.xlu0 %2352  ;;  %v9426_v37 = vpop.f32.mrf.mxu0 }
 0x10d   :  { %15242 = vst [vmem:[#allocation39_spill] sm:$0xff] %v9422_v6  ;;  %v9424_v26 = vpop.permute.xlu1 %2320  ;;  %4194 = vperm.xlu0 %8473, %v8778_v38  }
 0x10e   :  { %15243 = vst [vmem:[#allocation40_spill] sm:$0xff] %v9424_v26  ;;  %4198 = vperm.xlu1 %8474, %v8783_v39   ;;  %v8213_v22 = vpop.f32.mrf.mxu0 }
 0x110   :  { %v9430_v10 = vpop.permute.xlu0 %2324  ;;  %v9434_v40 = vpop.f32.mrf.mxu0 }
 0x111   :  { %15244 = vst [vmem:[#allocation41_spill] sm:$0xff] %v9430_v10  ;;  %v9432_v49 = vpop.permute.xlu1 %2223  ;;  %4164 = vperm.xlu0 %8473, %v8796_v41   ;;  %v7293_v41 = vld [vmem:[%s15202_s1 + $0xa0] sm:$0x3] }
 0x112   :  { %15245 = vst [vmem:[#allocation42_spill] sm:$0xff] %v9432_v49  ;;  %4168 = vperm.xlu1 %8474, %v8801_v42   ;;  %v8216_v19 = vpop.f32.mrf.mxu0  ;;  %v9454_v42 = vld [vmem:[%s15202_s1 + $0xc8] sm:$0xff] }
 0x114   :  { %v9441_v30 = vpop.permute.xlu0 %2300  ;;  %v9445_v39 = vpop.f32.mrf.mxu0 }
 0x115   :  { %15246 = vst [vmem:[#allocation43_spill] sm:$0xff] %v9441_v30  ;;  %v9443_v38 = vpop.permute.xlu1 %2272  ;;  %4223 = vperm.xlu0 %8473, %v8824_v47   ;;  %v7299_v47 = vld [vmem:[%s15202_s1 + $0xd0] sm:$0x3] }
 0x116   :  { %15247 = vst [vmem:[#allocation44_spill] sm:$0xff] %v9443_v38  ;;  %4202 = vperm.xlu1 %8474, %v7296_v4   ;;  %v8219_v56 = vpop.f32.mrf.mxu0 }
 0x117   :  { %v5074_v56 = vld [vmem:[%s15202_s1] sm:$0xff] }
 0x118   :  { %v9456_v22 = vpop.permute.xlu0 %2356  ;;  %v9460_v10 = vpop.f32.mrf.mxu0 }
 0x119   :  { %15248 = vst [vmem:[#allocation45_spill] sm:$0xff] %v9456_v22  ;;  %v9458_v19 = vpop.permute.xlu1 %2328  ;;  %4172 = vperm.xlu0 %8473, %v7293_v41   ;;  %v5075_v41 = vld [vmem:[%s15202_s1 + $0x8] sm:$0xff] }
 0x11a   :  { %15249 = vst [vmem:[#allocation46_spill] sm:$0xff] %v9458_v19  ;;  %4228 = vperm.xlu1 %8474, %v9454_v42   ;;  %v8222_v4 = vpop.f32.mrf.mxu0 }
 0x11b   :  { %v7300_v4 = vld [vmem:[%s15202_s1 + $0x18] sm:$0xff] }
 0x11c   :  { %v9469_v26 = vpop.permute.xlu0 %2406  ;;  %v9473_v22 = vpop.f32.mrf.mxu0 }
 0x11d   :  { %15250 = vst [vmem:[#allocation47_spill] sm:$0xff] %v9469_v26  ;;  %v9471_v49 = vpop.permute.xlu1 %2410  ;;  %4233 = vperm.xlu0 %8473, %v7299_v47   ;;  %v7301_v47 = vld [vmem:[%s15202_s1 + $0x20] sm:$0xff] }
 0x11e   :  { %15251 = vst [vmem:[#allocation48_spill] sm:$0xff] %v9471_v49  ;;  %5079 = vperm.xlu1 %8474, %v5074_v56   ;;  %v8225_v19 = vpop.f32.mrf.mxu0 }
 0x11f   :  { %v7303_v19 = vld [vmem:[%s15202_s1 + $0x30] sm:$0xff] }
 0x120   :  { %v9481_v6 = vpop.permute.xlu0 %2376  ;;  %v9485_v26 = vpop.f32.mrf.mxu0 }
 0x121   :  { %15252 = vst [vmem:[#allocation49_spill] sm:$0xff] %v9481_v6  ;;  %v9483_v32 = vpop.permute.xlu1 %2380  ;;  %5084 = vperm.xlu0 %8473, %v5075_v41   ;;  %v7304_v41 = vld [vmem:[%s15202_s1 + $0x38] sm:$0xff] }
 0x122   :  { %15253 = vst [vmem:[#allocation50_spill] sm:$0xff] %v9483_v32  ;;  %5107 = vperm.xlu1 %8474, %v7300_v4   ;;  %v8228_v56 = vpop.f32.mrf.mxu0 }
 0x123   :  { %v5076_v56 = vld [vmem:[%s15202_s1 + $0x10] sm:$0x3] }
 0x124   :  { %v9493_v49 = vpop.permute.xlu0 %2414  ;;  %v9497_v6 = vpop.f32.mrf.mxu0 }
 0x125   :  { %15254 = vst [vmem:[#allocation51_spill] sm:$0xff] %v9493_v49  ;;  %v9495_v38 = vpop.permute.xlu1 %2384  ;;  %5111 = vperm.xlu0 %8473, %v7301_v47   ;;  %v7302_v47 = vld [vmem:[%s15202_s1 + $0x28] sm:$0x3] }
 0x126   :  { %15255 = vst [vmem:[#allocation52_spill] sm:$0xff] %v9495_v38  ;;  %5140 = vperm.xlu1 %8474, %v7303_v19   ;;  %v8231_v4 = vpop.f32.mrf.mxu0 }
 0x127   :  { %v7305_v4 = vld [vmem:[%s15202_s1 + $0x40] sm:$0x3] }
 0x128   :  { %v9505_v32 = vpop.permute.xlu0 %2435  ;;  %v9509_v49 = vpop.f32.mrf.mxu0 }
 0x129   :  { %15256 = vst [vmem:[#allocation53_spill] sm:$0xff] %v9505_v32  ;;  %v9507_v30 = vpop.permute.xlu1 %2440  ;;  %5144 = vperm.xlu0 %8473, %v7304_v41   ;;  %v7306_v41 = vld [vmem:[%s15202_s1 + $0x48] sm:$0xff] }
 0x12a   :  { %15257 = vst [vmem:[#allocation54_spill] sm:$0xff] %v9507_v30  ;;  %5089 = vperm.xlu1 %8474, %v5076_v56   ;;  %v8234_v19 = vpop.f32.mrf.mxu0 }
 0x12b   :  { %v7307_v19 = vld [vmem:[%s15202_s1 + $0x50] sm:$0xff] }
 0x12c   :  { %v9517_v38 = vpop.permute.xlu0 %2445  ;;  %v267_v32 = vpop.f32.mrf.mxu0 }
 0x12d   :  { %15258 = vst [vmem:[#allocation55_spill] sm:$0xff] %v9517_v38  ;;  %v9519_v48 = vpop.permute.xlu1 %3130  ;;  %5115 = vperm.xlu0 %8473, %v7302_v47   ;;  %v7309_v47 = vld [vmem:[%s15202_s1 + $0x60] sm:$0xff] }
 0x12e   :  { %15259 = vst [vmem:[#allocation56_spill] sm:$0xff] %v9519_v48  ;;  %5148 = vperm.xlu1 %8474, %v7305_v4   ;;  %v8237_v56 = vpop.f32.mrf.mxu0 }
 0x12f   :  { %v7310_v56 = vld [vmem:[%s15202_s1 + $0x68] sm:$0xff] }
 0x130   :  { %v9527_v30 = vpop.permute.xlu0 %3134  ;;  %v9531_v3 = vpop.f32.mrf.mxu0 }
 0x131   :  { %15260 = vst [vmem:[#allocation57_spill] sm:$0xff] %v9527_v30  ;;  %v9529_v62 = vpop.permute.xlu1 %3107  ;;  %5173 = vperm.xlu0 %8473, %v7306_v41   ;;  %v7308_v41 = vld [vmem:[%s15202_s1 + $0x58] sm:$0x3] }
 0x132   :  { %15261 = vst [vmem:[#allocation58_spill] sm:$0xff] %v9529_v62  ;;  %5177 = vperm.xlu1 %8474, %v7307_v19   ;;  %v8240_v4 = vpop.f32.mrf.mxu0 }
 0x133   :  { %v7311_v4 = vld [vmem:[%s15202_s1 + $0x70] sm:$0x3] }
 0x134   :  { %v9539_v48 = vpop.permute.xlu0 %3138  ;;  %v9543_v30 = vpop.f32.mrf.mxu0 }
 0x135   :  { %15262 = vst [vmem:[#allocation59_spill] sm:$0xff] %v9539_v48  ;;  %v9541_v38 = vpop.permute.xlu1 %3186  ;;  %5206 = vperm.xlu0 %8473, %v7309_v47   ;;  %v7312_v47 = vld [vmem:[%s15202_s1 + $0x78] sm:$0xff] }
 0x136   :  { %15263 = vst [vmem:[#allocation60_spill] sm:$0xff] %v9541_v38  ;;  %5210 = vperm.xlu1 %8474, %v7310_v56   ;;  %v8243_v19 = vpop.f32.mrf.mxu0 }
 0x137   :  { %v7313_v19 = vld [vmem:[%s15202_s1 + $0x80] sm:$0xff] }
 0x138   :  { %v9551_v62 = vpop.permute.xlu0 %3190  ;;  %v282_v48 = vpop.f32.mrf.mxu0 }
 0x139   :  { %15264 = vst [vmem:[#allocation61_spill] sm:$0xff] %v9551_v62  ;;  %v9553_v23 = vpop.permute.xlu1 %3158  ;;  %5181 = vperm.xlu0 %8473, %v7308_v41   ;;  %v7315_v41 = vld [vmem:[%s15202_s1 + $0x90] sm:$0xff] }
 0x13a   :  { %15265 = vst [vmem:[#allocation62_spill] sm:$0xff] %v9553_v23  ;;  %5214 = vperm.xlu1 %8474, %v7311_v4   ;;  %v8246_v56 = vpop.f32.mrf.mxu0 }
 0x13b   :  { %v7316_v56 = vld [vmem:[%s15202_s1 + $0x98] sm:$0xff] }
 0x13c   :  { %v9561_v38 = vpop.permute.xlu0 %3162  ;;  %v287_v21 = vpop.f32.mrf.mxu0 }
 0x13d   :  { %15266 = vst [vmem:[#allocation63_spill] sm:$0xff] %v9561_v38  ;;  %v9563_v1 = vpop.permute.xlu1 %3112  ;;  %5239 = vperm.xlu0 %8473, %v7312_v47   ;;  %v223_v47 = vadd.f32 %v9368_v14, %v9418_v18 }
 0x13e   :  { %15267 = vst [vmem:[#allocation64_spill] sm:$0xff] %v9563_v1  ;;  %5243 = vperm.xlu1 %8474, %v7313_v19   ;;  %v8249_v4 = vpop.f32.mrf.mxu0  ;;  %v7314_v19 = vld [vmem:[%s15202_s1 + $0x88] sm:$0x3]  ;;  %v7317_v1 = vld [vmem:[%s15202_s1 + $0xa0] sm:$0x3] }
 0x140   :  { %v9571_v23 = vpop.permute.xlu0 %3242  ;;  %v9575_v33 = vpop.f32.mrf.mxu0 }
 0x141   :  { %15268 = vst [vmem:[#allocation65_spill] sm:$0xff] %v9571_v23  ;;  %v9573_v62 = vpop.permute.xlu1 %3246  ;;  %5272 = vperm.xlu0 %8473, %v7315_v41   ;;  %v238_v23 = vadd.f32 %v9368_v14, %v9445_v39  ;;  %v228_v41 = vadd.f32 %v9368_v14, %v9426_v37  ;;  %v243_v39 = vadd.f32 %v9368_v14, %v9460_v10  ;;  %v7319_v37 = vld [vmem:[%s15202_s1 + $0xb0] sm:$0xff] }
 0x142   :  { %15269 = vst [vmem:[#allocation66_spill] sm:$0xff] %v9573_v62  ;;  %5276 = vperm.xlu1 %8474, %v7316_v56   ;;  %v8252_v4 = vpop.f32.mrf.mxu0  ;;  %v332_v56 = vmax.f32 %v223_v47, 0.0 }
 0x143   :  { %v253_v4 = vadd.f32 %v9368_v14, %v9485_v26  ;;  %v333_v27 = vmax.f32 %v228_v41, 0.0  ;;  %v258_v26 = vadd.f32 %v9368_v14, %v9497_v6  ;;  %v336_v41 = vmax.f32 %v243_v39, 0.0 }
 0x144   :  { %v9587_v62 = vpop.permute.xlu0 %3214  ;;  %v297_v18 = vpop.f32.mrf.mxu0  ;;  %v273_v6 = vadd.f32 %v9368_v14, %v9531_v3 }
 0x145   :  { %15270 = vst [vmem:[#allocation67_spill] sm:$0xff] %v9587_v62  ;;  %v9591_v38 = vpop.permute.xlu1 %3218  ;;  %5247 = vperm.xlu0 %8473, %v7314_v19   ;;  %v268_v19 = vadd.f32 %v9368_v14, %v267_v32  ;;  %v338_v7 = vmax.f32 %v253_v4, 0.0  ;;  %v7320_v32 = vld [vmem:[%s15202_s1 + $0xb8] sm:$0x3] }
 0x146   :  { %15271 = vst [vmem:[#allocation68_spill] sm:$0xff] %v9591_v38  ;;  %5280 = vperm.xlu1 %8474, %v7317_v1   ;;  %v8255_v62 = vpop.f32.mrf.mxu0  ;;  %v335_v38 = vmax.f32 %v238_v23, 0.0  ;;  %v233_v1 = vadd.f32 %v9368_v14, %v9434_v40  ;;  %v283_v23 = vadd.f32 %v9368_v14, %v282_v48  ;;  %v248_v40 = vadd.f32 %v9368_v14, %v9473_v22 }
 0x147   :  { %v356_v62 = vmax.f32 %v9391_v28, %v332_v56  ;;  %v341_v56 = vmax.f32 %v268_v19, 0.0  ;;  %v298_v48 = vadd.f32 %v9368_v14, %v297_v18  ;;  %v263_v22 = vadd.f32 %v9368_v14, %v9509_v49  ;;  %v7323_v49 = vld [vmem:[%s15202_s1 + $0xd0] sm:$0x3] }
 0x148   :  { %v9604_v47 = vpop.permute.xlu0 %3117  ;;  %v302_v10 = vpop.f32.mrf.mxu0  ;;  %v334_v39 = vmax.f32 %v233_v1, 0.0  ;;  %v344_v34 = vmax.f32 %v283_v23, 0.0  ;;  %v337_v18 = vmax.f32 %v248_v40, 0.0 }
 0x149   :  { %15272 = vst [vmem:[#allocation69_spill] sm:$0xff] %v9604_v47  ;;  %v9610_v43 = vpop.permute.xlu1 %3194  ;;  %5309 = vperm.xlu0 %8473, %v7318_v46   ;;  %v7321_v46 = vld [vmem:[%s15202_s1 + $0xc0] sm:$0xff]  ;;  %v359_v28 = vmax.f32 %v356_v62, %v335_v38  ;;  %v288_v38 = vadd.f32 %v9368_v14, %v287_v21  ;;  %v342_v62 = vmax.f32 %v273_v6, 0.0 }
 0x14a   :  { %15273 = vst [vmem:[#allocation70_spill] sm:$0xff] %v9610_v43  ;;  %5313 = vperm.xlu1 %8474, %v7319_v37   ;;  %v8258_v47 = vpop.f32.mrf.mxu0  ;;  %v357_v37 = vmax.f32 %v9405_v12, %v333_v27  ;;  %v339_v43 = vmax.f32 %v258_v26, 0.0  ;;  %v278_v27 = vadd.f32 %v9368_v14, %v9543_v30  ;;  %v347_v26 = vmax.f32 %v298_v48, 0.0 }
 0x14b   :  { %v362_v47 = vmax.f32 %v359_v28, %v338_v7  ;;  %v358_v21 = vmax.f32 %v9420_v16, %v334_v39  ;;  %v293_v28 = vadd.f32 %v9368_v14, %v9575_v33 }
 0x14c   :  { %v9625_v4 = vpop.permute.xlu0 %3166  ;;  %v307_v3 = vpop.f32.mrf.mxu0  ;;  %v360_v19 = vmax.f32 %v357_v37, %v336_v41  ;;  %v340_v41 = vmax.f32 %v263_v22, 0.0  ;;  %v343_v37 = vmax.f32 %v278_v27, 0.0 }
 0x14d   :  { %v9630_v57 = vpop.permute.xlu1 %3250  ;;  %5317 = vperm.xlu0 %8473, %v7320_v32   ;;  %v365_v1 = vmax.f32 %v362_v47, %v341_v56  ;;  %v303_v32 = vadd.f32 %v9368_v14, %v302_v10  ;;  %v361_v10 = vmax.f32 %v358_v21, %v337_v18  ;;  %v308_v39 = vadd.f32 %v9368_v14, %v307_v3 }
 0x14e   :  { %5343 = vperm.xlu1 %8474, %v7321_v46   ;;  %v8261_v12 = vpop.f32.mrf.mxu0  ;;  %v363_v23 = vmax.f32 %v360_v19, %v339_v43  ;;  %v345_v46 = vmax.f32 %v288_v38, 0.0  ;;  %v346_v33 = vmax.f32 %v293_v28, 0.0  ;;  %v446_v28 = vrot.slane %v8986_v24, 7 }
 0x14f   :  { %v368_v30 = vmax.f32 %v365_v1, %v344_v34  ;;  %v348_v43 = vmax.f32 %v303_v32, 0.0  ;;  %v349_v21 = vmax.f32 %v308_v39, 0.0 }
 0x150   :  { %v9639_v7 = vpop.permute.xlu0 %3222  ;;  %v312_v6 = vpop.f32.mrf.mxu0  ;;  %v366_v48 = vmax.f32 %v363_v23, %v342_v62 }
 0x151   :  { %v9642_v40 = vpop.permute.xlu1 %3300  ;;  %5348 = vperm.xlu0 %8473, %v9454_v42   ;;  %v313_v56 = vadd.f32 %v9368_v14, %v312_v6  ;;  %v371_v16 = vmax.f32 %v368_v30, %v347_v26  ;;  %v364_v42 = vmax.f32 %v361_v10, %v340_v41  ;;  %v447_v10 = vrot.slane %v8997_v29, 7 }
 0x152   :  { %5353 = vperm.xlu1 %8474, %v7323_v49   ;;  %v8264_v47 = vpop.f32.mrf.mxu0  ;;  %v369_v12 = vmax.f32 %v366_v48, %v345_v46 }
 0x153   :  { %v350_v22 = vmax.f32 %v313_v56, 0.0  ;;  %v367_v18 = vmax.f32 %v364_v42, %v343_v37 }
 0x154   :  { %v9649_v19 = vpop.permute.xlu0 %3304  ;;  %v317_v38 = vpop.f32.mrf.mxu0  ;;  %v372_v27 = vmax.f32 %v369_v12, %v348_v43 }
 0x155   :  { %v9651_v34 = vpop.permute.xlu1 %3270  ;;  %v374_v1 = vmax.f32 %v371_v16, %v350_v22  ;;  %v318_v49 = vadd.f32 %v9368_v14, %v317_v38  ;;  %v370_v41 = vmax.f32 %v367_v18, %v346_v33  ;;  %v448_v38 = vsel %vm445_vm1, %v446_v28, %v447_v10 }
 0x156   :  { %v8267_v62 = vpop.f32.mrf.mxu0 }
 0x157   :  { %v377_v26 = vmax.f32 %v374_v1, 0.0  ;;  %v351_v32 = vmax.f32 %v318_v49, 0.0  ;;  %v373_v37 = vmax.f32 %v370_v41, %v349_v21 }
 0x158   :  { %v9654_v23 = vpop.permute.xlu0 %3274  ;;  %v322_v6 = vpop.f32.mrf.mxu0 }
 0x159   :  { %v9656_v3 = vpop.permute.xlu1 %3308  ;;  %v392_v30 = vrot.slane %v377_v26, 4  ;;  %v375_v56 = vmax.f32 %v372_v27, %v351_v32  ;;  %v323_v46 = vadd.f32 %v9368_v14, %v322_v6  ;;  %v8475_v26 = vld [vmem:[#allocation2] sm:$0xff] }
 0x15a   :  { %v8270_v48 = vpop.f32.mrf.mxu0 }
 0x15b   :  { %400 = vst [vmem:[#allocation2 + $0x30] sm:$0xf0] %v392_v30  ;;  %v378_v47 = vmax.f32 %v375_v56, 0.0  ;;  %v352_v16 = vmax.f32 %v323_v46, 0.0 }
 0x15c   :  { %v9661_v43 = vpop.permute.xlu0 %3278 }
 0x15d   :  { %v9663_v39 = vpop.permute.xlu1 %3329  ;;  %v393_v22 = vrot.slane %v378_v47, 4  ;;  %v376_v42 = vmax.f32 %v373_v37, %v352_v16  ;;  %v805_v47 = vld [vmem:[%s15204_s29 + $0x1f0] sm:$0xff]  ;;  %v506_v16 = vrot.slane %v9013_v36, 5 }
 0x15f   :  { %v9667_v14 = vsel %vm391_vm2, %v392_v30, %v393_v22  ;;  %v379_v24 = vmax.f32 %v376_v42, 0.0  ;;  %v788_v42 = vld [vmem:[%s15204_s29 + $0x168] sm:$0xff] }
 0x160   :  { %v9669_v29 = vpop.permute.xlu0 %3334  ;;  %v660_v33 = vmul.f32 %v9093_v11, %v9667_v14  ;;  %v455_v49 = vmul.f32 %v448_v38, %v9667_v14  ;;  %v449_v11 = vrot.slane %v8999_v31, 7  ;;  %v507_v31 = vrot.slane %v9027_v44, 5  ;;  %v792_v44 = vld [vmem:[%s15204_s29 + $0x188] sm:$0xff] }
 0x161   :  { %v9671_v12 = vpop.permute.xlu1 %3339  ;;  %v395_v1 = vrot.slane %v379_v24, 4 }
 0x162   :  { %8304 = vmatmul.mubr.f32.vlgmr.msra.gmra.mxu0 %v660_v33  ;;  %v427_v18 = vld [vmem:[#allocation2 + $0x30] sm:$0xfe]  ;;  %v667_v30 = vrot.slane %v455_v49, 1  ;;  %v450_v38 = vsel %vm445_vm1, %v447_v10, %v449_v11  ;;  %v508_v10 = vsel %vm505_vm4, %v506_v16, %v507_v31 }
 0x163   :  { %v396_v62 = vsel %vm391_vm2, %v393_v22, %v395_v1  ;;  %v454_v21 = vmul.f32 %v446_v28, %v427_v18  ;;  %8306 = vmatprep.mubr.msk.f32.mxu0 %vm8484_vm0, %v8475_v26  ;;  %v403_v6 = vld [vmem:[#allocation2 + $0x30] sm:$0xff]  ;;  %v790_v28 = vld [vmem:[%s15204_s29 + $0x178] sm:$0xff]  ;;  %v804_v22 = vld [vmem:[%s15204_s29 + $0x1e8] sm:$0xff] }
 0x164   :  { %v9677_v27 = vpop.permute.xlu0 %4024  ;;  %402 = vst [vmem:[#allocation2 + $0x8] sm:$0x3f] %v396_v62  ;;  %v424_v48 = vmul.f32 %v8988_v25, %v403_v6  ;;  %v789_v25 = vld [vmem:[%s15204_s29 + $0x170] sm:$0xff]  ;;  %v640_v6 = vld [vmem:[#allocation2 + $0x28] sm:$0x3] }
 0x165   :  { %v9680_v32 = vpop.permute.xlu1 %4028  ;;  %v666_v41 = vrot.slane %v454_v21, 1  ;;  %v487_v1 = vld [vmem:[#allocation2 + $0x30] sm:$0xf8]  ;;  %v803_v21 = vld [vmem:[%s15204_s29 + $0x1e0] sm:$0xff] }
 0x167   :  { %v668_v46 = vsel %vm626_vm3, %v666_v41, %v667_v30  ;;  %v787_v41 = vld [vmem:[%s15204_s29 + $0x160] sm:$0xff] }
 0x168   :  { %v9683_v56 = vpop.permute.xlu0 %4001  ;;  %958 = vmatprep.mubr.f32.mxu1 %v668_v46  ;;  %v514_v46 = vmul.f32 %v506_v16, %v487_v1  ;;  %v9740_v16 = vmul.f32 %v508_v10, %v9667_v14  ;;  %v799_v10 = vld [vmem:[%s15204_s29 + $0x1c0] sm:$0xff] }
 0x169   :  { %15274 = vst [vmem:[#allocation71_spill] sm:$0xff] %v9683_v56  ;;  %v9690_v37 = vpop.permute.xlu1 %4080  ;;  %959 = vmatmul.mubr.f32.vlgmr.msra.gmra.mxu1 %v424_v48 }
 0x16a   :  { %7416 = vmatpush3.msra.mxu1 %v790_v28  ;;  %v662_v28 = vmul.f32 %v9099_v15, %v640_v6  ;;  %v801_v15 = vld [vmem:[%s15204_s29 + $0x1d0] sm:$0xff] }
 0x16b   :  { %v9709_v24 = vld [vmem:[#allocation2 + $0x8] sm:$0xff]  ;;  %7417 = vmatprep.subr.mxu1 %v805_v47 }
 0x16c   :  { %v9707_v36 = vpop.permute.xlu0 %4084  ;;  %v428_v33 = vld [vmem:[#allocation2 + $0x8] sm:$0x7]  ;;  %v661_v18 = vmul.f32 %v9095_v13, %v9709_v24  ;;  %7418 = vmatpush3.msra.mxu1 %v789_v25  ;;  %v802_v13 = vld [vmem:[%s15204_s29 + $0x1d8] sm:$0xff] }
 0x16d   :  { %v9711_v49 = vpop.permute.xlu1 %4052  ;;  %v456_v62 = vmul.f32 %v450_v38, %v428_v33  ;;  %7419 = vmatprep.subr.mxu1 %v804_v22  ;;  %v425_v22 = vmul.f32 %v9011_v35, %v9667_v14  ;;  %v785_v35 = vld [vmem:[%s15204_s29 + $0x150] sm:$0xff]  ;;  %v800_v33 = vld [vmem:[%s15204_s29 + $0x1c8] sm:$0xff] }
 0x16e   :  { %8307 = vmatmul.mubr.f32.gmra.mxu0 %v661_v18  ;;  %7420 = vmatpush3.msra.mxu1 %v788_v42  ;;  %v786_v42 = vld [vmem:[%s15204_s29 + $0x158] sm:$0xff] }
 0x16f   :  { %v669_v11 = vrot.slane %v456_v62, 1  ;;  %8309 = vmatprep.mubr.msk.f32.mxu0 %vm8484_vm0, %v8475_v26  ;;  %7421 = vmatprep.subr.mxu1 %v803_v21  ;;  %v405_v26 = vld [vmem:[#allocation2 + $0x8] sm:$0x3]  ;;  %v689_v62 = vrot.slane %v9740_v16, 3 }
 0x170   :  { %v9727_v48 = vpop.permute.xlu0 %4056  ;;  %7422 = vmatpush3.msra.mxu1 %v787_v41  ;;  %v426_v18 = vmul.f32 %v9041_v51, %v405_v26  ;;  %v784_v21 = vld [vmem:[%s15204_s29 + $0x148] sm:$0xff]  ;;  %v783_v51 = vld [vmem:[%s15204_s29 + $0x140] sm:$0xff]  ;;  %v476_v26 = vrot.slane %v9029_v45, 6 }
 0x171   :  { %v9731_v47 = vpop.permute.xlu1 %4032  ;;  %v670_v25 = vsel %vm626_vm3, %v667_v30, %v669_v11  ;;  %7423 = vmatprep.subr.mxu1 %v802_v13  ;;  %v688_v30 = vrot.slane %v514_v46, 3  ;;  %v782_v13 = vld [vmem:[%s15204_s29 + $0x138] sm:$0xff] }
 0x172   :  { %963 = vmatprep.mubr.f32.mxu1 %v670_v25  ;;  %8310 = vmatmul.mubr.f32.gmra.mxu0 %v662_v28  ;;  %v797_v28 = vld [vmem:[%s15204_s29 + $0x1b0] sm:$0xff] }
 0x173   :  { %964 = vmatmul.mubr.f32.gmra.mxu1 %v425_v22  ;;  %v690_v6 = vsel %vm564_vm5, %v688_v30, %v689_v62  ;;  %v781_v25 = vld [vmem:[%s15204_s29 + $0x130] sm:$0xff] }
 0x174   :  { %968 = vmatprep.mubr.f32.mxu1 %v669_v11  ;;  %v9748_v38 = vpop.permute.xlu0 %4006  ;;  %7424 = vmatpush3.msra.mxu1 %v786_v42  ;;  %v798_v11 = vld [vmem:[%s15204_s29 + $0x1b8] sm:$0xff]  ;;  %v796_v42 = vld [vmem:[%s15204_s29 + $0x1a8] sm:$0xff] }
 0x175   :  { %15275 = vst [vmem:[#allocation72_spill] sm:$0xff] %v9748_v38  ;;  %v9753_v1 = vpop.permute.xlu1 %4136  ;;  %7425 = vmatprep.subr.mxu1 %v801_v15  ;;  %v477_v15 = vrot.slane %v9039_v50, 6  ;;  %v779_v50 = vld [vmem:[%s15204_s29 + $0x120] sm:$0xff] }
 0x176   :  { %15276 = vst [vmem:[#allocation73_spill] sm:$0xff] %v9753_v1  ;;  %7426 = vmatpush3.msra.mxu1 %v785_v35 }
 0x177   :  { %969 = vmatmul.mubr.f32.gmra.mxu1 %v426_v18  ;;  %7427 = vmatprep.subr.mxu1 %v800_v33  ;;  %v780_v33 = vld [vmem:[%s15204_s29 + $0x128] sm:$0xff]  ;;  %v509_v18 = vrot.slane %v9043_v52, 5  ;;  %v794_v52 = vld [vmem:[%s15204_s29 + $0x198] sm:$0xff] }
 0x178   :  { %1038 = vmatprep.mubr.f32.mxu1 %v690_v6  ;;  %v9769_v41 = vpop.permute.xlu0 %4140  ;;  %7428 = vmatpush3.msra.mxu1 %v784_v21  ;;  %v795_v21 = vld [vmem:[%s15204_s29 + $0x1a0] sm:$0xff]  ;;  %v488_v6 = vld [vmem:[#allocation2 + $0x8] sm:$0x1f] }
 0x179   :  { %7429 = vmatprep.subr.mxu1 %v799_v10  ;;  %v9777_v46 = vpop.permute.xlu1 %4108  ;;  %v457_v10 = vld [vmem:[#allocation2 + $0x30] sm:$0xfc] }
 0x17a   :  { %7430 = vmatpush3.msra.mxu1 %v783_v51  ;;  %v15191_v30 = vrot.slane %v9777_v46, 4  ;;  %v478_v51 = vsel %vm475_vm6, %v476_v26, %v477_v15 }
 0x17b   :  { %7431 = vmatprep.subr.mxu1 %v798_v11  ;;  %v479_v11 = vrot.slane %v9045_v53, 6  ;;  %v777_v53 = vld [vmem:[%s15204_s29 + $0x110] sm:$0xff] }
 0x17c   :  { %v9785_v22 = vpop.permute.xlu0 %4112  ;;  %7432 = vmatpush3.msra.mxu1 %v782_v13  ;;  %v778_v13 = vld [vmem:[%s15204_s29 + $0x118] sm:$0xff] }
 0x17d   :  { %15277 = vst [vmem:[#allocation74_spill] sm:$0xff] %v9785_v22  ;;  %v15190_v35 = vrot.slane %v9785_v22, 4  ;;  %7433 = vmatprep.subr.mxu1 %v797_v28  ;;  %v510_v28 = vsel %vm505_vm4, %v507_v31, %v509_v18  ;;  %v485_v31 = vmul.f32 %v478_v51, %v9667_v14  ;;  %v480_v18 = vsel %vm475_vm6, %v477_v15, %v479_v11  ;;  %v775_v15 = vld [vmem:[%s15204_s29 + $0x100] sm:$0xff] }
 0x17e   :  { %7434 = vmatpush3.msra.mxu1 %v781_v25  ;;  %v793_v25 = vld [vmem:[%s15204_s29 + $0x190] sm:$0xff] }
 0x17f   :  { %v9806_v45 = vsel %vm391_vm2, %v15191_v30, %v15190_v35  ;;  %7435 = vmatprep.subr.mxu1 %v796_v42  ;;  %v484_v42 = vmul.f32 %v476_v26, %v457_v10  ;;  %v776_v26 = vld [vmem:[%s15204_s29 + $0x108] sm:$0xff]  ;;  %v566_v10 = vrot.slane %v9051_v55, 3  ;;  %v678_v11 = vrot.slane %v485_v31, 2  ;;  %v821_v31 = vld [vmem:[%s15204_s29 + $0x270] sm:$0xff] }
 0x180   :  { %7436 = vmatpush3.msra.mxu1 %v780_v33  ;;  %v516_v33 = vmul.f32 %v510_v28, %v488_v6  ;;  %v546_v28 = vld [vmem:[#allocation2 + $0x30] sm:$0xe0]  ;;  %v824_v55 = vld [vmem:[%s15204_s29 + $0x288] sm:$0xff] }
 0x181   :  { %7437 = vmatprep.subr.mxu1 %v795_v21  ;;  %v458_v21 = vld [vmem:[#allocation2 + $0x8] sm:$0xf]  ;;  %v677_v6 = vrot.slane %v484_v42, 2 }
 0x182   :  { %7438 = vmatpush3.msra.mxu1 %v779_v50  ;;  %v565_v50 = vrot.slane %v9049_v54, 3  ;;  %v691_v51 = vrot.slane %v516_v33, 3  ;;  %v838_v54 = vld [vmem:[%s15204_s29 + $0x2f8] sm:$0xff]  ;;  %v837_v33 = vld [vmem:[%s15204_s29 + $0x2f0] sm:$0xff] }
 0x183   :  { %7439 = vmatprep.subr.mxu1 %v794_v52  ;;  %v791_v52 = vld [vmem:[%s15204_s29 + $0x180] sm:$0xff] }
 0x184   :  { %7440 = vmatpush3.msra.mxu1 %v778_v13  ;;  %v486_v13 = vmul.f32 %v480_v18, %v458_v21  ;;  %v567_v42 = vsel %vm564_vm5, %v565_v50, %v566_v10  ;;  %v573_v18 = vmul.f32 %v565_v50, %v546_v28  ;;  %v835_v50 = vld [vmem:[%s15204_s29 + $0x2e0] sm:$0xff]  ;;  %v833_v28 = vld [vmem:[%s15204_s29 + $0x2d0] sm:$0xff] }
 0x185   :  { %7441 = vmatprep.subr.mxu1 %v793_v25  ;;  %v822_v25 = vld [vmem:[%s15204_s29 + $0x278] sm:$0xff]  ;;  %v9870_v16 = vmul.f32 %v567_v42, %v9667_v14  ;;  %v832_v42 = vld [vmem:[%s15204_s29 + $0x2c8] sm:$0xff] }
 0x186   :  { %7442 = vmatpush3.msra.mxu1 %v777_v53  ;;  %v679_v53 = vsel %vm594_vm7, %v677_v6, %v678_v11  ;;  %v680_v21 = vrot.slane %v486_v13, 2  ;;  %v819_v6 = vld [vmem:[%s15204_s29 + $0x260] sm:$0xff]  ;;  %v710_v13 = vrot.slane %v573_v18, 5  ;;  %v829_v18 = vld [vmem:[%s15204_s29 + $0x2b0] sm:$0xff] }
 0x187   :  { %7443 = vmatprep.subr.mxu1 %v792_v44  ;;  %v692_v44 = vsel %vm564_vm5, %v689_v62, %v691_v51 }
 0x188   :  { %7444 = vmatpush3.msra.mxu1 %v776_v26  ;;  %v836_v26 = vld [vmem:[%s15204_s29 + $0x2e8] sm:$0xff]  ;;  %v681_v62 = vsel %vm594_vm7, %v678_v11, %v680_v21  ;;  %v818_v11 = vld [vmem:[%s15204_s29 + $0x258] sm:$0xff] }
 0x189   :  { %7445 = vmatprep.subr.mxu1 %v791_v52  ;;  %v820_v52 = vld [vmem:[%s15204_s29 + $0x268] sm:$0xff] }
 0x18a   :  { %7446 = vmatpush3.msra.mxu1 %v775_v15  ;;  %v834_v15 = vld [vmem:[%s15204_s29 + $0x2d8] sm:$0xff] }
 0x18b   :  { %1039 = vmatmul.mubr.f32.vlgmr.msra.gmra.mxu1 %v679_v53  ;;  %7456 = vmatprep.subr.mxu1 %v838_v54  ;;  %v711_v54 = vrot.slane %v9870_v16, 5  ;;  %v816_v53 = vld [vmem:[%s15204_s29 + $0x248] sm:$0xff] }
 0x18c   :  { %1043 = vmatprep.mubr.f32.mxu1 %v692_v44  ;;  %7457 = vmatpush3.msra.mxu1 %v822_v25  ;;  %v817_v25 = vld [vmem:[%s15204_s29 + $0x250] sm:$0xff]  ;;  %v830_v44 = vld [vmem:[%s15204_s29 + $0x2b8] sm:$0xff] }
 0x18d   :  { %7458 = vmatprep.subr.mxu1 %v837_v33  ;;  %v831_v33 = vld [vmem:[%s15204_s29 + $0x2c0] sm:$0xff] }
 0x18e   :  { %7459 = vmatpush3.msra.mxu1 %v821_v31  ;;  %v814_v31 = vld [vmem:[%s15204_s29 + $0x238] sm:$0xff] }
 0x18f   :  { %1044 = vmatmul.mubr.f32.gmra.mxu1 %v681_v62  ;;  %7460 = vmatprep.subr.mxu1 %v836_v26  ;;  %v813_v26 = vld [vmem:[%s15204_s29 + $0x230] sm:$0xff]  ;;  %v535_v62 = vrot.slane %v9061_v58, 4 }
 0x190   :  { %1048 = vmatprep.mubr.f32.mxu1 %v691_v51  ;;  %7461 = vmatpush3.msra.mxu1 %v820_v52  ;;  %v712_v51 = vsel %vm505_vm4, %v710_v13, %v711_v54  ;;  %v828_v52 = vld [vmem:[%s15204_s29 + $0x2a8] sm:$0xff]  ;;  %v568_v13 = vrot.slane %v9065_v60, 3  ;;  %v517_v58 = vld [vmem:[#allocation2 + $0x30] sm:$0xf0]  ;;  %v538_v60 = vrot.slane %v9067_v61, 4 }
 0x191   :  { %7462 = vmatprep.subr.mxu1 %v835_v50  ;;  %v536_v50 = vrot.slane %v9063_v59, 4  ;;  %v826_v59 = vld [vmem:[%s15204_s29 + $0x298] sm:$0xff]  ;;  %v809_v61 = vld [vmem:[%s15204_s29 + $0x210] sm:$0xff] }
 0x192   :  { %7463 = vmatpush3.msra.mxu1 %v819_v6  ;;  %v812_v6 = vld [vmem:[%s15204_s29 + $0x228] sm:$0xff] }
 0x193   :  { %1049 = vmatmul.mubr.f32.gmra.mxu1 %v680_v21  ;;  %7464 = vmatprep.subr.mxu1 %v834_v15  ;;  %v815_v21 = vld [vmem:[%s15204_s29 + $0x240] sm:$0xff] }
 0x194   :  { %7465 = vmatpush3.msra.mxu1 %v818_v11  ;;  %1118 = vmatprep.mubr.f32.mxu1 %v712_v51  ;;  %v827_v15 = vld [vmem:[%s15204_s29 + $0x2a0] sm:$0xff]  ;;  %v537_v51 = vsel %vm391_vm2, %v535_v62, %v536_v50 }
 0x195   :  { %7466 = vmatprep.subr.mxu1 %v833_v28  ;;  %v811_v11 = vld [vmem:[%s15204_s29 + $0x220] sm:$0xff]  ;;  %v547_v28 = vld [vmem:[#allocation2 + $0x8] sm:$0x7f] }
 0x196   :  { %7467 = vmatpush3.msra.mxu1 %v817_v25  ;;  %v810_v25 = vld [vmem:[%s15204_s29 + $0x218] sm:$0xff] }
 0x197   :  { %7468 = vmatprep.subr.mxu1 %v832_v42  ;;  %v569_v42 = vsel %vm564_vm5, %v566_v10, %v568_v13  ;;  %v544_v10 = vmul.f32 %v537_v51, %v9667_v14 }
 0x198   :  { %7469 = vmatpush3.msra.mxu1 %v816_v53  ;;  %v825_v53 = vld [vmem:[%s15204_s29 + $0x290] sm:$0xff] }
 0x199   :  { %7470 = vmatprep.subr.mxu1 %v831_v33  ;;  %v543_v33 = vmul.f32 %v535_v62, %v517_v58  ;;  %v823_v62 = vld [vmem:[%s15204_s29 + $0x280] sm:$0xff]  ;;  %v606_v58 = vld [vmem:[#allocation2 + $0x30] sm:$0x80] }
 0x19a   :  { %7471 = vmatpush3.msra.mxu1 %v815_v21  ;;  %v575_v21 = vmul.f32 %v569_v42, %v547_v28 }
 0x19b   :  { %7472 = vmatprep.subr.mxu1 %v830_v44  ;;  %v518_v44 = vld [vmem:[#allocation2 + $0x8] sm:$0x3f] }
 0x19c   :  { %7473 = vmatpush3.msra.mxu1 %v814_v31  ;;  %v539_v31 = vsel %vm391_vm2, %v536_v50, %v538_v60  ;;  %v807_v50 = vld [vmem:[%s15204_s29 + $0x200] sm:$0xff]  ;;  %v869_v60 = vld [vmem:[%s15204_s29 + $0x3f0] sm:$0xff] }
 0x19d   :  { %7474 = vmatprep.subr.mxu1 %v829_v18  ;;  %v808_v18 = vld [vmem:[%s15204_s29 + $0x208] sm:$0xff]  ;;  %v545_v13 = vmul.f32 %v539_v31, %v518_v44  ;;  %v867_v44 = vld [vmem:[%s15204_s29 + $0x3e0] sm:$0xff]  ;;  %v866_v31 = vld [vmem:[%s15204_s29 + $0x3d8] sm:$0xff] }
 0x19e   :  { %7475 = vmatpush3.msra.mxu1 %v813_v26  ;;  %v627_v26 = vrot.slane %v9074_v63, 1  ;;  %v870_v63 = vld [vmem:[%s15204_s29 + $0x3f8] sm:$0xff] }
 0x19f   :  { %7476 = vmatprep.subr.mxu1 %v828_v52  ;;  %v628_v52 = vrot.slane %v9076_v0, 1  ;;  %v856_v0 = vld [vmem:[%s15204_s29 + $0x388] sm:$0xff] }
 0x1a0   :  { %7477 = vmatpush3.msra.mxu1 %v812_v6  ;;  %v699_v6 = vrot.slane %v543_v33, 4  ;;  %v636_v33 = vmul.f32 %v627_v26, %v606_v58  ;;  %v862_v58 = vld [vmem:[%s15204_s29 + $0x3b8] sm:$0xff] }
 0x1a1   :  { %7478 = vmatprep.subr.mxu1 %v827_v15  ;;  %v713_v15 = vrot.slane %v575_v21, 5  ;;  %v629_v28 = vsel %vm626_vm3, %v627_v26, %v628_v52  ;;  %v852_v21 = vld [vmem:[%s15204_s29 + $0x368] sm:$0xff] }
 0x1a2   :  { %7479 = vmatpush3.msra.mxu1 %v811_v11  ;;  %v700_v11 = vrot.slane %v544_v10, 4  ;;  %v9993_v16 = vmul.f32 %v629_v28, %v9667_v14  ;;  %v733_v10 = vrot.slane %v636_v33, 7  ;;  %v861_v28 = vld [vmem:[%s15204_s29 + $0x3b0] sm:$0xff]  ;;  %v630_v33 = vrot.slane %v9088_v8, 1 }
 0x1a3   :  { %7480 = vmatprep.subr.mxu1 %v826_v59  ;;  %v854_v59 = vld [vmem:[%s15204_s29 + $0x378] sm:$0xff]  ;;  %v714_v42 = vsel %vm505_vm4, %v711_v54, %v713_v15  ;;  %v598_v8 = vrot.slane %v9090_v9, 2  ;;  %v841_v9 = vld [vmem:[%s15204_s29 + $0x310] sm:$0xff] }
 0x1a4   :  { %7481 = vmatpush3.msra.mxu1 %v810_v25  ;;  %v701_v51 = vsel %vm391_vm2, %v699_v6, %v700_v11  ;;  %v702_v25 = vrot.slane %v545_v13, 4  ;;  %v734_v26 = vrot.slane %v9993_v16, 7  ;;  %v849_v13 = vld [vmem:[%s15204_s29 + $0x350] sm:$0xff]  ;;  %v1652_v16 = vld [vmem:[%s15278_s5 + $0x78] sm:$0xff] }
 0x1a5   :  { %7482 = vmatprep.subr.mxu1 %v825_v53  ;;  %v853_v53 = vld [vmem:[%s15204_s29 + $0x370] sm:$0xff] }
 0x1a6   :  { %7483 = vmatpush3.msra.mxu1 %v809_v61  ;;  %v868_v61 = vld [vmem:[%s15204_s29 + $0x3e8] sm:$0xff]  ;;  %v703_v54 = vsel %vm391_vm2, %v700_v11, %v702_v25  ;;  %v735_v6 = vsel %vm445_vm1, %v733_v10, %v734_v26  ;;  %v863_v11 = vld [vmem:[%s15204_s29 + $0x3c0] sm:$0xff]  ;;  %v857_v10 = vld [vmem:[%s15204_s29 + $0x390] sm:$0xff] }
 0x1a7   :  { %7484 = vmatprep.subr.mxu1 %v824_v55  ;;  %v851_v55 = vld [vmem:[%s15204_s29 + $0x360] sm:$0xff] }
 0x1a8   :  { %7485 = vmatpush3.msra.mxu1 %v808_v18  ;;  %v850_v18 = vld [vmem:[%s15204_s29 + $0x358] sm:$0xff] }
 0x1a9   :  { %7486 = vmatprep.subr.mxu1 %v823_v62  ;;  %v865_v62 = vld [vmem:[%s15204_s29 + $0x3d0] sm:$0xff] }
 0x1aa   :  { %7487 = vmatpush3.msra.mxu1 %v807_v50  ;;  %v864_v50 = vld [vmem:[%s15204_s29 + $0x3c8] sm:$0xff] }
 0x1ab   :  { %1119 = vmatmul.mubr.f32.vlgmr.msra.gmra.mxu1 %v701_v51  ;;  %7497 = vmatprep.subr.mxu1 %v870_v63  ;;  %v847_v63 = vld [vmem:[%s15204_s29 + $0x340] sm:$0xff]  ;;  %v845_v51 = vld [vmem:[%s15204_s29 + $0x330] sm:$0xff] }
 0x1ac   :  { %1123 = vmatprep.mubr.f32.mxu1 %v714_v42  ;;  %7498 = vmatpush3.msra.mxu1 %v854_v59  ;;  %v846_v59 = vld [vmem:[%s15204_s29 + $0x338] sm:$0xff]  ;;  %v596_v42 = vrot.slane %v9081_v5, 2 }
 0x1ad   :  { %7499 = vmatprep.subr.mxu1 %v869_v60  ;;  %v860_v60 = vld [vmem:[%s15204_s29 + $0x3a8] sm:$0xff]  ;;  %v858_v5 = vld [vmem:[%s15204_s29 + $0x398] sm:$0xff] }
 0x1ae   :  { %7500 = vmatpush3.msra.mxu1 %v853_v53  ;;  %v844_v53 = vld [vmem:[%s15204_s29 + $0x328] sm:$0xff] }
 0x1af   :  { %1124 = vmatmul.mubr.f32.gmra.mxu1 %v703_v54  ;;  %7501 = vmatprep.subr.mxu1 %v868_v61  ;;  %v859_v61 = vld [vmem:[%s15204_s29 + $0x3a0] sm:$0xff] }
 0x1b0   :  { %1128 = vmatprep.mubr.f32.mxu1 %v713_v15  ;;  %7502 = vmatpush3.msra.mxu1 %v852_v21  ;;  %v848_v15 = vld [vmem:[%s15204_s29 + $0x348] sm:$0xff]  ;;  %v843_v21 = vld [vmem:[%s15204_s29 + $0x320] sm:$0xff] }
 0x1b1   :  { %7503 = vmatprep.subr.mxu1 %v867_v44  ;;  %v842_v44 = vld [vmem:[%s15204_s29 + $0x318] sm:$0xff] }
 0x1b2   :  { %7504 = vmatpush3.msra.mxu1 %v851_v55  ;;  %v631_v55 = vsel %vm626_vm3, %v628_v52, %v630_v33 }
 0x1b3   :  { %1129 = vmatmul.mubr.f32.gmra.mxu1 %v702_v25  ;;  %7505 = vmatprep.subr.mxu1 %v866_v31  ;;  %v595_v25 = vrot.slane %v9079_v2, 2  ;;  %v576_v2 = vld [vmem:[#allocation2 + $0x30] sm:$0xc0] }
 0x1b4   :  { %7506 = vmatpush3.msra.mxu1 %v850_v18  ;;  %1198 = vmatprep.mubr.f32.mxu1 %v735_v6  ;;  %v638_v18 = vmul.f32 %v631_v55, %v9709_v24  ;;  %v840_v6 = vld [vmem:[%s15204_s29 + $0x308] sm:$0xff] }
 0x1b5   :  { %7507 = vmatprep.subr.mxu1 %v865_v62  ;;  %v597_v54 = vsel %vm594_vm7, %v595_v25, %v596_v42  ;;  %v603_v31 = vmul.f32 %v595_v25, %v576_v2  ;;  %v599_v62 = vsel %vm594_vm7, %v596_v42, %v598_v8  ;;  %v1651_v2 = vld [vmem:[%s15278_s5 + $0x70] sm:$0xff]  ;;  %v1698_v8 = vld [vmem:[%s15278_s5 + $0x1e8] sm:$0xff] }
 0x1b6   :  { %7508 = vmatpush3.msra.mxu1 %v849_v13  ;;  %v604_v52 = vmul.f32 %v597_v54, %v9667_v14  ;;  %v609_v13 = vld [vmem:[#allocation2 + $0x28] sm:$0x1]  ;;  %v839_v14 = vld [vmem:[%s15204_s29 + $0x300] sm:$0xff] }
 0x1b7   :  { %7509 = vmatprep.subr.mxu1 %v864_v50  ;;  %v855_v50 = vld [vmem:[%s15204_s29 + $0x380] sm:$0xff]  ;;  %v1666_v54 = vld [vmem:[%s15278_s5 + $0xe8] sm:$0xff] }
 0x1b8   :  { %7510 = vmatpush3.msra.mxu1 %v848_v15  ;;  %v721_v15 = vrot.slane %v603_v31, 6  ;;  %v1682_v55 = vld [vmem:[%s15278_s5 + $0x168] sm:$0xff]  ;;  %v1697_v31 = vld [vmem:[%s15278_s5 + $0x1e0] sm:$0xff] }
 0x1b9   :  { %7511 = vmatprep.subr.mxu1 %v863_v11  ;;  %v605_v11 = vmul.f32 %v9709_v24, %v599_v62  ;;  %v1648_v62 = vld [vmem:[%s15278_s5 + $0x58] sm:$0xff] }
 0x1ba   :  { %7512 = vmatpush3.msra.mxu1 %v847_v63  ;;  %v736_v63 = vrot.slane %v638_v18, 7  ;;  %v1681_v18 = vld [vmem:[%s15278_s5 + $0x160] sm:$0xff] }
 0x1bb   :  { %7513 = vmatprep.subr.mxu1 %v862_v58  ;;  %v722_v58 = vrot.slane %v604_v52, 6  ;;  %v1696_v52 = vld [vmem:[%s15278_s5 + $0x1d8] sm:$0xff] }
 0x1bc   :  { %7514 = vmatpush3.msra.mxu1 %v846_v59  ;;  %v639_v59 = vmul.f32 %v630_v33, %v609_v13  ;;  %v1700_v33 = vld [vmem:[%s15278_s5 + $0x1f8] sm:$0xff]  ;;  %v1663_v13 = vld [vmem:[%s15278_s5 + $0xd0] sm:$0xff] }
 0x1bd   :  { %7515 = vmatprep.subr.mxu1 %v861_v28  ;;  %v723_v28 = vsel %vm475_vm6, %v721_v15, %v722_v58  ;;  %7598 = vmatprep.subr.mxu0 %v1700_v33  ;;  %v1647_v15 = vld [vmem:[%s15278_s5 + $0x50] sm:$0xff]  ;;  %v1676_v33 = vld [vmem:[%s15278_s5 + $0x138] sm:$0xff] }
 0x1be   :  { %7516 = vmatpush3.msra.mxu1 %v845_v51  ;;  %v724_v51 = vrot.slane %v605_v11, 6  ;;  %v738_v24 = vrot.slane %v639_v59, 7  ;;  %v1679_v11 = vld [vmem:[%s15278_s5 + $0x150] sm:$0xff]  ;;  %v1678_v59 = vld [vmem:[%s15278_s5 + $0x148] sm:$0xff] }
 0x1bf   :  { %7517 = vmatprep.subr.mxu1 %v860_v60  ;;  %v737_v60 = vsel %vm445_vm1, %v734_v26, %v736_v63  ;;  %v1684_v26 = vld [vmem:[%s15278_s5 + $0x178] sm:$0xff] }
 0x1c0   :  { %7518 = vmatpush3.msra.mxu1 %v844_v53  ;;  %v725_v25 = vsel %vm475_vm6, %v722_v58, %v724_v51  ;;  %v739_v42 = vsel %vm445_vm1, %v736_v63, %v738_v24  ;;  %v1668_v53 = vld [vmem:[%s15278_s5 + $0xf8] sm:$0xff]  ;;  %7599 = vmatpush3.msra.mxu0 %v1684_v26  ;;  %v1694_v63 = vld [vmem:[%s15278_s5 + $0x1c8] sm:$0xff]  ;;  %v1677_v24 = vld [vmem:[%s15278_s5 + $0x140] sm:$0xff] }
 0x1c1   :  { %7519 = vmatprep.subr.mxu1 %v859_v61  ;;  %v1667_v61 = vld [vmem:[%s15278_s5 + $0xf0] sm:$0xff]  ;;  %v1646_v58 = vld [vmem:[%s15278_s5 + $0x48] sm:$0xff] }
 0x1c2   :  { %7520 = vmatpush3.msra.mxu1 %v843_v21  ;;  %v1699_v21 = vld [vmem:[%s15278_s5 + $0x1f0] sm:$0xff] }
 0x1c3   :  { %7521 = vmatprep.subr.mxu1 %v858_v5  ;;  %7600 = vmatprep.subr.mxu0 %v1699_v21  ;;  %v1683_v5 = vld [vmem:[%s15278_s5 + $0x170] sm:$0xff] }
 0x1c4   :  { %7522 = vmatpush3.msra.mxu1 %v842_v44  ;;  %7601 = vmatpush3.msra.mxu0 %v1683_v5  ;;  %v1650_v44 = vld [vmem:[%s15278_s5 + $0x68] sm:$0xff]  ;;  %v1691_v26 = vld [vmem:[%s15278_s5 + $0x1b0] sm:$0xff] }
 0x1c5   :  { %7523 = vmatprep.subr.mxu1 %v857_v10  ;;  %7602 = vmatprep.subr.mxu0 %v1698_v8  ;;  %v1665_v10 = vld [vmem:[%s15278_s5 + $0xe0] sm:$0xff]  ;;  %v1675_v21 = vld [vmem:[%s15278_s5 + $0x130] sm:$0xff]  ;;  %v1690_v5 = vld [vmem:[%s15278_s5 + $0x1a8] sm:$0xff] }
 0x1c6   :  { %7524 = vmatpush3.msra.mxu1 %v841_v9  ;;  %7603 = vmatpush3.msra.mxu0 %v1682_v55  ;;  %v1649_v9 = vld [vmem:[%s15278_s5 + $0x60] sm:$0xff]  ;;  %v1674_v8 = vld [vmem:[%s15278_s5 + $0x128] sm:$0xff] }
 0x1c7   :  { %7525 = vmatprep.subr.mxu1 %v856_v0  ;;  %7604 = vmatprep.subr.mxu0 %v1697_v31  ;;  %v1664_v0 = vld [vmem:[%s15278_s5 + $0xd8] sm:$0xff]  ;;  %v1689_v55 = vld [vmem:[%s15278_s5 + $0x1a0] sm:$0xff] }
 0x1c8   :  { %7526 = vmatpush3.msra.mxu1 %v840_v6  ;;  %7605 = vmatpush3.msra.mxu0 %v1681_v18  ;;  %v1680_v6 = vld [vmem:[%s15278_s5 + $0x158] sm:$0xff]  ;;  %v1673_v31 = vld [vmem:[%s15278_s5 + $0x120] sm:$0xff] }
 0x1c9   :  { %7527 = vmatprep.subr.mxu1 %v855_v50  ;;  %7606 = vmatprep.subr.mxu0 %v1696_v52  ;;  %v1695_v50 = vld [vmem:[%s15278_s5 + $0x1d0] sm:$0xff]  ;;  %v1688_v18 = vld [vmem:[%s15278_s5 + $0x198] sm:$0xff] }
 0x1ca   :  { %7528 = vmatpush3.msra.mxu1 %v839_v14  ;;  %7607 = vmatpush3.msra.mxu0 %v1680_v6  ;;  %v1662_v14 = vld [vmem:[%s15278_s5 + $0xc8] sm:$0xff]  ;;  %v1672_v52 = vld [vmem:[%s15278_s5 + $0x118] sm:$0xff]  ;;  %v1655_v6 = vld [vmem:[%s15278_s5 + $0x90] sm:$0xff] }
 0x1cb   :  { %1199 = vmatmul.mubr.f32.vlgmr.msra.gmra.mxu1 %v723_v28  ;;  %7557 = vmatprep.subr.mxu1 %v1668_v53  ;;  %v1661_v28 = vld [vmem:[%s15278_s5 + $0xc0] sm:$0xff]  ;;  %v1644_v53 = vld [vmem:[%s15278_s5 + $0x38] sm:$0xff] }
 0x1cc   :  { %1203 = vmatprep.mubr.f32.mxu1 %v737_v60  ;;  %7558 = vmatpush3.msra.mxu1 %v1652_v16  ;;  %v1645_v60 = vld [vmem:[%s15278_s5 + $0x40] sm:$0xff]  ;;  %v1659_v16 = vld [vmem:[%s15278_s5 + $0xb0] sm:$0xff] }
 0x1cd   :  { %7559 = vmatprep.subr.mxu1 %v1667_v61  ;;  %7608 = vmatprep.subr.mxu0 %v1695_v50  ;;  %v1643_v61 = vld [vmem:[%s15278_s5 + $0x30] sm:$0xff] }
 0x1ce   :  { %7560 = vmatpush3.msra.mxu1 %v1651_v2  ;;  %7609 = vmatpush3.msra.mxu0 %v1679_v11  ;;  %v1658_v2 = vld [vmem:[%s15278_s5 + $0xa8] sm:$0xff]  ;;  %v1639_v50 = vld [vmem:[%s15278_s5 + $0x10] sm:$0xff] }
 0x1cf   :  { %1204 = vmatmul.mubr.f32.gmra.mxu1 %v725_v25  ;;  %7561 = vmatprep.subr.mxu1 %v1666_v54  ;;  %v1660_v25 = vld [vmem:[%s15278_s5 + $0xb8] sm:$0xff]  ;;  %v1642_v54 = vld [vmem:[%s15278_s5 + $0x28] sm:$0xff] }
 0x1d0   :  { %1208 = vmatprep.mubr.f32.mxu1 %v739_v42  ;;  %7562 = vmatpush3.msra.mxu1 %v1650_v44  ;;  %v1692_v42 = vld [vmem:[%s15278_s5 + $0x1b8] sm:$0xff]  ;;  %v1657_v44 = vld [vmem:[%s15278_s5 + $0xa0] sm:$0xff]  ;;  %v1654_v11 = vld [vmem:[%s15278_s5 + $0x88] sm:$0xff] }
 0x1d1   :  { %7563 = vmatprep.subr.mxu1 %v1665_v10  ;;  %7610 = vmatprep.subr.mxu0 %v1694_v63  ;;  %v1641_v10 = vld [vmem:[%s15278_s5 + $0x20] sm:$0xff] }
 0x1d2   :  { %7564 = vmatpush3.msra.mxu1 %v1649_v9  ;;  %7611 = vmatpush3.msra.mxu0 %v1678_v59  ;;  %v1656_v9 = vld [vmem:[%s15278_s5 + $0x98] sm:$0xff]  ;;  %v1670_v59 = vld [vmem:[%s15278_s5 + $0x108] sm:$0xff] }
 0x1d3   :  { %1209 = vmatmul.mubr.f32.gmra.mxu1 %v724_v51  ;;  %7565 = vmatprep.subr.mxu1 %v1664_v0  ;;  %v1693_v51 = vld [vmem:[%s15278_s5 + $0x1c0] sm:$0xff]  ;;  %v1640_v0 = vld [vmem:[%s15278_s5 + $0x18] sm:$0xff] }
 0x1d4   :  { %7566 = vmatpush3.msra.mxu1 %v1648_v62  ;;  %7612 = vmatprep.subr.mxu0 %v1693_v51  ;;  %v1685_v51 = vld [vmem:[%s15278_s5 + $0x180] sm:$0xff] }
 0x1d5   :  { %7567 = vmatprep.subr.mxu1 %v1663_v13  ;;  %7613 = vmatpush3.msra.mxu0 %v1677_v24  ;;  %v1687_v13 = vld [vmem:[%s15278_s5 + $0x190] sm:$0xff]  ;;  %v1669_v24 = vld [vmem:[%s15278_s5 + $0x100] sm:$0xff] }
 0x1d6   :  { %7568 = vmatpush3.msra.mxu1 %v1647_v15  ;;  %7614 = vmatprep.subr.mxu0 %v1692_v42  ;;  %v1671_v15 = vld [vmem:[%s15278_s5 + $0x110] sm:$0xff]  ;;  %v1764_v42 = vld [vmem:[%s15278_s5 + $0x3f8] sm:$0xff] }
 0x1d7   :  { %7569 = vmatprep.subr.mxu1 %v1662_v14  ;;  %7615 = vmatpush3.msra.mxu0 %v1676_v33  ;;  %v1686_v14 = vld [vmem:[%s15278_s5 + $0x188] sm:$0xff] }
 0x1d8   :  { %7570 = vmatpush3.msra.mxu1 %v1646_v58  ;;  %7616 = vmatprep.subr.mxu0 %v1691_v26  ;;  %v1638_v58 = vld [vmem:[%s15278_s5 + $0x8] sm:$0xff] }
 0x1d9   :  { %7571 = vmatprep.subr.mxu1 %v1661_v28  ;;  %7617 = vmatpush3.msra.mxu0 %v1675_v21  ;;  %v1653_v28 = vld [vmem:[%s15278_s5 + $0x80] sm:$0xff] }
 0x1da   :  { %7572 = vmatpush3.msra.mxu1 %v1645_v60  ;;  %7618 = vmatprep.subr.mxu0 %v1690_v5  ;;  %v1637_v60 = vld [vmem:[%s15278_s5] sm:$0xff] }
 0x1db   :  { %7573 = vmatprep.subr.mxu1 %v1660_v25  ;;  %7619 = vmatpush3.msra.mxu0 %v1674_v8  ;;  %v1732_v25 = vld [vmem:[%s15278_s5 + $0x2f8] sm:$0xff] }
 0x1dc   :  { %7574 = vmatpush3.msra.mxu1 %v1644_v53  ;;  %7620 = vmatprep.subr.mxu0 %v1689_v55 }
 0x1dd   :  { %7575 = vmatprep.subr.mxu1 %v1659_v16  ;;  %7621 = vmatpush3.msra.mxu0 %v1673_v31 }
 0x1de   :  { %7576 = vmatpush3.msra.mxu1 %v1643_v61  ;;  %7622 = vmatprep.subr.mxu0 %v1688_v18 }
 0x1df   :  { %7577 = vmatprep.subr.mxu1 %v1658_v2  ;;  %7623 = vmatpush3.msra.mxu0 %v1672_v52 }
 0x1e0   :  { %7578 = vmatpush3.msra.mxu1 %v1642_v54  ;;  %7624 = vmatprep.subr.mxu0 %v1687_v13 }
 0x1e1   :  { %7579 = vmatprep.subr.mxu1 %v1657_v44  ;;  %7625 = vmatpush3.msra.mxu0 %v1671_v15 }
 0x1e2   :  { %7580 = vmatpush3.msra.mxu1 %v1641_v10  ;;  %7626 = vmatprep.subr.mxu0 %v1686_v14 }
 0x1e3   :  { %7581 = vmatprep.subr.mxu1 %v1656_v9  ;;  %7627 = vmatpush3.msra.mxu0 %v1670_v59 }
 0x1e4   :  { %7582 = vmatpush3.msra.mxu1 %v1640_v0  ;;  %7628 = vmatprep.subr.mxu0 %v1685_v51 }
 0x1e5   :  { %7583 = vmatprep.subr.mxu1 %v1655_v6  ;;  %7629 = vmatpush3.msra.mxu0 %v1669_v24 }
 0x1e6   :  { %7584 = vmatpush3.msra.mxu1 %v1639_v50  ;;  %7680 = vmatprep.subr.mxu0 %v1764_v42 }
 0x1e7   :  { %7585 = vmatprep.subr.mxu1 %v1654_v11  ;;  %v7200_v11 = vld [vmem:[%s15279_s26] ss:$0 sm:$0xff] }
 0x1e8   :  { %7586 = vmatpush3.msra.mxu1 %v1638_v58 }
 0x1e9   :  { %7587 = vmatprep.subr.mxu1 %v1653_v28 }
 0x1ea   :  { %7588 = vmatpush3.msra.mxu1 %v1637_v60 }
 0x1eb   :  { %7639 = vmatprep.subr.mxu1 %v1732_v25 }
 0x222   :  { %v10252_v62 = vpop.f32.mrf.mxu0 }
 0x224   :  { %v8305_v63 = vpop.f32.mrf.mxu0 }
 0x229   :  { %v7406_v61 = vpop.f32.mrf.mxu1 }
 0x22b   :  { %v7407_v21 = vpop.f32.mrf.mxu1 }
 0x22c   :  { %v7408_v15 = vadd.f32 %v7407_v21, %v7406_v61 }
 0x22e   :  { %v1285_v53 = vpop.f32.mrf.mxu0  ;;  %v961_v58 = vadd.f32 %v7408_v15, %v7200_v11 }
 0x230   :  { %v8308_v33 = vpop.f32.mrf.mxu0 }
 0x232   :  { %v10296_v16 = vpop.f32.mrf.mxu0 }
 0x233   :  { %v7409_v2 = vpop.f32.mrf.mxu1 }
 0x234   :  { %v8311_v26 = vpop.f32.mrf.mxu0 }
 0x235   :  { %v7410_v5 = vpop.f32.mrf.mxu1 }
 0x236   :  { %v7411_v59 = vadd.f32 %v7410_v5, %v7409_v2 }
 0x237   :  { %v7412_v54 = vpop.f32.mrf.mxu1 }
 0x238   :  { %v966_v33 = vadd.f32 %v7411_v59, %v7200_v11 }
 0x239   :  { %v7413_v8 = vpop.f32.mrf.mxu1 }
 0x23a   :  { %v7414_v25 = vadd.f32 %v7413_v8, %v7412_v54 }
 0x23c   :  { %v971_v1 = vadd.f32 %v7414_v25, %v7200_v11 }
 0x24b   :  { %v7447_v44 = vpop.f32.mrf.mxu1 }
 0x24d   :  { %v7448_v55 = vpop.f32.mrf.mxu1 }
 0x24e   :  { %v7449_v14 = vadd.f32 %v7448_v55, %v7447_v44 }
 0x24f   :  { %v7450_v10 = vpop.f32.mrf.mxu1 }
 0x250   :  { %v1041_v60 = vadd.f32 %v7449_v14, %v961_v58 }
 0x251   :  { %v7451_v31 = vpop.f32.mrf.mxu1 }
 0x252   :  { %v7452_v24 = vadd.f32 %v7451_v31, %v7450_v10 }
 0x253   :  { %v7453_v9 = vpop.f32.mrf.mxu1 }
 0x254   :  { %v1046_v61 = vadd.f32 %v7452_v24, %v966_v33 }
 0x255   :  { %v7454_v18 = vpop.f32.mrf.mxu1 }
 0x256   :  { %v7455_v21 = vadd.f32 %v7454_v18, %v7453_v9  ;;  %v15280_v18 = vld [vmem:[#allocation6_spill] sm:$0xff] }
 0x26b   :  { %v7488_v0 = vpop.f32.mrf.mxu1 }
 0x26d   :  { %v7489_v52 = vpop.f32.mrf.mxu1 }
 0x26e   :  { %v7490_v28 = vadd.f32 %v7489_v52, %v7488_v0  ;;  %v1051_v52 = vadd.f32 %v7455_v21, %v971_v1 }
 0x26f   :  { %v7491_v6 = vpop.f32.mrf.mxu1 }
 0x270   :  { %v1121_v26 = vadd.f32 %v7490_v28, %v1041_v60 }
 0x271   :  { %v7492_v13 = vpop.f32.mrf.mxu1 }
 0x272   :  { %v7493_v35 = vadd.f32 %v7492_v13, %v7491_v6 }
 0x273   :  { %v7494_v50 = vpop.f32.mrf.mxu1 }
 0x274   :  { %v1126_v44 = vadd.f32 %v7493_v35, %v1046_v61  ;;  %v1353_v35 = vrot.slane %v9108_v20, 7 }
 0x275   :  { %v7495_v63 = vpop.f32.mrf.mxu1 }
 0x276   :  { %v7496_v55 = vadd.f32 %v7495_v63, %v7494_v50  ;;  %v1408_v50 = vrot.slane %v15280_v18, 5  ;;  %v15287_v18 = vld [vmem:[#allocation4_spill] sm:$0xff] }
 0x278   :  { %v1131_v31 = vadd.f32 %v7496_v55, %v1051_v52 }
 0x28b   :  { %v7529_v51 = vpop.f32.mrf.mxu1 }
 0x28d   :  { %v7530_v42 = vpop.f32.mrf.mxu1 }
 0x28e   :  { %v7531_v30 = vadd.f32 %v7530_v42, %v7529_v51 }
 0x28f   :  { %v7532_v38 = vpop.f32.mrf.mxu1 }
 0x290   :  { %v1201_v22 = vadd.f32 %v7531_v30, %v1121_v26  ;;  %v1352_v30 = vrot.slane %v9101_v17, 7 }
 0x291   :  { %v7533_v56 = vpop.f32.mrf.mxu1 }
 0x292   :  { %v1281_v2 = vadd.f32 %v10252_v62, %v1201_v22  ;;  %v7534_v5 = vadd.f32 %v7533_v56, %v7532_v38  ;;  %v15281_v22 = vld [vmem:[#allocation7_spill] sm:$0xff]  ;;  %v15282_v38 = vld [vmem:[#allocation8_spill] sm:$0xff]  ;;  %v15283_v62 = vld [vmem:[#allocation9_spill] sm:$0xff]  ;;  %v1354_v28 = vsel %vm445_vm1, %v1352_v30, %v1353_v35 }
 0x293   :  { %v7535_v0 = vpop.f32.mrf.mxu1  ;;  %v1409_v56 = vrot.slane %v15281_v22, 5  ;;  %v1380_v1 = vrot.slane %v15282_v38, 6  ;;  %v1381_v11 = vrot.slane %v15283_v62, 6  ;;  %v1716_v22 = vld [vmem:[%s15278_s5 + $0x278] sm:$0xff] }
 0x294   :  { %v1294_v10 = vmax.f32 %v1281_v2, 0.0  ;;  %v1206_v54 = vadd.f32 %v7534_v5, %v1126_v44  ;;  %v1748_v38 = vld [vmem:[%s15278_s5 + $0x378] sm:$0xff] }
 0x295   :  { %v7536_v8 = vpop.f32.mrf.mxu1  ;;  %v1410_v17 = vsel %vm505_vm4, %v1408_v50, %v1409_v56  ;;  %v1382_v20 = vsel %vm475_vm6, %v1380_v1, %v1381_v11 }
 0x296   :  { %v1300_v15 = vrot.slane %v1294_v10, 4  ;;  %v1286_v6 = vadd.f32 %v1285_v53, %v1206_v54  ;;  %v7537_v13 = vadd.f32 %v7536_v8, %v7535_v0  ;;  %v15284_v10 = vld [vmem:[#allocation5_spill] sm:$0xff]  ;;  %v15285_v8 = vld [vmem:[#allocation16_spill] sm:$0xff] }
 0x297   :  { %v1355_v54 = vrot.slane %v15284_v10, 7 }
 0x298   :  { %1308 = vst [vmem:[#allocation2 + $0x30] sm:$0xf0] %v1300_v15  ;;  %v1295_v14 = vmax.f32 %v1286_v6, 0.0  ;;  %v1211_v9 = vadd.f32 %v7537_v13, %v1131_v31  ;;  %v1411_v31 = vrot.slane %v15285_v8, 5  ;;  %v15286_v13 = vld [vmem:[#allocation17_spill] sm:$0xff] }
 0x29a   :  { %v1301_v63 = vrot.slane %v1295_v14, 4  ;;  %v1291_v58 = vadd.f32 %v10296_v16, %v1211_v9  ;;  %v1383_v14 = vrot.slane %v15286_v13, 6  ;;  %v1412_v10 = vsel %vm505_vm4, %v1409_v56, %v1411_v31  ;;  %v1713_v31 = vld [vmem:[%s15278_s5 + $0x260] sm:$0xff] }
 0x29c   :  { %v10310_v53 = vsel %vm391_vm2, %v1300_v15, %v1301_v63  ;;  %v1296_v59 = vmax.f32 %v1291_v58, 0.0  ;;  %v1731_v58 = vld [vmem:[%s15278_s5 + $0x2f0] sm:$0xff]  ;;  %v1384_v8 = vsel %vm475_vm6, %v1381_v11, %v1383_v14  ;;  %v1745_v14 = vld [vmem:[%s15278_s5 + $0x360] sm:$0xff] }
 0x29d   :  { %v10316_v60 = vmul.f32 %v1354_v28, %v10310_v53  ;;  %v10319_v24 = vmul.f32 %v1410_v17, %v10310_v53  ;;  %v10322_v16 = vmul.f32 %v1382_v20, %v10310_v53  ;;  %v1715_v28 = vld [vmem:[%s15278_s5 + $0x270] sm:$0xff]  ;;  %v15289_v17 = vld [vmem:[#allocation12_spill] sm:$0xff] }
 0x29e   :  { %v1303_v51 = vrot.slane %v1296_v59, 4  ;;  %v1763_v59 = vld [vmem:[%s15278_s5 + $0x3f0] sm:$0xff]  ;;  %v1465_v20 = vrot.slane %v15289_v17, 3 }
 0x29f   :  { %v1335_v25 = vld [vmem:[#allocation2 + $0x30] sm:$0xfe]  ;;  %v1561_v5 = vrot.slane %v10316_v60, 1  ;;  %v1583_v52 = vrot.slane %v10319_v24, 3  ;;  %v1572_v6 = vrot.slane %v10322_v16, 2  ;;  %v1760_v60 = vld [vmem:[%s15278_s5 + $0x3d8] sm:$0xff] }
 0x2a0   :  { %v1391_v42 = vld [vmem:[#allocation2 + $0x30] sm:$0xf8]  ;;  %v1304_v33 = vsel %vm391_vm2, %v1301_v63, %v1303_v51  ;;  %v1360_v26 = vmul.f32 %v1352_v30, %v1335_v25  ;;  %v15290_v51 = vld [vmem:[#allocation20_spill] sm:$0xff]  ;;  %v1712_v16 = vld [vmem:[%s15278_s5 + $0x258] sm:$0xff] }
 0x2a1   :  { %v1416_v61 = vmul.f32 %v1408_v50, %v1391_v42  ;;  %v1363_v21 = vld [vmem:[#allocation2 + $0x30] sm:$0xfc]  ;;  %1310 = vst [vmem:[#allocation2 + $0x8] sm:$0x3f] %v1304_v33  ;;  %v1522_v25 = vrot.slane %v15290_v51, 1  ;;  %v15291_v42 = vld [vmem:[#allocation21_spill] sm:$0xff] }
 0x2a2   :  { %v1311_v44 = vld [vmem:[#allocation2 + $0x30] sm:$0xff]  ;;  %v1388_v55 = vmul.f32 %v1380_v1, %v1363_v21  ;;  %v1560_v2 = vrot.slane %v1360_v26, 1  ;;  %v15288_v1 = vld [vmem:[#allocation11_spill] sm:$0xff]  ;;  %v1523_v33 = vrot.slane %v15291_v42, 1  ;;  %v1762_v21 = vld [vmem:[%s15278_s5 + $0x3e8] sm:$0xff] }
 0x2a3   :  { %v1582_v0 = vrot.slane %v1416_v61, 3  ;;  %v1332_v50 = vmul.f32 %v15287_v18, %v1311_v44  ;;  %v1464_v62 = vrot.slane %v15288_v1, 3  ;;  %v1747_v26 = vld [vmem:[%s15278_s5 + $0x370] sm:$0xff]  ;;  %v1730_v61 = vld [vmem:[%s15278_s5 + $0x2e8] sm:$0xff] }
 0x2a4   :  { %v1571_v15 = vrot.slane %v1388_v55, 2  ;;  %v1562_v9 = vsel %vm626_vm3, %v1560_v2, %v1561_v5  ;;  %v1714_v44 = vld [vmem:[%s15278_s5 + $0x268] sm:$0xff]  ;;  %v1447_v2 = vld [vmem:[#allocation2 + $0x30] sm:$0xe0] }
 0x2a5   :  { %v1584_v30 = vsel %vm564_vm5, %v1582_v0, %v1583_v52  ;;  %1852 = vmatprep.mubr.f32.mxu1 %v1562_v9  ;;  %v1746_v55 = vld [vmem:[%s15278_s5 + $0x368] sm:$0xff]  ;;  %v1356_v0 = vsel %vm445_vm1, %v1353_v35, %v1355_v54  ;;  %v1761_v35 = vld [vmem:[%s15278_s5 + $0x3e0] sm:$0xff]  ;;  %v1503_v56 = vld [vmem:[#allocation2 + $0x30] sm:$0x80]  ;;  %v1466_v11 = vsel %vm564_vm5, %v1464_v62, %v1465_v20  ;;  %v1524_v54 = vsel %vm626_vm3, %v1522_v25, %v1523_v33 }
 0x2a6   :  { %1932 = vmatprep.mubr.f32.mxu0 %v1584_v30  ;;  %v1573_v63 = vsel %vm594_vm7, %v1571_v15, %v1572_v6  ;;  %1853 = vmatmul.mubr.f32.vlgmr.msra.gmra.mxu1 %v1332_v50  ;;  %v10399_v51 = vmul.f32 %v1466_v11, %v10310_v53  ;;  %v10417_v24 = vmul.f32 %v1524_v54, %v10310_v53  ;;  %v1725_v11 = vld [vmem:[%s15278_s5 + $0x2c0] sm:$0xff]  ;;  %v1718_v42 = vld [vmem:[%s15278_s5 + $0x288] sm:$0xff] }
 0x2a7   :  { %1933 = vmatmul.mubr.f32.vlgmr.msra.gmra.mxu0 %v1573_v63  ;;  %7640 = vmatpush3.msra.mxu1 %v1716_v22  ;;  %v1729_v22 = vld [vmem:[%s15278_s5 + $0x2e0] sm:$0xff] }
 0x2a8   :  { %7681 = vmatpush3.msra.mxu0 %v1748_v38  ;;  %7641 = vmatprep.subr.mxu1 %v1731_v58  ;;  %v1336_v15 = vld [vmem:[#allocation2 + $0x8] sm:$0x7]  ;;  %v1472_v58 = vmul.f32 %v1464_v62, %v1447_v2  ;;  %v1757_v54 = vld [vmem:[%s15278_s5 + $0x3c0] sm:$0xff] }
 0x2a9   :  { %7682 = vmatprep.subr.mxu0 %v1763_v59  ;;  %v1392_v13 = vld [vmem:[#allocation2 + $0x8] sm:$0x1f]  ;;  %7642 = vmatpush3.msra.mxu1 %v1715_v28  ;;  %v1362_v30 = vmul.f32 %v1356_v0, %v1336_v15  ;;  %v15292_v59 = vld [vmem:[#allocation10_spill] sm:$0xff]  ;;  %v1628_v15 = vrot.slane %v10417_v24, 7 }
 0x2aa   :  { %v1364_v9 = vld [vmem:[#allocation2 + $0x8] sm:$0xf]  ;;  %7683 = vmatpush3.msra.mxu0 %v1747_v26  ;;  %v1418_v18 = vmul.f32 %v1412_v10, %v1392_v13  ;;  %7643 = vmatprep.subr.mxu1 %v1730_v61  ;;  %v1333_v28 = vmul.f32 %v15292_v59, %v10310_v53  ;;  %v1531_v26 = vmul.f32 %v1522_v25, %v1503_v56  ;;  %v1728_v25 = vld [vmem:[%s15278_s5 + $0x2d8] sm:$0xff]  ;;  %v1727_v0 = vld [vmem:[%s15278_s5 + $0x2d0] sm:$0xff]  ;;  %v1605_v10 = vrot.slane %v10399_v51, 5 }
 0x2ab   :  { %v1390_v50 = vmul.f32 %v1384_v8, %v1364_v9  ;;  %7684 = vmatprep.subr.mxu0 %v1762_v21  ;;  %v1563_v38 = vrot.slane %v1362_v30, 1  ;;  %7644 = vmatpush3.msra.mxu1 %v1714_v44  ;;  %v1759_v8 = vld [vmem:[%s15278_s5 + $0x3d0] sm:$0xff]  ;;  %v1742_v56 = vld [vmem:[%s15278_s5 + $0x348] sm:$0xff] }
 0x2ac   :  { %v1585_v1 = vrot.slane %v1418_v18, 3  ;;  %7685 = vmatpush3.msra.mxu0 %v1746_v55  ;;  %7645 = vmatprep.subr.mxu1 %v1729_v22  ;;  %v1627_v44 = vrot.slane %v1531_v26, 7  ;;  %v15293_v55 = vld [vmem:[#allocation15_spill] sm:$0xff]  ;;  %v1711_v9 = vld [vmem:[%s15278_s5 + $0x250] sm:$0xff]  ;;  %v1758_v22 = vld [vmem:[%s15278_s5 + $0x3c8] sm:$0xff] }
 0x2ad   :  { %v1574_v63 = vrot.slane %v1390_v50, 2  ;;  %7686 = vmatprep.subr.mxu0 %v1761_v35  ;;  %v1564_v61 = vsel %vm626_vm3, %v1561_v5, %v1563_v38  ;;  %7646 = vmatpush3.msra.mxu1 %v1713_v31  ;;  %v1313_v5 = vld [vmem:[#allocation2 + $0x8] sm:$0x3]  ;;  %v1743_v30 = vld [vmem:[%s15278_s5 + $0x350] sm:$0xff]  ;;  %v1709_v31 = vld [vmem:[%s15278_s5 + $0x240] sm:$0xff] }
 0x2ae   :  { %v1586_v21 = vsel %vm564_vm5, %v1583_v52, %v1585_v1  ;;  %7687 = vmatpush3.msra.mxu0 %v1745_v14  ;;  %1857 = vmatprep.mubr.f32.mxu1 %v1564_v61  ;;  %v1744_v52 = vld [vmem:[%s15278_s5 + $0x358] sm:$0xff]  ;;  %v1334_v2 = vmul.f32 %v15293_v55, %v1313_v5  ;;  %v1629_v18 = vsel %vm445_vm1, %v1627_v44, %v1628_v15  ;;  %v1726_v50 = vld [vmem:[%s15278_s5 + $0x2c8] sm:$0xff]  ;;  %v1741_v14 = vld [vmem:[%s15278_s5 + $0x340] sm:$0xff] }
 0x2af   :  { %v1575_v62 = vsel %vm594_vm7, %v1572_v6, %v1574_v63  ;;  %1937 = vmatprep.mubr.f32.mxu0 %v1586_v21  ;;  %1858 = vmatmul.mubr.f32.gmra.mxu1 %v1333_v28  ;;  %v1604_v6 = vrot.slane %v1472_v58, 5  ;;  %v1710_v35 = vld [vmem:[%s15278_s5 + $0x248] sm:$0xff]  ;;  %v1740_v58 = vld [vmem:[%s15278_s5 + $0x338] sm:$0xff]  ;;  %v1723_v59 = vld [vmem:[%s15278_s5 + $0x2b0] sm:$0xff] }
 0x2b0   :  { %1938 = vmatmul.mubr.f32.gmra.mxu0 %v1575_v62  ;;  %1862 = vmatprep.mubr.f32.mxu1 %v1563_v38  ;;  %v1724_v38 = vld [vmem:[%s15278_s5 + $0x2b8] sm:$0xff]  ;;  %v1755_v28 = vld [vmem:[%s15278_s5 + $0x3b0] sm:$0xff]  ;;  %v1722_v21 = vld [vmem:[%s15278_s5 + $0x2a8] sm:$0xff] }
 0x2b1   :  { %1942 = vmatprep.mubr.f32.mxu0 %v1585_v1  ;;  %7647 = vmatprep.subr.mxu1 %v1728_v25  ;;  %v1606_v13 = vsel %vm505_vm4, %v1604_v6, %v1605_v10  ;;  %v1756_v1 = vld [vmem:[%s15278_s5 + $0x3b8] sm:$0xff]  ;;  %v1707_v26 = vld [vmem:[%s15278_s5 + $0x230] sm:$0xff]  ;;  %v1754_v62 = vld [vmem:[%s15278_s5 + $0x3a8] sm:$0xff] }
 0x2b2   :  { %7688 = vmatprep.subr.mxu0 %v1760_v60  ;;  %7648 = vmatpush3.msra.mxu1 %v1712_v16  ;;  %v1739_v61 = vld [vmem:[%s15278_s5 + $0x330] sm:$0xff]  ;;  %v1738_v6 = vld [vmem:[%s15278_s5 + $0x328] sm:$0xff] }
 0x2b3   :  { %7689 = vmatpush3.msra.mxu0 %v1744_v52  ;;  %1863 = vmatmul.mubr.f32.gmra.mxu1 %v1334_v2  ;;  %v15294_v25 = vld [vmem:[#allocation13_spill] sm:$0xff]  ;;  %v15295_v5 = vld [vmem:[#allocation14_spill] sm:$0xff] }
 0x2b4   :  { %1943 = vmatmul.mubr.f32.gmra.mxu0 %v1574_v63  ;;  %7649 = vmatprep.subr.mxu1 %v1727_v0  ;;  %v1708_v63 = vld [vmem:[%s15278_s5 + $0x238] sm:$0xff]  ;;  %v1436_v60 = vrot.slane %v15294_v25, 4  ;;  %v1437_v16 = vrot.slane %v15295_v5, 4  ;;  %v1706_v52 = vld [vmem:[%s15278_s5 + $0x228] sm:$0xff]  ;;  %v1751_v25 = vld [vmem:[%s15278_s5 + $0x390] sm:$0xff] }
 0x2b5   :  { %2012 = vmatprep.mubr.f32.mxu1 %v1606_v13  ;;  %7690 = vmatprep.subr.mxu0 %v1759_v8  ;;  %v15296_v44 = vld [vmem:[#allocation18_spill] sm:$0xff]  ;;  %v15298_v8 = vld [vmem:[#allocation23_spill] sm:$0xff]  ;;  %v1778_v24 = vld [vmem:[%s15278_s5 + $0x468] sm:$0xff] }
 0x2b6   :  { %2092 = vmatprep.mubr.f32.mxu0 %v1629_v18  ;;  %7650 = vmatpush3.msra.mxu1 %v1711_v9  ;;  %v1467_v55 = vrot.slane %v15296_v44, 3  ;;  %v15297_v2 = vld [vmem:[#allocation22_spill] sm:$0xff]  ;;  %v1493_v13 = vrot.slane %v15298_v8, 2  ;;  %v1721_v9 = vld [vmem:[%s15278_s5 + $0x2a0] sm:$0xff]  ;;  %v1420_v8 = vld [vmem:[#allocation2 + $0x8] sm:$0x3f] }
 0x2b7   :  { %7691 = vmatpush3.msra.mxu0 %v1743_v30  ;;  %7651 = vmatprep.subr.mxu1 %v1726_v50  ;;  %v1492_v0 = vrot.slane %v15297_v2, 2  ;;  %v1753_v30 = vld [vmem:[%s15278_s5 + $0x3a0] sm:$0xff]  ;;  %v1735_v44 = vld [vmem:[%s15278_s5 + $0x310] sm:$0xff] }
 0x2b8   :  { %7692 = vmatprep.subr.mxu0 %v1758_v22  ;;  %7652 = vmatpush3.msra.mxu1 %v1710_v35  ;;  %v1705_v18 = vld [vmem:[%s15278_s5 + $0x220] sm:$0xff] }
 0x2b9   :  { %7693 = vmatpush3.msra.mxu0 %v1742_v56  ;;  %7653 = vmatprep.subr.mxu1 %v1725_v11  ;;  %v15299_v50 = vld [vmem:[#allocation24_spill] sm:$0xff]  ;;  %v1419_v56 = vld [vmem:[#allocation2 + $0x30] sm:$0xf0] }
 0x2ba   :  { %7694 = vmatprep.subr.mxu0 %v1757_v54  ;;  %7654 = vmatpush3.msra.mxu1 %v1709_v31  ;;  %v1525_v22 = vrot.slane %v15299_v50, 1  ;;  %v1737_v35 = vld [vmem:[%s15278_s5 + $0x320] sm:$0xff]  ;;  %v1475_v11 = vld [vmem:[#allocation2 + $0x30] sm:$0xc0]  ;;  %v1720_v54 = vld [vmem:[%s15278_s5 + $0x298] sm:$0xff]  ;;  %v1444_v5 = vmul.f32 %v1436_v60, %v1419_v56 }
 0x2bb   :  { %7695 = vmatpush3.msra.mxu0 %v1741_v14  ;;  %7655 = vmatprep.subr.mxu1 %v1724_v38  ;;  %v1752_v31 = vld [vmem:[%s15278_s5 + $0x398] sm:$0xff]  ;;  %v1448_v14 = vld [vmem:[#allocation2 + $0x8] sm:$0x7f]  ;;  %v1438_v38 = vsel %vm391_vm2, %v1436_v60, %v1437_v16  ;;  %v1717_v56 = vld [vmem:[%s15278_s5 + $0x280] sm:$0xff] }
 0x2bc   :  { %7696 = vmatprep.subr.mxu0 %v1756_v1  ;;  %7656 = vmatpush3.msra.mxu1 %v1708_v63  ;;  %v15300_v1 = vld [vmem:[#allocation25_spill] sm:$0xff]  ;;  %v1526_v17 = vsel %vm626_vm3, %v1523_v33, %v1525_v22  ;;  %v10605_v50 = vld [vmem:[#allocation2] sm:$0xff] }
 0x2bd   :  { %7697 = vmatpush3.msra.mxu0 %v1740_v58  ;;  %7657 = vmatprep.subr.mxu1 %v1723_v59  ;;  %v1495_v63 = vrot.slane %v15300_v1, 2  ;;  %v1704_v58 = vld [vmem:[%s15278_s5 + $0x218] sm:$0xff]  ;;  %v1750_v33 = vld [vmem:[%s15278_s5 + $0x388] sm:$0xff] }
 0x2be   :  { %7698 = vmatprep.subr.mxu0 %v1755_v28  ;;  %7658 = vmatpush3.msra.mxu1 %v1707_v26  ;;  %v1736_v59 = vld [vmem:[%s15278_s5 + $0x318] sm:$0xff]  ;;  %v10538_v28 = vld [vmem:[#allocation2 + $0x8] sm:$0xff]  ;;  %v1468_v26 = vsel %vm564_vm5, %v1465_v20, %v1467_v55  ;;  %v1703_v20 = vld [vmem:[%s15278_s5 + $0x210] sm:$0xff]  ;;  %v1445_v55 = vmul.f32 %v1438_v38, %v10310_v53 }
 0x2bf   :  { %7699 = vmatpush3.msra.mxu0 %v1739_v61  ;;  %7659 = vmatprep.subr.mxu1 %v1722_v21  ;;  %v15301_v61 = vld [vmem:[#allocation19_spill] sm:$0xff]  ;;  %v10562_v60 = vmul.f32 %v1468_v26, %v1448_v14  ;;  %v1506_v14 = vld [vmem:[#allocation2 + $0x28] sm:$0x1] }
 0x2c0   :  { %7700 = vmatprep.subr.mxu0 %v1754_v62  ;;  %7660 = vmatpush3.msra.mxu1 %v1706_v52  ;;  %v1439_v21 = vrot.slane %v15301_v61, 4  ;;  %v1719_v62 = vld [vmem:[%s15278_s5 + $0x290] sm:$0xff]  ;;  %v1500_v52 = vmul.f32 %v1492_v0, %v1475_v11  ;;  %v1593_v11 = vrot.slane %v1444_v5, 4  ;;  %v1733_v38 = vld [vmem:[%s15278_s5 + $0x300] sm:$0xff]  ;;  %v1534_v61 = vmul.f32 %v1525_v22, %v1506_v14  ;;  %v1535_v14 = vld [vmem:[#allocation2 + $0x28] sm:$0x3] }
 0x2c1   :  { %7701 = vmatpush3.msra.mxu0 %v1738_v6  ;;  %7661 = vmatprep.subr.mxu1 %v1721_v9  ;;  %v1494_v6 = vsel %vm594_vm7, %v1492_v0, %v1493_v13  ;;  %v1533_v0 = vmul.f32 %v1526_v17, %v10538_v28  ;;  %v1496_v9 = vsel %vm594_vm7, %v1493_v13, %v1495_v63  ;;  %v1749_v13 = vld [vmem:[%s15278_s5 + $0x380] sm:$0xff]  ;;  %v1607_v1 = vrot.slane %v10562_v60, 5  ;;  %v1779_v17 = vld [vmem:[%s15278_s5 + $0x470] sm:$0xff]  ;;  %v1776_v60 = vld [vmem:[%s15278_s5 + $0x458] sm:$0xff] }
 0x2c2   :  { %7702 = vmatprep.subr.mxu0 %v1753_v30  ;;  %7662 = vmatpush3.msra.mxu1 %v1705_v18  ;;  %v1501_v2 = vmul.f32 %v1494_v6, %v10310_v53  ;;  %v1702_v30 = vld [vmem:[%s15278_s5 + $0x208] sm:$0xff] }
 0x2c3   :  { %7703 = vmatpush3.msra.mxu0 %v1737_v35  ;;  %7663 = vmatprep.subr.mxu1 %v1720_v54  ;;  %v1734_v18 = vld [vmem:[%s15278_s5 + $0x308] sm:$0xff]  ;;  %v1440_v35 = vsel %vm391_vm2, %v1437_v16, %v1439_v21  ;;  %v1615_v54 = vrot.slane %v1500_v52, 6  ;;  %v1701_v16 = vld [vmem:[%s15278_s5 + $0x200] sm:$0xff]  ;;  %v1630_v26 = vrot.slane %v1533_v0, 7  ;;  %v1608_v52 = vsel %vm505_vm4, %v1605_v10, %v1607_v1  ;;  %v1771_v0 = vld [vmem:[%s15278_s5 + $0x430] sm:$0xff] }
 0x2c4   :  { %7704 = vmatprep.subr.mxu0 %v1752_v31  ;;  %7664 = vmatpush3.msra.mxu1 %v1704_v58  ;;  %v1502_v31 = vmul.f32 %v10538_v28, %v1496_v9  ;;  %v1446_v63 = vmul.f32 %v1440_v35, %v1420_v8  ;;  %v1594_v58 = vrot.slane %v1445_v55, 4  ;;  %v1773_v55 = vld [vmem:[%s15278_s5 + $0x440] sm:$0xff]  ;;  %v1770_v8 = vld [vmem:[%s15278_s5 + $0x428] sm:$0xff] }
 0x2c5   :  { %7705 = vmatpush3.msra.mxu0 %v1736_v59  ;;  %7665 = vmatprep.subr.mxu1 %v1719_v62  ;;  %v1616_v59 = vrot.slane %v1501_v2, 6  ;;  %v1631_v22 = vsel %vm445_vm1, %v1628_v15, %v1630_v26  ;;  %v1772_v2 = vld [vmem:[%s15278_s5 + $0x438] sm:$0xff]  ;;  %v1769_v9 = vld [vmem:[%s15278_s5 + $0x420] sm:$0xff]  ;;  %v1766_v35 = vld [vmem:[%s15278_s5 + $0x408] sm:$0xff] }
 0x2c6   :  { %7706 = vmatprep.subr.mxu0 %v1751_v25  ;;  %7666 = vmatpush3.msra.mxu1 %v1703_v20  ;;  %v1595_v21 = vsel %vm391_vm2, %v1593_v11, %v1594_v58  ;;  %v1780_v25 = vld [vmem:[%s15278_s5 + $0x478] sm:$0xff]  ;;  %v1618_v5 = vrot.slane %v1502_v31, 6  ;;  %v1596_v6 = vrot.slane %v1446_v63, 4  ;;  %v1632_v20 = vrot.slane %v1534_v61, 7  ;;  %v2577_v61 = vld [vmem:[%s15305_s27 + $0x170] sm:$0xff] }
 0x2c7   :  { %7707 = vmatpush3.msra.mxu0 %v1735_v44  ;;  %7667 = vmatprep.subr.mxu1 %v1718_v42  ;;  %v1617_v62 = vsel %vm475_vm6, %v1615_v54, %v1616_v59  ;;  %v1777_v44 = vld [vmem:[%s15278_s5 + $0x460] sm:$0xff]  ;;  %v1775_v42 = vld [vmem:[%s15278_s5 + $0x450] sm:$0xff]  ;;  %v2578_v63 = vld [vmem:[%s15305_s27 + $0x178] sm:$0xff] }
 0x2c8   :  { %7708 = vmatprep.subr.mxu0 %v1750_v33  ;;  %7668 = vmatpush3.msra.mxu1 %v1702_v30  ;;  %v1619_v51 = vsel %vm475_vm6, %v1616_v59, %v1618_v5  ;;  %v1597_v10 = vsel %vm391_vm2, %v1594_v58, %v1596_v6  ;;  %v1633_v15 = vsel %vm445_vm1, %v1630_v26, %v1632_v20  ;;  %v1774_v33 = vld [vmem:[%s15278_s5 + $0x448] sm:$0xff]  ;;  %v1768_v30 = vld [vmem:[%s15278_s5 + $0x418] sm:$0xff]  ;;  %v2561_v58 = vld [vmem:[%s15305_s27 + $0xf0] sm:$0xff] }
 0x2c9   :  { %7709 = vmatpush3.msra.mxu0 %v1734_v18  ;;  %7669 = vmatprep.subr.mxu1 %v1717_v56  ;;  %v1767_v18 = vld [vmem:[%s15278_s5 + $0x410] sm:$0xff]  ;;  %v1765_v56 = vld [vmem:[%s15278_s5 + $0x400] sm:$0xff]  ;;  %v2590_v20 = vld [vmem:[%s15305_s27 + $0x1d8] sm:$0xff] }
 0x2ca   :  { %7710 = vmatprep.subr.mxu0 %v1749_v13  ;;  %7670 = vmatpush3.msra.mxu1 %v1701_v16  ;;  %v15302_v13 = vld [vmem:[#allocation26_spill] sm:$0xff]  ;;  %v15303_v54 = vld [vmem:[#allocation27_spill] sm:$0xff]  ;;  %v15304_v16 = vld [vmem:[#allocation28_spill] sm:$0xff] }
 0x2cb   :  { %7711 = vmatpush3.msra.mxu0 %v1733_v38  ;;  %2013 = vmatmul.mubr.f32.vlgmr.msra.gmra.mxu1 %v1595_v21  ;;  %v1554_v11 = vmul.f32 %v15302_v13, %v10310_v53  ;;  %v1555_v31 = vmul.f32 %v15303_v54, %v10538_v28  ;;  %v1556_v38 = vmul.f32 %v15304_v16, %v1535_v14  ;;  %v2562_v53 = vld [vmem:[%s15305_s27 + $0xf8] sm:$0xff]  ;;  %v2593_v59 = vld [vmem:[%s15305_s27 + $0x1f0] sm:$0xff]  ;;  %v2560_v21 = vld [vmem:[%s15305_s27 + $0xe8] sm:$0xff] }
 0x2cc   :  { %2093 = vmatmul.mubr.f32.vlgmr.msra.gmra.mxu0 %v1617_v62  ;;  %8312 = vmatprep.subr.mxu1 %v10605_v50  ;;  %v2546_v28 = vld [vmem:[%s15305_s27 + $0x78] sm:$0xff]  ;;  %v2545_v26 = vld [vmem:[%s15305_s27 + $0x70] sm:$0xff]  ;;  %v2592_v62 = vld [vmem:[%s15305_s27 + $0x1e8] sm:$0xff] }
 0x2cd   :  { %2017 = vmatprep.mubr.f32.mxu1 %v1608_v52  ;;  %2097 = vmatprep.mubr.f32.mxu0 %v1631_v22  ;;  %v2559_v52 = vld [vmem:[%s15305_s27 + $0xe0] sm:$0xff]  ;;  %v2570_v13 = vld [vmem:[%s15305_s27 + $0x138] sm:$0xff]  ;;  %v2585_v54 = vld [vmem:[%s15305_s27 + $0x1b0] sm:$0xff] }
 0x2ce   :  { %8313 = vmatpush3.msra.mxu1 %v1780_v25  ;;  %7740 = vmatprep.subr.mxu0 %v2562_v53  ;;  %v2544_v25 = vld [vmem:[%s15305_s27 + $0x68] sm:$0xff]  ;;  %v2575_v22 = vld [vmem:[%s15305_s27 + $0x160] sm:$0xff]  ;;  %v2569_v14 = vld [vmem:[%s15305_s27 + $0x130] sm:$0xff] }
 0x2cf   :  { %8314 = vmatprep.subr.mxu1 %v10605_v50  ;;  %2018 = vmatmul.mubr.f32.gmra.mxu1 %v1597_v10  ;;  %v2574_v10 = vld [vmem:[%s15305_s27 + $0x158] sm:$0xff]  ;;  %v2552_v16 = vld [vmem:[%s15305_s27 + $0xa8] sm:$0xff] }
 0x2d0   :  { %8315 = vmatpush3.msra.mxu1 %v1779_v17  ;;  %2098 = vmatmul.mubr.f32.gmra.mxu0 %v1619_v51  ;;  %v2558_v17 = vld [vmem:[%s15305_s27 + $0xd8] sm:$0xff]  ;;  %v2536_v53 = vld [vmem:[%s15305_s27 + $0x28] sm:$0xff] }
 0x2d1   :  { %8316 = vmatprep.subr.mxu1 %v10605_v50  ;;  %2022 = vmatprep.mubr.f32.mxu1 %v1607_v1  ;;  %v2594_v1 = vld [vmem:[%s15305_s27 + $0x1f8] sm:$0xff] }
 0x2d2   :  { %2102 = vmatprep.mubr.f32.mxu0 %v1633_v15  ;;  %8317 = vmatpush3.msra.mxu1 %v1778_v24  ;;  %v2542_v51 = vld [vmem:[%s15305_s27 + $0x58] sm:$0xff]  ;;  %v2557_v24 = vld [vmem:[%s15305_s27 + $0xd0] sm:$0xff] }
 0x2d3   :  { %8318 = vmatprep.subr.mxu1 %v10605_v50  ;;  %2023 = vmatmul.mubr.f32.gmra.mxu1 %v1596_v6  ;;  %v2591_v6 = vld [vmem:[%s15305_s27 + $0x1e0] sm:$0xff]  ;;  %v2589_v15 = vld [vmem:[%s15305_s27 + $0x1d0] sm:$0xff] }
 0x2d4   :  { %2103 = vmatmul.mubr.f32.gmra.mxu0 %v1618_v5  ;;  %8319 = vmatpush3.msra.mxu1 %v1777_v44  ;;  %v2576_v5 = vld [vmem:[%s15305_s27 + $0x168] sm:$0xff]  ;;  %v2541_v44 = vld [vmem:[%s15305_s27 + $0x50] sm:$0xff] }
 0x2d5   :  { %8320 = vmatprep.subr.mxu1 %v10605_v50  ;;  %8344 = vmatprep.mubr.msk.f32.mxu1 %vm8484_vm0, %v10605_v50 }
 0x2d6   :  { %8321 = vmatpush3.msra.mxu1 %v1776_v60  ;;  %7741 = vmatpush3.msra.mxu0 %v2546_v28  ;;  %v2573_v60 = vld [vmem:[%s15305_s27 + $0x150] sm:$0xff]  ;;  %v2551_v28 = vld [vmem:[%s15305_s27 + $0xa0] sm:$0xff] }
 0x2d7   :  { %8322 = vmatprep.subr.mxu1 %v10605_v50  ;;  %7742 = vmatprep.subr.mxu0 %v2561_v58  ;;  %v2535_v58 = vld [vmem:[%s15305_s27 + $0x20] sm:$0xff] }
 0x2d8   :  { %8323 = vmatpush3.msra.mxu1 %v1775_v42  ;;  %7743 = vmatpush3.msra.mxu0 %v2545_v26  ;;  %v2556_v42 = vld [vmem:[%s15305_s27 + $0xc8] sm:$0xff]  ;;  %v2550_v26 = vld [vmem:[%s15305_s27 + $0x98] sm:$0xff] }
 0x2d9   :  { %8324 = vmatprep.subr.mxu1 %v10605_v50  ;;  %7744 = vmatprep.subr.mxu0 %v2560_v21  ;;  %v2534_v21 = vld [vmem:[%s15305_s27 + $0x18] sm:$0xff] }
 0x2da   :  { %8325 = vmatpush3.msra.mxu1 %v1774_v33  ;;  %7745 = vmatpush3.msra.mxu0 %v2544_v25  ;;  %v2588_v33 = vld [vmem:[%s15305_s27 + $0x1c8] sm:$0xff]  ;;  %v2549_v25 = vld [vmem:[%s15305_s27 + $0x90] sm:$0xff] }
 0x2db   :  { %8326 = vmatprep.subr.mxu1 %v10605_v50  ;;  %7746 = vmatprep.subr.mxu0 %v2559_v52  ;;  %v2533_v52 = vld [vmem:[%s15305_s27 + $0x10] sm:$0xff] }
 0x2dc   :  { %8327 = vmatpush3.msra.mxu1 %v1773_v55  ;;  %v2540_v55 = vld [vmem:[%s15305_s27 + $0x48] sm:$0xff] }
 0x2dd   :  { %8328 = vmatprep.subr.mxu1 %v10605_v50 }
 0x2de   :  { %8329 = vmatpush3.msra.mxu1 %v1772_v2  ;;  %v2572_v2 = vld [vmem:[%s15305_s27 + $0x148] sm:$0xff] }
 0x2df   :  { %8330 = vmatprep.subr.mxu1 %v10605_v50 }
 0x2e0   :  { %8331 = vmatpush3.msra.mxu1 %v1771_v0  ;;  %v2555_v0 = vld [vmem:[%s15305_s27 + $0xc0] sm:$0xff] }
 0x2e1   :  { %8332 = vmatprep.subr.mxu1 %v10605_v50 }
 0x2e2   :  { %8333 = vmatpush3.msra.mxu1 %v1770_v8  ;;  %v2587_v8 = vld [vmem:[%s15305_s27 + $0x1c0] sm:$0xff] }
 0x2e3   :  { %8334 = vmatprep.subr.mxu1 %v10605_v50 }
 0x2e4   :  { %8335 = vmatpush3.msra.mxu1 %v1769_v9  ;;  %v2539_v9 = vld [vmem:[%s15305_s27 + $0x40] sm:$0xff] }
 0x2e5   :  { %8336 = vmatprep.subr.mxu1 %v10605_v50 }
 0x2e6   :  { %8337 = vmatpush3.msra.mxu1 %v1768_v30  ;;  %v2571_v30 = vld [vmem:[%s15305_s27 + $0x140] sm:$0xff] }
 0x2e7   :  { %8338 = vmatprep.subr.mxu1 %v10605_v50 }
 0x2e8   :  { %8339 = vmatpush3.msra.mxu1 %v1767_v18  ;;  %v2554_v18 = vld [vmem:[%s15305_s27 + $0xb8] sm:$0xff] }
 0x2e9   :  { %8340 = vmatprep.subr.mxu1 %v10605_v50 }
 0x2ea   :  { %8341 = vmatpush3.msra.mxu1 %v1766_v35  ;;  %v2586_v35 = vld [vmem:[%s15305_s27 + $0x1b8] sm:$0xff] }
 0x2eb   :  { %8342 = vmatprep.subr.mxu1 %v10605_v50 }
 0x2ec   :  { %8343 = vmatpush3.msra.mxu1 %v1765_v56  ;;  %v2538_v56 = vld [vmem:[%s15305_s27 + $0x38] sm:$0xff] }
 0x2ed   :  { %8345 = vmatmul.mubr.f32.vlgmr.msra.gmra.mxu1 %v1554_v11  ;;  %7781 = vmatprep.subr.mxu1 %v2594_v1  ;;  %v2553_v11 = vld [vmem:[%s15305_s27 + $0xb0] sm:$0xff]  ;;  %v2568_v1 = vld [vmem:[%s15305_s27 + $0x128] sm:$0xff] }
 0x2ee   :  { %8347 = vmatprep.mubr.msk.f32.mxu1 %vm8484_vm0, %v10605_v50  ;;  %7782 = vmatpush3.msra.mxu1 %v2578_v63  ;;  %v2583_v63 = vld [vmem:[%s15305_s27 + $0x1a0] sm:$0xff] }
 0x2ef   :  { %7783 = vmatprep.subr.mxu1 %v2593_v59  ;;  %v2567_v59 = vld [vmem:[%s15305_s27 + $0x120] sm:$0xff] }
 0x2f0   :  { %7784 = vmatpush3.msra.mxu1 %v2577_v61  ;;  %v2582_v61 = vld [vmem:[%s15305_s27 + $0x198] sm:$0xff] }
 0x2f1   :  { %8348 = vmatmul.mubr.f32.gmra.mxu1 %v1555_v31  ;;  %7785 = vmatprep.subr.mxu1 %v2592_v62  ;;  %v2537_v31 = vld [vmem:[%s15305_s27 + $0x30] sm:$0xff]  ;;  %v2566_v62 = vld [vmem:[%s15305_s27 + $0x118] sm:$0xff] }
 0x2f2   :  { %8350 = vmatprep.mubr.msk.f32.mxu1 %vm8484_vm0, %v10605_v50  ;;  %7786 = vmatpush3.msra.mxu1 %v2576_v5  ;;  %v2543_v50 = vld [vmem:[%s15305_s27 + $0x60] sm:$0xff]  ;;  %v2581_v5 = vld [vmem:[%s15305_s27 + $0x190] sm:$0xff] }
 0x2f3   :  { %7787 = vmatprep.subr.mxu1 %v2591_v6  ;;  %7747 = vmatpush3.msra.mxu0 %v2543_v50  ;;  %v2565_v6 = vld [vmem:[%s15305_s27 + $0x110] sm:$0xff]  ;;  %v2548_v50 = vld [vmem:[%s15305_s27 + $0x88] sm:$0xff] }
 0x2f4   :  { %7788 = vmatpush3.msra.mxu1 %v2575_v22  ;;  %7748 = vmatprep.subr.mxu0 %v2558_v17  ;;  %v2580_v22 = vld [vmem:[%s15305_s27 + $0x188] sm:$0xff] }
 0x2f5   :  { %8351 = vmatmul.mubr.f32.gmra.mxu1 %v1556_v38  ;;  %7789 = vmatprep.subr.mxu1 %v2590_v20  ;;  %v2584_v38 = vld [vmem:[%s15305_s27 + $0x1a8] sm:$0xff] }
 0x2f6   :  { %7749 = vmatpush3.msra.mxu0 %v2542_v51  ;;  %7790 = vmatpush3.msra.mxu1 %v2574_v10  ;;  %v2532_v17 = vld [vmem:[%s15305_s27 + $0x8] sm:$0xff]  ;;  %v2547_v51 = vld [vmem:[%s15305_s27 + $0x80] sm:$0xff] }
 0x2f7   :  { %7750 = vmatprep.subr.mxu0 %v2557_v24  ;;  %7791 = vmatprep.subr.mxu1 %v2589_v15  ;;  %v2564_v20 = vld [vmem:[%s15305_s27 + $0x108] sm:$0xff]  ;;  %v2579_v10 = vld [vmem:[%s15305_s27 + $0x180] sm:$0xff] }
 0x2f8   :  { %7751 = vmatpush3.msra.mxu0 %v2541_v44  ;;  %7792 = vmatpush3.msra.mxu1 %v2573_v60  ;;  %v2531_v24 = vld [vmem:[%s15305_s27] sm:$0xff]  ;;  %v2626_v44 = vld [vmem:[%s15305_s27 + $0x2f8] sm:$0xff] }
 0x2f9   :  { %7752 = vmatprep.subr.mxu0 %v2556_v42  ;;  %7793 = vmatprep.subr.mxu1 %v2588_v33  ;;  %v2563_v15 = vld [vmem:[%s15305_s27 + $0x100] sm:$0xff]  ;;  %v2658_v60 = vld [vmem:[%s15305_s27 + $0x3f8] sm:$0xff] }
 0x2fa   :  { %7753 = vmatpush3.msra.mxu0 %v2540_v55  ;;  %7794 = vmatpush3.msra.mxu1 %v2572_v2 }
 0x2fb   :  { %7754 = vmatprep.subr.mxu0 %v2555_v0  ;;  %7795 = vmatprep.subr.mxu1 %v2587_v8 }
 0x2fc   :  { %7755 = vmatpush3.msra.mxu0 %v2539_v9  ;;  %7796 = vmatpush3.msra.mxu1 %v2571_v30 }
 0x2fd   :  { %7756 = vmatprep.subr.mxu0 %v2554_v18  ;;  %7797 = vmatprep.subr.mxu1 %v2586_v35 }
 0x2fe   :  { %7757 = vmatpush3.msra.mxu0 %v2538_v56  ;;  %7798 = vmatpush3.msra.mxu1 %v2570_v13 }
 0x2ff   :  { %7758 = vmatprep.subr.mxu0 %v2553_v11  ;;  %7799 = vmatprep.subr.mxu1 %v2585_v54 }
 0x300   :  { %7759 = vmatpush3.msra.mxu0 %v2537_v31  ;;  %7800 = vmatpush3.msra.mxu1 %v2569_v14 }
 0x301   :  { %7760 = vmatprep.subr.mxu0 %v2552_v16  ;;  %7801 = vmatprep.subr.mxu1 %v2584_v38  ;;  %v7225_v38 = vld [vmem:[%s15159_s8] ss:$0 sm:$0xff] }
 0x302   :  { %7761 = vmatpush3.msra.mxu0 %v2536_v53  ;;  %7802 = vmatpush3.msra.mxu1 %v2568_v1 }
 0x303   :  { %7762 = vmatprep.subr.mxu0 %v2551_v28  ;;  %7803 = vmatprep.subr.mxu1 %v2583_v63 }
 0x304   :  { %7763 = vmatpush3.msra.mxu0 %v2535_v58  ;;  %7804 = vmatpush3.msra.mxu1 %v2567_v59 }
 0x305   :  { %7764 = vmatprep.subr.mxu0 %v2550_v26  ;;  %7805 = vmatprep.subr.mxu1 %v2582_v61 }
 0x306   :  { %7765 = vmatpush3.msra.mxu0 %v2534_v21  ;;  %7806 = vmatpush3.msra.mxu1 %v2566_v62 }
 0x307   :  { %7766 = vmatprep.subr.mxu0 %v2549_v25  ;;  %7807 = vmatprep.subr.mxu1 %v2581_v5 }
 0x308   :  { %7767 = vmatpush3.msra.mxu0 %v2533_v52  ;;  %7808 = vmatpush3.msra.mxu1 %v2565_v6 }
 0x309   :  { %7768 = vmatprep.subr.mxu0 %v2548_v50  ;;  %7809 = vmatprep.subr.mxu1 %v2580_v22 }
 0x30a   :  { %7769 = vmatpush3.msra.mxu0 %v2532_v17  ;;  %7810 = vmatpush3.msra.mxu1 %v2564_v20 }
 0x30b   :  { %7770 = vmatprep.subr.mxu0 %v2547_v51  ;;  %7811 = vmatprep.subr.mxu1 %v2579_v10 }
 0x30c   :  { %7771 = vmatpush3.msra.mxu0 %v2531_v24  ;;  %7812 = vmatpush3.msra.mxu1 %v2563_v15 }
 0x30d   :  { %7822 = vmatprep.subr.mxu0 %v2626_v44  ;;  %7863 = vmatprep.subr.mxu1 %v2658_v60 }
 0x366   :  { %v7589_v42 = vpop.f32.mrf.mxu1 }
 0x367   :  { %v7630_v55 = vpop.f32.mrf.mxu0 }
 0x368   :  { %v7590_v33 = vpop.f32.mrf.mxu1 }
 0x369   :  { %v7631_v0 = vpop.f32.mrf.mxu0  ;;  %v7591_v16 = vadd.f32 %v7590_v33, %v7589_v42 }
 0x36a   :  { %v7632_v59 = vadd.f32 %v7631_v0, %v7630_v55 }
 0x36b   :  { %v1855_v28 = vadd.f32 %v7591_v16, %v7225_v38 }
 0x36d   :  { %v1935_v21 = vadd.f32 %v7632_v59, %v1855_v28  ;;  %v15308_v28 = vld [vmem:[#allocation33_spill] sm:$0xff] }
 0x36f   :  { %v7592_v2 = vpop.f32.mrf.mxu1 }
 0x370   :  { %v7633_v9 = vpop.f32.mrf.mxu0 }
 0x371   :  { %v7593_v8 = vpop.f32.mrf.mxu1 }
 0x372   :  { %v7634_v18 = vpop.f32.mrf.mxu0  ;;  %v7594_v63 = vadd.f32 %v7593_v8, %v7592_v2 }
 0x373   :  { %v7595_v30 = vpop.f32.mrf.mxu1  ;;  %v7635_v52 = vadd.f32 %v7634_v18, %v7633_v9 }
 0x374   :  { %v7636_v56 = vpop.f32.mrf.mxu0  ;;  %v1860_v62 = vadd.f32 %v7594_v63, %v7225_v38  ;;  %v2302_v63 = vrot.slane %v15308_v28, 5 }
 0x375   :  { %v7596_v35 = vpop.f32.mrf.mxu1 }
 0x376   :  { %v7637_v11 = vpop.f32.mrf.mxu0  ;;  %v7597_v25 = vadd.f32 %v7596_v35, %v7595_v30  ;;  %v1940_v17 = vadd.f32 %v7635_v52, %v1860_v62  ;;  %v15311_v62 = vld [vmem:[#allocation36_spill] sm:$0xff] }
 0x377   :  { %v7638_v24 = vadd.f32 %v7637_v11, %v7636_v56  ;;  %v15306_v11 = vld [vmem:[#allocation29_spill] sm:$0xff] }
 0x378   :  { %v1865_v20 = vadd.f32 %v7597_v25, %v7225_v38  ;;  %v2246_v38 = vrot.slane %v15306_v11, 7  ;;  %v2275_v25 = vrot.slane %v15311_v62, 6  ;;  %v15316_v62 = vld [vmem:[#allocation38_spill] sm:$0xff] }
 0x37a   :  { %v1945_v33 = vadd.f32 %v7638_v24, %v1865_v20 }
 0x38b   :  { %v7671_v13 = vpop.f32.mrf.mxu1 }
 0x38c   :  { %v7712_v31 = vpop.f32.mrf.mxu0 }
 0x38d   :  { %v7672_v54 = vpop.f32.mrf.mxu1 }
 0x38e   :  { %v7713_v53 = vpop.f32.mrf.mxu0  ;;  %v7673_v26 = vadd.f32 %v7672_v54, %v7671_v13 }
 0x38f   :  { %v7674_v14 = vpop.f32.mrf.mxu1  ;;  %v7714_v51 = vadd.f32 %v7713_v53, %v7712_v31  ;;  %v15307_v53 = vld [vmem:[#allocation30_spill] sm:$0xff] }
 0x390   :  { %v7715_v58 = vpop.f32.mrf.mxu0  ;;  %v2015_v6 = vadd.f32 %v7673_v26, %v1935_v21 }
 0x391   :  { %v7675_v1 = vpop.f32.mrf.mxu1 }
 0x392   :  { %v7716_v5 = vpop.f32.mrf.mxu0  ;;  %v7676_v50 = vadd.f32 %v7675_v1, %v7674_v14  ;;  %v2095_v60 = vadd.f32 %v7714_v51, %v2015_v6  ;;  %v2247_v1 = vrot.slane %v15307_v53, 7  ;;  %v15314_v53 = vld [vmem:[#allocation44_spill] sm:$0xff] }
 0x393   :  { %v7677_v61 = vpop.f32.mrf.mxu1  ;;  %v7717_v55 = vadd.f32 %v7716_v5, %v7715_v58  ;;  %v15309_v58 = vld [vmem:[#allocation34_spill] sm:$0xff] }
 0x394   :  { %v7718_v10 = vpop.f32.mrf.mxu0  ;;  %v2020_v15 = vadd.f32 %v7676_v50, %v1940_v17  ;;  %v2303_v59 = vrot.slane %v15309_v58, 5  ;;  %v2248_v17 = vsel %vm445_vm1, %v2246_v38, %v2247_v1  ;;  %v15315_v58 = vld [vmem:[#allocation31_spill] sm:$0xff] }
 0x395   :  { %v7678_v22 = vpop.f32.mrf.mxu1 }
 0x396   :  { %v7679_v44 = vadd.f32 %v7678_v22, %v7677_v61  ;;  %v7719_v0 = vpop.f32.mrf.mxu0  ;;  %v2100_v9 = vadd.f32 %v7717_v55, %v2020_v15  ;;  %v15310_v61 = vld [vmem:[#allocation35_spill] sm:$0xff]  ;;  %v2304_v20 = vsel %vm505_vm4, %v2302_v63, %v2303_v59 }
 0x397   :  { %v7720_v13 = vadd.f32 %v7719_v0, %v7718_v10  ;;  %v2274_v21 = vrot.slane %v15310_v61, 6  ;;  %v2610_v61 = vld [vmem:[%s15305_s27 + $0x278] sm:$0xff] }
 0x398   :  { %v2025_v30 = vadd.f32 %v7679_v44, %v1945_v33 }
 0x399   :  { %v2276_v51 = vsel %vm475_vm6, %v2274_v21, %v2275_v25 }
 0x39a   :  { %v2105_v56 = vadd.f32 %v7720_v13, %v2025_v30 }
 0x3ad   :  { %v2174_v42 = vpop.f32.mrf.mxu1 }
 0x3ae   :  { %v2175_v2 = vadd.f32 %v2174_v42, %v2095_v60 }
 0x3af   :  { %v8346_v8 = vpop.f32.mrf.mxu1 }
 0x3b0   :  { %v2188_v35 = vmax.f32 %v2175_v2, 0.0 }
 0x3b1   :  { %v2179_v18 = vpop.f32.mrf.mxu1 }
 0x3b2   :  { %v2194_v54 = vrot.slane %v2188_v35, 4  ;;  %v2180_v14 = vadd.f32 %v2179_v18, %v2100_v9 }
 0x3b3   :  { %v8349_v16 = vpop.f32.mrf.mxu1 }
 0x3b4   :  { %2202 = vst [vmem:[#allocation2 + $0x30] sm:$0xf0] %v2194_v54  ;;  %v2189_v31 = vmax.f32 %v2180_v14, 0.0  ;;  %v15313_v16 = vld [vmem:[#allocation43_spill] sm:$0xff] }
 0x3b5   :  { %v2184_v26 = vpop.f32.mrf.mxu1 }
 0x3b6   :  { %v2195_v5 = vrot.slane %v2189_v31, 4  ;;  %v2185_v52 = vadd.f32 %v2184_v26, %v2105_v56  ;;  %v2305_v31 = vrot.slane %v15313_v16, 5 }
 0x3b7   :  { %v8352_v6 = vpop.f32.mrf.mxu1 }
 0x3b8   :  { %v10893_v50 = vsel %vm391_vm2, %v2194_v54, %v2195_v5  ;;  %v2190_v22 = vmax.f32 %v2185_v52, 0.0  ;;  %v15312_v54 = vld [vmem:[#allocation32_spill] sm:$0xff]  ;;  %v2625_v6 = vld [vmem:[%s15305_s27 + $0x2f0] sm:$0xff] }
 0x3b9   :  { %v10899_v24 = vmul.f32 %v2248_v17, %v10893_v50  ;;  %v10902_v15 = vmul.f32 %v2304_v20, %v10893_v50  ;;  %v10905_v42 = vmul.f32 %v2276_v51, %v10893_v50  ;;  %v2249_v14 = vrot.slane %v15312_v54, 7  ;;  %v2609_v17 = vld [vmem:[%s15305_s27 + $0x270] sm:$0xff]  ;;  %v15317_v20 = vld [vmem:[#allocation39_spill] sm:$0xff] }
 0x3ba   :  { %v2197_v10 = vrot.slane %v2190_v22, 4  ;;  %v2657_v22 = vld [vmem:[%s15305_s27 + $0x3f0] sm:$0xff]  ;;  %v2359_v51 = vrot.slane %v15317_v20, 3  ;;  %v2306_v54 = vsel %vm505_vm4, %v2303_v59, %v2305_v31  ;;  %v2607_v31 = vld [vmem:[%s15305_s27 + $0x260] sm:$0xff] }
 0x3bb   :  { %v2229_v44 = vld [vmem:[#allocation2 + $0x30] sm:$0xfe]  ;;  %v2455_v9 = vrot.slane %v10899_v24, 1  ;;  %v2477_v13 = vrot.slane %v10902_v15, 3  ;;  %v2466_v11 = vrot.slane %v10905_v42, 2  ;;  %v2654_v24 = vld [vmem:[%s15305_s27 + $0x3d8] sm:$0xff] }
 0x3bc   :  { %v2285_v60 = vld [vmem:[#allocation2 + $0x30] sm:$0xf8]  ;;  %v2198_v33 = vsel %vm391_vm2, %v2195_v5, %v2197_v10  ;;  %v2254_v55 = vmul.f32 %v2246_v38, %v2229_v44  ;;  %v2277_v38 = vrot.slane %v15314_v53, 6  ;;  %v2358_v5 = vrot.slane %v15316_v62, 3  ;;  %v15318_v10 = vld [vmem:[#allocation47_spill] sm:$0xff] }
 0x3bd   :  { %v2310_v2 = vmul.f32 %v2302_v63, %v2285_v60  ;;  %v2257_v0 = vld [vmem:[#allocation2 + $0x30] sm:$0xfc]  ;;  %2204 = vst [vmem:[#allocation2 + $0x8] sm:$0x3f] %v2198_v33  ;;  %v2416_v44 = vrot.slane %v15318_v10, 1  ;;  %v15319_v60 = vld [vmem:[#allocation48_spill] sm:$0xff] }
 0x3be   :  { %v2205_v8 = vld [vmem:[#allocation2 + $0x30] sm:$0xff]  ;;  %v2282_v30 = vmul.f32 %v2274_v21, %v2257_v0  ;;  %v2454_v35 = vrot.slane %v2254_v55, 1  ;;  %v2642_v21 = vld [vmem:[%s15305_s27 + $0x378] sm:$0xff]  ;;  %v2417_v33 = vrot.slane %v15319_v60, 1  ;;  %v2656_v0 = vld [vmem:[%s15305_s27 + $0x3e8] sm:$0xff]  ;;  %v2278_v16 = vsel %vm475_vm6, %v2275_v25, %v2277_v38 }
 0x3bf   :  { %v2476_v18 = vrot.slane %v2310_v2, 3  ;;  %v2226_v26 = vmul.f32 %v15315_v58, %v2205_v8  ;;  %v2641_v55 = vld [vmem:[%s15305_s27 + $0x370] sm:$0xff]  ;;  %v2624_v2 = vld [vmem:[%s15305_s27 + $0x2e8] sm:$0xff]  ;;  %v2360_v25 = vsel %vm564_vm5, %v2358_v5, %v2359_v51  ;;  %v2639_v38 = vld [vmem:[%s15305_s27 + $0x360] sm:$0xff] }
 0x3c0   :  { %v2465_v56 = vrot.slane %v2282_v30, 2  ;;  %v2456_v28 = vsel %vm626_vm3, %v2454_v35, %v2455_v9  ;;  %v2608_v8 = vld [vmem:[%s15305_s27 + $0x268] sm:$0xff]  ;;  %v2341_v35 = vld [vmem:[#allocation2 + $0x30] sm:$0xe0]  ;;  %v10982_v10 = vmul.f32 %v2360_v25, %v10893_v50  ;;  %v2606_v42 = vld [vmem:[%s15305_s27 + $0x258] sm:$0xff] }
 0x3c1   :  { %v2478_v63 = vsel %vm564_vm5, %v2476_v18, %v2477_v13  ;;  %2746 = vmatprep.mubr.f32.mxu0 %v2456_v28  ;;  %v2640_v30 = vld [vmem:[%s15305_s27 + $0x368] sm:$0xff]  ;;  %v2250_v18 = vsel %vm445_vm1, %v2247_v1, %v2249_v14  ;;  %v2655_v1 = vld [vmem:[%s15305_s27 + $0x3e0] sm:$0xff]  ;;  %v2397_v59 = vld [vmem:[#allocation2 + $0x30] sm:$0x80]  ;;  %v2418_v14 = vsel %vm626_vm3, %v2416_v44, %v2417_v33 }
 0x3c2   :  { %2826 = vmatprep.mubr.f32.mxu1 %v2478_v63  ;;  %v2467_v52 = vsel %vm594_vm7, %v2465_v56, %v2466_v11  ;;  %2747 = vmatmul.mubr.f32.vlgmr.msra.gmra.mxu0 %v2226_v26  ;;  %v11000_v15 = vmul.f32 %v2418_v14, %v10893_v50  ;;  %v2619_v25 = vld [vmem:[%s15305_s27 + $0x2c0] sm:$0xff]  ;;  %v2612_v60 = vld [vmem:[%s15305_s27 + $0x288] sm:$0xff] }
 0x3c3   :  { %2827 = vmatmul.mubr.f32.vlgmr.msra.gmra.mxu1 %v2467_v52  ;;  %7823 = vmatpush3.msra.mxu0 %v2610_v61  ;;  %v2623_v61 = vld [vmem:[%s15305_s27 + $0x2e0] sm:$0xff] }
 0x3c4   :  { %7864 = vmatpush3.msra.mxu1 %v2642_v21  ;;  %7824 = vmatprep.subr.mxu0 %v2625_v6  ;;  %v2230_v56 = vld [vmem:[#allocation2 + $0x8] sm:$0x7]  ;;  %v2366_v6 = vmul.f32 %v2358_v5, %v2341_v35  ;;  %v2651_v14 = vld [vmem:[%s15305_s27 + $0x3c0] sm:$0xff] }
 0x3c5   :  { %7865 = vmatprep.subr.mxu1 %v2657_v22  ;;  %v2286_v53 = vld [vmem:[#allocation2 + $0x8] sm:$0x1f]  ;;  %7825 = vmatpush3.msra.mxu0 %v2609_v17  ;;  %v2256_v63 = vmul.f32 %v2250_v18, %v2230_v56  ;;  %v2621_v18 = vld [vmem:[%s15305_s27 + $0x2d0] sm:$0xff]  ;;  %v2522_v56 = vrot.slane %v11000_v15, 7 }
 0x3c6   :  { %v2258_v28 = vld [vmem:[#allocation2 + $0x8] sm:$0xf]  ;;  %7866 = vmatpush3.msra.mxu1 %v2641_v55  ;;  %v2312_v58 = vmul.f32 %v2306_v54, %v2286_v53  ;;  %7826 = vmatprep.subr.mxu0 %v2624_v2  ;;  %v2425_v55 = vmul.f32 %v2416_v44, %v2397_v59  ;;  %v2622_v44 = vld [vmem:[%s15305_s27 + $0x2d8] sm:$0xff]  ;;  %v2499_v54 = vrot.slane %v10982_v10, 5 }
 0x3c7   :  { %v2284_v26 = vmul.f32 %v2278_v16, %v2258_v28  ;;  %7867 = vmatprep.subr.mxu1 %v2656_v0  ;;  %v2457_v21 = vrot.slane %v2256_v63, 1  ;;  %7827 = vmatpush3.msra.mxu0 %v2608_v8  ;;  %v15320_v22 = vld [vmem:[#allocation37_spill] sm:$0xff] }
 0x3c8   :  { %v2479_v62 = vrot.slane %v2312_v58, 3  ;;  %7868 = vmatpush3.msra.mxu1 %v2640_v30  ;;  %v2227_v17 = vmul.f32 %v15320_v22, %v10893_v50  ;;  %7828 = vmatprep.subr.mxu0 %v2623_v61  ;;  %v2521_v8 = vrot.slane %v2425_v55, 7  ;;  %v15321_v30 = vld [vmem:[#allocation42_spill] sm:$0xff]  ;;  %v2652_v61 = vld [vmem:[%s15305_s27 + $0x3c8] sm:$0xff] }
 0x3c9   :  { %v2468_v52 = vrot.slane %v2284_v26, 2  ;;  %7869 = vmatprep.subr.mxu1 %v2655_v1  ;;  %v2458_v2 = vsel %vm626_vm3, %v2455_v9, %v2457_v21  ;;  %7829 = vmatpush3.msra.mxu0 %v2607_v31  ;;  %v2207_v9 = vld [vmem:[#allocation2 + $0x8] sm:$0x3]  ;;  %v2653_v16 = vld [vmem:[%s15305_s27 + $0x3d0] sm:$0xff]  ;;  %v2603_v31 = vld [vmem:[%s15305_s27 + $0x240] sm:$0xff] }
 0x3ca   :  { %v2480_v0 = vsel %vm564_vm5, %v2477_v13, %v2479_v62  ;;  %7870 = vmatpush3.msra.mxu1 %v2639_v38  ;;  %2751 = vmatprep.mubr.f32.mxu0 %v2458_v2  ;;  %v2638_v13 = vld [vmem:[%s15305_s27 + $0x358] sm:$0xff]  ;;  %v2228_v35 = vmul.f32 %v15321_v30, %v2207_v9  ;;  %v2605_v28 = vld [vmem:[%s15305_s27 + $0x250] sm:$0xff]  ;;  %v2523_v58 = vsel %vm445_vm1, %v2521_v8, %v2522_v56  ;;  %v2620_v26 = vld [vmem:[%s15305_s27 + $0x2c8] sm:$0xff] }
 0x3cb   :  { %v2469_v5 = vsel %vm594_vm7, %v2466_v11, %v2468_v52  ;;  %2831 = vmatprep.mubr.f32.mxu1 %v2480_v0  ;;  %2752 = vmatmul.mubr.f32.gmra.mxu0 %v2227_v17  ;;  %v2498_v11 = vrot.slane %v2366_v6, 5  ;;  %v2637_v63 = vld [vmem:[%s15305_s27 + $0x350] sm:$0xff]  ;;  %v2604_v1 = vld [vmem:[%s15305_s27 + $0x248] sm:$0xff]  ;;  %v2635_v38 = vld [vmem:[%s15305_s27 + $0x340] sm:$0xff] }
 0x3cc   :  { %2832 = vmatmul.mubr.f32.gmra.mxu1 %v2469_v5  ;;  %2756 = vmatprep.mubr.f32.mxu0 %v2457_v21  ;;  %v2636_v59 = vld [vmem:[%s15305_s27 + $0x348] sm:$0xff]  ;;  %v2618_v21 = vld [vmem:[%s15305_s27 + $0x2b8] sm:$0xff]  ;;  %v2617_v22 = vld [vmem:[%s15305_s27 + $0x2b0] sm:$0xff] }
 0x3cd   :  { %2836 = vmatprep.mubr.f32.mxu1 %v2479_v62  ;;  %7830 = vmatprep.subr.mxu0 %v2622_v44  ;;  %v2500_v53 = vsel %vm505_vm4, %v2498_v11, %v2499_v54  ;;  %v2650_v62 = vld [vmem:[%s15305_s27 + $0x3b8] sm:$0xff]  ;;  %v2649_v17 = vld [vmem:[%s15305_s27 + $0x3b0] sm:$0xff]  ;;  %v2616_v0 = vld [vmem:[%s15305_s27 + $0x2a8] sm:$0xff] }
 0x3ce   :  { %7871 = vmatprep.subr.mxu1 %v2654_v24  ;;  %7831 = vmatpush3.msra.mxu0 %v2606_v42  ;;  %v2634_v6 = vld [vmem:[%s15305_s27 + $0x338] sm:$0xff]  ;;  %v2601_v55 = vld [vmem:[%s15305_s27 + $0x230] sm:$0xff]  ;;  %v2648_v5 = vld [vmem:[%s15305_s27 + $0x3a8] sm:$0xff] }
 0x3cf   :  { %7872 = vmatpush3.msra.mxu1 %v2638_v13  ;;  %2757 = vmatmul.mubr.f32.gmra.mxu0 %v2228_v35  ;;  %v2633_v2 = vld [vmem:[%s15305_s27 + $0x330] sm:$0xff]  ;;  %v15322_v44 = vld [vmem:[#allocation40_spill] sm:$0xff] }
 0x3d0   :  { %2837 = vmatmul.mubr.f32.gmra.mxu1 %v2468_v52  ;;  %7832 = vmatprep.subr.mxu0 %v2621_v18  ;;  %v2602_v52 = vld [vmem:[%s15305_s27 + $0x238] sm:$0xff]  ;;  %v2330_v24 = vrot.slane %v15322_v44, 4  ;;  %v15323_v9 = vld [vmem:[#allocation41_spill] sm:$0xff] }
 0x3d1   :  { %2906 = vmatprep.mubr.f32.mxu0 %v2500_v53  ;;  %7873 = vmatprep.subr.mxu1 %v2653_v16  ;;  %v2331_v42 = vrot.slane %v15323_v9, 4  ;;  %v2600_v13 = vld [vmem:[%s15305_s27 + $0x228] sm:$0xff]  ;;  %v15326_v16 = vld [vmem:[#allocation50_spill] sm:$0xff] }
 0x3d2   :  { %2986 = vmatprep.mubr.f32.mxu1 %v2523_v58  ;;  %7833 = vmatpush3.msra.mxu0 %v2605_v28  ;;  %v2632_v11 = vld [vmem:[%s15305_s27 + $0x328] sm:$0xff]  ;;  %v2387_v53 = vrot.slane %v15326_v16, 2  ;;  %v2615_v28 = vld [vmem:[%s15305_s27 + $0x2a0] sm:$0xff]  ;;  %v2645_v44 = vld [vmem:[%s15305_s27 + $0x390] sm:$0xff] }
 0x3d3   :  { %7874 = vmatpush3.msra.mxu1 %v2637_v63  ;;  %7834 = vmatprep.subr.mxu0 %v2620_v26  ;;  %v15324_v8 = vld [vmem:[#allocation45_spill] sm:$0xff]  ;;  %v2647_v63 = vld [vmem:[%s15305_s27 + $0x3a0] sm:$0xff] }
 0x3d4   :  { %7875 = vmatprep.subr.mxu1 %v2652_v61  ;;  %7835 = vmatpush3.msra.mxu0 %v2604_v1  ;;  %v2361_v30 = vrot.slane %v15324_v8, 3  ;;  %v15325_v35 = vld [vmem:[#allocation49_spill] sm:$0xff]  ;;  %v2599_v58 = vld [vmem:[%s15305_s27 + $0x220] sm:$0xff] }
 0x3d5   :  { %7876 = vmatpush3.msra.mxu1 %v2636_v59  ;;  %7836 = vmatprep.subr.mxu0 %v2619_v25  ;;  %v2386_v18 = vrot.slane %v15325_v35, 2  ;;  %v15327_v26 = vld [vmem:[#allocation51_spill] sm:$0xff]  ;;  %v2313_v59 = vld [vmem:[#allocation2 + $0x30] sm:$0xf0]  ;;  %v2314_v16 = vld [vmem:[#allocation2 + $0x8] sm:$0x3f] }
 0x3d6   :  { %7877 = vmatprep.subr.mxu1 %v2651_v14  ;;  %7837 = vmatpush3.msra.mxu0 %v2603_v31  ;;  %v2419_v61 = vrot.slane %v15327_v26, 1  ;;  %v2631_v1 = vld [vmem:[%s15305_s27 + $0x320] sm:$0xff]  ;;  %v2369_v25 = vld [vmem:[#allocation2 + $0x30] sm:$0xc0]  ;;  %v2614_v14 = vld [vmem:[%s15305_s27 + $0x298] sm:$0xff]  ;;  %v2338_v9 = vmul.f32 %v2330_v24, %v2313_v59 }
 0x3d7   :  { %7878 = vmatpush3.msra.mxu1 %v2635_v38  ;;  %7838 = vmatprep.subr.mxu0 %v2618_v21  ;;  %v2646_v31 = vld [vmem:[%s15305_s27 + $0x398] sm:$0xff]  ;;  %v2342_v38 = vld [vmem:[#allocation2 + $0x8] sm:$0x7f]  ;;  %v2332_v21 = vsel %vm391_vm2, %v2330_v24, %v2331_v42  ;;  %v2629_v8 = vld [vmem:[%s15305_s27 + $0x310] sm:$0xff] }
 0x3d8   :  { %7879 = vmatprep.subr.mxu1 %v2650_v62  ;;  %7839 = vmatpush3.msra.mxu0 %v2602_v52  ;;  %v15328_v62 = vld [vmem:[#allocation52_spill] sm:$0xff]  ;;  %v2420_v20 = vsel %vm626_vm3, %v2417_v33, %v2419_v61 }
 0x3d9   :  { %7880 = vmatpush3.msra.mxu1 %v2634_v6  ;;  %7840 = vmatprep.subr.mxu0 %v2617_v22  ;;  %v2389_v52 = vrot.slane %v15328_v62, 2  ;;  %v2598_v6 = vld [vmem:[%s15305_s27 + $0x218] sm:$0xff]  ;;  %v2644_v33 = vld [vmem:[%s15305_s27 + $0x388] sm:$0xff]  ;;  %v2611_v59 = vld [vmem:[%s15305_s27 + $0x280] sm:$0xff] }
 0x3da   :  { %7881 = vmatprep.subr.mxu1 %v2649_v17  ;;  %7841 = vmatpush3.msra.mxu0 %v2601_v55  ;;  %v2630_v22 = vld [vmem:[%s15305_s27 + $0x318] sm:$0xff]  ;;  %v11121_v17 = vld [vmem:[#allocation2 + $0x8] sm:$0xff]  ;;  %v2362_v55 = vsel %vm564_vm5, %v2359_v51, %v2361_v30  ;;  %v2597_v51 = vld [vmem:[%s15305_s27 + $0x210] sm:$0xff]  ;;  %v2339_v30 = vmul.f32 %v2332_v21, %v10893_v50 }
 0x3db   :  { %7882 = vmatpush3.msra.mxu1 %v2633_v2  ;;  %7842 = vmatprep.subr.mxu0 %v2616_v0  ;;  %v15329_v2 = vld [vmem:[#allocation46_spill] sm:$0xff]  ;;  %v11145_v24 = vmul.f32 %v2362_v55, %v2342_v38  ;;  %v2400_v38 = vld [vmem:[#allocation2 + $0x28] sm:$0x1]  ;;  %v2627_v21 = vld [vmem:[%s15305_s27 + $0x300] sm:$0xff] }
 0x3dc   :  { %7883 = vmatprep.subr.mxu1 %v2648_v5  ;;  %7843 = vmatpush3.msra.mxu0 %v2600_v13  ;;  %v2333_v0 = vrot.slane %v15329_v2, 4  ;;  %v2613_v5 = vld [vmem:[%s15305_s27 + $0x290] sm:$0xff]  ;;  %v2394_v13 = vmul.f32 %v2386_v18, %v2369_v25  ;;  %v2487_v25 = vrot.slane %v2338_v9, 4  ;;  %v2428_v2 = vmul.f32 %v2419_v61, %v2400_v38  ;;  %v11188_v26 = vld [vmem:[#allocation2] sm:$0xff]  ;;  %v2672_v15 = vld [vmem:[%s15305_s27 + $0x468] sm:$0xff] }
 0x3dd   :  { %7884 = vmatpush3.msra.mxu1 %v2632_v11  ;;  %7844 = vmatprep.subr.mxu0 %v2615_v28  ;;  %v2388_v11 = vsel %vm594_vm7, %v2386_v18, %v2387_v53  ;;  %v2427_v18 = vmul.f32 %v2420_v20, %v11121_v17  ;;  %v2390_v28 = vsel %vm594_vm7, %v2387_v53, %v2389_v52  ;;  %v2643_v53 = vld [vmem:[%s15305_s27 + $0x380] sm:$0xff]  ;;  %v2501_v62 = vrot.slane %v11145_v24, 5  ;;  %v2673_v20 = vld [vmem:[%s15305_s27 + $0x470] sm:$0xff]  ;;  %v2670_v24 = vld [vmem:[%s15305_s27 + $0x458] sm:$0xff] }
 0x3de   :  { %7885 = vmatprep.subr.mxu1 %v2647_v63  ;;  %7845 = vmatpush3.msra.mxu0 %v2599_v58  ;;  %v2395_v35 = vmul.f32 %v2388_v11, %v10893_v50  ;;  %v2596_v63 = vld [vmem:[%s15305_s27 + $0x208] sm:$0xff] }
 0x3df   :  { %7886 = vmatpush3.msra.mxu1 %v2631_v1  ;;  %7846 = vmatprep.subr.mxu0 %v2614_v14  ;;  %v2628_v58 = vld [vmem:[%s15305_s27 + $0x308] sm:$0xff]  ;;  %v2334_v1 = vsel %vm391_vm2, %v2331_v42, %v2333_v0  ;;  %v2509_v14 = vrot.slane %v2394_v13, 6  ;;  %v2595_v42 = vld [vmem:[%s15305_s27 + $0x200] sm:$0xff]  ;;  %v2524_v55 = vrot.slane %v2427_v18, 7  ;;  %v2502_v13 = vsel %vm505_vm4, %v2499_v54, %v2501_v62  ;;  %v2665_v18 = vld [vmem:[%s15305_s27 + $0x430] sm:$0xff] }
 0x3e0   :  { %7887 = vmatprep.subr.mxu1 %v2646_v31  ;;  %7847 = vmatpush3.msra.mxu0 %v2598_v6  ;;  %v2396_v31 = vmul.f32 %v11121_v17, %v2390_v28  ;;  %v2340_v52 = vmul.f32 %v2334_v1, %v2314_v16  ;;  %v2488_v6 = vrot.slane %v2339_v30, 4  ;;  %v2667_v30 = vld [vmem:[%s15305_s27 + $0x440] sm:$0xff]  ;;  %v2664_v16 = vld [vmem:[%s15305_s27 + $0x428] sm:$0xff] }
 0x3e1   :  { %7888 = vmatpush3.msra.mxu1 %v2630_v22  ;;  %7848 = vmatprep.subr.mxu0 %v2613_v5  ;;  %v2510_v22 = vrot.slane %v2395_v35, 6  ;;  %v2525_v61 = vsel %vm445_vm1, %v2522_v56, %v2524_v55  ;;  %v2666_v35 = vld [vmem:[%s15305_s27 + $0x438] sm:$0xff]  ;;  %v2663_v28 = vld [vmem:[%s15305_s27 + $0x420] sm:$0xff]  ;;  %v2660_v1 = vld [vmem:[%s15305_s27 + $0x408] sm:$0xff] }
 0x3e2   :  { %7889 = vmatprep.subr.mxu1 %v2645_v44  ;;  %7849 = vmatpush3.msra.mxu0 %v2597_v51  ;;  %v2489_v0 = vsel %vm391_vm2, %v2487_v25, %v2488_v6  ;;  %v2674_v44 = vld [vmem:[%s15305_s27 + $0x478] sm:$0xff]  ;;  %v2512_v9 = vrot.slane %v2396_v31, 6  ;;  %v2490_v11 = vrot.slane %v2340_v52, 4  ;;  %v2526_v51 = vrot.slane %v2428_v2, 7  ;;  %v2429_v38 = vld [vmem:[#allocation2 + $0x28] sm:$0x3] }
 0x3e3   :  { %7890 = vmatpush3.msra.mxu1 %v2629_v8  ;;  %7850 = vmatprep.subr.mxu0 %v2612_v60  ;;  %v2511_v5 = vsel %vm475_vm6, %v2509_v14, %v2510_v22  ;;  %v2671_v8 = vld [vmem:[%s15305_s27 + $0x460] sm:$0xff]  ;;  %v2669_v60 = vld [vmem:[%s15305_s27 + $0x450] sm:$0xff]  ;;  %v3472_v52 = vld [vmem:[%s15160_s11 + $0x178] sm:$0xff] }
 0x3e4   :  { %7891 = vmatprep.subr.mxu1 %v2644_v33  ;;  %7851 = vmatpush3.msra.mxu0 %v2596_v63  ;;  %v2513_v10 = vsel %vm475_vm6, %v2510_v22, %v2512_v9  ;;  %v2491_v54 = vsel %vm391_vm2, %v2488_v6, %v2490_v11  ;;  %v2527_v56 = vsel %vm445_vm1, %v2524_v55, %v2526_v51  ;;  %v2668_v33 = vld [vmem:[%s15305_s27 + $0x448] sm:$0xff]  ;;  %v2662_v63 = vld [vmem:[%s15305_s27 + $0x418] sm:$0xff]  ;;  %v3455_v6 = vld [vmem:[%s15160_s11 + $0xf0] sm:$0xff] }
 0x3e5   :  { %7892 = vmatpush3.msra.mxu1 %v2628_v58  ;;  %7852 = vmatprep.subr.mxu0 %v2611_v59  ;;  %v2661_v58 = vld [vmem:[%s15305_s27 + $0x410] sm:$0xff]  ;;  %v2659_v59 = vld [vmem:[%s15305_s27 + $0x400] sm:$0xff]  ;;  %v3484_v51 = vld [vmem:[%s15160_s11 + $0x1d8] sm:$0xff] }
 0x3e6   :  { %7893 = vmatprep.subr.mxu1 %v2643_v53  ;;  %7853 = vmatpush3.msra.mxu0 %v2595_v42  ;;  %v15330_v53 = vld [vmem:[#allocation53_spill] sm:$0xff]  ;;  %v15331_v14 = vld [vmem:[#allocation54_spill] sm:$0xff]  ;;  %v15332_v42 = vld [vmem:[#allocation55_spill] sm:$0xff] }
 0x3e7   :  { %7894 = vmatpush3.msra.mxu1 %v2627_v21  ;;  %2907 = vmatmul.mubr.f32.vlgmr.msra.gmra.mxu0 %v2489_v0  ;;  %v2448_v25 = vmul.f32 %v15330_v53, %v10893_v50  ;;  %v2449_v31 = vmul.f32 %v15331_v14, %v11121_v17  ;;  %v2450_v21 = vmul.f32 %v15332_v42, %v2429_v38  ;;  %v3456_v50 = vld [vmem:[%s15160_s11 + $0xf8] sm:$0xff]  ;;  %v3487_v22 = vld [vmem:[%s15160_s11 + $0x1f0] sm:$0xff]  ;;  %v3454_v0 = vld [vmem:[%s15160_s11 + $0xe8] sm:$0xff] }
 0x3e8   :  { %2987 = vmatmul.mubr.f32.vlgmr.msra.gmra.mxu1 %v2511_v5  ;;  %8353 = vmatprep.subr.mxu0 %v11188_v26  ;;  %v3440_v17 = vld [vmem:[%s15160_s11 + $0x78] sm:$0xff]  ;;  %v3439_v55 = vld [vmem:[%s15160_s11 + $0x70] sm:$0xff]  ;;  %v3486_v5 = vld [vmem:[%s15160_s11 + $0x1e8] sm:$0xff] }
 0x3e9   :  { %2911 = vmatprep.mubr.f32.mxu0 %v2502_v13  ;;  %2991 = vmatprep.mubr.f32.mxu1 %v2525_v61  ;;  %v3471_v2 = vld [vmem:[%s15160_s11 + $0x170] sm:$0xff]  ;;  %v3453_v13 = vld [vmem:[%s15160_s11 + $0xe0] sm:$0xff]  ;;  %v3464_v53 = vld [vmem:[%s15160_s11 + $0x138] sm:$0xff] }
 0x3ea   :  { %8354 = vmatpush3.msra.mxu0 %v2674_v44  ;;  %7923 = vmatprep.subr.mxu1 %v3456_v50  ;;  %v3438_v44 = vld [vmem:[%s15160_s11 + $0x68] sm:$0xff]  ;;  %v3469_v61 = vld [vmem:[%s15160_s11 + $0x160] sm:$0xff]  ;;  %v3479_v14 = vld [vmem:[%s15160_s11 + $0x1b0] sm:$0xff] }
 0x3eb   :  { %8355 = vmatprep.subr.mxu0 %v11188_v26  ;;  %2912 = vmatmul.mubr.f32.gmra.mxu0 %v2491_v54  ;;  %v3468_v54 = vld [vmem:[%s15160_s11 + $0x158] sm:$0xff]  ;;  %v3463_v38 = vld [vmem:[%s15160_s11 + $0x130] sm:$0xff]  ;;  %v3446_v42 = vld [vmem:[%s15160_s11 + $0xa8] sm:$0xff] }
 0x3ec   :  { %8356 = vmatpush3.msra.mxu0 %v2673_v20  ;;  %2992 = vmatmul.mubr.f32.gmra.mxu1 %v2513_v10  ;;  %v3452_v20 = vld [vmem:[%s15160_s11 + $0xd8] sm:$0xff]  ;;  %v3430_v50 = vld [vmem:[%s15160_s11 + $0x28] sm:$0xff] }
 0x3ed   :  { %8357 = vmatprep.subr.mxu0 %v11188_v26  ;;  %2916 = vmatprep.mubr.f32.mxu0 %v2501_v62  ;;  %v3488_v62 = vld [vmem:[%s15160_s11 + $0x1f8] sm:$0xff] }
 0x3ee   :  { %2996 = vmatprep.mubr.f32.mxu1 %v2527_v56  ;;  %8358 = vmatpush3.msra.mxu0 %v2672_v15  ;;  %v3436_v10 = vld [vmem:[%s15160_s11 + $0x58] sm:$0xff]  ;;  %v3451_v15 = vld [vmem:[%s15160_s11 + $0xd0] sm:$0xff] }
 0x3ef   :  { %8359 = vmatprep.subr.mxu0 %v11188_v26  ;;  %2917 = vmatmul.mubr.f32.gmra.mxu0 %v2490_v11  ;;  %v3485_v11 = vld [vmem:[%s15160_s11 + $0x1e0] sm:$0xff]  ;;  %v3483_v56 = vld [vmem:[%s15160_s11 + $0x1d0] sm:$0xff] }
 0x3f0   :  { %2997 = vmatmul.mubr.f32.gmra.mxu1 %v2512_v9  ;;  %8360 = vmatpush3.msra.mxu0 %v2671_v8  ;;  %v3470_v9 = vld [vmem:[%s15160_s11 + $0x168] sm:$0xff]  ;;  %v3435_v8 = vld [vmem:[%s15160_s11 + $0x50] sm:$0xff] }
 0x3f1   :  { %8361 = vmatprep.subr.mxu0 %v11188_v26  ;;  %8385 = vmatprep.mubr.msk.f32.mxu0 %vm8484_vm0, %v11188_v26 }
 0x3f2   :  { %8362 = vmatpush3.msra.mxu0 %v2670_v24  ;;  %7924 = vmatpush3.msra.mxu1 %v3440_v17  ;;  %v3467_v24 = vld [vmem:[%s15160_s11 + $0x150] sm:$0xff]  ;;  %v3445_v17 = vld [vmem:[%s15160_s11 + $0xa0] sm:$0xff] }
 0x3f3   :  { %8363 = vmatprep.subr.mxu0 %v11188_v26  ;;  %7925 = vmatprep.subr.mxu1 %v3455_v6  ;;  %v3429_v6 = vld [vmem:[%s15160_s11 + $0x20] sm:$0xff] }
 0x3f4   :  { %8364 = vmatpush3.msra.mxu0 %v2669_v60  ;;  %7926 = vmatpush3.msra.mxu1 %v3439_v55  ;;  %v3450_v60 = vld [vmem:[%s15160_s11 + $0xc8] sm:$0xff]  ;;  %v3444_v55 = vld [vmem:[%s15160_s11 + $0x98] sm:$0xff] }
 0x3f5   :  { %8365 = vmatprep.subr.mxu0 %v11188_v26  ;;  %7927 = vmatprep.subr.mxu1 %v3454_v0  ;;  %v3428_v0 = vld [vmem:[%s15160_s11 + $0x18] sm:$0xff] }
 0x3f6   :  { %8366 = vmatpush3.msra.mxu0 %v2668_v33  ;;  %7928 = vmatpush3.msra.mxu1 %v3438_v44  ;;  %v3482_v33 = vld [vmem:[%s15160_s11 + $0x1c8] sm:$0xff]  ;;  %v3443_v44 = vld [vmem:[%s15160_s11 + $0x90] sm:$0xff] }
 0x3f7   :  { %8367 = vmatprep.subr.mxu0 %v11188_v26  ;;  %7929 = vmatprep.subr.mxu1 %v3453_v13  ;;  %v3427_v13 = vld [vmem:[%s15160_s11 + $0x10] sm:$0xff] }
 0x3f8   :  { %8368 = vmatpush3.msra.mxu0 %v2667_v30  ;;  %v3434_v30 = vld [vmem:[%s15160_s11 + $0x48] sm:$0xff] }
 0x3f9   :  { %8369 = vmatprep.subr.mxu0 %v11188_v26 }
 0x3fa   :  { %8370 = vmatpush3.msra.mxu0 %v2666_v35  ;;  %v3466_v35 = vld [vmem:[%s15160_s11 + $0x148] sm:$0xff] }
 0x3fb   :  { %8371 = vmatprep.subr.mxu0 %v11188_v26 }
 0x3fc   :  { %8372 = vmatpush3.msra.mxu0 %v2665_v18  ;;  %v3449_v18 = vld [vmem:[%s15160_s11 + $0xc0] sm:$0xff] }
 0x3fd   :  { %8373 = vmatprep.subr.mxu0 %v11188_v26 }
 0x3fe   :  { %8374 = vmatpush3.msra.mxu0 %v2664_v16  ;;  %v3481_v16 = vld [vmem:[%s15160_s11 + $0x1c0] sm:$0xff] }
 0x3ff   :  { %8375 = vmatprep.subr.mxu0 %v11188_v26 }
 0x400   :  { %8376 = vmatpush3.msra.mxu0 %v2663_v28  ;;  %v3433_v28 = vld [vmem:[%s15160_s11 + $0x40] sm:$0xff] }
 0x401   :  { %8377 = vmatprep.subr.mxu0 %v11188_v26 }
 0x402   :  { %8378 = vmatpush3.msra.mxu0 %v2662_v63  ;;  %v3465_v63 = vld [vmem:[%s15160_s11 + $0x140] sm:$0xff] }
 0x403   :  { %8379 = vmatprep.subr.mxu0 %v11188_v26 }
 0x404   :  { %8380 = vmatpush3.msra.mxu0 %v2661_v58  ;;  %v3448_v58 = vld [vmem:[%s15160_s11 + $0xb8] sm:$0xff] }
 0x405   :  { %8381 = vmatprep.subr.mxu0 %v11188_v26 }
 0x406   :  { %8382 = vmatpush3.msra.mxu0 %v2660_v1  ;;  %v3480_v1 = vld [vmem:[%s15160_s11 + $0x1b8] sm:$0xff] }
 0x407   :  { %8383 = vmatprep.subr.mxu0 %v11188_v26 }
 0x408   :  { %8384 = vmatpush3.msra.mxu0 %v2659_v59  ;;  %v3432_v59 = vld [vmem:[%s15160_s11 + $0x38] sm:$0xff] }
 0x409   :  { %8386 = vmatmul.mubr.f32.vlgmr.msra.gmra.mxu0 %v2448_v25  ;;  %7964 = vmatprep.subr.mxu0 %v3488_v62  ;;  %v3447_v25 = vld [vmem:[%s15160_s11 + $0xb0] sm:$0xff]  ;;  %v3462_v62 = vld [vmem:[%s15160_s11 + $0x128] sm:$0xff] }
 0x40a   :  { %8388 = vmatprep.mubr.msk.f32.mxu0 %vm8484_vm0, %v11188_v26  ;;  %7965 = vmatpush3.msra.mxu0 %v3472_v52  ;;  %v3477_v52 = vld [vmem:[%s15160_s11 + $0x1a0] sm:$0xff] }
 0x40b   :  { %7966 = vmatprep.subr.mxu0 %v3487_v22  ;;  %v3461_v22 = vld [vmem:[%s15160_s11 + $0x120] sm:$0xff] }
 0x40c   :  { %7967 = vmatpush3.msra.mxu0 %v3471_v2  ;;  %v3476_v2 = vld [vmem:[%s15160_s11 + $0x198] sm:$0xff] }
 0x40d   :  { %8389 = vmatmul.mubr.f32.gmra.mxu0 %v2449_v31  ;;  %7968 = vmatprep.subr.mxu0 %v3486_v5  ;;  %v3431_v31 = vld [vmem:[%s15160_s11 + $0x30] sm:$0xff]  ;;  %v3460_v5 = vld [vmem:[%s15160_s11 + $0x118] sm:$0xff] }
 0x40e   :  { %8391 = vmatprep.mubr.msk.f32.mxu0 %vm8484_vm0, %v11188_v26  ;;  %7969 = vmatpush3.msra.mxu0 %v3470_v9  ;;  %v3437_v26 = vld [vmem:[%s15160_s11 + $0x60] sm:$0xff]  ;;  %v3475_v9 = vld [vmem:[%s15160_s11 + $0x190] sm:$0xff] }
 0x40f   :  { %7970 = vmatprep.subr.mxu0 %v3485_v11  ;;  %7930 = vmatpush3.msra.mxu1 %v3437_v26  ;;  %v3459_v11 = vld [vmem:[%s15160_s11 + $0x110] sm:$0xff]  ;;  %v3442_v26 = vld [vmem:[%s15160_s11 + $0x88] sm:$0xff] }
 0x410   :  { %7971 = vmatpush3.msra.mxu0 %v3469_v61  ;;  %7931 = vmatprep.subr.mxu1 %v3452_v20  ;;  %v3474_v61 = vld [vmem:[%s15160_s11 + $0x188] sm:$0xff] }
 0x411   :  { %8392 = vmatmul.mubr.f32.gmra.mxu0 %v2450_v21  ;;  %7972 = vmatprep.subr.mxu0 %v3484_v51  ;;  %v3478_v21 = vld [vmem:[%s15160_s11 + $0x1a8] sm:$0xff] }
 0x412   :  { %7932 = vmatpush3.msra.mxu1 %v3436_v10  ;;  %7973 = vmatpush3.msra.mxu0 %v3468_v54  ;;  %v3426_v20 = vld [vmem:[%s15160_s11 + $0x8] sm:$0xff]  ;;  %v3441_v10 = vld [vmem:[%s15160_s11 + $0x80] sm:$0xff] }
 0x413   :  { %7933 = vmatprep.subr.mxu1 %v3451_v15  ;;  %7974 = vmatprep.subr.mxu0 %v3483_v56  ;;  %v3458_v51 = vld [vmem:[%s15160_s11 + $0x108] sm:$0xff]  ;;  %v3473_v54 = vld [vmem:[%s15160_s11 + $0x180] sm:$0xff] }
 0x414   :  { %7934 = vmatpush3.msra.mxu1 %v3435_v8  ;;  %7975 = vmatpush3.msra.mxu0 %v3467_v24  ;;  %v3425_v15 = vld [vmem:[%s15160_s11] sm:$0xff]  ;;  %v3520_v8 = vld [vmem:[%s15160_s11 + $0x2f8] sm:$0xff] }
 0x415   :  { %7935 = vmatprep.subr.mxu1 %v3450_v60  ;;  %7976 = vmatprep.subr.mxu0 %v3482_v33  ;;  %v3457_v56 = vld [vmem:[%s15160_s11 + $0x100] sm:$0xff]  ;;  %v3552_v24 = vld [vmem:[%s15160_s11 + $0x3f8] sm:$0xff] }
 0x416   :  { %7936 = vmatpush3.msra.mxu1 %v3434_v30  ;;  %7977 = vmatpush3.msra.mxu0 %v3466_v35 }
 0x417   :  { %7937 = vmatprep.subr.mxu1 %v3449_v18  ;;  %7978 = vmatprep.subr.mxu0 %v3481_v16 }
 0x418   :  { %7938 = vmatpush3.msra.mxu1 %v3433_v28  ;;  %7979 = vmatpush3.msra.mxu0 %v3465_v63 }
 0x419   :  { %7939 = vmatprep.subr.mxu1 %v3448_v58  ;;  %7980 = vmatprep.subr.mxu0 %v3480_v1 }
 0x41a   :  { %7940 = vmatpush3.msra.mxu1 %v3432_v59  ;;  %7981 = vmatpush3.msra.mxu0 %v3464_v53 }
 0x41b   :  { %7941 = vmatprep.subr.mxu1 %v3447_v25  ;;  %7982 = vmatprep.subr.mxu0 %v3479_v14 }
 0x41c   :  { %7942 = vmatpush3.msra.mxu1 %v3431_v31  ;;  %7983 = vmatpush3.msra.mxu0 %v3463_v38 }
 0x41d   :  { %7943 = vmatprep.subr.mxu1 %v3446_v42  ;;  %7984 = vmatprep.subr.mxu0 %v3478_v21  ;;  %v7250_v21 = vld [vmem:[%s15161_s10] ss:$0 sm:$0xff] }
 0x41e   :  { %7944 = vmatpush3.msra.mxu1 %v3430_v50  ;;  %7985 = vmatpush3.msra.mxu0 %v3462_v62 }
 0x41f   :  { %7945 = vmatprep.subr.mxu1 %v3445_v17  ;;  %7986 = vmatprep.subr.mxu0 %v3477_v52 }
 0x420   :  { %7946 = vmatpush3.msra.mxu1 %v3429_v6  ;;  %7987 = vmatpush3.msra.mxu0 %v3461_v22 }
 0x421   :  { %7947 = vmatprep.subr.mxu1 %v3444_v55  ;;  %7988 = vmatprep.subr.mxu0 %v3476_v2 }
 0x422   :  { %7948 = vmatpush3.msra.mxu1 %v3428_v0  ;;  %7989 = vmatpush3.msra.mxu0 %v3460_v5 }
 0x423   :  { %7949 = vmatprep.subr.mxu1 %v3443_v44  ;;  %7990 = vmatprep.subr.mxu0 %v3475_v9 }
 0x424   :  { %7950 = vmatpush3.msra.mxu1 %v3427_v13  ;;  %7991 = vmatpush3.msra.mxu0 %v3459_v11 }
 0x425   :  { %7951 = vmatprep.subr.mxu1 %v3442_v26  ;;  %7992 = vmatprep.subr.mxu0 %v3474_v61 }
 0x426   :  { %7952 = vmatpush3.msra.mxu1 %v3426_v20  ;;  %7993 = vmatpush3.msra.mxu0 %v3458_v51 }
 0x427   :  { %7953 = vmatprep.subr.mxu1 %v3441_v10  ;;  %7994 = vmatprep.subr.mxu0 %v3473_v54 }
 0x428   :  { %7954 = vmatpush3.msra.mxu1 %v3425_v15  ;;  %7995 = vmatpush3.msra.mxu0 %v3457_v56 }
 0x429   :  { %8005 = vmatprep.subr.mxu1 %v3520_v8  ;;  %8046 = vmatprep.subr.mxu0 %v3552_v24 }
 0x482   :  { %v7772_v60 = vpop.f32.mrf.mxu0 }
 0x483   :  { %v7813_v30 = vpop.f32.mrf.mxu1 }
 0x484   :  { %v7773_v33 = vpop.f32.mrf.mxu0 }
 0x485   :  { %v7814_v18 = vpop.f32.mrf.mxu1  ;;  %v7774_v42 = vadd.f32 %v7773_v33, %v7772_v60 }
 0x486   :  { %v7815_v22 = vadd.f32 %v7814_v18, %v7813_v30 }
 0x487   :  { %v2749_v17 = vadd.f32 %v7774_v42, %v7250_v21 }
 0x489   :  { %v2829_v0 = vadd.f32 %v7815_v22, %v2749_v17  ;;  %v15335_v17 = vld [vmem:[#allocation60_spill] sm:$0xff] }
 0x48b   :  { %v7775_v35 = vpop.f32.mrf.mxu0 }
 0x48c   :  { %v7816_v28 = vpop.f32.mrf.mxu1 }
 0x48d   :  { %v7776_v16 = vpop.f32.mrf.mxu0 }
 0x48e   :  { %v7817_v58 = vpop.f32.mrf.mxu1  ;;  %v7777_v52 = vadd.f32 %v7776_v16, %v7775_v35 }
 0x48f   :  { %v7778_v63 = vpop.f32.mrf.mxu0  ;;  %v7818_v13 = vadd.f32 %v7817_v58, %v7816_v28 }
 0x490   :  { %v7819_v59 = vpop.f32.mrf.mxu1  ;;  %v2754_v5 = vadd.f32 %v7777_v52, %v7250_v21  ;;  %v3196_v52 = vrot.slane %v15335_v17, 5 }
 0x491   :  { %v7779_v1 = vpop.f32.mrf.mxu0 }
 0x492   :  { %v7820_v25 = vpop.f32.mrf.mxu1  ;;  %v7780_v44 = vadd.f32 %v7779_v1, %v7778_v63  ;;  %v2834_v20 = vadd.f32 %v7818_v13, %v2754_v5  ;;  %v15338_v5 = vld [vmem:[#allocation63_spill] sm:$0xff] }
 0x493   :  { %v7821_v15 = vadd.f32 %v7820_v25, %v7819_v59  ;;  %v15333_v25 = vld [vmem:[#allocation56_spill] sm:$0xff] }
 0x494   :  { %v2759_v51 = vadd.f32 %v7780_v44, %v7250_v21  ;;  %v3140_v21 = vrot.slane %v15333_v25, 7  ;;  %v3169_v44 = vrot.slane %v15338_v5, 6 }
 0x496   :  { %v2839_v33 = vadd.f32 %v7821_v15, %v2759_v51 }
 0x4a7   :  { %v7854_v53 = vpop.f32.mrf.mxu0 }
 0x4a8   :  { %v7895_v31 = vpop.f32.mrf.mxu1 }
 0x4a9   :  { %v7855_v14 = vpop.f32.mrf.mxu0 }
 0x4aa   :  { %v7896_v50 = vpop.f32.mrf.mxu1  ;;  %v7856_v55 = vadd.f32 %v7855_v14, %v7854_v53 }
 0x4ab   :  { %v7857_v38 = vpop.f32.mrf.mxu0  ;;  %v7897_v10 = vadd.f32 %v7896_v50, %v7895_v31  ;;  %v15334_v50 = vld [vmem:[#allocation57_spill] sm:$0xff] }
 0x4ac   :  { %v7898_v6 = vpop.f32.mrf.mxu1  ;;  %v2909_v11 = vadd.f32 %v7856_v55, %v2829_v0 }
 0x4ad   :  { %v7858_v62 = vpop.f32.mrf.mxu0 }
 0x4ae   :  { %v7899_v9 = vpop.f32.mrf.mxu1  ;;  %v7859_v26 = vadd.f32 %v7858_v62, %v7857_v38  ;;  %v2989_v24 = vadd.f32 %v7897_v10, %v2909_v11  ;;  %v3141_v62 = vrot.slane %v15334_v50, 7 }
 0x4af   :  { %v7860_v2 = vpop.f32.mrf.mxu0  ;;  %v7900_v30 = vadd.f32 %v7899_v9, %v7898_v6  ;;  %v15336_v6 = vld [vmem:[#allocation61_spill] sm:$0xff] }
 0x4b0   :  { %v7901_v54 = vpop.f32.mrf.mxu1  ;;  %v2914_v56 = vadd.f32 %v7859_v26, %v2834_v20  ;;  %v3197_v22 = vrot.slane %v15336_v6, 5  ;;  %v3142_v20 = vsel %vm445_vm1, %v3140_v21, %v3141_v62 }
 0x4b1   :  { %v7861_v61 = vpop.f32.mrf.mxu0 }
 0x4b2   :  { %v7862_v8 = vadd.f32 %v7861_v61, %v7860_v2  ;;  %v7902_v18 = vpop.f32.mrf.mxu1  ;;  %v2994_v28 = vadd.f32 %v7900_v30, %v2914_v56  ;;  %v15337_v2 = vld [vmem:[#allocation62_spill] sm:$0xff]  ;;  %v3198_v51 = vsel %vm505_vm4, %v3196_v52, %v3197_v22 }
 0x4b3   :  { %v7903_v53 = vadd.f32 %v7902_v18, %v7901_v54  ;;  %v3168_v0 = vrot.slane %v15337_v2, 6  ;;  %v3536_v2 = vld [vmem:[%s15160_s11 + $0x378] sm:$0xff] }
 0x4b4   :  { %v2919_v63 = vadd.f32 %v7862_v8, %v2839_v33 }
 0x4b5   :  { %v3170_v10 = vsel %vm475_vm6, %v3168_v0, %v3169_v44 }
 0x4b6   :  { %v2999_v59 = vadd.f32 %v7903_v53, %v2919_v63 }
 0x4c9   :  { %v3068_v60 = vpop.f32.mrf.mxu0 }
 0x4ca   :  { %v3069_v35 = vadd.f32 %v3068_v60, %v2989_v24 }
 0x4cb   :  { %v8387_v16 = vpop.f32.mrf.mxu0 }
 0x4cc   :  { %v3082_v1 = vmax.f32 %v3069_v35, 0.0 }
 0x4cd   :  { %v3073_v58 = vpop.f32.mrf.mxu0 }
 0x4ce   :  { %v3088_v14 = vrot.slane %v3082_v1, 4  ;;  %v3074_v38 = vadd.f32 %v3073_v58, %v2994_v28 }
 0x4cf   :  { %v8390_v42 = vpop.f32.mrf.mxu0 }
 0x4d0   :  { %3096 = vst [vmem:[#allocation2 + $0x30] sm:$0xf0] %v3088_v14  ;;  %v3083_v31 = vmax.f32 %v3074_v38, 0.0  ;;  %v15340_v42 = vld [vmem:[#allocation70_spill] sm:$0xff] }
 0x4d1   :  { %v3078_v55 = vpop.f32.mrf.mxu0 }
 0x4d2   :  { %v3089_v9 = vrot.slane %v3083_v31, 4  ;;  %v3079_v13 = vadd.f32 %v3078_v55, %v2999_v59  ;;  %v3199_v31 = vrot.slane %v15340_v42, 5  ;;  %v3504_v55 = vld [vmem:[%s15160_s11 + $0x278] sm:$0xff] }
 0x4d3   :  { %v8393_v11 = vpop.f32.mrf.mxu0 }
 0x4d4   :  { %v11476_v26 = vsel %vm391_vm2, %v3088_v14, %v3089_v9  ;;  %v3084_v61 = vmax.f32 %v3079_v13, 0.0  ;;  %v15339_v14 = vld [vmem:[#allocation59_spill] sm:$0xff]  ;;  %v3551_v13 = vld [vmem:[%s15160_s11 + $0x3f0] sm:$0xff] }
 0x4d5   :  { %v11482_v15 = vmul.f32 %v3142_v20, %v11476_v26  ;;  %v11485_v56 = vmul.f32 %v3198_v51, %v11476_v26  ;;  %v11488_v60 = vmul.f32 %v3170_v10, %v11476_v26  ;;  %v3143_v38 = vrot.slane %v15339_v14, 7  ;;  %v3503_v11 = vld [vmem:[%s15160_s11 + $0x270] sm:$0xff] }
 0x4d6   :  { %v3091_v54 = vrot.slane %v3084_v61, 4  ;;  %v15343_v61 = vld [vmem:[#allocation66_spill] sm:$0xff]  ;;  %v3310_v51 = vrot.slane %v9642_v40, 1  ;;  %v3311_v10 = vrot.slane %v9649_v19, 1  ;;  %v3502_v40 = vld [vmem:[%s15160_s11 + $0x268] sm:$0xff] }
 0x4d7   :  { %v3123_v8 = vld [vmem:[#allocation2 + $0x30] sm:$0xfe]  ;;  %v3349_v28 = vrot.slane %v11482_v15, 1  ;;  %v3371_v53 = vrot.slane %v11485_v56, 3  ;;  %v3360_v25 = vrot.slane %v11488_v60, 2  ;;  %v3253_v20 = vrot.slane %v15343_v61, 3 }
 0x4d8   :  { %v3179_v24 = vld [vmem:[#allocation2 + $0x30] sm:$0xf8]  ;;  %v3092_v33 = vsel %vm391_vm2, %v3089_v9, %v3091_v54  ;;  %v3148_v30 = vmul.f32 %v3140_v21, %v3123_v8  ;;  %v3171_v21 = vrot.slane %v9625_v4, 6  ;;  %v3518_v8 = vld [vmem:[%s15160_s11 + $0x2e8] sm:$0xff]  ;;  %v3548_v15 = vld [vmem:[%s15160_s11 + $0x3d8] sm:$0xff] }
 0x4d9   :  { %v3204_v35 = vmul.f32 %v3196_v52, %v3179_v24  ;;  %v3151_v18 = vld [vmem:[#allocation2 + $0x30] sm:$0xfc]  ;;  %3098 = vst [vmem:[#allocation2 + $0x8] sm:$0x3f] %v3092_v33  ;;  %v3550_v24 = vld [vmem:[%s15160_s11 + $0x3e8] sm:$0xff]  ;;  %v3500_v60 = vld [vmem:[%s15160_s11 + $0x258] sm:$0xff] }
 0x4da   :  { %v3099_v16 = vld [vmem:[#allocation2 + $0x30] sm:$0xff]  ;;  %v3176_v63 = vmul.f32 %v3168_v0, %v3151_v18  ;;  %v3348_v1 = vrot.slane %v3148_v30, 1  ;;  %v3534_v33 = vld [vmem:[%s15160_s11 + $0x368] sm:$0xff]  ;;  %v3200_v18 = vsel %vm505_vm4, %v3197_v22, %v3199_v31  ;;  %v3501_v31 = vld [vmem:[%s15160_s11 + $0x260] sm:$0xff] }
 0x4db   :  { %v3370_v58 = vrot.slane %v3204_v35, 3  ;;  %v15341_v52 = vld [vmem:[#allocation58_spill] sm:$0xff]  ;;  %v15342_v0 = vld [vmem:[#allocation65_spill] sm:$0xff]  ;;  %v3144_v35 = vsel %vm445_vm1, %v3141_v62, %v3143_v38  ;;  %v3549_v62 = vld [vmem:[%s15160_s11 + $0x3e0] sm:$0xff]  ;;  %v3312_v38 = vsel %vm626_vm3, %v3310_v51, %v3311_v10 }
 0x4dc   :  { %v3359_v59 = vrot.slane %v3176_v63, 2  ;;  %v3350_v50 = vsel %vm626_vm3, %v3348_v1, %v3349_v28  ;;  %v3120_v6 = vmul.f32 %v15341_v52, %v3099_v16  ;;  %v3252_v4 = vrot.slane %v15342_v0, 3  ;;  %v3519_v9 = vld [vmem:[%s15160_s11 + $0x2f0] sm:$0xff]  ;;  %v3506_v19 = vld [vmem:[%s15160_s11 + $0x288] sm:$0xff] }
 0x4dd   :  { %v3372_v17 = vsel %vm564_vm5, %v3370_v58, %v3371_v53  ;;  %3640 = vmatprep.mubr.f32.mxu1 %v3350_v50  ;;  %v3535_v54 = vld [vmem:[%s15160_s11 + $0x370] sm:$0xff]  ;;  %v3172_v16 = vsel %vm475_vm6, %v3169_v44, %v3171_v21  ;;  %v3517_v50 = vld [vmem:[%s15160_s11 + $0x2e0] sm:$0xff]  ;;  %v11583_v56 = vmul.f32 %v3312_v38, %v11476_v26  ;;  %v3512_v38 = vld [vmem:[%s15160_s11 + $0x2b8] sm:$0xff] }
 0x4de   :  { %3720 = vmatprep.mubr.f32.mxu0 %v3372_v17  ;;  %v3361_v5 = vsel %vm594_vm7, %v3359_v59, %v3360_v25  ;;  %3641 = vmatmul.mubr.f32.vlgmr.msra.gmra.mxu1 %v3120_v6  ;;  %v3235_v30 = vld [vmem:[#allocation2 + $0x30] sm:$0xe0]  ;;  %v3254_v44 = vsel %vm564_vm5, %v3252_v4, %v3253_v20  ;;  %v3533_v21 = vld [vmem:[%s15160_s11 + $0x360] sm:$0xff] }
 0x4df   :  { %3721 = vmatmul.mubr.f32.vlgmr.msra.gmra.mxu0 %v3361_v5  ;;  %8006 = vmatpush3.msra.mxu1 %v3504_v55  ;;  %v3291_v22 = vld [vmem:[#allocation2 + $0x30] sm:$0x80]  ;;  %v3260_v55 = vmul.f32 %v3252_v4, %v3235_v30  ;;  %v11565_v5 = vmul.f32 %v3254_v44, %v11476_v26  ;;  %v3529_v44 = vld [vmem:[%s15160_s11 + $0x340] sm:$0xff] }
 0x4e0   :  { %8047 = vmatpush3.msra.mxu0 %v3536_v2  ;;  %8007 = vmatprep.subr.mxu1 %v3519_v9  ;;  %v3124_v63 = vld [vmem:[#allocation2 + $0x8] sm:$0x7]  ;;  %v3319_v9 = vmul.f32 %v3310_v51, %v3291_v22  ;;  %v3516_v51 = vld [vmem:[%s15160_s11 + $0x2d8] sm:$0xff]  ;;  %v3547_v30 = vld [vmem:[%s15160_s11 + $0x3d0] sm:$0xff] }
 0x4e1   :  { %8048 = vmatprep.subr.mxu0 %v3551_v13  ;;  %v3180_v1 = vld [vmem:[#allocation2 + $0x8] sm:$0x1f]  ;;  %8008 = vmatpush3.msra.mxu1 %v3503_v11  ;;  %v3150_v14 = vmul.f32 %v3144_v35, %v3124_v63  ;;  %v3416_v35 = vrot.slane %v11583_v56, 7  ;;  %v3531_v63 = vld [vmem:[%s15160_s11 + $0x350] sm:$0xff]  ;;  %v3497_v22 = vld [vmem:[%s15160_s11 + $0x240] sm:$0xff] }
 0x4e2   :  { %v3152_v58 = vld [vmem:[#allocation2 + $0x8] sm:$0xf]  ;;  %8049 = vmatpush3.msra.mxu0 %v3535_v54  ;;  %v3206_v42 = vmul.f32 %v3200_v18, %v3180_v1  ;;  %8009 = vmatprep.subr.mxu1 %v3518_v8  ;;  %v3415_v54 = vrot.slane %v3319_v9, 7  ;;  %v3491_v61 = vld [vmem:[%s15160_s11 + $0x210] sm:$0xff] }
 0x4e3   :  { %v3178_v59 = vmul.f32 %v3172_v16, %v3152_v58  ;;  %8050 = vmatprep.subr.mxu0 %v3550_v24  ;;  %v3351_v17 = vrot.slane %v3150_v14, 1  ;;  %8010 = vmatpush3.msra.mxu1 %v3502_v40  ;;  %v15344_v2 = vld [vmem:[#allocation64_spill] sm:$0xff]  ;;  %v15345_v8 = vld [vmem:[#allocation69_spill] sm:$0xff] }
 0x4e4   :  { %v3373_v52 = vrot.slane %v3206_v42, 3  ;;  %8051 = vmatpush3.msra.mxu0 %v3534_v33  ;;  %v3121_v0 = vmul.f32 %v15344_v2, %v11476_v26  ;;  %8011 = vmatprep.subr.mxu1 %v3517_v50  ;;  %v3515_v40 = vld [vmem:[%s15160_s11 + $0x2d0] sm:$0xff]  ;;  %v3393_v33 = vrot.slane %v11565_v5, 5  ;;  %v3417_v1 = vsel %vm445_vm1, %v3415_v54, %v3416_v35  ;;  %v3514_v58 = vld [vmem:[%s15160_s11 + $0x2c8] sm:$0xff]  ;;  %v3513_v50 = vld [vmem:[%s15160_s11 + $0x2c0] sm:$0xff] }
 0x4e5   :  { %v3362_v6 = vrot.slane %v3178_v59, 2  ;;  %8052 = vmatprep.subr.mxu0 %v3549_v62  ;;  %v3352_v13 = vsel %vm626_vm3, %v3349_v28, %v3351_v17  ;;  %8012 = vmatpush3.msra.mxu1 %v3501_v31  ;;  %v3101_v28 = vld [vmem:[#allocation2 + $0x8] sm:$0x3]  ;;  %v3499_v16 = vld [vmem:[%s15160_s11 + $0x250] sm:$0xff]  ;;  %v3545_v62 = vld [vmem:[%s15160_s11 + $0x3c0] sm:$0xff] }
 0x4e6   :  { %v3374_v11 = vsel %vm564_vm5, %v3371_v53, %v3373_v52  ;;  %8053 = vmatpush3.msra.mxu0 %v3533_v21  ;;  %3645 = vmatprep.mubr.f32.mxu1 %v3352_v13  ;;  %v3532_v53 = vld [vmem:[%s15160_s11 + $0x358] sm:$0xff]  ;;  %v3122_v24 = vmul.f32 %v15345_v8, %v3101_v28  ;;  %v3546_v14 = vld [vmem:[%s15160_s11 + $0x3c8] sm:$0xff]  ;;  %v3527_v2 = vld [vmem:[%s15160_s11 + $0x330] sm:$0xff] }
 0x4e7   :  { %v3363_v4 = vsel %vm594_vm7, %v3360_v25, %v3362_v6  ;;  %3725 = vmatprep.mubr.f32.mxu0 %v3374_v11  ;;  %3646 = vmatmul.mubr.f32.gmra.mxu1 %v3121_v0  ;;  %v3392_v25 = vrot.slane %v3260_v55, 5  ;;  %v3498_v42 = vld [vmem:[%s15160_s11 + $0x248] sm:$0xff]  ;;  %v3544_v31 = vld [vmem:[%s15160_s11 + $0x3b8] sm:$0xff]  ;;  %v3495_v55 = vld [vmem:[%s15160_s11 + $0x230] sm:$0xff] }
 0x4e8   :  { %3726 = vmatmul.mubr.f32.gmra.mxu0 %v3363_v4  ;;  %3650 = vmatprep.mubr.f32.mxu1 %v3351_v17  ;;  %v3530_v59 = vld [vmem:[%s15160_s11 + $0x348] sm:$0xff]  ;;  %v3496_v21 = vld [vmem:[%s15160_s11 + $0x238] sm:$0xff]  ;;  %v3509_v54 = vld [vmem:[%s15160_s11 + $0x2a0] sm:$0xff] }
 0x4e9   :  { %3730 = vmatprep.mubr.f32.mxu0 %v3373_v52  ;;  %8013 = vmatprep.subr.mxu1 %v3516_v51  ;;  %v3394_v18 = vsel %vm505_vm4, %v3392_v25, %v3393_v33  ;;  %v3528_v17 = vld [vmem:[%s15160_s11 + $0x338] sm:$0xff]  ;;  %v3511_v52 = vld [vmem:[%s15160_s11 + $0x2b0] sm:$0xff]  ;;  %v3510_v0 = vld [vmem:[%s15160_s11 + $0x2a8] sm:$0xff]  ;;  %v3281_v25 = vrot.slane %v9654_v23, 2 }
 0x4ea   :  { %8054 = vmatprep.subr.mxu0 %v3548_v15  ;;  %8014 = vmatpush3.msra.mxu1 %v3500_v60  ;;  %v3542_v9 = vld [vmem:[%s15160_s11 + $0x3a8] sm:$0xff]  ;;  %v15346_v13 = vld [vmem:[#allocation67_spill] sm:$0xff]  ;;  %v3255_v60 = vrot.slane %v9630_v57, 3  ;;  %v3313_v57 = vrot.slane %v9656_v3, 1  ;;  %v3207_v23 = vld [vmem:[#allocation2 + $0x30] sm:$0xf0] }
 0x4eb   :  { %8055 = vmatpush3.msra.mxu0 %v3532_v53  ;;  %3651 = vmatmul.mubr.f32.gmra.mxu1 %v3122_v24  ;;  %v3224_v11 = vrot.slane %v15346_v13, 4  ;;  %v15347_v4 = vld [vmem:[#allocation68_spill] sm:$0xff]  ;;  %v3280_v53 = vrot.slane %v9651_v34, 2 }
 0x4ec   :  { %3731 = vmatmul.mubr.f32.gmra.mxu0 %v3362_v6  ;;  %8015 = vmatprep.subr.mxu1 %v3515_v40  ;;  %v3543_v6 = vld [vmem:[%s15160_s11 + $0x3b0] sm:$0xff]  ;;  %v3225_v51 = vrot.slane %v15347_v4, 4  ;;  %v3494_v15 = vld [vmem:[%s15160_s11 + $0x228] sm:$0xff]  ;;  %v3541_v8 = vld [vmem:[%s15160_s11 + $0x3a0] sm:$0xff] }
 0x4ed   :  { %3800 = vmatprep.mubr.f32.mxu1 %v3394_v18  ;;  %8056 = vmatprep.subr.mxu0 %v3547_v30  ;;  %v3526_v28 = vld [vmem:[%s15160_s11 + $0x328] sm:$0xff]  ;;  %v3493_v24 = vld [vmem:[%s15160_s11 + $0x220] sm:$0xff]  ;;  %v3263_v40 = vld [vmem:[#allocation2 + $0x30] sm:$0xc0] }
 0x4ee   :  { %3880 = vmatprep.mubr.f32.mxu0 %v3417_v1  ;;  %8016 = vmatpush3.msra.mxu1 %v3499_v16  ;;  %v3525_v34 = vld [vmem:[%s15160_s11 + $0x320] sm:$0xff]  ;;  %v3508_v30 = vld [vmem:[%s15160_s11 + $0x298] sm:$0xff]  ;;  %v3236_v16 = vld [vmem:[#allocation2 + $0x8] sm:$0x7f]  ;;  %v3283_v1 = vrot.slane %v9661_v43, 2 }
 0x4ef   :  { %8057 = vmatpush3.msra.mxu0 %v3531_v63  ;;  %8017 = vmatprep.subr.mxu1 %v3514_v58  ;;  %v3540_v18 = vld [vmem:[%s15160_s11 + $0x398] sm:$0xff]  ;;  %v3226_v63 = vsel %vm391_vm2, %v3224_v11, %v3225_v51  ;;  %v3507_v43 = vld [vmem:[%s15160_s11 + $0x290] sm:$0xff]  ;;  %v3505_v13 = vld [vmem:[%s15160_s11 + $0x280] sm:$0xff] }
 0x4f0   :  { %8058 = vmatprep.subr.mxu0 %v3546_v14  ;;  %8018 = vmatpush3.msra.mxu1 %v3498_v42  ;;  %v3492_v58 = vld [vmem:[%s15160_s11 + $0x218] sm:$0xff]  ;;  %v11704_v42 = vld [vmem:[#allocation2 + $0x8] sm:$0xff]  ;;  %v11771_v3 = vld [vmem:[#allocation2] sm:$0xff] }
 0x4f1   :  { %8059 = vmatpush3.msra.mxu0 %v3530_v59  ;;  %8019 = vmatprep.subr.mxu1 %v3513_v50  ;;  %v3524_v14 = vld [vmem:[%s15160_s11 + $0x318] sm:$0xff]  ;;  %v3256_v59 = vsel %vm564_vm5, %v3253_v20, %v3255_v60  ;;  %v3227_v50 = vrot.slane %v9639_v7, 4  ;;  %v3314_v7 = vsel %vm626_vm3, %v3311_v10, %v3313_v57  ;;  %v3523_v20 = vld [vmem:[%s15160_s11 + $0x310] sm:$0xff]  ;;  %v3538_v10 = vld [vmem:[%s15160_s11 + $0x388] sm:$0xff] }
 0x4f2   :  { %8060 = vmatprep.subr.mxu0 %v3545_v62  ;;  %8020 = vmatpush3.msra.mxu1 %v3497_v22  ;;  %v3539_v62 = vld [vmem:[%s15160_s11 + $0x390] sm:$0xff]  ;;  %v3232_v22 = vmul.f32 %v3224_v11, %v3207_v23  ;;  %v3537_v11 = vld [vmem:[%s15160_s11 + $0x380] sm:$0xff]  ;;  %v3294_v60 = vld [vmem:[#allocation2 + $0x28] sm:$0x1] }
 0x4f3   :  { %8061 = vmatpush3.msra.mxu0 %v3529_v44  ;;  %8021 = vmatprep.subr.mxu1 %v3512_v38  ;;  %v3288_v44 = vmul.f32 %v3280_v53, %v3263_v40  ;;  %v3282_v38 = vsel %vm594_vm7, %v3280_v53, %v3281_v25  ;;  %v3521_v53 = vld [vmem:[%s15160_s11 + $0x300] sm:$0xff]  ;;  %v3322_v23 = vmul.f32 %v3313_v57, %v3294_v60  ;;  %v3566_v56 = vld [vmem:[%s15160_s11 + $0x468] sm:$0xff] }
 0x4f4   :  { %8062 = vmatprep.subr.mxu0 %v3544_v31  ;;  %8022 = vmatpush3.msra.mxu1 %v3496_v21  ;;  %v11728_v31 = vmul.f32 %v3256_v59, %v3236_v16  ;;  %v3233_v21 = vmul.f32 %v3226_v63, %v11476_v26  ;;  %v3381_v4 = vrot.slane %v3232_v22, 4  ;;  %v3565_v59 = vld [vmem:[%s15160_s11 + $0x460] sm:$0xff] }
 0x4f5   :  { %8063 = vmatpush3.msra.mxu0 %v3528_v17  ;;  %8023 = vmatprep.subr.mxu1 %v3511_v52  ;;  %v3289_v17 = vmul.f32 %v3282_v38, %v11476_v26  ;;  %v3321_v52 = vmul.f32 %v3314_v7, %v11704_v42  ;;  %v3561_v22 = vld [vmem:[%s15160_s11 + $0x440] sm:$0xff]  ;;  %v3559_v38 = vld [vmem:[%s15160_s11 + $0x430] sm:$0xff]  ;;  %v3558_v7 = vld [vmem:[%s15160_s11 + $0x428] sm:$0xff] }
 0x4f6   :  { %8064 = vmatprep.subr.mxu0 %v3543_v6  ;;  %8024 = vmatpush3.msra.mxu1 %v3495_v55  ;;  %v3208_v6 = vld [vmem:[#allocation2 + $0x8] sm:$0x3f]  ;;  %v3284_v55 = vsel %vm594_vm7, %v3281_v25, %v3283_v1  ;;  %v3395_v25 = vrot.slane %v11728_v31, 5  ;;  %v3555_v31 = vld [vmem:[%s15160_s11 + $0x410] sm:$0xff]  ;;  %v4343_v60 = vld [vmem:[%s15162_s13 + $0xc0] sm:$0xff] }
 0x4f7   :  { %8065 = vmatpush3.msra.mxu0 %v3527_v2  ;;  %8025 = vmatprep.subr.mxu1 %v3510_v0  ;;  %v3490_v2 = vld [vmem:[%s15160_s11 + $0x208] sm:$0xff] }
 0x4f8   :  { %8066 = vmatprep.subr.mxu0 %v3542_v9  ;;  %8026 = vmatpush3.msra.mxu1 %v3494_v15  ;;  %v3522_v0 = vld [vmem:[%s15160_s11 + $0x308] sm:$0xff]  ;;  %v3228_v9 = vsel %vm391_vm2, %v3225_v51, %v3227_v50  ;;  %v3403_v15 = vrot.slane %v3288_v44, 6  ;;  %v3489_v51 = vld [vmem:[%s15160_s11 + $0x200] sm:$0xff]  ;;  %v3396_v63 = vsel %vm505_vm4, %v3393_v33, %v3395_v25  ;;  %v3564_v50 = vld [vmem:[%s15160_s11 + $0x458] sm:$0xff] }
 0x4f9   :  { %8067 = vmatpush3.msra.mxu0 %v3526_v28  ;;  %8027 = vmatprep.subr.mxu1 %v3509_v54  ;;  %v3290_v28 = vmul.f32 %v11704_v42, %v3284_v55  ;;  %v3234_v54 = vmul.f32 %v3228_v9, %v3208_v6  ;;  %v3560_v44 = vld [vmem:[%s15160_s11 + $0x438] sm:$0xff]  ;;  %v4412_v55 = vld [vmem:[%s15162_s13 + $0x2e8] sm:$0xff] }
 0x4fa   :  { %8068 = vmatprep.subr.mxu0 %v3541_v8  ;;  %8028 = vmatpush3.msra.mxu1 %v3493_v24  ;;  %v3382_v8 = vrot.slane %v3233_v21, 4  ;;  %v3404_v24 = vrot.slane %v3289_v17, 6  ;;  %v3342_v21 = vmul.f32 %v9663_v39, %v11476_v26  ;;  %v3343_v17 = vmul.f32 %v9669_v29, %v11704_v42  ;;  %v4350_v39 = vld [vmem:[%s15162_s13 + $0xf8] sm:$0xff]  ;;  %v4349_v29 = vld [vmem:[%s15162_s13 + $0xf0] sm:$0xff] }
 0x4fb   :  { %8069 = vmatpush3.msra.mxu0 %v3525_v34  ;;  %8029 = vmatprep.subr.mxu1 %v3508_v30  ;;  %v3418_v34 = vrot.slane %v3321_v52, 7  ;;  %v3406_v16 = vrot.slane %v3290_v28, 6  ;;  %v3384_v1 = vrot.slane %v3234_v54, 4  ;;  %v3323_v52 = vld [vmem:[#allocation2 + $0x28] sm:$0x3]  ;;  %v4414_v26 = vld [vmem:[%s15162_s13 + $0x2f8] sm:$0xff] }
 0x4fc   :  { %8070 = vmatprep.subr.mxu0 %v3540_v18  ;;  %8030 = vmatpush3.msra.mxu1 %v3492_v58  ;;  %v3383_v40 = vsel %vm391_vm2, %v3381_v4, %v3382_v8  ;;  %v3405_v30 = vsel %vm475_vm6, %v3403_v15, %v3404_v24  ;;  %v3568_v18 = vld [vmem:[%s15160_s11 + $0x478] sm:$0xff]  ;;  %v3567_v58 = vld [vmem:[%s15160_s11 + $0x470] sm:$0xff]  ;;  %v3344_v6 = vmul.f32 %v9671_v12, %v3323_v52  ;;  %v4348_v12 = vld [vmem:[%s15162_s13 + $0xe8] sm:$0xff] }
 0x4fd   :  { %8071 = vmatpush3.msra.mxu0 %v3524_v14  ;;  %8031 = vmatprep.subr.mxu1 %v3507_v43  ;;  %v3419_v57 = vsel %vm445_vm1, %v3416_v35, %v3418_v34  ;;  %v3420_v14 = vrot.slane %v3322_v23, 7  ;;  %v3407_v5 = vsel %vm475_vm6, %v3404_v24, %v3406_v16  ;;  %v3385_v33 = vsel %vm391_vm2, %v3382_v8, %v3384_v1  ;;  %v3563_v43 = vld [vmem:[%s15160_s11 + $0x450] sm:$0xff]  ;;  %v4346_v9 = vld [vmem:[%s15162_s13 + $0xd8] sm:$0xff]  ;;  %v4344_v15 = vld [vmem:[%s15162_s13 + $0xc8] sm:$0xff] }
 0x4fe   :  { %8072 = vmatprep.subr.mxu0 %v3539_v62  ;;  %8032 = vmatpush3.msra.mxu1 %v3491_v61  ;;  %v3562_v62 = vld [vmem:[%s15160_s11 + $0x448] sm:$0xff]  ;;  %v3557_v61 = vld [vmem:[%s15160_s11 + $0x420] sm:$0xff]  ;;  %v4413_v42 = vld [vmem:[%s15162_s13 + $0x2f0] sm:$0xff] }
 0x4ff   :  { %8073 = vmatpush3.msra.mxu0 %v3523_v20  ;;  %8033 = vmatprep.subr.mxu1 %v3506_v19  ;;  %v3421_v35 = vsel %vm445_vm1, %v3418_v34, %v3420_v14  ;;  %v3556_v20 = vld [vmem:[%s15160_s11 + $0x418] sm:$0xff]  ;;  %v3554_v19 = vld [vmem:[%s15160_s11 + $0x408] sm:$0xff]  ;;  %v4409_v4 = vld [vmem:[%s15162_s13 + $0x2d0] sm:$0xff] }
 0x500   :  { %8074 = vmatprep.subr.mxu0 %v3538_v10  ;;  %8034 = vmatpush3.msra.mxu1 %v3490_v2  ;;  %v3553_v10 = vld [vmem:[%s15160_s11 + $0x400] sm:$0xff]  ;;  %v4408_v28 = vld [vmem:[%s15162_s13 + $0x2c8] sm:$0xff]  ;;  %v4341_v54 = vld [vmem:[%s15162_s13 + $0xb0] sm:$0xff] }
 0x501   :  { %8075 = vmatpush3.msra.mxu0 %v3522_v0  ;;  %8035 = vmatprep.subr.mxu1 %v3505_v13  ;;  %v4347_v2 = vld [vmem:[%s15162_s13 + $0xe0] sm:$0xff]  ;;  %v4410_v13 = vld [vmem:[%s15162_s13 + $0x2d8] sm:$0xff]  ;;  %v4405_v8 = vld [vmem:[%s15162_s13 + $0x2b0] sm:$0xff] }
 0x502   :  { %8076 = vmatprep.subr.mxu0 %v3537_v11  ;;  %8036 = vmatpush3.msra.mxu1 %v3489_v51  ;;  %v4411_v0 = vld [vmem:[%s15162_s13 + $0x2e0] sm:$0xff]  ;;  %v4345_v11 = vld [vmem:[%s15162_s13 + $0xd0] sm:$0xff]  ;;  %v4340_v24 = vld [vmem:[%s15162_s13 + $0xa8] sm:$0xff] }
 0x503   :  { %8077 = vmatpush3.msra.mxu0 %v3521_v53  ;;  %3801 = vmatmul.mubr.f32.vlgmr.msra.gmra.mxu1 %v3383_v40  ;;  %v4407_v51 = vld [vmem:[%s15162_s13 + $0x2c0] sm:$0xff]  ;;  %v4342_v53 = vld [vmem:[%s15162_s13 + $0xb8] sm:$0xff]  ;;  %v4404_v34 = vld [vmem:[%s15162_s13 + $0x2a8] sm:$0xff] }
 0x504   :  { %3881 = vmatmul.mubr.f32.vlgmr.msra.gmra.mxu0 %v3405_v30  ;;  %8394 = vmatprep.subr.mxu1 %v11771_v3  ;;  %v4339_v23 = vld [vmem:[%s15162_s13 + $0xa0] sm:$0xff]  ;;  %v4338_v30 = vld [vmem:[%s15162_s13 + $0x98] sm:$0xff]  ;;  %v4324_v52 = vld [vmem:[%s15162_s13 + $0x28] sm:$0xff] }
 0x505   :  { %3805 = vmatprep.mubr.f32.mxu1 %v3396_v63  ;;  %3885 = vmatprep.mubr.f32.mxu0 %v3419_v57  ;;  %v4403_v40 = vld [vmem:[%s15162_s13 + $0x2a0] sm:$0xff]  ;;  %v4401_v63 = vld [vmem:[%s15162_s13 + $0x290] sm:$0xff]  ;;  %v4334_v14 = vld [vmem:[%s15162_s13 + $0x78] sm:$0xff] }
 0x506   :  { %8395 = vmatpush3.msra.mxu1 %v3568_v18  ;;  %4619 = vmatprep.subr.mxu0 %v4350_v39  ;;  %v4402_v18 = vld [vmem:[%s15162_s13 + $0x298] sm:$0xff]  ;;  %v4335_v57 = vld [vmem:[%s15162_s13 + $0x80] sm:$0xff] }
 0x507   :  { %8396 = vmatprep.subr.mxu1 %v11771_v3  ;;  %3806 = vmatmul.mubr.f32.gmra.mxu1 %v3385_v33  ;;  %v4333_v33 = vld [vmem:[%s15162_s13 + $0x70] sm:$0xff]  ;;  %v4323_v39 = vld [vmem:[%s15162_s13 + $0x20] sm:$0xff] }
 0x508   :  { %8397 = vmatpush3.msra.mxu1 %v3567_v58  ;;  %3886 = vmatmul.mubr.f32.gmra.mxu0 %v3407_v5  ;;  %v4399_v58 = vld [vmem:[%s15162_s13 + $0x280] sm:$0xff]  ;;  %v4398_v5 = vld [vmem:[%s15162_s13 + $0x278] sm:$0xff] }
 0x509   :  { %8398 = vmatprep.subr.mxu1 %v11771_v3  ;;  %3810 = vmatprep.mubr.f32.mxu1 %v3395_v25  ;;  %v4406_v25 = vld [vmem:[%s15162_s13 + $0x2b8] sm:$0xff] }
 0x50a   :  { %3890 = vmatprep.mubr.f32.mxu0 %v3421_v35  ;;  %8399 = vmatpush3.msra.mxu1 %v3566_v56  ;;  %v4397_v56 = vld [vmem:[%s15162_s13 + $0x270] sm:$0xff]  ;;  %v4332_v35 = vld [vmem:[%s15162_s13 + $0x68] sm:$0xff] }
 0x50b   :  { %8400 = vmatprep.subr.mxu1 %v11771_v3  ;;  %3811 = vmatmul.mubr.f32.gmra.mxu1 %v3384_v1  ;;  %v4336_v1 = vld [vmem:[%s15162_s13 + $0x88] sm:$0xff] }
 0x50c   :  { %3891 = vmatmul.mubr.f32.gmra.mxu0 %v3406_v16  ;;  %8401 = vmatpush3.msra.mxu1 %v3565_v59  ;;  %v4337_v16 = vld [vmem:[%s15162_s13 + $0x90] sm:$0xff]  ;;  %v4396_v59 = vld [vmem:[%s15162_s13 + $0x268] sm:$0xff] }
 0x50d   :  { %8402 = vmatprep.subr.mxu1 %v11771_v3  ;;  %8426 = vmatprep.mubr.msk.f32.mxu1 %vm8484_vm0, %v11771_v3 }
 0x50e   :  { %8403 = vmatpush3.msra.mxu1 %v3564_v50  ;;  %4620 = vmatpush1.msra.mxu0 %v4349_v29  ;;  %v4331_v50 = vld [vmem:[%s15162_s13 + $0x60] sm:$0xff]  ;;  %v4322_v29 = vld [vmem:[%s15162_s13 + $0x18] sm:$0xff] }
 0x50f   :  { %8404 = vmatprep.subr.mxu1 %v11771_v3  ;;  %4621 = vmatprep.subr.mxu0 %v4348_v12  ;;  %v4321_v12 = vld [vmem:[%s15162_s13 + $0x10] sm:$0xff] }
 0x510   :  { %8405 = vmatpush3.msra.mxu1 %v3563_v43  ;;  %4622 = vmatpush1.msra.mxu0 %v4347_v2  ;;  %v4395_v43 = vld [vmem:[%s15162_s13 + $0x260] sm:$0xff]  ;;  %v4320_v2 = vld [vmem:[%s15162_s13 + $0x8] sm:$0xff] }
 0x511   :  { %8406 = vmatprep.subr.mxu1 %v11771_v3  ;;  %4623 = vmatprep.subr.mxu0 %v4346_v9  ;;  %v4319_v9 = vld [vmem:[%s15162_s13] sm:$0xff] }
 0x512   :  { %8407 = vmatpush3.msra.mxu1 %v3562_v62  ;;  %4624 = vmatpush1.msra.mxu0 %v4345_v11  ;;  %v4330_v62 = vld [vmem:[%s15162_s13 + $0x58] sm:$0xff] }
 0x513   :  { %8408 = vmatprep.subr.mxu1 %v11771_v3  ;;  %4625 = vmatprep.subr.mxu0 %v4344_v15  ;;  %v4382_v11 = vld [vmem:[%s15162_s13 + $0x1f8] sm:$0xff]  ;;  %v4381_v15 = vld [vmem:[%s15162_s13 + $0x1f0] sm:$0xff] }
 0x514   :  { %8409 = vmatpush3.msra.mxu1 %v3561_v22  ;;  %4626 = vmatpush1.msra.mxu0 %v4343_v60  ;;  %v4394_v22 = vld [vmem:[%s15162_s13 + $0x258] sm:$0xff]  ;;  %v4380_v60 = vld [vmem:[%s15162_s13 + $0x1e8] sm:$0xff] }
 0x515   :  { %8410 = vmatprep.subr.mxu1 %v11771_v3  ;;  %4627 = vmatprep.subr.mxu0 %v4342_v53  ;;  %v4379_v53 = vld [vmem:[%s15162_s13 + $0x1e0] sm:$0xff] }
 0x516   :  { %8411 = vmatpush3.msra.mxu1 %v3560_v44  ;;  %4628 = vmatpush1.msra.mxu0 %v4341_v54  ;;  %v4329_v44 = vld [vmem:[%s15162_s13 + $0x50] sm:$0xff]  ;;  %v4378_v54 = vld [vmem:[%s15162_s13 + $0x1d8] sm:$0xff] }
 0x517   :  { %8412 = vmatprep.subr.mxu1 %v11771_v3  ;;  %4629 = vmatprep.subr.mxu0 %v4340_v24  ;;  %v4377_v24 = vld [vmem:[%s15162_s13 + $0x1d0] sm:$0xff] }
 0x518   :  { %8413 = vmatpush3.msra.mxu1 %v3559_v38  ;;  %4630 = vmatpush1.msra.mxu0 %v4339_v23  ;;  %v4393_v38 = vld [vmem:[%s15162_s13 + $0x250] sm:$0xff]  ;;  %v4376_v23 = vld [vmem:[%s15162_s13 + $0x1c8] sm:$0xff] }
 0x519   :  { %8414 = vmatprep.subr.mxu1 %v11771_v3  ;;  %4631 = vmatprep.subr.mxu0 %v4338_v30  ;;  %v4375_v30 = vld [vmem:[%s15162_s13 + $0x1c0] sm:$0xff] }
 0x51a   :  { %8415 = vmatpush3.msra.mxu1 %v3558_v7  ;;  %4632 = vmatpush1.msra.mxu0 %v4337_v16  ;;  %v4328_v7 = vld [vmem:[%s15162_s13 + $0x48] sm:$0xff]  ;;  %v4374_v16 = vld [vmem:[%s15162_s13 + $0x1b8] sm:$0xff] }
 0x51b   :  { %8416 = vmatprep.subr.mxu1 %v11771_v3  ;;  %4633 = vmatprep.subr.mxu0 %v4336_v1  ;;  %v4373_v1 = vld [vmem:[%s15162_s13 + $0x1b0] sm:$0xff] }
 0x51c   :  { %8417 = vmatpush3.msra.mxu1 %v3557_v61  ;;  %4634 = vmatpush1.msra.mxu0 %v4335_v57  ;;  %v4392_v61 = vld [vmem:[%s15162_s13 + $0x248] sm:$0xff] }
 0x51d   :  { %8418 = vmatprep.subr.mxu1 %v11771_v3  ;;  %4635 = vmatprep.subr.mxu0 %v4334_v14  ;;  %v4372_v57 = vld [vmem:[%s15162_s13 + $0x1a8] sm:$0xff]  ;;  %v4371_v14 = vld [vmem:[%s15162_s13 + $0x1a0] sm:$0xff] }
 0x51e   :  { %8419 = vmatpush3.msra.mxu1 %v3556_v20  ;;  %4636 = vmatpush1.msra.mxu0 %v4333_v33  ;;  %v4327_v20 = vld [vmem:[%s15162_s13 + $0x40] sm:$0xff]  ;;  %v4370_v33 = vld [vmem:[%s15162_s13 + $0x198] sm:$0xff] }
 0x51f   :  { %8420 = vmatprep.subr.mxu1 %v11771_v3  ;;  %4637 = vmatprep.subr.mxu0 %v4332_v35  ;;  %v4369_v35 = vld [vmem:[%s15162_s13 + $0x190] sm:$0xff] }
 0x520   :  { %8421 = vmatpush3.msra.mxu1 %v3555_v31  ;;  %4638 = vmatpush1.msra.mxu0 %v4331_v50  ;;  %v4391_v31 = vld [vmem:[%s15162_s13 + $0x240] sm:$0xff]  ;;  %v4368_v50 = vld [vmem:[%s15162_s13 + $0x188] sm:$0xff] }
 0x521   :  { %8422 = vmatprep.subr.mxu1 %v11771_v3  ;;  %4639 = vmatprep.subr.mxu0 %v4330_v62  ;;  %v4367_v62 = vld [vmem:[%s15162_s13 + $0x180] sm:$0xff] }
 0x522   :  { %8423 = vmatpush3.msra.mxu1 %v3554_v19  ;;  %4640 = vmatpush1.msra.mxu0 %v4329_v44  ;;  %v4326_v19 = vld [vmem:[%s15162_s13 + $0x38] sm:$0xff] }
 0x523   :  { %8424 = vmatprep.subr.mxu1 %v11771_v3  ;;  %4641 = vmatprep.subr.mxu0 %v4328_v7  ;;  %v4366_v44 = vld [vmem:[%s15162_s13 + $0x178] sm:$0xff]  ;;  %v4365_v7 = vld [vmem:[%s15162_s13 + $0x170] sm:$0xff] }
 0x524   :  { %8425 = vmatpush3.msra.mxu1 %v3553_v10  ;;  %4642 = vmatpush1.msra.mxu0 %v4327_v20  ;;  %v4390_v10 = vld [vmem:[%s15162_s13 + $0x238] sm:$0xff]  ;;  %v4364_v20 = vld [vmem:[%s15162_s13 + $0x168] sm:$0xff] }
 0x525   :  { %8427 = vmatmul.mubr.f32.vlgmr.msra.gmra.mxu1 %v3342_v21  ;;  %4702 = vmatprep.subr.mxu1 %v4414_v26  ;;  %v4325_v21 = vld [vmem:[%s15162_s13 + $0x30] sm:$0xff]  ;;  %v4387_v26 = vld [vmem:[%s15162_s13 + $0x220] sm:$0xff] }
 0x526   :  { %8429 = vmatprep.mubr.msk.f32.mxu1 %vm8484_vm0, %v11771_v3  ;;  %4703 = vmatpush1.msra.mxu1 %v4413_v42  ;;  %v4386_v42 = vld [vmem:[%s15162_s13 + $0x218] sm:$0xff] }
 0x527   :  { %4704 = vmatprep.subr.mxu1 %v4412_v55  ;;  %4643 = vmatprep.subr.mxu0 %v4326_v19  ;;  %v4385_v55 = vld [vmem:[%s15162_s13 + $0x210] sm:$0xff]  ;;  %v4363_v19 = vld [vmem:[%s15162_s13 + $0x160] sm:$0xff] }
 0x528   :  { %4705 = vmatpush1.msra.mxu1 %v4411_v0  ;;  %4644 = vmatpush1.msra.mxu0 %v4325_v21  ;;  %v4384_v0 = vld [vmem:[%s15162_s13 + $0x208] sm:$0xff]  ;;  %v4362_v21 = vld [vmem:[%s15162_s13 + $0x158] sm:$0xff] }
 0x529   :  { %8430 = vmatmul.mubr.f32.gmra.mxu1 %v3343_v17  ;;  %4706 = vmatprep.subr.mxu1 %v4410_v13  ;;  %v4389_v17 = vld [vmem:[%s15162_s13 + $0x230] sm:$0xff]  ;;  %v4383_v13 = vld [vmem:[%s15162_s13 + $0x200] sm:$0xff] }
 0x52a   :  { %8432 = vmatprep.mubr.msk.f32.mxu1 %vm8484_vm0, %v11771_v3  ;;  %4707 = vmatpush1.msra.mxu1 %v4409_v4  ;;  %v4400_v3 = vld [vmem:[%s15162_s13 + $0x288] sm:$0xff]  ;;  %v4446_v4 = vld [vmem:[%s15162_s13 + $0x3f8] sm:$0xff] }
 0x52b   :  { %4708 = vmatprep.subr.mxu1 %v4408_v28  ;;  %4645 = vmatprep.subr.mxu0 %v4324_v52  ;;  %v4445_v28 = vld [vmem:[%s15162_s13 + $0x3f0] sm:$0xff] }
 0x52c   :  { %4709 = vmatpush1.msra.mxu1 %v4407_v51  ;;  %4646 = vmatpush1.msra.mxu0 %v4323_v39  ;;  %v4444_v51 = vld [vmem:[%s15162_s13 + $0x3e8] sm:$0xff]  ;;  %v4361_v52 = vld [vmem:[%s15162_s13 + $0x150] sm:$0xff] }
 0x52d   :  { %8433 = vmatmul.mubr.f32.gmra.mxu1 %v3344_v6  ;;  %4710 = vmatprep.subr.mxu1 %v4406_v25  ;;  %v4388_v6 = vld [vmem:[%s15162_s13 + $0x228] sm:$0xff]  ;;  %v4443_v25 = vld [vmem:[%s15162_s13 + $0x3e0] sm:$0xff] }
 0x52e   :  { %4711 = vmatpush1.msra.mxu1 %v4405_v8  ;;  %4647 = vmatprep.subr.mxu0 %v4322_v29  ;;  %v4442_v8 = vld [vmem:[%s15162_s13 + $0x3d8] sm:$0xff]  ;;  %v4360_v39 = vld [vmem:[%s15162_s13 + $0x148] sm:$0xff]  ;;  %v4359_v29 = vld [vmem:[%s15162_s13 + $0x140] sm:$0xff] }
 0x52f   :  { %4712 = vmatprep.subr.mxu1 %v4404_v34  ;;  %4648 = vmatpush1.msra.mxu0 %v4321_v12  ;;  %v4441_v34 = vld [vmem:[%s15162_s13 + $0x3d0] sm:$0xff]  ;;  %v4358_v12 = vld [vmem:[%s15162_s13 + $0x138] sm:$0xff] }
 0x530   :  { %4713 = vmatpush1.msra.mxu1 %v4403_v40  ;;  %4649 = vmatprep.subr.mxu0 %v4320_v2  ;;  %v4440_v40 = vld [vmem:[%s15162_s13 + $0x3c8] sm:$0xff]  ;;  %v4357_v2 = vld [vmem:[%s15162_s13 + $0x130] sm:$0xff] }
 0x531   :  { %4714 = vmatprep.subr.mxu1 %v4402_v18  ;;  %4650 = vmatpush1.msra.mxu0 %v4319_v9  ;;  %v4439_v18 = vld [vmem:[%s15162_s13 + $0x3c0] sm:$0xff]  ;;  %v4356_v9 = vld [vmem:[%s15162_s13 + $0x128] sm:$0xff] }
 0x532   :  { %4715 = vmatpush1.msra.mxu1 %v4401_v63  ;;  %4651 = vmatprep.subr.mxu0 %v4382_v11  ;;  %v4438_v63 = vld [vmem:[%s15162_s13 + $0x3b8] sm:$0xff]  ;;  %v4355_v11 = vld [vmem:[%s15162_s13 + $0x120] sm:$0xff] }
 0x533   :  { %4716 = vmatprep.subr.mxu1 %v4400_v3  ;;  %4652 = vmatpush2.msra.mxu0 %v4381_v15  ;;  %v4437_v3 = vld [vmem:[%s15162_s13 + $0x3b0] sm:$0xff]  ;;  %v4354_v15 = vld [vmem:[%s15162_s13 + $0x118] sm:$0xff] }
 0x534   :  { %4717 = vmatpush1.msra.mxu1 %v4399_v58  ;;  %4653 = vmatprep.subr.mxu0 %v4380_v60  ;;  %v4436_v58 = vld [vmem:[%s15162_s13 + $0x3a8] sm:$0xff]  ;;  %v4353_v60 = vld [vmem:[%s15162_s13 + $0x110] sm:$0xff] }
 0x535   :  { %4718 = vmatprep.subr.mxu1 %v4398_v5  ;;  %4654 = vmatpush2.msra.mxu0 %v4379_v53  ;;  %v4435_v5 = vld [vmem:[%s15162_s13 + $0x3a0] sm:$0xff]  ;;  %v4352_v53 = vld [vmem:[%s15162_s13 + $0x108] sm:$0xff] }
 0x536   :  { %4719 = vmatpush1.msra.mxu1 %v4397_v56  ;;  %4655 = vmatprep.subr.mxu0 %v4378_v54  ;;  %v4434_v56 = vld [vmem:[%s15162_s13 + $0x398] sm:$0xff]  ;;  %v4351_v54 = vld [vmem:[%s15162_s13 + $0x100] sm:$0xff] }
 0x537   :  { %4720 = vmatprep.subr.mxu1 %v4396_v59  ;;  %4656 = vmatpush2.msra.mxu0 %v4377_v24  ;;  %v4433_v59 = vld [vmem:[%s15162_s13 + $0x390] sm:$0xff]  ;;  %v4478_v24 = vld [vmem:[%s15162_s13 + $0x4f8] sm:$0xff] }
 0x538   :  { %4721 = vmatpush1.msra.mxu1 %v4395_v43  ;;  %4657 = vmatprep.subr.mxu0 %v4376_v23  ;;  %v4432_v43 = vld [vmem:[%s15162_s13 + $0x388] sm:$0xff] }
 0x539   :  { %4722 = vmatprep.subr.mxu1 %v4394_v22  ;;  %4658 = vmatpush2.msra.mxu0 %v4375_v30  ;;  %v4431_v22 = vld [vmem:[%s15162_s13 + $0x380] sm:$0xff] }
 0x53a   :  { %4723 = vmatpush1.msra.mxu1 %v4393_v38  ;;  %4659 = vmatprep.subr.mxu0 %v4374_v16  ;;  %v4430_v38 = vld [vmem:[%s15162_s13 + $0x378] sm:$0xff] }
 0x53b   :  { %4724 = vmatprep.subr.mxu1 %v4392_v61  ;;  %4660 = vmatpush2.msra.mxu0 %v4373_v1  ;;  %v4429_v61 = vld [vmem:[%s15162_s13 + $0x370] sm:$0xff] }
 0x53c   :  { %4725 = vmatpush1.msra.mxu1 %v4391_v31  ;;  %4661 = vmatprep.subr.mxu0 %v4372_v57  ;;  %v4428_v31 = vld [vmem:[%s15162_s13 + $0x368] sm:$0xff] }
 0x53d   :  { %4726 = vmatprep.subr.mxu1 %v4390_v10  ;;  %4662 = vmatpush2.msra.mxu0 %v4371_v14  ;;  %v4427_v10 = vld [vmem:[%s15162_s13 + $0x360] sm:$0xff] }
 0x53e   :  { %4727 = vmatpush1.msra.mxu1 %v4389_v17  ;;  %4663 = vmatprep.subr.mxu0 %v4370_v33  ;;  %v4426_v17 = vld [vmem:[%s15162_s13 + $0x358] sm:$0xff] }
 0x53f   :  { %4728 = vmatprep.subr.mxu1 %v4388_v6  ;;  %4664 = vmatpush2.msra.mxu0 %v4369_v35  ;;  %v4425_v6 = vld [vmem:[%s15162_s13 + $0x350] sm:$0xff] }
 0x540   :  { %4729 = vmatpush1.msra.mxu1 %v4387_v26  ;;  %4665 = vmatprep.subr.mxu0 %v4368_v50  ;;  %v4424_v26 = vld [vmem:[%s15162_s13 + $0x348] sm:$0xff] }
 0x541   :  { %4730 = vmatprep.subr.mxu1 %v4386_v42  ;;  %4666 = vmatpush2.msra.mxu0 %v4367_v62  ;;  %v4423_v42 = vld [vmem:[%s15162_s13 + $0x340] sm:$0xff] }
 0x542   :  { %4731 = vmatpush1.msra.mxu1 %v4385_v55  ;;  %4667 = vmatprep.subr.mxu0 %v4366_v44  ;;  %v4422_v55 = vld [vmem:[%s15162_s13 + $0x338] sm:$0xff] }
 0x543   :  { %4732 = vmatprep.subr.mxu1 %v4384_v0  ;;  %4668 = vmatpush2.msra.mxu0 %v4365_v7  ;;  %v4421_v0 = vld [vmem:[%s15162_s13 + $0x330] sm:$0xff] }
 0x544   :  { %4733 = vmatpush1.msra.mxu1 %v4383_v13  ;;  %4669 = vmatprep.subr.mxu0 %v4364_v20  ;;  %v4420_v13 = vld [vmem:[%s15162_s13 + $0x328] sm:$0xff] }
 0x545   :  { %4734 = vmatprep.subr.mxu1 %v4446_v4  ;;  %4670 = vmatpush2.msra.mxu0 %v4363_v19  ;;  %v4419_v4 = vld [vmem:[%s15162_s13 + $0x320] sm:$0xff] }
 0x546   :  { %4735 = vmatpush2.msra.mxu1 %v4445_v28  ;;  %4671 = vmatprep.subr.mxu0 %v4362_v21  ;;  %v4418_v28 = vld [vmem:[%s15162_s13 + $0x318] sm:$0xff] }
 0x547   :  { %4736 = vmatprep.subr.mxu1 %v4444_v51  ;;  %4672 = vmatpush2.msra.mxu0 %v4361_v52  ;;  %v4417_v51 = vld [vmem:[%s15162_s13 + $0x310] sm:$0xff] }
 0x548   :  { %4737 = vmatpush2.msra.mxu1 %v4443_v25  ;;  %4673 = vmatprep.subr.mxu0 %v4360_v39  ;;  %v4416_v25 = vld [vmem:[%s15162_s13 + $0x308] sm:$0xff] }
 0x549   :  { %4738 = vmatprep.subr.mxu1 %v4442_v8  ;;  %4674 = vmatpush2.msra.mxu0 %v4359_v29  ;;  %v4415_v8 = vld [vmem:[%s15162_s13 + $0x300] sm:$0xff] }
 0x54a   :  { %4739 = vmatpush2.msra.mxu1 %v4441_v34  ;;  %4675 = vmatprep.subr.mxu0 %v4358_v12  ;;  %v4542_v34 = vld [vmem:[%s15162_s13 + $0x6f8] sm:$0xff] }
 0x54b   :  { %4740 = vmatprep.subr.mxu1 %v4440_v40  ;;  %4676 = vmatpush2.msra.mxu0 %v4357_v2 }
 0x54c   :  { %4741 = vmatpush2.msra.mxu1 %v4439_v18  ;;  %4677 = vmatprep.subr.mxu0 %v4356_v9 }
 0x54d   :  { %4742 = vmatprep.subr.mxu1 %v4438_v63  ;;  %4678 = vmatpush2.msra.mxu0 %v4355_v11  ;;  %v12244_v11 = vpop.permute.xlu1 %4011 }
 0x54e   :  { %4743 = vmatpush2.msra.mxu1 %v4437_v3  ;;  %4679 = vmatprep.subr.mxu0 %v4354_v15 }
 0x54f   :  { %4744 = vmatprep.subr.mxu1 %v4436_v58  ;;  %4680 = vmatpush2.msra.mxu0 %v4353_v60 }
 0x550   :  { %4745 = vmatpush2.msra.mxu1 %v4435_v5  ;;  %4681 = vmatprep.subr.mxu0 %v4352_v53 }
 0x551   :  { %4746 = vmatprep.subr.mxu1 %v4434_v56  ;;  %4682 = vmatpush2.msra.mxu0 %v4351_v54 }
 0x552   :  { %4747 = vmatpush2.msra.mxu1 %v4433_v59  ;;  %4785 = vmatprep.subr.mxu0 %v4478_v24 }
 0x553   :  { %4748 = vmatprep.subr.mxu1 %v4432_v43  ;;  %v7275_v43 = vld [vmem:[%s15163_s12] ss:$0 sm:$0xff] }
 0x554   :  { %4749 = vmatpush2.msra.mxu1 %v4431_v22 }
 0x555   :  { %4750 = vmatprep.subr.mxu1 %v4430_v38 }
 0x556   :  { %4751 = vmatpush2.msra.mxu1 %v4429_v61 }
 0x557   :  { %4752 = vmatprep.subr.mxu1 %v4428_v31 }
 0x558   :  { %4753 = vmatpush2.msra.mxu1 %v4427_v10 }
 0x559   :  { %4754 = vmatprep.subr.mxu1 %v4426_v17 }
 0x55a   :  { %4755 = vmatpush2.msra.mxu1 %v4425_v6 }
 0x55b   :  { %4756 = vmatprep.subr.mxu1 %v4424_v26 }
 0x55c   :  { %4757 = vmatpush2.msra.mxu1 %v4423_v42 }
 0x55d   :  { %4758 = vmatprep.subr.mxu1 %v4422_v55 }
 0x55e   :  { %4759 = vmatpush2.msra.mxu1 %v4421_v0 }
 0x55f   :  { %4760 = vmatprep.subr.mxu1 %v4420_v13 }
 0x560   :  { %4761 = vmatpush2.msra.mxu1 %v4419_v4 }
 0x561   :  { %4762 = vmatprep.subr.mxu1 %v4418_v28 }
 0x562   :  { %4763 = vmatpush2.msra.mxu1 %v4417_v51 }
 0x563   :  { %4764 = vmatprep.subr.mxu1 %v4416_v25 }
 0x564   :  { %4765 = vmatpush2.msra.mxu1 %v4415_v8 }
 0x565   :  { %4868 = vmatprep.subr.mxu1 %v4542_v34  ;;  %v12246_v34 = vpop.permute.xlu0 %4088 }
 0x59e   :  { %v7955_v23 = vpop.f32.mrf.mxu1 }
 0x59f   :  { %v7996_v30 = vpop.f32.mrf.mxu0 }
 0x5a0   :  { %v7956_v40 = vpop.f32.mrf.mxu1 }
 0x5a1   :  { %v7997_v16 = vpop.f32.mrf.mxu0  ;;  %v7957_v50 = vadd.f32 %v7956_v40, %v7955_v23 }
 0x5a2   :  { %v7998_v61 = vadd.f32 %v7997_v16, %v7996_v30 }
 0x5a3   :  { %v3643_v44 = vadd.f32 %v7957_v50, %v7275_v43  ;;  %v4062_v50 = vrot.slane %v9711_v49, 6 }
 0x5a5   :  { %v3723_v19 = vadd.f32 %v7998_v61, %v3643_v44  ;;  %v12265_v44 = vpop.permute.xlu0 %4144 }
 0x5a7   :  { %v7958_v18 = vpop.f32.mrf.mxu1 }
 0x5a8   :  { %v7999_v1 = vpop.f32.mrf.mxu0 }
 0x5a9   :  { %v7959_v63 = vpop.f32.mrf.mxu1 }
 0x5aa   :  { %v8000_v57 = vpop.f32.mrf.mxu0  ;;  %v7960_v38 = vadd.f32 %v7959_v63, %v7958_v18  ;;  %v12248_v18 = vpop.permute.xlu1 %4060 }
 0x5ab   :  { %v7961_v3 = vpop.f32.mrf.mxu1  ;;  %v8001_v52 = vadd.f32 %v8000_v57, %v7999_v1  ;;  %v4035_v57 = vrot.slane %v9680_v32, 7 }
 0x5ac   :  { %v8002_v14 = vpop.f32.mrf.mxu0  ;;  %v3648_v10 = vadd.f32 %v7960_v38, %v7275_v43 }
 0x5ad   :  { %v7962_v58 = vpop.f32.mrf.mxu1 }
 0x5ae   :  { %v8003_v33 = vpop.f32.mrf.mxu0  ;;  %v7963_v21 = vadd.f32 %v7962_v58, %v7961_v3  ;;  %v3728_v29 = vadd.f32 %v8001_v52, %v3648_v10  ;;  %v4034_v3 = vrot.slane %v9677_v27, 7  ;;  %v4091_v58 = vrot.slane %v9707_v36, 5  ;;  %v12267_v38 = vpop.permute.xlu1 %4116  ;;  %v4472_v36 = vld [vmem:[%s15162_s13 + $0x4c8] sm:$0xff] }
 0x5af   :  { %v8004_v2 = vadd.f32 %v8003_v33, %v8002_v14 }
 0x5b0   :  { %v3653_v42 = vadd.f32 %v7963_v21, %v7275_v43  ;;  %v4036_v27 = vsel %vm445_vm1, %v4034_v3, %v4035_v57 }
 0x5b2   :  { %v3733_v15 = vadd.f32 %v8004_v2, %v3653_v42 }
 0x5c3   :  { %v8037_v5 = vpop.f32.mrf.mxu1 }
 0x5c4   :  { %v8078_v35 = vpop.f32.mrf.mxu0 }
 0x5c5   :  { %v8038_v56 = vpop.f32.mrf.mxu1 }
 0x5c6   :  { %v8079_v62 = vpop.f32.mrf.mxu0  ;;  %v8039_v20 = vadd.f32 %v8038_v56, %v8037_v5  ;;  %v4063_v5 = vrot.slane %v9727_v48, 6  ;;  %v4536_v48 = vld [vmem:[%s15162_s13 + $0x6c8] sm:$0xff] }
 0x5c7   :  { %v8040_v59 = vpop.f32.mrf.mxu1  ;;  %v8080_v12 = vadd.f32 %v8079_v62, %v8078_v35  ;;  %v4090_v35 = vrot.slane %v9690_v37, 5 }
 0x5c8   :  { %v8081_v7 = vpop.f32.mrf.mxu0  ;;  %v3803_v6 = vadd.f32 %v8039_v20, %v3723_v19  ;;  %v4064_v37 = vsel %vm475_vm6, %v4062_v50, %v4063_v5 }
 0x5c9   :  { %v8041_v22 = vpop.f32.mrf.mxu1 }
 0x5ca   :  { %v8082_v17 = vpop.f32.mrf.mxu0  ;;  %v8042_v39 = vadd.f32 %v8041_v22, %v8040_v59  ;;  %v3883_v13 = vadd.f32 %v8080_v12, %v3803_v6  ;;  %v4092_v22 = vsel %vm505_vm4, %v4090_v35, %v4091_v58 }
 0x5cb   :  { %v8043_v31 = vpop.f32.mrf.mxu1  ;;  %v8083_v28 = vadd.f32 %v8082_v17, %v8081_v7 }
 0x5cc   :  { %v8084_v55 = vpop.f32.mrf.mxu0  ;;  %v3808_v0 = vadd.f32 %v8042_v39, %v3728_v29  ;;  %v4037_v39 = vrot.slane %v9731_v47, 7 }
 0x5cd   :  { %v8044_v26 = vpop.f32.mrf.mxu1 }
 0x5ce   :  { %v8045_v9 = vadd.f32 %v8044_v26, %v8043_v31  ;;  %v8085_v51 = vpop.f32.mrf.mxu0  ;;  %v3888_v8 = vadd.f32 %v8083_v28, %v3808_v0  ;;  %v4147_v26 = vrot.slane %v9769_v41, 3  ;;  %v15348_v28 = vrot.slane %v9777_v46, 4  ;;  %v4541_v46 = vld [vmem:[%s15162_s13 + $0x6f0] sm:$0xff]  ;;  %v4483_v41 = vld [vmem:[%s15162_s13 + $0x520] sm:$0xff] }
 0x5cf   :  { %v8086_v23 = vadd.f32 %v8085_v51, %v8084_v55  ;;  %v4065_v51 = vrot.slane %v12248_v18, 6  ;;  %v4540_v18 = vld [vmem:[%s15162_s13 + $0x6e8] sm:$0xff] }
 0x5d0   :  { %v3813_v25 = vadd.f32 %v8045_v9, %v3733_v15  ;;  %v4093_v9 = vrot.slane %v12246_v34, 5  ;;  %v15350_v34 = vld [vmem:[#allocation73_spill] sm:$0xff] }
 0x5d2   :  { %v3893_v1 = vadd.f32 %v8086_v23, %v3813_v25  ;;  %v4146_v23 = vrot.slane %v15350_v34, 3 }
 0x5d4   :  { %v4148_v32 = vsel %vm564_vm5, %v4146_v23, %v4147_v26 }
 0x5e5   :  { %v3962_v4 = vpop.f32.mrf.mxu1 }
 0x5e6   :  { %v3963_v60 = vadd.f32 %v3962_v4, %v3883_v13  ;;  %v12291_v13 = vpop.permute.xlu0 %4194  ;;  %v12293_v4 = vpop.permute.xlu1 %4198 }
 0x5e7   :  { %v8428_v53 = vpop.f32.mrf.mxu1 }
 0x5e8   :  { %v3976_v54 = vmax.f32 %v3963_v60, 0.0 }
 0x5e9   :  { %v3967_v24 = vpop.f32.mrf.mxu1 }
 0x5ea   :  { %v3982_v40 = vrot.slane %v3976_v54, 4  ;;  %v3968_v30 = vadd.f32 %v3967_v24, %v3888_v8  ;;  %v15349_v54 = vld [vmem:[#allocation71_spill] sm:$0xff]  ;;  %v4477_v24 = vld [vmem:[%s15162_s13 + $0x4f0] sm:$0xff] }
 0x5eb   :  { %v8431_v16 = vpop.f32.mrf.mxu1 }
 0x5ec   :  { %3990 = vst [vmem:[#allocation2 + $0x30] sm:$0xf0] %v3982_v40  ;;  %v3977_v63 = vmax.f32 %v3968_v30, 0.0  ;;  %v4476_v30 = vld [vmem:[%s15162_s13 + $0x4e8] sm:$0xff]  ;;  %v4475_v16 = vld [vmem:[%s15162_s13 + $0x4e0] sm:$0xff] }
 0x5ed   :  { %v3972_v14 = vpop.f32.mrf.mxu1 }
 0x5ee   :  { %v3983_v33 = vrot.slane %v3977_v63, 4  ;;  %v3973_v56 = vadd.f32 %v3972_v14, %v3893_v1  ;;  %v4204_v14 = vrot.slane %v12291_v13, 1 }
 0x5ef   :  { %v8434_v59 = vpop.f32.mrf.mxu1 }
 0x5f0   :  { %v12257_v43 = vsel %vm391_vm2, %v3982_v40, %v3983_v33  ;;  %v3978_v62 = vmax.f32 %v3973_v56, 0.0  ;;  %v4539_v56 = vld [vmem:[%s15162_s13 + $0x6e0] sm:$0xff]  ;;  %v4538_v59 = vld [vmem:[%s15162_s13 + $0x6d8] sm:$0xff] }
 0x5f1   :  { %v12273_v7 = vmul.f32 %v4036_v27, %v12257_v43  ;;  %v12276_v61 = vmul.f32 %v4092_v22, %v12257_v43  ;;  %v12279_v19 = vmul.f32 %v4064_v37, %v12257_v43  ;;  %v12283_v10 = vmul.f32 %v9806_v45, %v12257_v43  ;;  %v4537_v27 = vld [vmem:[%s15162_s13 + $0x6d0] sm:$0xff] }
 0x5f2   :  { %v3985_v49 = vrot.slane %v3978_v62, 4  ;;  %v4473_v62 = vld [vmem:[%s15162_s13 + $0x4d0] sm:$0xff]  ;;  %v4066_v37 = vsel %vm475_vm6, %v4063_v5, %v4065_v51 }
 0x5f3   :  { %v4017_v20 = vld [vmem:[#allocation2 + $0x30] sm:$0xfe]  ;;  %v4243_v2 = vrot.slane %v12273_v7, 1  ;;  %v4265_v45 = vrot.slane %v12276_v61, 3  ;;  %v4254_v47 = vrot.slane %v12279_v19, 2  ;;  %v4276_v1 = vrot.slane %v12283_v10, 4 }
 0x5f4   :  { %v4073_v31 = vld [vmem:[#allocation2 + $0x30] sm:$0xf8]  ;;  %v3986_v21 = vsel %vm391_vm2, %v3983_v33, %v3985_v49  ;;  %v4042_v17 = vmul.f32 %v4034_v3, %v4017_v20  ;;  %v4121_v3 = vrot.slane %v12267_v38, 4  ;;  %v4205_v33 = vrot.slane %v12293_v4, 1  ;;  %v4470_v7 = vld [vmem:[%s15162_s13 + $0x4b8] sm:$0xff]  ;;  %v4532_v10 = vld [vmem:[%s15162_s13 + $0x6a8] sm:$0xff] }
 0x5f5   :  { %v4098_v52 = vmul.f32 %v4090_v35, %v4073_v31  ;;  %v4045_v6 = vld [vmem:[#allocation2 + $0x30] sm:$0xfc]  ;;  %3992 = vst [vmem:[#allocation2 + $0x8] sm:$0x3f] %v3986_v21  ;;  %v4474_v35 = vld [vmem:[%s15162_s13 + $0x4d8] sm:$0xff] }
 0x5f6   :  { %v3993_v29 = vld [vmem:[#allocation2 + $0x30] sm:$0xff]  ;;  %v4070_v42 = vmul.f32 %v4062_v50, %v4045_v6  ;;  %v4242_v55 = vrot.slane %v4042_v17, 1  ;;  %v4038_v50 = vsel %vm445_vm1, %v4035_v57, %v4037_v39  ;;  %v4094_v57 = vsel %vm505_vm4, %v4091_v58, %v4093_v9  ;;  %v4534_v61 = vld [vmem:[%s15162_s13 + $0x6b8] sm:$0xff] }
 0x5f7   :  { %v4101_v12 = vld [vmem:[#allocation2 + $0x30] sm:$0xf0]  ;;  %v4264_v0 = vrot.slane %v4098_v52, 3  ;;  %v4014_v8 = vmul.f32 %v15349_v54, %v3993_v29  ;;  %v4206_v29 = vsel %vm626_vm3, %v4204_v14, %v4205_v33  ;;  %v4546_v4 = vld [vmem:[%s15162_s13 + $0x718] sm:$0xff] }
 0x5f8   :  { %v4253_v15 = vrot.slane %v4070_v42, 2  ;;  %v4126_v60 = vmul.f32 %v15348_v28, %v4101_v12  ;;  %v4244_v53 = vsel %vm626_vm3, %v4242_v55, %v4243_v2  ;;  %v4129_v22 = vld [vmem:[#allocation2 + $0x30] sm:$0xe0]  ;;  %v4471_v42 = vld [vmem:[%s15162_s13 + $0x4c0] sm:$0xff] }
 0x5f9   :  { %v4266_v25 = vsel %vm564_vm5, %v4264_v0, %v4265_v45  ;;  %4683 = vmatprep.mubr.f32.mxu0 %v4244_v53  ;;  %v4185_v58 = vld [vmem:[#allocation2 + $0x30] sm:$0x80]  ;;  %v4535_v12 = vld [vmem:[%s15162_s13 + $0x6c0] sm:$0xff]  ;;  %v4154_v55 = vmul.f32 %v4146_v23, %v4129_v22  ;;  %v12384_v53 = vmul.f32 %v4148_v32, %v12257_v43 }
 0x5fa   :  { %4766 = vmatprep.mubr.f32.mxu1 %v4266_v25  ;;  %v4255_v40 = vsel %vm594_vm7, %v4253_v15, %v4254_v47  ;;  %v4275_v63 = vrot.slane %v4126_v60, 4  ;;  %4684 = vmatmul.mubr.f32.vlgmr.msra.gmra.mxu0 %v4014_v8  ;;  %v15351_v5 = vld [vmem:[#allocation74_spill] sm:$0xff]  ;;  %v15353_v60 = vld [vmem:[#allocation72_spill] sm:$0xff]  ;;  %v4213_v25 = vmul.f32 %v4204_v14, %v4185_v58 }
 0x5fb   :  { %4767 = vmatmul.mubr.f32.vlgmr.msra.gmra.mxu1 %v4255_v40  ;;  %4786 = vmatpush1.msra.mxu0 %v4477_v24  ;;  %v15352_v6 = vrot.slane %v15351_v5, 4  ;;  %v4015_v51 = vmul.f32 %v15353_v60, %v12257_v43  ;;  %v4469_v19 = vld [vmem:[%s15162_s13 + $0x4b0] sm:$0xff]  ;;  %v4286_v34 = vrot.slane %v4154_v55, 5  ;;  %v4463_v22 = vld [vmem:[%s15162_s13 + $0x480] sm:$0xff]  ;;  %v4518_v55 = vld [vmem:[%s15162_s13 + $0x638] sm:$0xff] }
 0x5fc   :  { %4869 = vmatpush1.msra.mxu1 %v4541_v46  ;;  %v12350_v38 = vsel %vm391_vm2, %v4275_v63, %v4276_v1  ;;  %4787 = vmatprep.subr.mxu0 %v4476_v30  ;;  %v4018_v49 = vld [vmem:[#allocation2 + $0x8] sm:$0x7]  ;;  %v4309_v40 = vrot.slane %v4213_v25, 7  ;;  %v4527_v32 = vld [vmem:[%s15162_s13 + $0x680] sm:$0xff]  ;;  %v4457_v58 = vld [vmem:[%s15162_s13 + $0x450] sm:$0xff] }
 0x5fd   :  { %4870 = vmatprep.subr.mxu1 %v4540_v18  ;;  %v4074_v20 = vld [vmem:[#allocation2 + $0x8] sm:$0x1f]  ;;  %4788 = vmatpush1.msra.mxu0 %v4475_v16  ;;  %v4044_v21 = vmul.f32 %v4038_v50, %v4018_v49  ;;  %v4122_v39 = vsel %vm391_vm2, %v15352_v6, %v4121_v3  ;;  %v4287_v16 = vrot.slane %v12384_v53, 5  ;;  %v4531_v3 = vld [vmem:[%s15162_s13 + $0x6a0] sm:$0xff]  ;;  %v4529_v50 = vld [vmem:[%s15162_s13 + $0x690] sm:$0xff] }
 0x5fe   :  { %v4046_v31 = vld [vmem:[#allocation2 + $0x8] sm:$0xf]  ;;  %4871 = vmatpush1.msra.mxu1 %v4539_v56  ;;  %v4100_v17 = vmul.f32 %v4094_v57, %v4074_v20  ;;  %4789 = vmatprep.subr.mxu0 %v4474_v35  ;;  %v4466_v56 = vld [vmem:[%s15162_s13 + $0x498] sm:$0xff]  ;;  %v4461_v49 = vld [vmem:[%s15162_s13 + $0x470] sm:$0xff] }
 0x5ff   :  { %v4072_v52 = vmul.f32 %v4066_v37, %v4046_v31  ;;  %4872 = vmatprep.subr.mxu1 %v4538_v59  ;;  %v4102_v0 = vld [vmem:[#allocation2 + $0x8] sm:$0x3f]  ;;  %v4245_v9 = vrot.slane %v4044_v21, 1  ;;  %4790 = vmatpush1.msra.mxu0 %v4473_v62  ;;  %v4530_v35 = vld [vmem:[%s15162_s13 + $0x698] sm:$0xff]  ;;  %v4465_v59 = vld [vmem:[%s15162_s13 + $0x490] sm:$0xff] }
 0x600   :  { %v4267_v13 = vrot.slane %v4100_v17, 3  ;;  %4873 = vmatpush1.msra.mxu1 %v4537_v27  ;;  %v12379_v28 = vmul.f32 %v4122_v39, %v4102_v0  ;;  %4791 = vmatprep.subr.mxu0 %v4472_v36  ;;  %v4468_v18 = vld [vmem:[%s15162_s13 + $0x4a8] sm:$0xff]  ;;  %v4462_v57 = vld [vmem:[%s15162_s13 + $0x478] sm:$0xff]  ;;  %v4525_v20 = vld [vmem:[%s15162_s13 + $0x670] sm:$0xff] }
 0x601   :  { %v4256_v15 = vrot.slane %v4072_v52, 2  ;;  %4874 = vmatprep.subr.mxu1 %v4536_v48  ;;  %v4246_v54 = vsel %vm626_vm3, %v4243_v2, %v4245_v9  ;;  %4792 = vmatpush1.msra.mxu0 %v4471_v42  ;;  %v3995_v2 = vld [vmem:[#allocation2 + $0x8] sm:$0x3]  ;;  %v4526_v37 = vld [vmem:[%s15162_s13 + $0x678] sm:$0xff]  ;;  %v4459_v17 = vld [vmem:[%s15162_s13 + $0x460] sm:$0xff] }
 0x602   :  { %v4268_v8 = vsel %vm564_vm5, %v4265_v45, %v4267_v13  ;;  %4875 = vmatpush1.msra.mxu1 %v4535_v12  ;;  %v4278_v46 = vrot.slane %v12379_v28, 4  ;;  %4689 = vmatprep.mubr.f32.mxu0 %v4246_v54  ;;  %v12403_v45 = vmul.f32 %v4206_v29, %v12257_v43  ;;  %v4016_v30 = vmul.f32 %v12244_v11, %v3995_v2  ;;  %v4464_v62 = vld [vmem:[%s15162_s13 + $0x488] sm:$0xff]  ;;  %v4523_v52 = vld [vmem:[%s15162_s13 + $0x660] sm:$0xff]  ;;  %v4458_v36 = vld [vmem:[%s15162_s13 + $0x458] sm:$0xff] }
 0x603   :  { %v4257_v24 = vsel %vm594_vm7, %v4254_v47, %v4256_v15  ;;  %4772 = vmatprep.mubr.f32.mxu1 %v4268_v8  ;;  %4690 = vmatmul.mubr.f32.gmra.mxu0 %v4015_v51  ;;  %v4533_v47 = vld [vmem:[%s15162_s13 + $0x6b0] sm:$0xff]  ;;  %v4288_v11 = vsel %vm505_vm4, %v4286_v34, %v4287_v16  ;;  %v4528_v27 = vld [vmem:[%s15162_s13 + $0x688] sm:$0xff]  ;;  %v4522_v48 = vld [vmem:[%s15162_s13 + $0x658] sm:$0xff] }
 0x604   :  { %4773 = vmatmul.mubr.f32.gmra.mxu1 %v4257_v24  ;;  %v12416_v23 = vsel %vm391_vm2, %v4276_v1, %v4278_v46  ;;  %4695 = vmatprep.mubr.f32.mxu0 %v4245_v9  ;;  %v4310_v63 = vrot.slane %v12403_v45, 7  ;;  %v4467_v1 = vld [vmem:[%s15162_s13 + $0x4a0] sm:$0xff]  ;;  %v4460_v31 = vld [vmem:[%s15162_s13 + $0x468] sm:$0xff]  ;;  %v4521_v5 = vld [vmem:[%s15162_s13 + $0x650] sm:$0xff] }
 0x605   :  { %4778 = vmatprep.mubr.f32.mxu1 %v4267_v13  ;;  %4793 = vmatprep.subr.mxu0 %v4470_v7  ;;  %v4524_v21 = vld [vmem:[%s15162_s13 + $0x668] sm:$0xff]  ;;  %v4455_v29 = vld [vmem:[%s15162_s13 + $0x440] sm:$0xff]  ;;  %v4454_v12 = vld [vmem:[%s15162_s13 + $0x438] sm:$0xff] }
 0x606   :  { %4876 = vmatprep.subr.mxu1 %v4534_v61  ;;  %4794 = vmatpush1.msra.mxu0 %v4469_v19  ;;  %v4311_v14 = vsel %vm445_vm1, %v4309_v40, %v4310_v63  ;;  %v4456_v6 = vld [vmem:[%s15162_s13 + $0x448] sm:$0xff]  ;;  %v4519_v42 = vld [vmem:[%s15162_s13 + $0x640] sm:$0xff]  ;;  %v4453_v0 = vld [vmem:[%s15162_s13 + $0x430] sm:$0xff] }
 0x607   :  { %4877 = vmatpush1.msra.mxu1 %v4533_v47  ;;  %4696 = vmatmul.mubr.f32.gmra.mxu0 %v4016_v30  ;;  %v4520_v39 = vld [vmem:[%s15162_s13 + $0x648] sm:$0xff]  ;;  %v4517_v9 = vld [vmem:[%s15162_s13 + $0x630] sm:$0xff]  ;;  %v4451_v60 = vld [vmem:[%s15162_s13 + $0x420] sm:$0xff] }
 0x608   :  { %4779 = vmatmul.mubr.f32.gmra.mxu1 %v4256_v15  ;;  %4795 = vmatprep.subr.mxu0 %v4468_v18  ;;  %v4452_v13 = vld [vmem:[%s15162_s13 + $0x428] sm:$0xff]  ;;  %v4515_v51 = vld [vmem:[%s15162_s13 + $0x620] sm:$0xff]  ;;  %v4450_v25 = vld [vmem:[%s15162_s13 + $0x418] sm:$0xff] }
 0x609   :  { %4849 = vmatprep.mubr.f32.mxu0 %v4288_v11  ;;  %4878 = vmatprep.subr.mxu1 %v4532_v10  ;;  %v4516_v15 = vld [vmem:[%s15162_s13 + $0x628] sm:$0xff]  ;;  %v4514_v54 = vld [vmem:[%s15162_s13 + $0x618] sm:$0xff]  ;;  %v4449_v8 = vld [vmem:[%s15162_s13 + $0x410] sm:$0xff] }
 0x60a   :  { %4932 = vmatprep.mubr.f32.mxu1 %v4311_v14  ;;  %4796 = vmatpush1.msra.mxu0 %v4467_v1  ;;  %v4513_v24 = vld [vmem:[%s15162_s13 + $0x610] sm:$0xff]  ;;  %v4448_v7 = vld [vmem:[%s15162_s13 + $0x408] sm:$0xff]  ;;  %v4447_v2 = vld [vmem:[%s15162_s13 + $0x400] sm:$0xff] }
 0x60b   :  { %4879 = vmatpush1.msra.mxu1 %v4531_v3  ;;  %4797 = vmatprep.subr.mxu0 %v4466_v56  ;;  %v4512_v61 = vld [vmem:[%s15162_s13 + $0x608] sm:$0xff]  ;;  %v4511_v19 = vld [vmem:[%s15162_s13 + $0x600] sm:$0xff]  ;;  %v4510_v47 = vld [vmem:[%s15162_s13 + $0x5f8] sm:$0xff] }
 0x60c   :  { %4880 = vmatprep.subr.mxu1 %v4530_v35  ;;  %4798 = vmatpush1.msra.mxu0 %v4465_v59  ;;  %v4574_v34 = vld [vmem:[%s15162_s13 + $0x7f8] sm:$0xff]  ;;  %v4509_v40 = vld [vmem:[%s15162_s13 + $0x5f0] sm:$0xff]  ;;  %v4508_v18 = vld [vmem:[%s15162_s13 + $0x5e8] sm:$0xff] }
 0x60d   :  { %4881 = vmatpush1.msra.mxu1 %v4529_v50  ;;  %4799 = vmatprep.subr.mxu0 %v4464_v62  ;;  %v4573_v30 = vld [vmem:[%s15162_s13 + $0x7f0] sm:$0xff]  ;;  %v4572_v10 = vld [vmem:[%s15162_s13 + $0x7e8] sm:$0xff]  ;;  %v4507_v11 = vld [vmem:[%s15162_s13 + $0x5e0] sm:$0xff] }
 0x60e   :  { %4882 = vmatprep.subr.mxu1 %v4528_v27  ;;  %4800 = vmatpush1.msra.mxu0 %v4463_v22  ;;  %v4571_v1 = vld [vmem:[%s15162_s13 + $0x7e0] sm:$0xff]  ;;  %v4506_v3 = vld [vmem:[%s15162_s13 + $0x5d8] sm:$0xff]  ;;  %v4505_v56 = vld [vmem:[%s15162_s13 + $0x5d0] sm:$0xff] }
 0x60f   :  { %4883 = vmatpush1.msra.mxu1 %v4527_v32  ;;  %4801 = vmatprep.subr.mxu0 %v4462_v57  ;;  %v4570_v14 = vld [vmem:[%s15162_s13 + $0x7d8] sm:$0xff]  ;;  %v4569_v35 = vld [vmem:[%s15162_s13 + $0x7d0] sm:$0xff]  ;;  %v4504_v59 = vld [vmem:[%s15162_s13 + $0x5c8] sm:$0xff] }
 0x610   :  { %4884 = vmatprep.subr.mxu1 %v4526_v37  ;;  %4802 = vmatpush1.msra.mxu0 %v4461_v49  ;;  %v4568_v50 = vld [vmem:[%s15162_s13 + $0x7c8] sm:$0xff]  ;;  %v4503_v62 = vld [vmem:[%s15162_s13 + $0x5c0] sm:$0xff]  ;;  %v4502_v22 = vld [vmem:[%s15162_s13 + $0x5b8] sm:$0xff]  ;;  %v12619_v49 = vpop.permute.xlu0 %4164 }
 0x611   :  { %4885 = vmatpush1.msra.mxu1 %v4525_v20  ;;  %4803 = vmatprep.subr.mxu0 %v4460_v31  ;;  %v4567_v27 = vld [vmem:[%s15162_s13 + $0x7c0] sm:$0xff]  ;;  %v4566_v32 = vld [vmem:[%s15162_s13 + $0x7b8] sm:$0xff]  ;;  %v4501_v57 = vld [vmem:[%s15162_s13 + $0x5b0] sm:$0xff] }
 0x612   :  { %4886 = vmatprep.subr.mxu1 %v4524_v21  ;;  %4804 = vmatpush1.msra.mxu0 %v4459_v17  ;;  %v4565_v37 = vld [vmem:[%s15162_s13 + $0x7b0] sm:$0xff]  ;;  %v4500_v20 = vld [vmem:[%s15162_s13 + $0x5a8] sm:$0xff]  ;;  %v4499_v21 = vld [vmem:[%s15162_s13 + $0x5a0] sm:$0xff] }
 0x613   :  { %4887 = vmatpush1.msra.mxu1 %v4523_v52  ;;  %4805 = vmatprep.subr.mxu0 %v4458_v36  ;;  %v4564_v31 = vld [vmem:[%s15162_s13 + $0x7a8] sm:$0xff]  ;;  %v4563_v17 = vld [vmem:[%s15162_s13 + $0x7a0] sm:$0xff]  ;;  %v4498_v52 = vld [vmem:[%s15162_s13 + $0x598] sm:$0xff] }
 0x614   :  { %4888 = vmatprep.subr.mxu1 %v4522_v48  ;;  %4806 = vmatpush1.msra.mxu0 %v4457_v58  ;;  %v4562_v36 = vld [vmem:[%s15162_s13 + $0x798] sm:$0xff]  ;;  %v4497_v48 = vld [vmem:[%s15162_s13 + $0x590] sm:$0xff] }
 0x615   :  { %4889 = vmatpush1.msra.mxu1 %v4521_v5  ;;  %4807 = vmatprep.subr.mxu0 %v4456_v6  ;;  %v4561_v58 = vld [vmem:[%s15162_s13 + $0x790] sm:$0xff]  ;;  %v12645_v5 = vpop.permute.xlu1 %4168  ;;  %v4496_v6 = vld [vmem:[%s15162_s13 + $0x588] sm:$0xff] }
 0x616   :  { %4890 = vmatprep.subr.mxu1 %v4520_v39  ;;  %4808 = vmatpush1.msra.mxu0 %v4455_v29  ;;  %v4560_v39 = vld [vmem:[%s15162_s13 + $0x788] sm:$0xff]  ;;  %v4495_v29 = vld [vmem:[%s15162_s13 + $0x580] sm:$0xff]  ;;  %v4601_v45 = vld [vmem:[%s15162_s13 + $0x8d0] sm:$0xff] }
 0x617   :  { %4891 = vmatpush1.msra.mxu1 %v4519_v42  ;;  %4809 = vmatprep.subr.mxu0 %v4454_v12  ;;  %v4559_v42 = vld [vmem:[%s15162_s13 + $0x780] sm:$0xff]  ;;  %v12659_v12 = vpop.permute.xlu0 %4223  ;;  %v4593_v28 = vld [vmem:[%s15162_s13 + $0x890] sm:$0xff] }
 0x618   :  { %4892 = vmatprep.subr.mxu1 %v4518_v55  ;;  %4810 = vmatpush1.msra.mxu0 %v4453_v0  ;;  %v4494_v55 = vld [vmem:[%s15162_s13 + $0x578] sm:$0xff] }
 0x619   :  { %4893 = vmatpush1.msra.mxu1 %v4517_v9  ;;  %4811 = vmatprep.subr.mxu0 %v4452_v13  ;;  %v4558_v0 = vld [vmem:[%s15162_s13 + $0x778] sm:$0xff]  ;;  %v4493_v9 = vld [vmem:[%s15162_s13 + $0x570] sm:$0xff] }
 0x61a   :  { %4894 = vmatprep.subr.mxu1 %v4516_v15  ;;  %4812 = vmatpush1.msra.mxu0 %v4451_v60  ;;  %v4557_v13 = vld [vmem:[%s15162_s13 + $0x770] sm:$0xff]  ;;  %v4492_v15 = vld [vmem:[%s15162_s13 + $0x568] sm:$0xff] }
 0x61b   :  { %4895 = vmatpush1.msra.mxu1 %v4515_v51  ;;  %4813 = vmatprep.subr.mxu0 %v4450_v25  ;;  %v4556_v60 = vld [vmem:[%s15162_s13 + $0x768] sm:$0xff]  ;;  %v4491_v51 = vld [vmem:[%s15162_s13 + $0x560] sm:$0xff] }
 0x61c   :  { %4896 = vmatprep.subr.mxu1 %v4514_v54  ;;  %4814 = vmatpush1.msra.mxu0 %v4449_v8  ;;  %v4555_v25 = vld [vmem:[%s15162_s13 + $0x760] sm:$0xff]  ;;  %v12685_v54 = vpop.permute.xlu1 %4202  ;;  %v4490_v8 = vld [vmem:[%s15162_s13 + $0x558] sm:$0xff] }
 0x61d   :  { %4897 = vmatpush1.msra.mxu1 %v4513_v24  ;;  %4815 = vmatprep.subr.mxu0 %v4448_v7  ;;  %v4554_v24 = vld [vmem:[%s15162_s13 + $0x758] sm:$0xff]  ;;  %v4489_v7 = vld [vmem:[%s15162_s13 + $0x550] sm:$0xff] }
 0x61e   :  { %4898 = vmatprep.subr.mxu1 %v4512_v61  ;;  %4816 = vmatpush1.msra.mxu0 %v4447_v2  ;;  %v4553_v61 = vld [vmem:[%s15162_s13 + $0x750] sm:$0xff]  ;;  %v4149_v2 = vrot.slane %v12265_v44, 3  ;;  %v4487_v44 = vld [vmem:[%s15162_s13 + $0x540] sm:$0xff] }
 0x61f   :  { %4899 = vmatpush1.msra.mxu1 %v4511_v19  ;;  %4817 = vmatprep.subr.mxu0 %v4510_v47  ;;  %v4174_v19 = vrot.slane %v12619_v49, 2  ;;  %v4173_v47 = vpop.permute.xlu0 %4172 }
 0x620   :  { %4900 = vmatprep.subr.mxu1 %v4574_v34  ;;  %4818 = vmatpush2.msra.mxu0 %v4509_v40  ;;  %v4488_v34 = vld [vmem:[%s15162_s13 + $0x548] sm:$0xff] }
 0x621   :  { %4901 = vmatpush2.msra.mxu1 %v4573_v30  ;;  %4819 = vmatprep.subr.mxu0 %v4508_v18  ;;  %v4552_v40 = vld [vmem:[%s15162_s13 + $0x748] sm:$0xff]  ;;  %v4175_v30 = vrot.slane %v12645_v5, 2  ;;  %v4207_v18 = vrot.slane %v12685_v54, 1 }
 0x622   :  { %4902 = vmatprep.subr.mxu1 %v4572_v10  ;;  %4820 = vmatpush2.msra.mxu0 %v4507_v11  ;;  %v4551_v10 = vld [vmem:[%s15162_s13 + $0x740] sm:$0xff]  ;;  %v4157_v11 = vld [vmem:[#allocation2 + $0x30] sm:$0xc0]  ;;  %v4604_v54 = vld [vmem:[%s15162_s13 + $0x8e8] sm:$0xff] }
 0x623   :  { %4903 = vmatpush2.msra.mxu1 %v4571_v1  ;;  %4821 = vmatprep.subr.mxu0 %v4506_v3  ;;  %v4486_v1 = vld [vmem:[%s15162_s13 + $0x538] sm:$0xff] }
 0x624   :  { %4904 = vmatprep.subr.mxu1 %v4570_v14  ;;  %4822 = vmatpush2.msra.mxu0 %v4505_v56  ;;  %v4550_v3 = vld [vmem:[%s15162_s13 + $0x738] sm:$0xff]  ;;  %v4130_v14 = vld [vmem:[#allocation2 + $0x8] sm:$0x7f]  ;;  %v4177_v56 = vrot.slane %v4173_v47, 2  ;;  %v4595_v47 = vld [vmem:[%s15162_s13 + $0x8a0] sm:$0xff] }
 0x625   :  { %4905 = vmatpush2.msra.mxu1 %v4569_v35  ;;  %4823 = vmatprep.subr.mxu0 %v4504_v59  ;;  %v4485_v35 = vld [vmem:[%s15162_s13 + $0x530] sm:$0xff] }
 0x626   :  { %4906 = vmatprep.subr.mxu1 %v4568_v50  ;;  %4824 = vmatpush2.msra.mxu0 %v4503_v62  ;;  %v4549_v59 = vld [vmem:[%s15162_s13 + $0x730] sm:$0xff]  ;;  %v12727_v50 = vld [vmem:[#allocation2 + $0x8] sm:$0xff]  ;;  %v4150_v62 = vsel %vm564_vm5, %v4147_v26, %v4149_v2  ;;  %v4547_v26 = vld [vmem:[%s15162_s13 + $0x720] sm:$0xff] }
 0x627   :  { %4907 = vmatpush2.msra.mxu1 %v4567_v27  ;;  %4825 = vmatprep.subr.mxu0 %v4502_v22  ;;  %v4484_v27 = vld [vmem:[%s15162_s13 + $0x528] sm:$0xff]  ;;  %v4156_v49 = vmul.f32 %v4150_v62, %v4130_v14  ;;  %v4598_v2 = vld [vmem:[%s15162_s13 + $0x8b8] sm:$0xff] }
 0x628   :  { %4908 = vmatprep.subr.mxu1 %v4566_v32  ;;  %4826 = vmatpush2.msra.mxu0 %v4501_v57  ;;  %v4548_v22 = vld [vmem:[%s15162_s13 + $0x728] sm:$0xff]  ;;  %v4182_v32 = vmul.f32 %v4174_v19, %v4157_v11  ;;  %v4176_v57 = vsel %vm594_vm7, %v4174_v19, %v4175_v30  ;;  %v4590_v11 = vld [vmem:[%s15162_s13 + $0x878] sm:$0xff] }
 0x629   :  { %4909 = vmatpush2.msra.mxu1 %v4565_v37  ;;  %4827 = vmatprep.subr.mxu0 %v4500_v20  ;;  %v4208_v37 = vsel %vm626_vm3, %v4205_v33, %v4207_v18  ;;  %v4482_v20 = vld [vmem:[%s15162_s13 + $0x518] sm:$0xff]  ;;  %v4183_v33 = vmul.f32 %v4176_v57, %v12257_v43  ;;  %v4596_v19 = vld [vmem:[%s15162_s13 + $0x8a8] sm:$0xff] }
 0x62a   :  { %4910 = vmatprep.subr.mxu1 %v4564_v31  ;;  %4828 = vmatpush2.msra.mxu0 %v4499_v21  ;;  %v4215_v31 = vmul.f32 %v4208_v37, %v12727_v50  ;;  %v4178_v21 = vsel %vm594_vm7, %v4175_v30, %v4177_v56  ;;  %v4591_v30 = vld [vmem:[%s15162_s13 + $0x880] sm:$0xff]  ;;  %v5549_v14 = vld [vmem:[%s15164_s15 + $0xd8] sm:$0xff]  ;;  %v4588_v56 = vld [vmem:[%s15162_s13 + $0x868] sm:$0xff] }
 0x62b   :  { %4911 = vmatpush2.msra.mxu1 %v4563_v17  ;;  %4829 = vmatprep.subr.mxu0 %v4498_v52  ;;  %v4481_v17 = vld [vmem:[%s15162_s13 + $0x510] sm:$0xff]  ;;  %v4184_v5 = vmul.f32 %v12727_v50, %v4178_v21  ;;  %v5547_v62 = vld [vmem:[%s15164_s15 + $0xc8] sm:$0xff]  ;;  %v5545_v57 = vld [vmem:[%s15164_s15 + $0xb8] sm:$0xff] }
 0x62c   :  { %4912 = vmatprep.subr.mxu1 %v4562_v36  ;;  %4830 = vmatpush2.msra.mxu0 %v4497_v48  ;;  %v4545_v52 = vld [vmem:[%s15162_s13 + $0x710] sm:$0xff]  ;;  %v4480_v36 = vld [vmem:[%s15162_s13 + $0x508] sm:$0xff] }
 0x62d   :  { %4913 = vmatpush2.msra.mxu1 %v4561_v58  ;;  %4831 = vmatprep.subr.mxu0 %v4496_v6  ;;  %v4544_v48 = vld [vmem:[%s15162_s13 + $0x708] sm:$0xff]  ;;  %v4297_v58 = vrot.slane %v4182_v32, 6  ;;  %v4585_v32 = vld [vmem:[%s15162_s13 + $0x850] sm:$0xff] }
 0x62e   :  { %4914 = vmatprep.subr.mxu1 %v4560_v39  ;;  %4832 = vmatpush2.msra.mxu0 %v4495_v29  ;;  %v4188_v6 = vld [vmem:[#allocation2 + $0x28] sm:$0x1]  ;;  %v4479_v39 = vld [vmem:[%s15162_s13 + $0x500] sm:$0xff] }
 0x62f   :  { %4915 = vmatpush2.msra.mxu1 %v4559_v42  ;;  %4833 = vmatprep.subr.mxu0 %v4494_v55  ;;  %v4543_v29 = vld [vmem:[%s15162_s13 + $0x700] sm:$0xff]  ;;  %v4289_v42 = vrot.slane %v4156_v49, 5  ;;  %v4298_v55 = vrot.slane %v4183_v33, 6  ;;  %v4584_v37 = vld [vmem:[%s15162_s13 + $0x848] sm:$0xff]  ;;  %v4581_v33 = vld [vmem:[%s15162_s13 + $0x830] sm:$0xff] }
 0x630   :  { %4916 = vmatprep.subr.mxu1 %v4558_v0  ;;  %4834 = vmatpush2.msra.mxu0 %v4493_v9  ;;  %v4312_v0 = vrot.slane %v4215_v31, 7  ;;  %v4606_v9 = vld [vmem:[%s15162_s13 + $0x8f8] sm:$0xff]  ;;  %v5543_v49 = vld [vmem:[%s15164_s15 + $0xa8] sm:$0xff] }
 0x631   :  { %4917 = vmatpush2.msra.mxu1 %v4557_v13  ;;  %4835 = vmatprep.subr.mxu0 %v4492_v15  ;;  %v4216_v13 = vmul.f32 %v4207_v18, %v4188_v6  ;;  %v4299_v15 = vsel %vm475_vm6, %v4297_v58, %v4298_v55  ;;  %v5553_v18 = vld [vmem:[%s15164_s15 + $0xf8] sm:$0xff]  ;;  %v4580_v21 = vld [vmem:[%s15162_s13 + $0x828] sm:$0xff]  ;;  %v4575_v58 = vld [vmem:[%s15162_s13 + $0x800] sm:$0xff]  ;;  %v4236_v6 = vmul.f32 %v12659_v12, %v12257_v43 }
 0x632   :  { %4918 = vmatprep.subr.mxu1 %v4556_v60  ;;  %4836 = vmatpush2.msra.mxu0 %v4491_v51  ;;  %v4605_v60 = vld [vmem:[%s15162_s13 + $0x8f0] sm:$0xff]  ;;  %v4300_v51 = vrot.slane %v4184_v5, 6  ;;  %v5541_v31 = vld [vmem:[%s15164_s15 + $0x98] sm:$0xff] }
 0x633   :  { %4919 = vmatpush2.msra.mxu1 %v4555_v25  ;;  %4837 = vmatprep.subr.mxu0 %v4490_v8  ;;  %v4290_v25 = vsel %vm505_vm4, %v4287_v16, %v4289_v42  ;;  %v4313_v8 = vsel %vm445_vm1, %v4310_v63, %v4312_v0  ;;  %v4314_v53 = vrot.slane %v4216_v13, 7  ;;  %v5617_v5 = vld [vmem:[%s15164_s15 + $0x2f8] sm:$0xff] }
 0x634   :  { %4920 = vmatprep.subr.mxu1 %v4554_v24  ;;  %4838 = vmatpush2.msra.mxu0 %v4489_v7  ;;  %v4603_v24 = vld [vmem:[%s15162_s13 + $0x8e0] sm:$0xff]  ;;  %v4301_v16 = vsel %vm475_vm6, %v4298_v55, %v4300_v51  ;;  %v4600_v7 = vld [vmem:[%s15162_s13 + $0x8c8] sm:$0xff]  ;;  %v4229_v55 = vpop.permute.xlu1 %4228  ;;  %v5613_v43 = vld [vmem:[%s15164_s15 + $0x2d8] sm:$0xff] }
 0x635   :  { %4921 = vmatpush2.msra.mxu1 %v4553_v61  ;;  %4839 = vmatprep.subr.mxu0 %v4488_v34  ;;  %v4315_v63 = vsel %vm445_vm1, %v4312_v0, %v4314_v53  ;;  %v4599_v61 = vld [vmem:[%s15162_s13 + $0x8c0] sm:$0xff]  ;;  %v4594_v34 = vld [vmem:[%s15162_s13 + $0x898] sm:$0xff]  ;;  %v4237_v12 = vmul.f32 %v4229_v55, %v12727_v50  ;;  %v4217_v0 = vld [vmem:[#allocation2 + $0x28] sm:$0x3] }
 0x636   :  { %4922 = vmatprep.subr.mxu1 %v4552_v40  ;;  %4840 = vmatpush2.msra.mxu0 %v4487_v44  ;;  %v12828_v40 = vld [vmem:[#allocation2] sm:$0xff]  ;;  %v5552_v44 = vld [vmem:[%s15164_s15 + $0xf0] sm:$0xff]  ;;  %v5577_v55 = vld [vmem:[%s15164_s15 + $0x1b8] sm:$0xff] }
 0x637   :  { %4923 = vmatpush2.msra.mxu1 %v4551_v10  ;;  %4841 = vmatprep.subr.mxu0 %v4486_v1  ;;  %v5551_v10 = vld [vmem:[%s15164_s15 + $0xe8] sm:$0xff]  ;;  %v5550_v1 = vld [vmem:[%s15164_s15 + $0xe0] sm:$0xff] }
 0x638   :  { %4924 = vmatprep.subr.mxu1 %v4550_v3  ;;  %4842 = vmatpush2.msra.mxu0 %v4485_v35  ;;  %v4589_v3 = vld [vmem:[%s15162_s13 + $0x870] sm:$0xff]  ;;  %v5610_v50 = vld [vmem:[%s15164_s15 + $0x2c0] sm:$0xff] }
 0x639   :  { %4925 = vmatpush2.msra.mxu1 %v4549_v59  ;;  %4843 = vmatprep.subr.mxu0 %v4484_v27  ;;  %v5548_v35 = vld [vmem:[%s15164_s15 + $0xd0] sm:$0xff]  ;;  %v4587_v59 = vld [vmem:[%s15162_s13 + $0x860] sm:$0xff]  ;;  %v4586_v27 = vld [vmem:[%s15162_s13 + $0x858] sm:$0xff] }
 0x63a   :  { %4926 = vmatprep.subr.mxu1 %v4548_v22  ;;  %4844 = vmatpush2.msra.mxu0 %v4483_v41  ;;  %v5546_v22 = vld [vmem:[%s15164_s15 + $0xc0] sm:$0xff]  ;;  %v5544_v41 = vld [vmem:[%s15164_s15 + $0xb0] sm:$0xff] }
 0x63b   :  { %4927 = vmatpush2.msra.mxu1 %v4547_v26  ;;  %4845 = vmatprep.subr.mxu0 %v4482_v20  ;;  %v4583_v26 = vld [vmem:[%s15162_s13 + $0x840] sm:$0xff]  ;;  %v4582_v20 = vld [vmem:[%s15162_s13 + $0x838] sm:$0xff] }
 0x63c   :  { %4928 = vmatprep.subr.mxu1 %v4546_v4  ;;  %4846 = vmatpush2.msra.mxu0 %v4481_v17  ;;  %v5542_v4 = vld [vmem:[%s15164_s15 + $0xa0] sm:$0xff] }
 0x63d   :  { %4929 = vmatpush2.msra.mxu1 %v4545_v52  ;;  %4847 = vmatprep.subr.mxu0 %v4480_v36  ;;  %v4579_v17 = vld [vmem:[%s15162_s13 + $0x820] sm:$0xff]  ;;  %v4578_v52 = vld [vmem:[%s15162_s13 + $0x818] sm:$0xff]  ;;  %v4577_v36 = vld [vmem:[%s15162_s13 + $0x810] sm:$0xff] }
 0x63e   :  { %4930 = vmatprep.subr.mxu1 %v4544_v48  ;;  %4848 = vmatpush2.msra.mxu0 %v4479_v39  ;;  %v4576_v48 = vld [vmem:[%s15162_s13 + $0x808] sm:$0xff]  ;;  %v5616_v39 = vld [vmem:[%s15164_s15 + $0x2f0] sm:$0xff]  ;;  %v5538_v53 = vld [vmem:[%s15164_s15 + $0x80] sm:$0xff] }
 0x63f   :  { %4931 = vmatpush2.msra.mxu1 %v4543_v29  ;;  %4850 = vmatmul.mubr.f32.vlgmr.msra.gmra.mxu0 %v12350_v38  ;;  %v4602_v38 = vld [vmem:[%s15162_s13 + $0x8d8] sm:$0xff]  ;;  %v5615_v29 = vld [vmem:[%s15164_s15 + $0x2e8] sm:$0xff] }
 0x640   :  { %4933 = vmatmul.mubr.f32.vlgmr.msra.gmra.mxu1 %v4299_v15  ;;  %4951 = vmatprep.subr.mxu0 %v4606_v9  ;;  %v4234_v9 = vpop.permute.xlu0 %4233  ;;  %v5612_v15 = vld [vmem:[%s15164_s15 + $0x2d0] sm:$0xff] }
 0x641   :  { %4855 = vmatprep.mubr.f32.mxu0 %v4290_v25  ;;  %4938 = vmatprep.mubr.f32.mxu1 %v4313_v8  ;;  %v4238_v13 = vmul.f32 %v4234_v9, %v4217_v0  ;;  %v5608_v25 = vld [vmem:[%s15164_s15 + $0x2b0] sm:$0xff]  ;;  %v5607_v8 = vld [vmem:[%s15164_s15 + $0x2a8] sm:$0xff]  ;;  %v5645_v0 = vld [vmem:[%s15164_s15 + $0x3d8] sm:$0xff] }
 0x642   :  { %4952 = vmatpush1.msra.mxu0 %v4605_v60  ;;  %6110 = vmatprep.subr.mxu1 %v5553_v18  ;;  %v5611_v60 = vld [vmem:[%s15164_s15 + $0x2c8] sm:$0xff] }
 0x643   :  { %4953 = vmatprep.subr.mxu0 %v4604_v54  ;;  %4856 = vmatmul.mubr.f32.gmra.mxu0 %v12416_v23  ;;  %v4597_v23 = vld [vmem:[%s15162_s13 + $0x8b0] sm:$0xff]  ;;  %v5531_v18 = vld [vmem:[%s15164_s15 + $0x48] sm:$0xff] }
 0x644   :  { %4954 = vmatpush1.msra.mxu0 %v4603_v24  ;;  %4939 = vmatmul.mubr.f32.gmra.mxu1 %v4301_v16  ;;  %v5540_v54 = vld [vmem:[%s15164_s15 + $0x90] sm:$0xff]  ;;  %v5539_v24 = vld [vmem:[%s15164_s15 + $0x88] sm:$0xff]  ;;  %v5605_v16 = vld [vmem:[%s15164_s15 + $0x298] sm:$0xff] }
 0x645   :  { %4955 = vmatprep.subr.mxu0 %v4602_v38  ;;  %4861 = vmatprep.mubr.f32.mxu0 %v4289_v42  ;;  %v5614_v42 = vld [vmem:[%s15164_s15 + $0x2e0] sm:$0xff]  ;;  %v5575_v9 = vld [vmem:[%s15164_s15 + $0x1a8] sm:$0xff] }
 0x646   :  { %4944 = vmatprep.mubr.f32.mxu1 %v4315_v63  ;;  %4956 = vmatpush1.msra.mxu0 %v4601_v45  ;;  %v5606_v38 = vld [vmem:[%s15164_s15 + $0x2a0] sm:$0xff]  ;;  %v5537_v45 = vld [vmem:[%s15164_s15 + $0x78] sm:$0xff]  ;;  %v5604_v63 = vld [vmem:[%s15164_s15 + $0x290] sm:$0xff] }
 0x647   :  { %4957 = vmatprep.subr.mxu0 %v4600_v7  ;;  %4862 = vmatmul.mubr.f32.gmra.mxu0 %v4278_v46  ;;  %v4592_v46 = vld [vmem:[%s15162_s13 + $0x888] sm:$0xff]  ;;  %v5536_v7 = vld [vmem:[%s15164_s15 + $0x70] sm:$0xff] }
 0x648   :  { %4945 = vmatmul.mubr.f32.gmra.mxu1 %v4300_v51  ;;  %4958 = vmatpush1.msra.mxu0 %v4599_v61  ;;  %v5609_v51 = vld [vmem:[%s15164_s15 + $0x2b8] sm:$0xff]  ;;  %v5603_v61 = vld [vmem:[%s15164_s15 + $0x288] sm:$0xff] }
 0x649   :  { %4959 = vmatprep.subr.mxu0 %v4598_v2  ;;  %5015 = vmatprep.mubr.f32.mxu0 %v12828_v40  ;;  %v5535_v2 = vld [vmem:[%s15164_s15 + $0x68] sm:$0xff] }
 0x64a   :  { %4960 = vmatpush1.msra.mxu0 %v4597_v23  ;;  %6111 = vmatpush1.msra.mxu1 %v5552_v44  ;;  %v5602_v23 = vld [vmem:[%s15164_s15 + $0x280] sm:$0xff] }
 0x64b   :  { %4961 = vmatprep.subr.mxu0 %v4596_v19  ;;  %6112 = vmatprep.subr.mxu1 %v5551_v10  ;;  %v5534_v19 = vld [vmem:[%s15164_s15 + $0x60] sm:$0xff] }
 0x64c   :  { %4962 = vmatpush1.msra.mxu0 %v4595_v47  ;;  %6113 = vmatpush1.msra.mxu1 %v5550_v1  ;;  %v5601_v47 = vld [vmem:[%s15164_s15 + $0x278] sm:$0xff]  ;;  %v5598_v44 = vld [vmem:[%s15164_s15 + $0x260] sm:$0xff] }
 0x64d   :  { %4963 = vmatprep.subr.mxu0 %v4594_v34  ;;  %6114 = vmatprep.subr.mxu1 %v5549_v14  ;;  %v5533_v34 = vld [vmem:[%s15164_s15 + $0x58] sm:$0xff]  ;;  %v5530_v10 = vld [vmem:[%s15164_s15 + $0x40] sm:$0xff]  ;;  %v5528_v14 = vld [vmem:[%s15164_s15 + $0x30] sm:$0xff] }
 0x64e   :  { %4964 = vmatpush1.msra.mxu0 %v4593_v28  ;;  %6115 = vmatpush1.msra.mxu1 %v5548_v35  ;;  %v5600_v28 = vld [vmem:[%s15164_s15 + $0x270] sm:$0xff]  ;;  %v5529_v1 = vld [vmem:[%s15164_s15 + $0x38] sm:$0xff]  ;;  %v5527_v35 = vld [vmem:[%s15164_s15 + $0x28] sm:$0xff] }
 0x64f   :  { %4965 = vmatprep.subr.mxu0 %v4592_v46  ;;  %6116 = vmatprep.subr.mxu1 %v5547_v62  ;;  %v5532_v46 = vld [vmem:[%s15164_s15 + $0x50] sm:$0xff]  ;;  %v5526_v62 = vld [vmem:[%s15164_s15 + $0x20] sm:$0xff] }
 0x650   :  { %4966 = vmatpush1.msra.mxu0 %v4591_v30  ;;  %6117 = vmatpush1.msra.mxu1 %v5546_v22  ;;  %v5599_v30 = vld [vmem:[%s15164_s15 + $0x268] sm:$0xff]  ;;  %v5524_v22 = vld [vmem:[%s15164_s15 + $0x10] sm:$0xff] }
 0x651   :  { %4967 = vmatprep.subr.mxu0 %v4590_v11  ;;  %6118 = vmatprep.subr.mxu1 %v5545_v57  ;;  %v5597_v11 = vld [vmem:[%s15164_s15 + $0x258] sm:$0xff]  ;;  %v5522_v57 = vld [vmem:[%s15164_s15] sm:$0xff] }
 0x652   :  { %4968 = vmatpush1.msra.mxu0 %v4589_v3  ;;  %6119 = vmatpush1.msra.mxu1 %v5544_v41  ;;  %v5596_v3 = vld [vmem:[%s15164_s15 + $0x250] sm:$0xff] }
 0x653   :  { %4969 = vmatprep.subr.mxu0 %v4588_v56  ;;  %6120 = vmatprep.subr.mxu1 %v5543_v49  ;;  %v5595_v56 = vld [vmem:[%s15164_s15 + $0x248] sm:$0xff]  ;;  %v5592_v41 = vld [vmem:[%s15164_s15 + $0x230] sm:$0xff] }
 0x654   :  { %4970 = vmatpush1.msra.mxu0 %v4587_v59  ;;  %6121 = vmatpush1.msra.mxu1 %v5542_v4  ;;  %v5594_v59 = vld [vmem:[%s15164_s15 + $0x240] sm:$0xff]  ;;  %v5591_v49 = vld [vmem:[%s15164_s15 + $0x228] sm:$0xff] }
 0x655   :  { %4971 = vmatprep.subr.mxu0 %v4586_v27  ;;  %6122 = vmatprep.subr.mxu1 %v5541_v31  ;;  %v5525_v27 = vld [vmem:[%s15164_s15 + $0x18] sm:$0xff]  ;;  %v5590_v4 = vld [vmem:[%s15164_s15 + $0x220] sm:$0xff]  ;;  %v5583_v31 = vld [vmem:[%s15164_s15 + $0x1e8] sm:$0xff] }
 0x656   :  { %4972 = vmatpush1.msra.mxu0 %v4585_v32  ;;  %6123 = vmatpush1.msra.mxu1 %v5540_v54  ;;  %v5523_v32 = vld [vmem:[%s15164_s15 + $0x8] sm:$0xff]  ;;  %v5640_v54 = vld [vmem:[%s15164_s15 + $0x3b0] sm:$0xff] }
 0x657   :  { %4973 = vmatprep.subr.mxu0 %v4584_v37  ;;  %6124 = vmatprep.subr.mxu1 %v5539_v24  ;;  %v5593_v37 = vld [vmem:[%s15164_s15 + $0x238] sm:$0xff]  ;;  %v5639_v24 = vld [vmem:[%s15164_s15 + $0x3a8] sm:$0xff] }
 0x658   :  { %4974 = vmatpush1.msra.mxu0 %v4583_v26  ;;  %6125 = vmatpush1.msra.mxu1 %v5538_v53  ;;  %v5585_v26 = vld [vmem:[%s15164_s15 + $0x1f8] sm:$0xff]  ;;  %v5638_v53 = vld [vmem:[%s15164_s15 + $0x3a0] sm:$0xff] }
 0x659   :  { %4975 = vmatprep.subr.mxu0 %v4582_v20  ;;  %6126 = vmatprep.subr.mxu1 %v5537_v45  ;;  %v5584_v20 = vld [vmem:[%s15164_s15 + $0x1f0] sm:$0xff]  ;;  %v5637_v45 = vld [vmem:[%s15164_s15 + $0x398] sm:$0xff] }
 0x65a   :  { %4976 = vmatpush1.msra.mxu0 %v4581_v33  ;;  %6127 = vmatpush1.msra.mxu1 %v5536_v7  ;;  %v5589_v33 = vld [vmem:[%s15164_s15 + $0x218] sm:$0xff]  ;;  %v5636_v7 = vld [vmem:[%s15164_s15 + $0x390] sm:$0xff] }
 0x65b   :  { %4977 = vmatprep.subr.mxu0 %v4580_v21  ;;  %6128 = vmatprep.subr.mxu1 %v5535_v2  ;;  %v5588_v21 = vld [vmem:[%s15164_s15 + $0x210] sm:$0xff]  ;;  %v5635_v2 = vld [vmem:[%s15164_s15 + $0x388] sm:$0xff] }
 0x65c   :  { %4978 = vmatpush1.msra.mxu0 %v4579_v17  ;;  %6129 = vmatpush1.msra.mxu1 %v5534_v19  ;;  %v5582_v17 = vld [vmem:[%s15164_s15 + $0x1e0] sm:$0xff] }
 0x65d   :  { %4979 = vmatprep.subr.mxu0 %v4578_v52  ;;  %6130 = vmatprep.subr.mxu1 %v5533_v34  ;;  %v5587_v52 = vld [vmem:[%s15164_s15 + $0x208] sm:$0xff]  ;;  %v5634_v19 = vld [vmem:[%s15164_s15 + $0x380] sm:$0xff]  ;;  %v5633_v34 = vld [vmem:[%s15164_s15 + $0x378] sm:$0xff] }
 0x65e   :  { %4980 = vmatpush1.msra.mxu0 %v4577_v36  ;;  %6131 = vmatpush1.msra.mxu1 %v5532_v46  ;;  %v5581_v36 = vld [vmem:[%s15164_s15 + $0x1d8] sm:$0xff]  ;;  %v5632_v46 = vld [vmem:[%s15164_s15 + $0x370] sm:$0xff] }
 0x65f   :  { %4981 = vmatprep.subr.mxu0 %v4576_v48  ;;  %6132 = vmatprep.subr.mxu1 %v5531_v18  ;;  %v5586_v48 = vld [vmem:[%s15164_s15 + $0x200] sm:$0xff]  ;;  %v5631_v18 = vld [vmem:[%s15164_s15 + $0x368] sm:$0xff] }
 0x660   :  { %4982 = vmatpush1.msra.mxu0 %v4575_v58  ;;  %6133 = vmatpush1.msra.mxu1 %v5530_v10  ;;  %v5580_v58 = vld [vmem:[%s15164_s15 + $0x1d0] sm:$0xff]  ;;  %v5630_v10 = vld [vmem:[%s15164_s15 + $0x360] sm:$0xff] }
 0x661   :  { %5016 = vmatmul.mubr.f32.vlgmr.msra.gmra.mxu0 %v4236_v6  ;;  %6193 = vmatprep.subr.mxu0 %v5617_v5  ;;  %v5649_v5 = vld [vmem:[%s15164_s15 + $0x3f8] sm:$0xff]  ;;  %v5579_v6 = vld [vmem:[%s15164_s15 + $0x1c8] sm:$0xff] }
 0x662   :  { %5021 = vmatprep.mubr.f32.mxu0 %v12828_v40  ;;  %6194 = vmatpush1.msra.mxu0 %v5616_v39  ;;  %v5648_v39 = vld [vmem:[%s15164_s15 + $0x3f0] sm:$0xff] }
 0x663   :  { %6195 = vmatprep.subr.mxu0 %v5615_v29  ;;  %6134 = vmatprep.subr.mxu1 %v5529_v1  ;;  %v5578_v29 = vld [vmem:[%s15164_s15 + $0x1c0] sm:$0xff]  ;;  %v5629_v1 = vld [vmem:[%s15164_s15 + $0x358] sm:$0xff] }
 0x664   :  { %6196 = vmatpush1.msra.mxu0 %v5614_v42  ;;  %6135 = vmatpush1.msra.mxu1 %v5528_v14  ;;  %v5647_v42 = vld [vmem:[%s15164_s15 + $0x3e8] sm:$0xff]  ;;  %v5628_v14 = vld [vmem:[%s15164_s15 + $0x350] sm:$0xff] }
 0x665   :  { %5022 = vmatmul.mubr.f32.gmra.mxu0 %v4237_v12  ;;  %6197 = vmatprep.subr.mxu0 %v5613_v43  ;;  %v5646_v43 = vld [vmem:[%s15164_s15 + $0x3e0] sm:$0xff]  ;;  %v5576_v12 = vld [vmem:[%s15164_s15 + $0x1b0] sm:$0xff] }
 0x666   :  { %5027 = vmatprep.mubr.f32.mxu0 %v12828_v40  ;;  %6198 = vmatpush1.msra.mxu0 %v5612_v15  ;;  %v5574_v15 = vld [vmem:[%s15164_s15 + $0x1a0] sm:$0xff] }
 0x667   :  { %6199 = vmatprep.subr.mxu0 %v5611_v60  ;;  %6136 = vmatprep.subr.mxu1 %v5527_v35  ;;  %v5643_v60 = vld [vmem:[%s15164_s15 + $0x3c8] sm:$0xff] }
 0x668   :  { %6200 = vmatpush1.msra.mxu0 %v5610_v50  ;;  %6137 = vmatpush1.msra.mxu1 %v5526_v62  ;;  %v5573_v50 = vld [vmem:[%s15164_s15 + $0x198] sm:$0xff]  ;;  %v5627_v35 = vld [vmem:[%s15164_s15 + $0x348] sm:$0xff]  ;;  %v5626_v62 = vld [vmem:[%s15164_s15 + $0x340] sm:$0xff] }
 0x669   :  { %5028 = vmatmul.mubr.f32.gmra.mxu0 %v4238_v13  ;;  %6201 = vmatprep.subr.mxu0 %v5609_v51  ;;  %v5644_v13 = vld [vmem:[%s15164_s15 + $0x3d0] sm:$0xff]  ;;  %v5642_v51 = vld [vmem:[%s15164_s15 + $0x3c0] sm:$0xff] }
 0x66a   :  { %6202 = vmatpush1.msra.mxu0 %v5608_v25  ;;  %6138 = vmatprep.subr.mxu1 %v5525_v27  ;;  %v5641_v25 = vld [vmem:[%s15164_s15 + $0x3b8] sm:$0xff]  ;;  %v5558_v27 = vld [vmem:[%s15164_s15 + $0x120] sm:$0xff] }
 0x66b   :  { %6203 = vmatprep.subr.mxu0 %v5607_v8  ;;  %6139 = vmatpush1.msra.mxu1 %v5524_v22  ;;  %v5572_v8 = vld [vmem:[%s15164_s15 + $0x190] sm:$0xff]  ;;  %v5625_v22 = vld [vmem:[%s15164_s15 + $0x338] sm:$0xff] }
 0x66c   :  { %6204 = vmatpush1.msra.mxu0 %v5606_v38  ;;  %6140 = vmatprep.subr.mxu1 %v5523_v32  ;;  %v5571_v38 = vld [vmem:[%s15164_s15 + $0x188] sm:$0xff]  ;;  %v5557_v32 = vld [vmem:[%s15164_s15 + $0x118] sm:$0xff] }
 0x66d   :  { %6205 = vmatprep.subr.mxu0 %v5605_v16  ;;  %6141 = vmatpush1.msra.mxu1 %v5522_v57  ;;  %v5570_v16 = vld [vmem:[%s15164_s15 + $0x180] sm:$0xff]  ;;  %v5624_v57 = vld [vmem:[%s15164_s15 + $0x330] sm:$0xff] }
 0x66e   :  { %6206 = vmatpush1.msra.mxu0 %v5604_v63  ;;  %6142 = vmatprep.subr.mxu1 %v5585_v26  ;;  %v5569_v63 = vld [vmem:[%s15164_s15 + $0x178] sm:$0xff]  ;;  %v5623_v26 = vld [vmem:[%s15164_s15 + $0x328] sm:$0xff] }
 0x66f   :  { %6207 = vmatprep.subr.mxu0 %v5603_v61  ;;  %6143 = vmatpush2.msra.mxu1 %v5584_v20  ;;  %v5568_v61 = vld [vmem:[%s15164_s15 + $0x170] sm:$0xff]  ;;  %v5622_v20 = vld [vmem:[%s15164_s15 + $0x320] sm:$0xff] }
 0x670   :  { %6208 = vmatpush1.msra.mxu0 %v5602_v23  ;;  %6144 = vmatprep.subr.mxu1 %v5583_v31  ;;  %v5567_v23 = vld [vmem:[%s15164_s15 + $0x168] sm:$0xff]  ;;  %v5620_v31 = vld [vmem:[%s15164_s15 + $0x310] sm:$0xff] }
 0x671   :  { %6209 = vmatprep.subr.mxu0 %v5601_v47  ;;  %6145 = vmatpush2.msra.mxu1 %v5582_v17  ;;  %v5566_v47 = vld [vmem:[%s15164_s15 + $0x160] sm:$0xff] }
 0x672   :  { %6210 = vmatpush1.msra.mxu0 %v5600_v28  ;;  %6146 = vmatprep.subr.mxu1 %v5581_v36  ;;  %v5565_v28 = vld [vmem:[%s15164_s15 + $0x158] sm:$0xff]  ;;  %v5618_v17 = vld [vmem:[%s15164_s15 + $0x300] sm:$0xff] }
 0x673   :  { %6211 = vmatprep.subr.mxu0 %v5599_v30  ;;  %6147 = vmatpush2.msra.mxu1 %v5580_v58  ;;  %v5564_v30 = vld [vmem:[%s15164_s15 + $0x150] sm:$0xff] }
 0x674   :  { %6212 = vmatpush1.msra.mxu0 %v5598_v44  ;;  %6148 = vmatprep.subr.mxu1 %v5579_v6  ;;  %v5563_v44 = vld [vmem:[%s15164_s15 + $0x148] sm:$0xff] }
 0x675   :  { %6213 = vmatprep.subr.mxu0 %v5597_v11  ;;  %6149 = vmatpush2.msra.mxu1 %v5578_v29  ;;  %v5562_v11 = vld [vmem:[%s15164_s15 + $0x140] sm:$0xff] }
 0x676   :  { %6214 = vmatpush1.msra.mxu0 %v5596_v3  ;;  %6150 = vmatprep.subr.mxu1 %v5577_v55  ;;  %v5561_v3 = vld [vmem:[%s15164_s15 + $0x138] sm:$0xff] }
 0x677   :  { %6215 = vmatprep.subr.mxu0 %v5595_v56  ;;  %6151 = vmatpush2.msra.mxu1 %v5576_v12  ;;  %v5560_v56 = vld [vmem:[%s15164_s15 + $0x130] sm:$0xff] }
 0x678   :  { %6216 = vmatpush1.msra.mxu0 %v5594_v59  ;;  %6152 = vmatprep.subr.mxu1 %v5575_v9  ;;  %v5559_v59 = vld [vmem:[%s15164_s15 + $0x128] sm:$0xff] }
 0x679   :  { %6217 = vmatprep.subr.mxu0 %v5593_v37  ;;  %6153 = vmatpush2.msra.mxu1 %v5574_v15  ;;  %v5556_v37 = vld [vmem:[%s15164_s15 + $0x110] sm:$0xff]  ;;  %v4607_v15 = vld [vmem:[%s15165_s14] sm:$0x3] }
 0x67a   :  { %6218 = vmatpush1.msra.mxu0 %v5592_v41  ;;  %6154 = vmatprep.subr.mxu1 %v5573_v50  ;;  %v5555_v41 = vld [vmem:[%s15164_s15 + $0x108] sm:$0xff] }
 0x67b   :  { %6219 = vmatprep.subr.mxu0 %v5591_v49  ;;  %6155 = vmatpush2.msra.mxu1 %v5572_v8  ;;  %v5554_v49 = vld [vmem:[%s15164_s15 + $0x100] sm:$0xff] }
 0x67c   :  { %6220 = vmatpush1.msra.mxu0 %v5590_v4  ;;  %6156 = vmatprep.subr.mxu1 %v5571_v38  ;;  %v5681_v4 = vld [vmem:[%s15164_s15 + $0x4f8] sm:$0xff] }
 0x67d   :  { %6221 = vmatprep.subr.mxu0 %v5589_v33  ;;  %6157 = vmatpush2.msra.mxu1 %v5570_v16  ;;  %v5621_v33 = vld [vmem:[%s15164_s15 + $0x318] sm:$0xff] }
 0x67e   :  { %6222 = vmatpush1.msra.mxu0 %v5588_v21  ;;  %6158 = vmatprep.subr.mxu1 %v5569_v63  ;;  %v5619_v21 = vld [vmem:[%s15164_s15 + $0x308] sm:$0xff] }
 0x67f   :  { %6223 = vmatprep.subr.mxu0 %v5587_v52  ;;  %6159 = vmatpush2.msra.mxu1 %v5568_v61  ;;  %v5745_v52 = vld [vmem:[%s15164_s15 + $0x6f8] sm:$0xff] }
 0x680   :  { %6224 = vmatpush1.msra.mxu0 %v5586_v48  ;;  %6160 = vmatprep.subr.mxu1 %v5567_v23 }
 0x681   :  { %6225 = vmatprep.subr.mxu0 %v5649_v5  ;;  %6161 = vmatpush2.msra.mxu1 %v5566_v47 }
 0x682   :  { %6226 = vmatpush2.msra.mxu0 %v5648_v39  ;;  %6162 = vmatprep.subr.mxu1 %v5565_v28 }
 0x683   :  { %6227 = vmatprep.subr.mxu0 %v5647_v42  ;;  %6163 = vmatpush2.msra.mxu1 %v5564_v30  ;;  %v4609_v42 = vlaneseq }
 0x684   :  { %6228 = vmatpush2.msra.mxu0 %v5646_v43  ;;  %6164 = vmatprep.subr.mxu1 %v5563_v44 }
 0x685   :  { %6229 = vmatprep.subr.mxu0 %v5645_v0  ;;  %6165 = vmatpush2.msra.mxu1 %v5562_v11  ;;  %v13283_v12 = vshrl.u32 %v4609_v42, 7 }
 0x686   :  { %6230 = vmatpush2.msra.mxu0 %v5644_v13  ;;  %6166 = vmatprep.subr.mxu1 %v5561_v3 }
 0x687   :  { %6231 = vmatprep.subr.mxu0 %v5643_v60  ;;  %6167 = vmatpush2.msra.mxu1 %v5560_v56  ;;  %v4611_v13 = vsub.s32 0, %v13283_v12 }
 0x688   :  { %6232 = vmatpush2.msra.mxu0 %v5642_v51  ;;  %6168 = vmatprep.subr.mxu1 %v5559_v59  ;;  %v4615_v51 = vsub.s32 1, %v13283_v12 }
 0x689   :  { %6233 = vmatprep.subr.mxu0 %v5641_v25  ;;  %6169 = vmatpush2.msra.mxu1 %v5558_v27  ;;  %v4612_v25 = vrot.slane %v4607_v15, %v4611_v13 }
 0x68a   :  { %6234 = vmatpush2.msra.mxu0 %v5640_v54  ;;  %6170 = vmatprep.subr.mxu1 %v5557_v32 }
 0x68b   :  { %6235 = vmatprep.subr.mxu0 %v5639_v24  ;;  %6171 = vmatpush2.msra.mxu1 %v5556_v37  ;;  %v4616_v24 = vrot.slane %v4607_v15, %v4615_v51 }
 0x68c   :  { %6236 = vmatpush2.msra.mxu0 %v5638_v53  ;;  %6172 = vmatprep.subr.mxu1 %v5555_v41 }
 0x68d   :  { %6237 = vmatprep.subr.mxu0 %v5637_v45  ;;  %6173 = vmatpush2.msra.mxu1 %v5554_v49 }
 0x68e   :  { %6238 = vmatpush2.msra.mxu0 %v5636_v7  ;;  %6276 = vmatprep.subr.mxu1 %v5681_v4  ;;  %v13294_v7 = vpop.permute.xlu1 %5079 }
 0x68f   :  { %6239 = vmatprep.subr.mxu0 %v5635_v2 }
 0x690   :  { %6240 = vmatpush2.msra.mxu0 %v5634_v19 }
 0x691   :  { %6241 = vmatprep.subr.mxu0 %v5633_v34 }
 0x692   :  { %6242 = vmatpush2.msra.mxu0 %v5632_v46  ;;  %v13296_v46 = vpop.permute.xlu0 %5084  ;;  %v5108_v3 = vpop.permute.xlu1 %5107 }
 0x693   :  { %6243 = vmatprep.subr.mxu0 %v5631_v18 }
 0x694   :  { %6244 = vmatpush2.msra.mxu0 %v5630_v10 }
 0x695   :  { %6245 = vmatprep.subr.mxu0 %v5629_v1 }
 0x696   :  { %6246 = vmatpush2.msra.mxu0 %v5628_v14  ;;  %v13298_v41 = vpop.permute.xlu0 %5111 }
 0x697   :  { %6247 = vmatprep.subr.mxu0 %v5627_v35 }
 0x698   :  { %6248 = vmatpush2.msra.mxu0 %v5626_v62 }
 0x699   :  { %6249 = vmatprep.subr.mxu0 %v5625_v22 }
 0x69a   :  { %6250 = vmatpush2.msra.mxu0 %v5624_v57 }
 0x69b   :  { %6251 = vmatprep.subr.mxu0 %v5623_v26 }
 0x69c   :  { %6252 = vmatpush2.msra.mxu0 %v5622_v20 }
 0x69d   :  { %6253 = vmatprep.subr.mxu0 %v5621_v33 }
 0x69e   :  { %6254 = vmatpush2.msra.mxu0 %v5620_v31 }
 0x69f   :  { %6255 = vmatprep.subr.mxu0 %v5619_v21 }
 0x6a0   :  { %6256 = vmatpush2.msra.mxu0 %v5618_v17 }
 0x6a1   :  { %6359 = vmatprep.subr.mxu0 %v5745_v52 }
 0x6ba   :  { %v4685_v36 = vpop.f32.mrf.mxu0 }
 0x6bb   :  { %v4768_v5 = vpop.f32.mrf.mxu1  ;;  %v4686_v53 = vadd.f32 %v4685_v36, %v4612_v25 }
 0x6bc   :  { %v4687_v48 = vpop.f32.mrf.mxu0 }
 0x6bd   :  { %v4770_v39 = vpop.f32.mrf.mxu1  ;;  %v4688_v45 = vadd.f32 %v4687_v48, %v4616_v24  ;;  %v4769_v61 = vadd.f32 %v4768_v5, %v4686_v53 }
 0x6bf   :  { %v4771_v47 = vadd.f32 %v4770_v39, %v4688_v45 }
 0x6c3   :  { %v4691_v58 = vpop.f32.mrf.mxu0 }
 0x6c4   :  { %v4774_v55 = vpop.f32.mrf.mxu1  ;;  %v4692_v2 = vadd.f32 %v4691_v58, %v4612_v25  ;;  %v5141_v58 = vpop.permute.xlu1 %5140 }
 0x6c5   :  { %v4693_v6 = vpop.f32.mrf.mxu0 }
 0x6c6   :  { %v4776_v0 = vpop.f32.mrf.mxu1  ;;  %v4694_v23 = vadd.f32 %v4693_v6, %v4616_v24  ;;  %v4775_v30 = vadd.f32 %v4774_v55, %v4692_v2 }
 0x6c7   :  { %v4697_v29 = vpop.f32.mrf.mxu0 }
 0x6c8   :  { %v4780_v60 = vpop.f32.mrf.mxu1  ;;  %v4698_v18 = vadd.f32 %v4697_v29, %v4612_v25  ;;  %v4777_v10 = vadd.f32 %v4776_v0, %v4694_v23  ;;  %v13301_v25 = vpop.permute.xlu0 %5144 }
 0x6c9   :  { %v4699_v43 = vpop.f32.mrf.mxu0  ;;  %v13306_v45 = vpop.permute.xlu1 %5089 }
 0x6ca   :  { %v4782_v54 = vpop.f32.mrf.mxu1  ;;  %v4700_v11 = vadd.f32 %v4699_v43, %v4616_v24  ;;  %v4781_v27 = vadd.f32 %v4780_v60, %v4698_v18 }
 0x6cc   :  { %v4783_v57 = vadd.f32 %v4782_v54, %v4700_v11 }
 0x6ff   :  { %v4851_v9 = vpop.f32.mrf.mxu0 }
 0x700   :  { %v4934_v38 = vpop.f32.mrf.mxu1  ;;  %v4852_v34 = vadd.f32 %v4851_v9, %v4769_v61 }
 0x701   :  { %v4853_v50 = vpop.f32.mrf.mxu0 }
 0x702   :  { %v4936_v63 = vpop.f32.mrf.mxu1  ;;  %v4854_v44 = vadd.f32 %v4853_v50, %v4771_v47  ;;  %v4935_v14 = vadd.f32 %v4934_v38, %v4852_v34  ;;  %v5118_v50 = vrot.slane %v13298_v41, 7 }
 0x703   :  { %v4857_v8 = vpop.f32.mrf.mxu0 }
 0x704   :  { %v4940_v28 = vpop.f32.mrf.mxu1  ;;  %v4858_v56 = vadd.f32 %v4857_v8, %v4775_v30  ;;  %v4937_v22 = vadd.f32 %v4936_v63, %v4854_v44  ;;  %v5116_v44 = vpop.permute.xlu0 %5115 }
 0x705   :  { %v4859_v16 = vpop.f32.mrf.mxu0 }
 0x706   :  { %v4860_v35 = vadd.f32 %v4859_v16, %v4777_v10  ;;  %v4942_v59 = vpop.f32.mrf.mxu1  ;;  %v4941_v26 = vadd.f32 %v4940_v28, %v4858_v56  ;;  %v5117_v16 = vrot.slane %v5108_v3, 7 }
 0x707   :  { %v4863_v19 = vpop.f32.mrf.mxu0 }
 0x708   :  { %v4864_v49 = vadd.f32 %v4863_v19, %v4781_v27  ;;  %v4943_v33 = vadd.f32 %v4942_v59, %v4860_v35  ;;  %v4946_v31 = vpop.f32.mrf.mxu1  ;;  %v5119_v23 = vsel %vm445_vm1, %v5117_v16, %v5118_v50  ;;  %v5151_v35 = vrot.slane %v13301_v25, 6  ;;  %v13324_v59 = vpop.permute.xlu1 %5148  ;;  %v5680_v27 = vld [vmem:[%s15164_s15 + $0x4f0] sm:$0xff]  ;;  %v5686_v25 = vld [vmem:[%s15164_s15 + $0x520] sm:$0xff] }
 0x709   :  { %v4865_v1 = vpop.f32.mrf.mxu0 }
 0x70a   :  { %v4866_v17 = vadd.f32 %v4865_v1, %v4783_v57  ;;  %v4947_v6 = vadd.f32 %v4946_v31, %v4864_v49  ;;  %v4948_v55 = vpop.f32.mrf.mxu1  ;;  %v5679_v57 = vld [vmem:[%s15164_s15 + $0x4e8] sm:$0xff] }
 0x70c   :  { %v4949_v0 = vadd.f32 %v4948_v55, %v4866_v17  ;;  %v5674_v55 = vld [vmem:[%s15164_s15 + $0x4c0] sm:$0xff] }
 0x721   :  { %v5017_v62 = vpop.f32.mrf.mxu0 }
 0x722   :  { %v5018_v32 = vadd.f32 %v5017_v62, %v4935_v14 }
 0x723   :  { %v5019_v37 = vpop.f32.mrf.mxu0 }
 0x724   :  { %v5034_v20 = vmax.f32 %v5018_v32, 0.0  ;;  %v5020_v4 = vadd.f32 %v5019_v37, %v4937_v22  ;;  %v5120_v32 = vrot.slane %v5116_v44, 7 }
 0x725   :  { %v5023_v21 = vpop.f32.mrf.mxu0 }
 0x726   :  { %v5046_v52 = vrot.slane %v5034_v20, 4  ;;  %v5035_v36 = vmax.f32 %v5020_v4, 0.0  ;;  %v5024_v48 = vadd.f32 %v5023_v21, %v4941_v26  ;;  %v13336_v20 = vrot.slane %v5141_v58, 6  ;;  %v5676_v21 = vld [vmem:[%s15164_s15 + $0x4d0] sm:$0xff] }
 0x727   :  { %v5025_v5 = vpop.f32.mrf.mxu0 }
 0x728   :  { %5062 = vst [vmem:[#allocation2 + $0x30] sm:$0xf0] %v5046_v52  ;;  %v5047_v39 = vrot.slane %v5035_v36, 4  ;;  %v5036_v29 = vmax.f32 %v5024_v48, 0.0  ;;  %v5026_v42 = vadd.f32 %v5025_v5, %v4943_v33  ;;  %v5677_v33 = vld [vmem:[%s15164_s15 + $0x4d8] sm:$0xff]  ;;  %v5744_v36 = vld [vmem:[%s15164_s15 + $0x6f0] sm:$0xff]  ;;  %v13364_v58 = vsel %vm475_vm6, %v13336_v20, %v5151_v35 }
 0x729   :  { %v5029_v43 = vpop.f32.mrf.mxu0  ;;  %v5121_v5 = vsel %vm445_vm1, %v5118_v50, %v5120_v32  ;;  %v5739_v32 = vld [vmem:[%s15164_s15 + $0x6c8] sm:$0xff] }
 0x72a   :  { %5063 = vst [vmem:[#allocation2] sm:$0xf0] %v5047_v39  ;;  %v5048_v9 = vrot.slane %v5036_v29, 4  ;;  %v5037_v15 = vmax.f32 %v5026_v42, 0.0  ;;  %v5030_v60 = vadd.f32 %v5029_v43, %v4947_v6  ;;  %v5743_v6 = vld [vmem:[%s15164_s15 + $0x6e8] sm:$0xff]  ;;  %v5174_v29 = vpop.permute.xlu0 %5173  ;;  %v13373_v42 = vpop.permute.xlu1 %5177  ;;  %v5673_v43 = vld [vmem:[%s15164_s15 + $0x4b8] sm:$0xff] }
 0x72b   :  { %v5031_v54 = vpop.f32.mrf.mxu0 }
 0x72c   :  { %v13304_v8 = vsel %vm391_vm2, %v5046_v52, %v5048_v9  ;;  %v5050_v24 = vrot.slane %v5037_v15, 4  ;;  %v5038_v38 = vmax.f32 %v5030_v60, 0.0  ;;  %v5032_v53 = vadd.f32 %v5031_v54, %v4949_v0 }
 0x72d   :  { %5064 = vst [vmem:[#allocation2 + $0x18] sm:$0xff] %v13304_v8  ;;  %v13319_v1 = vmul.f32 %v5119_v23, %v13304_v8  ;;  %v5094_v17 = vmul.f32 %v13296_v46, %v13304_v8 }
 0x72e   :  { %v13310_v63 = vsel %vm391_vm2, %v5047_v39, %v5050_v24  ;;  %v5052_v61 = vrot.slane %v5038_v38, 4  ;;  %v5039_v2 = vmax.f32 %v5032_v53, 0.0  ;;  %v5672_v38 = vld [vmem:[%s15164_s15 + $0x4b0] sm:$0xff] }
 0x72f   :  { %5065 = vst [vmem:[#allocation2 + $0x10] sm:$0xff] %v13310_v63  ;;  %v5098_v19 = vld [vmem:[#allocation2 + $0x30] sm:$0xfe]  ;;  %v13316_v30 = vmul.f32 %v5119_v23, %v13310_v63  ;;  %v5095_v37 = vmul.f32 %v13296_v46, %v13310_v63  ;;  %v5369_v4 = vrot.slane %v13319_v1, 1  ;;  %v5675_v46 = vld [vmem:[%s15164_s15 + $0x4c8] sm:$0xff]  ;;  %v13383_v0 = vmul.f32 %v13364_v58, %v13310_v63  ;;  %v5738_v1 = vld [vmem:[%s15164_s15 + $0x6c0] sm:$0xff] }
 0x730   :  { %v5053_v47 = vsel %vm391_vm2, %v5048_v9, %v5052_v61  ;;  %v5054_v34 = vrot.slane %v5039_v2, 4  ;;  %v5068_v28 = vld [vmem:[#allocation2 + $0x30] sm:$0xff]  ;;  %v5125_v18 = vmul.f32 %v5117_v16, %v5098_v19  ;;  %v5742_v9 = vld [vmem:[%s15164_s15 + $0x6e0] sm:$0xff]  ;;  %v5741_v61 = vld [vmem:[%s15164_s15 + $0x6d8] sm:$0xff]  ;;  %v13397_v2 = vrot.slane %v5174_v29, 5 }
 0x731   :  { %5066 = vst [vmem:[#allocation2 + $0x8] sm:$0x3f] %v5053_v47  ;;  %v5069_v10 = vld [vmem:[#allocation2] sm:$0xff]  ;;  %v5092_v62 = vmul.f32 %v13294_v7, %v5068_v28  ;;  %v5372_v26 = vrot.slane %v13316_v30, 1  ;;  %v5184_v23 = vrot.slane %v13373_v42, 5  ;;  %v5671_v19 = vld [vmem:[%s15164_s15 + $0x4a8] sm:$0xff] }
 0x732   :  { %v5099_v11 = vld [vmem:[#allocation2] sm:$0xfe]  ;;  %v5055_v3 = vsel %vm391_vm2, %v5050_v24, %v5054_v34  ;;  %v5093_v14 = vmul.f32 %v13294_v7, %v5069_v10  ;;  %v5368_v22 = vrot.slane %v5125_v18, 1  ;;  %v5394_v28 = vrot.slane %v13383_v0, 2  ;;  %v5731_v29 = vld [vmem:[%s15164_s15 + $0x688] sm:$0xff] }
 0x733   :  { %v5126_v56 = vmul.f32 %v5117_v16, %v5099_v11  ;;  %5067 = vst [vmem:[#allocation2 + $0x20] sm:$0x3f] %v5055_v3  ;;  %v5132_v49 = vld [vmem:[#allocation2] sm:$0xfc]  ;;  %v5669_v11 = vld [vmem:[%s15164_s15 + $0x498] sm:$0xff] }
 0x734   :  { %6174 = vmatprep.mubr.f32.mxu1 %v5093_v14  ;;  %v5678_v7 = vld [vmem:[%s15164_s15 + $0x4e0] sm:$0xff]  ;;  %v5370_v52 = vsel %vm626_vm3, %v5368_v22, %v5369_v4  ;;  %v5159_v48 = vmul.f32 %v13336_v20, %v5132_v49  ;;  %v5668_v14 = vld [vmem:[%s15164_s15 + $0x490] sm:$0xff]  ;;  %v5667_v22 = vld [vmem:[%s15164_s15 + $0x488] sm:$0xff] }
 0x735   :  { %v5371_v41 = vrot.slane %v5126_v56, 1  ;;  %6175 = vmatmul.mubr.f32.vlgmr.msra.gmra.mxu1 %v5092_v62  ;;  %v5670_v34 = vld [vmem:[%s15164_s15 + $0x4a0] sm:$0xff]  ;;  %v5740_v56 = vld [vmem:[%s15164_s15 + $0x6d0] sm:$0xff] }
 0x736   :  { %6277 = vmatpush1.msra.mxu1 %v5680_v27  ;;  %6180 = vmatprep.mubr.f32.mxu1 %v5095_v37  ;;  %v5393_v53 = vrot.slane %v5159_v48, 2  ;;  %v5165_v10 = vld [vmem:[#allocation2] sm:$0xf8]  ;;  %v13429_v27 = vsel %vm505_vm4, %v13397_v2, %v5184_v23  ;;  %v5664_v49 = vld [vmem:[%s15164_s15 + $0x470] sm:$0xff]  ;;  %v5661_v48 = vld [vmem:[%s15164_s15 + $0x458] sm:$0xff] }
 0x737   :  { %v5373_v31 = vsel %vm626_vm3, %v5371_v41, %v5372_v26  ;;  %6278 = vmatprep.subr.mxu1 %v5679_v57  ;;  %v5192_v62 = vmul.f32 %v13397_v2, %v5165_v10  ;;  %v5666_v57 = vld [vmem:[%s15164_s15 + $0x480] sm:$0xff]  ;;  %v13448_v37 = vmul.f32 %v13429_v27, %v13310_v63  ;;  %v5665_v41 = vld [vmem:[%s15164_s15 + $0x478] sm:$0xff] }
 0x738   :  { %6257 = vmatprep.mubr.f32.mxu0 %v5373_v31  ;;  %6279 = vmatpush1.msra.mxu1 %v5678_v7  ;;  %v5100_v39 = vld [vmem:[#allocation2 + $0x8] sm:$0x7]  ;;  %v5722_v10 = vld [vmem:[%s15164_s15 + $0x640] sm:$0xff] }
 0x739   :  { %6258 = vmatmul.mubr.f32.vlgmr.msra.gmra.mxu0 %v5370_v52  ;;  %6280 = vmatprep.subr.mxu1 %v5677_v33  ;;  %v13388_v15 = vmul.f32 %v5121_v5, %v5100_v39  ;;  %v5072_v50 = vld [vmem:[#allocation2 + $0x8] sm:$0x3]  ;;  %v5415_v7 = vrot.slane %v5192_v62, 3  ;;  %v5734_v52 = vld [vmem:[%s15164_s15 + $0x6a0] sm:$0xff] }
 0x73a   :  { %6181 = vmatmul.mubr.f32.gmra.mxu1 %v5094_v17  ;;  %v5073_v60 = vld [vmem:[#allocation2 + $0x20] sm:$0x3]  ;;  %6360 = vmatpush1.msra.mxu0 %v5744_v36  ;;  %v5096_v47 = vmul.f32 %v13306_v45, %v5072_v50  ;;  %v5663_v33 = vld [vmem:[%s15164_s15 + $0x468] sm:$0xff]  ;;  %v5728_v50 = vld [vmem:[%s15164_s15 + $0x670] sm:$0xff] }
 0x73b   :  { %6281 = vmatpush1.msra.mxu1 %v5676_v21  ;;  %v5101_v54 = vld [vmem:[#allocation2 + $0x20] sm:$0x7]  ;;  %v5097_v24 = vmul.f32 %v13306_v45, %v5073_v60  ;;  %6361 = vmatprep.subr.mxu0 %v5743_v6  ;;  %v5374_v44 = vrot.slane %v13388_v15, 1  ;;  %v5395_v45 = vsel %vm594_vm7, %v5393_v53, %v5394_v28  ;;  %v5735_v31 = vld [vmem:[%s15164_s15 + $0x6a8] sm:$0xff]  ;;  %v5416_v21 = vrot.slane %v13448_v37, 3  ;;  %v5732_v6 = vld [vmem:[%s15164_s15 + $0x690] sm:$0xff] }
 0x73c   :  { %6282 = vmatprep.subr.mxu1 %v5675_v46  ;;  %v5130_v16 = vmul.f32 %v5121_v5, %v5101_v54  ;;  %6362 = vmatpush1.msra.mxu0 %v5742_v9  ;;  %v5662_v17 = vld [vmem:[%s15164_s15 + $0x460] sm:$0xff]  ;;  %v5733_v5 = vld [vmem:[%s15164_s15 + $0x698] sm:$0xff]  ;;  %v5660_v46 = vld [vmem:[%s15164_s15 + $0x450] sm:$0xff] }
 0x73d   :  { %6283 = vmatpush1.msra.mxu1 %v5674_v55  ;;  %6186 = vmatprep.mubr.f32.mxu1 %v5097_v24  ;;  %v5375_v30 = vsel %vm626_vm3, %v5369_v4, %v5374_v44  ;;  %v5736_v4 = vld [vmem:[%s15164_s15 + $0x6b0] sm:$0xff]  ;;  %v5417_v36 = vsel %vm564_vm5, %v5415_v7, %v5416_v21  ;;  %v5659_v39 = vld [vmem:[%s15164_s15 + $0x448] sm:$0xff]  ;;  %v5658_v55 = vld [vmem:[%s15164_s15 + $0x440] sm:$0xff] }
 0x73e   :  { %6284 = vmatprep.subr.mxu1 %v5673_v43  ;;  %v5376_v18 = vrot.slane %v5130_v16, 1  ;;  %6363 = vmatprep.subr.mxu0 %v5741_v61  ;;  %v5730_v43 = vld [vmem:[%s15164_s15 + $0x680] sm:$0xff]  ;;  %v5657_v9 = vld [vmem:[%s15164_s15 + $0x438] sm:$0xff]  ;;  %v5656_v60 = vld [vmem:[%s15164_s15 + $0x430] sm:$0xff] }
 0x73f   :  { %6285 = vmatpush1.msra.mxu1 %v5672_v38  ;;  %6364 = vmatpush1.msra.mxu0 %v5740_v56  ;;  %v5729_v15 = vld [vmem:[%s15164_s15 + $0x678] sm:$0xff]  ;;  %v5655_v54 = vld [vmem:[%s15164_s15 + $0x428] sm:$0xff]  ;;  %v5654_v38 = vld [vmem:[%s15164_s15 + $0x420] sm:$0xff] }
 0x740   :  { %6187 = vmatmul.mubr.f32.gmra.mxu1 %v5096_v47  ;;  %6286 = vmatprep.subr.mxu1 %v5671_v19  ;;  %v5377_v3 = vsel %vm626_vm3, %v5372_v26, %v5376_v18  ;;  %v5737_v26 = vld [vmem:[%s15164_s15 + $0x6b8] sm:$0xff]  ;;  %v5727_v24 = vld [vmem:[%s15164_s15 + $0x668] sm:$0xff]  ;;  %v5726_v53 = vld [vmem:[%s15164_s15 + $0x660] sm:$0xff] }
 0x741   :  { %6287 = vmatpush1.msra.mxu1 %v5670_v34  ;;  %6340 = vmatprep.mubr.f32.mxu1 %v5395_v45  ;;  %v5653_v16 = vld [vmem:[%s15164_s15 + $0x418] sm:$0xff]  ;;  %v5652_v19 = vld [vmem:[%s15164_s15 + $0x410] sm:$0xff]  ;;  %v5651_v34 = vld [vmem:[%s15164_s15 + $0x408] sm:$0xff] }
 0x742   :  { %6263 = vmatprep.mubr.f32.mxu0 %v5377_v3  ;;  %6288 = vmatprep.subr.mxu1 %v5669_v11  ;;  %v5725_v61 = vld [vmem:[%s15164_s15 + $0x658] sm:$0xff]  ;;  %v5724_v47 = vld [vmem:[%s15164_s15 + $0x650] sm:$0xff]  ;;  %v5711_v56 = vld [vmem:[%s15164_s15 + $0x5e8] sm:$0xff] }
 0x743   :  { %6264 = vmatmul.mubr.f32.gmra.mxu0 %v5375_v30  ;;  %6289 = vmatpush1.msra.mxu1 %v5668_v14  ;;  %v5713_v11 = vld [vmem:[%s15164_s15 + $0x5f8] sm:$0xff]  ;;  %v5712_v3 = vld [vmem:[%s15164_s15 + $0x5f0] sm:$0xff]  ;;  %v5719_v62 = vld [vmem:[%s15164_s15 + $0x628] sm:$0xff] }
 0x744   :  { %6269 = vmatprep.mubr.f32.mxu0 %v5376_v18  ;;  %6290 = vmatprep.subr.mxu1 %v5667_v22  ;;  %v5723_v18 = vld [vmem:[%s15164_s15 + $0x648] sm:$0xff]  ;;  %v5721_v45 = vld [vmem:[%s15164_s15 + $0x638] sm:$0xff]  ;;  %v5720_v14 = vld [vmem:[%s15164_s15 + $0x630] sm:$0xff] }
 0x745   :  { %6365 = vmatprep.subr.mxu0 %v5739_v32  ;;  %6291 = vmatpush1.msra.mxu1 %v5666_v57  ;;  %v5710_v30 = vld [vmem:[%s15164_s15 + $0x5e0] sm:$0xff]  ;;  %v5709_v32 = vld [vmem:[%s15164_s15 + $0x5d8] sm:$0xff] }
 0x746   :  { %6366 = vmatpush1.msra.mxu0 %v5738_v1  ;;  %6292 = vmatprep.subr.mxu1 %v5665_v41  ;;  %v5718_v22 = vld [vmem:[%s15164_s15 + $0x620] sm:$0xff]  ;;  %v5717_v57 = vld [vmem:[%s15164_s15 + $0x618] sm:$0xff]  ;;  %v5708_v1 = vld [vmem:[%s15164_s15 + $0x5d0] sm:$0xff] }
 0x747   :  { %6367 = vmatprep.subr.mxu0 %v5737_v26  ;;  %6270 = vmatmul.mubr.f32.gmra.mxu0 %v5374_v44  ;;  %v5650_v44 = vld [vmem:[%s15164_s15 + $0x400] sm:$0xff]  ;;  %v5716_v41 = vld [vmem:[%s15164_s15 + $0x610] sm:$0xff]  ;;  %v5707_v26 = vld [vmem:[%s15164_s15 + $0x5c8] sm:$0xff] }
 0x748   :  { %6293 = vmatpush1.msra.mxu1 %v5664_v49  ;;  %6368 = vmatpush1.msra.mxu0 %v5736_v4  ;;  %v5715_v49 = vld [vmem:[%s15164_s15 + $0x608] sm:$0xff]  ;;  %v5706_v7 = vld [vmem:[%s15164_s15 + $0x5c0] sm:$0xff] }
 0x749   :  { %6294 = vmatprep.subr.mxu1 %v5663_v33  ;;  %6369 = vmatprep.subr.mxu0 %v5735_v31  ;;  %v5714_v4 = vld [vmem:[%s15164_s15 + $0x600] sm:$0xff]  ;;  %v5705_v33 = vld [vmem:[%s15164_s15 + $0x5b8] sm:$0xff] }
 0x74a   :  { %6423 = vmatprep.mubr.f32.mxu0 %v5417_v36  ;;  %6295 = vmatpush1.msra.mxu1 %v5662_v17  ;;  %v5777_v31 = vld [vmem:[%s15164_s15 + $0x7f8] sm:$0xff]  ;;  %v5704_v17 = vld [vmem:[%s15164_s15 + $0x5b0] sm:$0xff]  ;;  %v5703_v36 = vld [vmem:[%s15164_s15 + $0x5a8] sm:$0xff] }
 0x74b   :  { %6370 = vmatpush1.msra.mxu0 %v5734_v52  ;;  %6296 = vmatprep.subr.mxu1 %v5661_v48  ;;  %v5776_v52 = vld [vmem:[%s15164_s15 + $0x7f0] sm:$0xff]  ;;  %v5775_v48 = vld [vmem:[%s15164_s15 + $0x7e8] sm:$0xff]  ;;  %v5750_v0 = vld [vmem:[%s15164_s15 + $0x720] sm:$0xff] }
 0x74c   :  { %6371 = vmatprep.subr.mxu0 %v5733_v5  ;;  %6297 = vmatpush1.msra.mxu1 %v5660_v46  ;;  %v5702_v5 = vld [vmem:[%s15164_s15 + $0x5a0] sm:$0xff] }
 0x74d   :  { %6372 = vmatpush1.msra.mxu0 %v5732_v6  ;;  %6298 = vmatprep.subr.mxu1 %v5659_v39  ;;  %v5774_v46 = vld [vmem:[%s15164_s15 + $0x7e0] sm:$0xff]  ;;  %v5701_v6 = vld [vmem:[%s15164_s15 + $0x598] sm:$0xff] }
 0x74e   :  { %6373 = vmatprep.subr.mxu0 %v5731_v29  ;;  %6299 = vmatpush1.msra.mxu1 %v5658_v55  ;;  %v5773_v39 = vld [vmem:[%s15164_s15 + $0x7d8] sm:$0xff]  ;;  %v5700_v29 = vld [vmem:[%s15164_s15 + $0x590] sm:$0xff]  ;;  %v5798_v37 = vld [vmem:[%s15164_s15 + $0x8a0] sm:$0xff] }
 0x74f   :  { %6374 = vmatpush1.msra.mxu0 %v5730_v43  ;;  %6300 = vmatprep.subr.mxu1 %v5657_v9  ;;  %v5772_v55 = vld [vmem:[%s15164_s15 + $0x7d0] sm:$0xff]  ;;  %v5699_v43 = vld [vmem:[%s15164_s15 + $0x588] sm:$0xff] }
 0x750   :  { %6375 = vmatprep.subr.mxu0 %v5729_v15  ;;  %6301 = vmatpush1.msra.mxu1 %v5656_v60  ;;  %v5771_v9 = vld [vmem:[%s15164_s15 + $0x7c8] sm:$0xff]  ;;  %v5698_v15 = vld [vmem:[%s15164_s15 + $0x580] sm:$0xff] }
 0x751   :  { %6376 = vmatpush1.msra.mxu0 %v5728_v50  ;;  %6302 = vmatprep.subr.mxu1 %v5655_v54  ;;  %v5770_v60 = vld [vmem:[%s15164_s15 + $0x7c0] sm:$0xff]  ;;  %v5697_v50 = vld [vmem:[%s15164_s15 + $0x578] sm:$0xff] }
 0x752   :  { %6377 = vmatprep.subr.mxu0 %v5727_v24  ;;  %6303 = vmatpush1.msra.mxu1 %v5654_v38  ;;  %v5769_v54 = vld [vmem:[%s15164_s15 + $0x7b8] sm:$0xff]  ;;  %v5696_v24 = vld [vmem:[%s15164_s15 + $0x570] sm:$0xff] }
 0x753   :  { %6378 = vmatpush1.msra.mxu0 %v5726_v53  ;;  %6304 = vmatprep.subr.mxu1 %v5653_v16  ;;  %v5768_v38 = vld [vmem:[%s15164_s15 + $0x7b0] sm:$0xff]  ;;  %v5695_v53 = vld [vmem:[%s15164_s15 + $0x568] sm:$0xff] }
 0x754   :  { %6379 = vmatprep.subr.mxu0 %v5725_v61  ;;  %6305 = vmatpush1.msra.mxu1 %v5652_v19  ;;  %v5767_v16 = vld [vmem:[%s15164_s15 + $0x7a8] sm:$0xff]  ;;  %v5694_v61 = vld [vmem:[%s15164_s15 + $0x560] sm:$0xff] }
 0x755   :  { %6380 = vmatpush1.msra.mxu0 %v5724_v47  ;;  %6306 = vmatprep.subr.mxu1 %v5651_v34  ;;  %v5766_v19 = vld [vmem:[%s15164_s15 + $0x7a0] sm:$0xff]  ;;  %v5693_v47 = vld [vmem:[%s15164_s15 + $0x558] sm:$0xff] }
 0x756   :  { %6381 = vmatprep.subr.mxu0 %v5723_v18  ;;  %6307 = vmatpush1.msra.mxu1 %v5650_v44  ;;  %v5765_v34 = vld [vmem:[%s15164_s15 + $0x798] sm:$0xff]  ;;  %v5692_v18 = vld [vmem:[%s15164_s15 + $0x550] sm:$0xff] }
 0x757   :  { %6382 = vmatpush1.msra.mxu0 %v5722_v10  ;;  %6308 = vmatprep.subr.mxu1 %v5713_v11  ;;  %v5764_v44 = vld [vmem:[%s15164_s15 + $0x790] sm:$0xff]  ;;  %v5153_v10 = vrot.slane %v13324_v59, 6  ;;  %v5691_v11 = vld [vmem:[%s15164_s15 + $0x548] sm:$0xff]  ;;  %v5762_v59 = vld [vmem:[%s15164_s15 + $0x780] sm:$0xff] }
 0x758   :  { %6383 = vmatprep.subr.mxu0 %v5721_v45  ;;  %6309 = vmatpush2.msra.mxu1 %v5712_v3  ;;  %v5763_v45 = vld [vmem:[%s15164_s15 + $0x788] sm:$0xff]  ;;  %v5690_v3 = vld [vmem:[%s15164_s15 + $0x540] sm:$0xff] }
 0x759   :  { %6384 = vmatpush1.msra.mxu0 %v5720_v14  ;;  %6310 = vmatprep.subr.mxu1 %v5711_v56  ;;  %v5131_v14 = vld [vmem:[#allocation2 + $0x30] sm:$0xfc]  ;;  %v13695_v56 = vpop.permute.xlu0 %5206 }
 0x75a   :  { %6385 = vmatprep.subr.mxu0 %v5719_v62  ;;  %6311 = vmatpush2.msra.mxu1 %v5710_v30  ;;  %v5689_v62 = vld [vmem:[%s15164_s15 + $0x538] sm:$0xff] }
 0x75b   :  { %6386 = vmatpush1.msra.mxu0 %v5718_v22  ;;  %6312 = vmatprep.subr.mxu1 %v5709_v32  ;;  %v5761_v30 = vld [vmem:[%s15164_s15 + $0x778] sm:$0xff]  ;;  %v5134_v22 = vld [vmem:[#allocation2 + $0x20] sm:$0xf]  ;;  %v5688_v32 = vld [vmem:[%s15164_s15 + $0x530] sm:$0xff] }
 0x75c   :  { %6387 = vmatprep.subr.mxu0 %v5717_v57  ;;  %6313 = vmatpush2.msra.mxu1 %v5708_v1  ;;  %v5760_v57 = vld [vmem:[%s15164_s15 + $0x770] sm:$0xff]  ;;  %v5154_v1 = vsel %vm475_vm6, %v5151_v35, %v5153_v10  ;;  %v5758_v35 = vld [vmem:[%s15164_s15 + $0x760] sm:$0xff] }
 0x75d   :  { %6388 = vmatpush1.msra.mxu0 %v5716_v41  ;;  %6314 = vmatprep.subr.mxu1 %v5707_v26  ;;  %v5687_v41 = vld [vmem:[%s15164_s15 + $0x528] sm:$0xff]  ;;  %v5198_v10 = vld [vmem:[#allocation2] sm:$0xf0] }
 0x75e   :  { %6389 = vmatprep.subr.mxu0 %v5715_v49  ;;  %6315 = vmatpush2.msra.mxu1 %v5706_v7  ;;  %v5759_v26 = vld [vmem:[%s15164_s15 + $0x768] sm:$0xff]  ;;  %v5158_v49 = vmul.f32 %v13336_v20, %v5131_v14  ;;  %v13725_v7 = vmul.f32 %v5154_v1, %v5134_v22  ;;  %v5757_v20 = vld [vmem:[%s15164_s15 + $0x758] sm:$0xff]  ;;  %v5748_v14 = vld [vmem:[%s15164_s15 + $0x710] sm:$0xff] }
 0x75f   :  { %6390 = vmatpush1.msra.mxu0 %v5714_v4  ;;  %6316 = vmatprep.subr.mxu1 %v5705_v33  ;;  %v5685_v4 = vld [vmem:[%s15164_s15 + $0x518] sm:$0xff]  ;;  %v5160_v33 = vmul.f32 %v13364_v58, %v13304_v8  ;;  %v5755_v58 = vld [vmem:[%s15164_s15 + $0x748] sm:$0xff] }
 0x760   :  { %6391 = vmatprep.subr.mxu0 %v5777_v31  ;;  %6317 = vmatpush2.msra.mxu1 %v5704_v17  ;;  %v5133_v31 = vld [vmem:[#allocation2 + $0x8] sm:$0xf]  ;;  %v5684_v17 = vld [vmem:[%s15164_s15 + $0x510] sm:$0xff] }
 0x761   :  { %6392 = vmatpush2.msra.mxu0 %v5776_v52  ;;  %6318 = vmatprep.subr.mxu1 %v5703_v36  ;;  %v5756_v52 = vld [vmem:[%s15164_s15 + $0x750] sm:$0xff]  ;;  %v5182_v36 = vpop.permute.xlu0 %5181  ;;  %v5803_v22 = vld [vmem:[%s15164_s15 + $0x8c8] sm:$0xff] }
 0x762   :  { %6393 = vmatprep.subr.mxu0 %v5775_v48  ;;  %6319 = vmatpush2.msra.mxu1 %v5702_v5  ;;  %v5683_v48 = vld [vmem:[%s15164_s15 + $0x508] sm:$0xff]  ;;  %v5390_v5 = vrot.slane %v5158_v49, 2 }
 0x763   :  { %6394 = vmatpush2.msra.mxu0 %v5774_v46  ;;  %6320 = vmatprep.subr.mxu1 %v5701_v6  ;;  %v13747_v46 = vpop.permute.xlu1 %5210  ;;  %v5682_v6 = vld [vmem:[%s15164_s15 + $0x500] sm:$0xff] }
 0x764   :  { %6395 = vmatprep.subr.mxu0 %v5773_v39  ;;  %6321 = vmatpush2.msra.mxu1 %v5700_v29  ;;  %v5754_v39 = vld [vmem:[%s15164_s15 + $0x740] sm:$0xff]  ;;  %v5398_v29 = vrot.slane %v13725_v7, 2 }
 0x765   :  { %6396 = vmatpush2.msra.mxu0 %v5772_v55  ;;  %6322 = vmatprep.subr.mxu1 %v5699_v43  ;;  %v13756_v55 = vmul.f32 %v5154_v1, %v5133_v31  ;;  %v5391_v43 = vrot.slane %v5160_v33, 2  ;;  %v5802_v1 = vld [vmem:[%s15164_s15 + $0x8c0] sm:$0xff] }
 0x766   :  { %6397 = vmatprep.subr.mxu0 %v5771_v9  ;;  %6323 = vmatpush2.msra.mxu1 %v5698_v15  ;;  %v5753_v9 = vld [vmem:[%s15164_s15 + $0x738] sm:$0xff]  ;;  %v5186_v15 = vrot.slane %v5182_v36, 5 }
 0x767   :  { %6398 = vmatpush2.msra.mxu0 %v5770_v60  ;;  %6324 = vmatprep.subr.mxu1 %v5697_v50  ;;  %v5809_v60 = vld [vmem:[%s15164_s15 + $0x8f8] sm:$0xff]  ;;  %v5164_v50 = vld [vmem:[#allocation2 + $0x30] sm:$0xf8] }
 0x768   :  { %6399 = vmatprep.subr.mxu0 %v5769_v54  ;;  %6325 = vmatpush2.msra.mxu1 %v5696_v24  ;;  %v5392_v54 = vsel %vm594_vm7, %v5390_v5, %v5391_v43  ;;  %v5752_v24 = vld [vmem:[%s15164_s15 + $0x730] sm:$0xff] }
 0x769   :  { %6400 = vmatpush2.msra.mxu0 %v5768_v38  ;;  %6326 = vmatprep.subr.mxu1 %v5695_v53  ;;  %v5808_v38 = vld [vmem:[%s15164_s15 + $0x8f0] sm:$0xff]  ;;  %v5399_v53 = vsel %vm594_vm7, %v5394_v28, %v5398_v29  ;;  %v5806_v28 = vld [vmem:[%s15164_s15 + $0x8e0] sm:$0xff] }
 0x76a   :  { %6401 = vmatprep.subr.mxu0 %v5767_v16  ;;  %6327 = vmatpush2.msra.mxu1 %v5694_v61  ;;  %v5751_v16 = vld [vmem:[%s15164_s15 + $0x728] sm:$0xff] }
 0x76b   :  { %6402 = vmatpush2.msra.mxu0 %v5766_v19  ;;  %6328 = vmatprep.subr.mxu1 %v5693_v47  ;;  %v5807_v61 = vld [vmem:[%s15164_s15 + $0x8e8] sm:$0xff]  ;;  %v5396_v19 = vrot.slane %v13756_v55, 2  ;;  %v5167_v47 = vld [vmem:[#allocation2 + $0x20] sm:$0x1f]  ;;  %v5231_v55 = vld [vmem:[#allocation2] sm:$0xe0] }
 0x76c   :  { %6403 = vmatprep.subr.mxu0 %v5765_v34  ;;  %6329 = vmatpush2.msra.mxu1 %v5692_v18  ;;  %v13782_v34 = vrot.slane %v13695_v56, 4  ;;  %v5217_v18 = vrot.slane %v13747_v46, 4  ;;  %v5804_v56 = vld [vmem:[%s15164_s15 + $0x8d0] sm:$0xff]  ;;  %v5814_v46 = vld [vmem:[%s15164_s15 + $0x920] sm:$0xff] }
 0x76d   :  { %6404 = vmatpush2.msra.mxu0 %v5764_v44  ;;  %6330 = vmatprep.subr.mxu1 %v5691_v11  ;;  %v5191_v44 = vmul.f32 %v13397_v2, %v5164_v50  ;;  %v5187_v11 = vsel %vm505_vm4, %v5184_v23, %v5186_v15  ;;  %v13805_v2 = vmul.f32 %v13429_v27, %v13304_v8  ;;  %v5747_v27 = vld [vmem:[%s15164_s15 + $0x708] sm:$0xff]  ;;  %v5869_v15 = vld [vmem:[%s15164_s15 + $0xad8] sm:$0xff] }
 0x76e   :  { %6405 = vmatprep.subr.mxu0 %v5763_v45  ;;  %6331 = vmatpush2.msra.mxu1 %v5690_v3  ;;  %v13795_v45 = vpop.permute.xlu1 %5214  ;;  %v5749_v3 = vld [vmem:[%s15164_s15 + $0x718] sm:$0xff]  ;;  %v13807_v42 = vmul.f32 %v5187_v11, %v5167_v47  ;;  %v5397_v23 = vsel %vm594_vm7, %v5391_v43, %v5396_v19  ;;  %v13821_v8 = vsel %vm391_vm2, %v13782_v34, %v5217_v18  ;;  %v5866_v47 = vld [vmem:[%s15164_s15 + $0xac0] sm:$0xff] }
 0x76f   :  { %6406 = vmatpush2.msra.mxu0 %v5762_v59  ;;  %6332 = vmatprep.subr.mxu1 %v5689_v62  ;;  %v5805_v59 = vld [vmem:[%s15164_s15 + $0x8d8] sm:$0xff]  ;;  %v5225_v62 = vmul.f32 %v13782_v34, %v5198_v10  ;;  %v5413_v49 = vrot.slane %v13805_v2, 3  ;;  %v5864_v10 = vld [vmem:[%s15164_s15 + $0xab0] sm:$0xff] }
 0x770   :  { %6407 = vmatprep.subr.mxu0 %v5761_v30  ;;  %6333 = vmatpush2.msra.mxu1 %v5688_v32  ;;  %v5166_v30 = vld [vmem:[#allocation2 + $0x8] sm:$0x1f]  ;;  %v5412_v32 = vrot.slane %v5191_v44, 3  ;;  %v5792_v44 = vld [vmem:[%s15164_s15 + $0x870] sm:$0xff] }
 0x771   :  { %6408 = vmatpush2.msra.mxu0 %v5760_v57  ;;  %6334 = vmatprep.subr.mxu1 %v5687_v41  ;;  %v5746_v57 = vld [vmem:[%s15164_s15 + $0x700] sm:$0xff]  ;;  %v13837_v41 = vmul.f32 %v13821_v8, %v13310_v63  ;;  %v5437_v33 = vrot.slane %v5225_v62, 4  ;;  %v5788_v62 = vld [vmem:[%s15164_s15 + $0x850] sm:$0xff] }
 0x772   :  { %6409 = vmatprep.subr.mxu0 %v5759_v26  ;;  %6335 = vmatpush2.msra.mxu1 %v5686_v25  ;;  %v5240_v26 = vpop.permute.xlu0 %5239  ;;  %v5420_v25 = vrot.slane %v13807_v42, 3  ;;  %v13843_v7 = vpop.permute.xlu1 %5243  ;;  %v5414_v31 = vsel %vm564_vm5, %v5412_v32, %v5413_v49  ;;  %v5790_v42 = vld [vmem:[%s15164_s15 + $0x860] sm:$0xff] }
 0x773   :  { %6410 = vmatpush2.msra.mxu0 %v5758_v35  ;;  %6336 = vmatprep.subr.mxu1 %v5685_v4  ;;  %v13841_v35 = vmul.f32 %v5187_v11, %v5166_v30  ;;  %v5801_v4 = vld [vmem:[%s15164_s15 + $0x8b8] sm:$0xff]  ;;  %v5438_v36 = vrot.slane %v13837_v41, 4  ;;  %v5860_v30 = vld [vmem:[%s15164_s15 + $0xa90] sm:$0xff]  ;;  %v5786_v32 = vld [vmem:[%s15164_s15 + $0x840] sm:$0xff] }
 0x774   :  { %6411 = vmatprep.subr.mxu0 %v5757_v20  ;;  %6337 = vmatpush2.msra.mxu1 %v5684_v17  ;;  %v5873_v20 = vld [vmem:[%s15164_s15 + $0xaf8] sm:$0xff]  ;;  %v5800_v17 = vld [vmem:[%s15164_s15 + $0x8b0] sm:$0xff]  ;;  %v5421_v5 = vsel %vm564_vm5, %v5416_v21, %v5420_v25  ;;  %v5870_v21 = vld [vmem:[%s15164_s15 + $0xae0] sm:$0xff] }
 0x775   :  { %6412 = vmatpush2.msra.mxu0 %v5756_v52  ;;  %6338 = vmatprep.subr.mxu1 %v5683_v48  ;;  %v13855_v52 = vrot.slane %v5240_v26, 3  ;;  %v5872_v48 = vld [vmem:[%s15164_s15 + $0xaf0] sm:$0xff]  ;;  %v5439_v43 = vsel %vm391_vm2, %v5437_v33, %v5438_v36  ;;  %v5857_v26 = vld [vmem:[%s15164_s15 + $0xa78] sm:$0xff]  ;;  %v5854_v33 = vld [vmem:[%s15164_s15 + $0xa60] sm:$0xff] }
 0x776   :  { %6413 = vmatprep.subr.mxu0 %v5755_v58  ;;  %6339 = vmatpush2.msra.mxu1 %v5682_v6  ;;  %v5250_v58 = vrot.slane %v13843_v7, 3  ;;  %v5799_v6 = vld [vmem:[%s15164_s15 + $0x8a8] sm:$0xff]  ;;  %v5878_v41 = vld [vmem:[%s15164_s15 + $0xb20] sm:$0xff] }
 0x777   :  { %6414 = vmatpush2.msra.mxu0 %v5754_v39  ;;  %6341 = vmatmul.mubr.f32.vlgmr.msra.gmra.mxu1 %v5392_v54  ;;  %v5871_v39 = vld [vmem:[%s15164_s15 + $0xae8] sm:$0xff] }
 0x778   :  { %6415 = vmatprep.subr.mxu0 %v5753_v9  ;;  %6442 = vmatprep.subr.mxu1 %v5809_v60  ;;  %v5797_v9 = vld [vmem:[%s15164_s15 + $0x898] sm:$0xff]  ;;  %v5258_v60 = vmul.f32 %v13855_v52, %v5231_v55  ;;  %v13892_v50 = vsel %vm564_vm5, %v13855_v52, %v5250_v58  ;;  %v5850_v55 = vld [vmem:[%s15164_s15 + $0xa40] sm:$0xff] }
 0x779   :  { %6346 = vmatprep.mubr.f32.mxu1 %v5399_v53  ;;  %6416 = vmatpush2.msra.mxu0 %v5752_v24  ;;  %v5796_v24 = vld [vmem:[%s15164_s15 + $0x890] sm:$0xff]  ;;  %v5795_v53 = vld [vmem:[%s15164_s15 + $0x888] sm:$0xff] }
 0x77a   :  { %6443 = vmatpush1.msra.mxu1 %v5808_v38  ;;  %6417 = vmatprep.subr.mxu0 %v5751_v16  ;;  %v5868_v38 = vld [vmem:[%s15164_s15 + $0xad0] sm:$0xff]  ;;  %v5867_v16 = vld [vmem:[%s15164_s15 + $0xac8] sm:$0xff] }
 0x77b   :  { %6444 = vmatprep.subr.mxu1 %v5807_v61  ;;  %6418 = vmatpush2.msra.mxu0 %v5750_v0  ;;  %v13909_v61 = vmul.f32 %v13892_v50, %v13310_v63  ;;  %v5793_v0 = vld [vmem:[%s15164_s15 + $0x878] sm:$0xff] }
 0x77c   :  { %6445 = vmatpush1.msra.mxu1 %v5806_v28  ;;  %6419 = vmatprep.subr.mxu0 %v5749_v3  ;;  %v5459_v28 = vrot.slane %v5258_v60, 5  ;;  %v5865_v63 = vld [vmem:[%s15164_s15 + $0xab8] sm:$0xff]  ;;  %v5791_v3 = vld [vmem:[%s15164_s15 + $0x868] sm:$0xff] }
 0x77d   :  { %6347 = vmatmul.mubr.f32.gmra.mxu1 %v5397_v23  ;;  %6446 = vmatprep.subr.mxu1 %v5805_v59  ;;  %v5460_v11 = vrot.slane %v13909_v61, 5  ;;  %v5863_v59 = vld [vmem:[%s15164_s15 + $0xaa8] sm:$0xff]  ;;  %v5862_v23 = vld [vmem:[%s15164_s15 + $0xaa0] sm:$0xff] }
 0x77e   :  { %6352 = vmatprep.mubr.f32.mxu1 %v5398_v29  ;;  %6420 = vmatpush2.msra.mxu0 %v5748_v14  ;;  %v5418_v29 = vrot.slane %v13841_v35, 3  ;;  %v5789_v14 = vld [vmem:[%s15164_s15 + $0x858] sm:$0xff]  ;;  %v5783_v35 = vld [vmem:[%s15164_s15 + $0x828] sm:$0xff] }
 0x77f   :  { %6447 = vmatpush1.msra.mxu1 %v5804_v56  ;;  %6421 = vmatprep.subr.mxu0 %v5747_v27  ;;  %v5461_v2 = vsel %vm505_vm4, %v5459_v28, %v5460_v11  ;;  %v5861_v56 = vld [vmem:[%s15164_s15 + $0xa98] sm:$0xff]  ;;  %v5787_v27 = vld [vmem:[%s15164_s15 + $0x848] sm:$0xff]  ;;  %v5834_v28 = vld [vmem:[%s15164_s15 + $0x9c0] sm:$0xff] }
 0x780   :  { %6448 = vmatprep.subr.mxu1 %v5803_v22  ;;  %6422 = vmatpush2.msra.mxu0 %v5746_v57  ;;  %v5419_v54 = vsel %vm564_vm5, %v5413_v49, %v5418_v29  ;;  %v5859_v22 = vld [vmem:[%s15164_s15 + $0xa88] sm:$0xff]  ;;  %v5858_v57 = vld [vmem:[%s15164_s15 + $0xa80] sm:$0xff]  ;;  %v5784_v49 = vld [vmem:[%s15164_s15 + $0x830] sm:$0xff] }
 0x781   :  { %6449 = vmatpush1.msra.mxu1 %v5802_v1  ;;  %6424 = vmatmul.mubr.f32.vlgmr.msra.gmra.mxu0 %v5414_v31  ;;  %v5785_v1 = vld [vmem:[%s15164_s15 + $0x838] sm:$0xff]  ;;  %v5847_v60 = vld [vmem:[%s15164_s15 + $0xa28] sm:$0xff] }
 0x782   :  { %6353 = vmatmul.mubr.f32.gmra.mxu1 %v5396_v19  ;;  %6450 = vmatprep.subr.mxu1 %v5801_v4  ;;  %v5794_v19 = vld [vmem:[%s15164_s15 + $0x880] sm:$0xff]  ;;  %v5855_v4 = vld [vmem:[%s15164_s15 + $0xa68] sm:$0xff]  ;;  %v5781_v31 = vld [vmem:[%s15164_s15 + $0x818] sm:$0xff] }
 0x783   :  { %6525 = vmatprep.subr.mxu0 %v5873_v20  ;;  %6429 = vmatprep.mubr.f32.mxu0 %v5421_v5  ;;  %v5782_v20 = vld [vmem:[%s15164_s15 + $0x820] sm:$0xff]  ;;  %v5852_v5 = vld [vmem:[%s15164_s15 + $0xa50] sm:$0xff] }
 0x784   :  { %6451 = vmatpush1.msra.mxu1 %v5800_v17  ;;  %6506 = vmatprep.mubr.f32.mxu1 %v5439_v43  ;;  %v5853_v17 = vld [vmem:[%s15164_s15 + $0xa58] sm:$0xff] }
 0x785   :  { %6526 = vmatpush1.msra.mxu0 %v5872_v48  ;;  %6452 = vmatprep.subr.mxu1 %v5799_v6  ;;  %v5780_v48 = vld [vmem:[%s15164_s15 + $0x810] sm:$0xff]  ;;  %v5779_v6 = vld [vmem:[%s15164_s15 + $0x808] sm:$0xff]  ;;  %v5841_v43 = vld [vmem:[%s15164_s15 + $0x9f8] sm:$0xff] }
 0x786   :  { %6527 = vmatprep.subr.mxu0 %v5871_v39  ;;  %6453 = vmatpush1.msra.mxu1 %v5798_v37  ;;  %v5851_v39 = vld [vmem:[%s15164_s15 + $0xa48] sm:$0xff]  ;;  %v5849_v37 = vld [vmem:[%s15164_s15 + $0xa38] sm:$0xff] }
 0x787   :  { %6528 = vmatpush1.msra.mxu0 %v5870_v21  ;;  %6454 = vmatprep.subr.mxu1 %v5797_v9  ;;  %v5840_v21 = vld [vmem:[%s15164_s15 + $0x9f0] sm:$0xff] }
 0x788   :  { %6430 = vmatmul.mubr.f32.gmra.mxu0 %v5419_v54  ;;  %6529 = vmatprep.subr.mxu0 %v5869_v15  ;;  %v5848_v9 = vld [vmem:[%s15164_s15 + $0xa30] sm:$0xff]  ;;  %v5839_v15 = vld [vmem:[%s15164_s15 + $0x9e8] sm:$0xff]  ;;  %v5838_v54 = vld [vmem:[%s15164_s15 + $0x9e0] sm:$0xff] }
 0x789   :  { %6435 = vmatprep.mubr.f32.mxu0 %v5420_v25  ;;  %6455 = vmatpush1.msra.mxu1 %v5796_v24  ;;  %v5856_v25 = vld [vmem:[%s15164_s15 + $0xa70] sm:$0xff]  ;;  %v5846_v24 = vld [vmem:[%s15164_s15 + $0xa20] sm:$0xff] }
 0x78a   :  { %6530 = vmatpush1.msra.mxu0 %v5868_v38  ;;  %6456 = vmatprep.subr.mxu1 %v5795_v53  ;;  %v5837_v38 = vld [vmem:[%s15164_s15 + $0x9d8] sm:$0xff] }
 0x78b   :  { %6531 = vmatprep.subr.mxu0 %v5867_v16  ;;  %6457 = vmatpush1.msra.mxu1 %v5794_v19  ;;  %v5845_v53 = vld [vmem:[%s15164_s15 + $0xa18] sm:$0xff]  ;;  %v5836_v16 = vld [vmem:[%s15164_s15 + $0x9d0] sm:$0xff] }
 0x78c   :  { %6532 = vmatpush1.msra.mxu0 %v5866_v47  ;;  %6458 = vmatprep.subr.mxu1 %v5793_v0  ;;  %v5844_v19 = vld [vmem:[%s15164_s15 + $0xa10] sm:$0xff]  ;;  %v5835_v47 = vld [vmem:[%s15164_s15 + $0x9c8] sm:$0xff] }
 0x78d   :  { %6436 = vmatmul.mubr.f32.gmra.mxu0 %v5418_v29  ;;  %6533 = vmatprep.subr.mxu0 %v5865_v63  ;;  %v5778_v29 = vld [vmem:[%s15164_s15 + $0x800] sm:$0xff]  ;;  %v5843_v0 = vld [vmem:[%s15164_s15 + $0xa08] sm:$0xff] }
 0x78e   :  { %6459 = vmatpush1.msra.mxu1 %v5792_v44  ;;  %6534 = vmatpush1.msra.mxu0 %v5864_v10  ;;  %v5842_v63 = vld [vmem:[%s15164_s15 + $0xa00] sm:$0xff]  ;;  %v5833_v44 = vld [vmem:[%s15164_s15 + $0x9b8] sm:$0xff] }
 0x78f   :  { %6589 = vmatprep.mubr.f32.mxu0 %v5461_v2  ;;  %6460 = vmatprep.subr.mxu1 %v5791_v3  ;;  %v5905_v10 = vld [vmem:[%s15164_s15 + $0xbf8] sm:$0xff]  ;;  %v5832_v3 = vld [vmem:[%s15164_s15 + $0x9b0] sm:$0xff]  ;;  %v5831_v2 = vld [vmem:[%s15164_s15 + $0x9a8] sm:$0xff] }
 0x790   :  { %6535 = vmatprep.subr.mxu0 %v5863_v59  ;;  %6461 = vmatpush1.msra.mxu1 %v5790_v42  ;;  %v5904_v59 = vld [vmem:[%s15164_s15 + $0xbf0] sm:$0xff]  ;;  %v5903_v42 = vld [vmem:[%s15164_s15 + $0xbe8] sm:$0xff] }
 0x791   :  { %6536 = vmatpush1.msra.mxu0 %v5862_v23  ;;  %6462 = vmatprep.subr.mxu1 %v5789_v14  ;;  %v5830_v23 = vld [vmem:[%s15164_s15 + $0x9a0] sm:$0xff] }
 0x792   :  { %6537 = vmatprep.subr.mxu0 %v5861_v56  ;;  %6463 = vmatpush1.msra.mxu1 %v5788_v62  ;;  %v5902_v14 = vld [vmem:[%s15164_s15 + $0xbe0] sm:$0xff]  ;;  %v5829_v56 = vld [vmem:[%s15164_s15 + $0x998] sm:$0xff] }
 0x793   :  { %6538 = vmatpush1.msra.mxu0 %v5860_v30  ;;  %6464 = vmatprep.subr.mxu1 %v5787_v27  ;;  %v5901_v62 = vld [vmem:[%s15164_s15 + $0xbd8] sm:$0xff]  ;;  %v5828_v30 = vld [vmem:[%s15164_s15 + $0x990] sm:$0xff] }
 0x794   :  { %6539 = vmatprep.subr.mxu0 %v5859_v22  ;;  %6465 = vmatpush1.msra.mxu1 %v5786_v32  ;;  %v5900_v27 = vld [vmem:[%s15164_s15 + $0xbd0] sm:$0xff]  ;;  %v5827_v22 = vld [vmem:[%s15164_s15 + $0x988] sm:$0xff] }
 0x795   :  { %6540 = vmatpush1.msra.mxu0 %v5858_v57  ;;  %6466 = vmatprep.subr.mxu1 %v5785_v1  ;;  %v5899_v32 = vld [vmem:[%s15164_s15 + $0xbc8] sm:$0xff]  ;;  %v5826_v57 = vld [vmem:[%s15164_s15 + $0x980] sm:$0xff] }
 0x796   :  { %6541 = vmatprep.subr.mxu0 %v5857_v26  ;;  %6467 = vmatpush1.msra.mxu1 %v5784_v49  ;;  %v5898_v1 = vld [vmem:[%s15164_s15 + $0xbc0] sm:$0xff]  ;;  %v5825_v26 = vld [vmem:[%s15164_s15 + $0x978] sm:$0xff] }
 0x797   :  { %6542 = vmatpush1.msra.mxu0 %v5856_v25  ;;  %6468 = vmatprep.subr.mxu1 %v5783_v35  ;;  %v5897_v49 = vld [vmem:[%s15164_s15 + $0xbb8] sm:$0xff]  ;;  %v5824_v25 = vld [vmem:[%s15164_s15 + $0x970] sm:$0xff] }
 0x798   :  { %6543 = vmatprep.subr.mxu0 %v5855_v4  ;;  %6469 = vmatpush1.msra.mxu1 %v5782_v20  ;;  %v5896_v35 = vld [vmem:[%s15164_s15 + $0xbb0] sm:$0xff]  ;;  %v5823_v4 = vld [vmem:[%s15164_s15 + $0x968] sm:$0xff] }
 0x799   :  { %6544 = vmatpush1.msra.mxu0 %v5854_v33  ;;  %6470 = vmatprep.subr.mxu1 %v5781_v31  ;;  %v5895_v20 = vld [vmem:[%s15164_s15 + $0xba8] sm:$0xff]  ;;  %v5822_v33 = vld [vmem:[%s15164_s15 + $0x960] sm:$0xff] }
 0x79a   :  { %6545 = vmatprep.subr.mxu0 %v5853_v17  ;;  %6471 = vmatpush1.msra.mxu1 %v5780_v48  ;;  %v5894_v31 = vld [vmem:[%s15164_s15 + $0xba0] sm:$0xff]  ;;  %v5821_v17 = vld [vmem:[%s15164_s15 + $0x958] sm:$0xff] }
 0x79b   :  { %6546 = vmatpush1.msra.mxu0 %v5852_v5  ;;  %6472 = vmatprep.subr.mxu1 %v5779_v6  ;;  %v5893_v48 = vld [vmem:[%s15164_s15 + $0xb98] sm:$0xff]  ;;  %v5820_v5 = vld [vmem:[%s15164_s15 + $0x950] sm:$0xff] }
 0x79c   :  { %6547 = vmatprep.subr.mxu0 %v5851_v39  ;;  %6473 = vmatpush1.msra.mxu1 %v5778_v29  ;;  %v5892_v6 = vld [vmem:[%s15164_s15 + $0xb90] sm:$0xff]  ;;  %v5219_v39 = vrot.slane %v13795_v45, 4  ;;  %v5819_v29 = vld [vmem:[%s15164_s15 + $0x948] sm:$0xff]  ;;  %v5890_v45 = vld [vmem:[%s15164_s15 + $0xb80] sm:$0xff] }
 0x79d   :  { %6548 = vmatpush1.msra.mxu0 %v5850_v55  ;;  %6474 = vmatprep.subr.mxu1 %v5841_v43  ;;  %v5891_v55 = vld [vmem:[%s15164_s15 + $0xb88] sm:$0xff]  ;;  %v5818_v43 = vld [vmem:[%s15164_s15 + $0x940] sm:$0xff] }
 0x79e   :  { %6549 = vmatprep.subr.mxu0 %v5849_v37  ;;  %6475 = vmatpush2.msra.mxu1 %v5840_v21  ;;  %v5197_v37 = vld [vmem:[#allocation2 + $0x30] sm:$0xf0]  ;;  %v14162_v21 = vpop.permute.xlu0 %5272 }
 0x79f   :  { %6550 = vmatpush1.msra.mxu0 %v5848_v9  ;;  %6476 = vmatprep.subr.mxu1 %v5839_v15  ;;  %v5817_v9 = vld [vmem:[%s15164_s15 + $0x938] sm:$0xff] }
 0x7a0   :  { %6551 = vmatprep.subr.mxu0 %v5847_v60  ;;  %6477 = vmatpush2.msra.mxu1 %v5838_v54  ;;  %v5889_v15 = vld [vmem:[%s15164_s15 + $0xb78] sm:$0xff]  ;;  %v5200_v60 = vld [vmem:[#allocation2 + $0x20] sm:$0x3f]  ;;  %v5816_v54 = vld [vmem:[%s15164_s15 + $0x930] sm:$0xff] }
 0x7a1   :  { %6552 = vmatpush1.msra.mxu0 %v5846_v24  ;;  %6478 = vmatprep.subr.mxu1 %v5837_v38  ;;  %v5888_v24 = vld [vmem:[%s15164_s15 + $0xb70] sm:$0xff]  ;;  %v5220_v38 = vsel %vm391_vm2, %v5217_v18, %v5219_v39  ;;  %v5886_v18 = vld [vmem:[%s15164_s15 + $0xb60] sm:$0xff] }
 0x7a2   :  { %6553 = vmatprep.subr.mxu0 %v5845_v53  ;;  %6479 = vmatpush2.msra.mxu1 %v5836_v16  ;;  %v5815_v53 = vld [vmem:[%s15164_s15 + $0x928] sm:$0xff]  ;;  %v5264_v39 = vld [vmem:[#allocation2] sm:$0xc0] }
 0x7a3   :  { %6554 = vmatpush1.msra.mxu0 %v5844_v19  ;;  %6480 = vmatprep.subr.mxu1 %v5835_v47  ;;  %v5887_v16 = vld [vmem:[%s15164_s15 + $0xb68] sm:$0xff]  ;;  %v5224_v19 = vmul.f32 %v13782_v34, %v5197_v37  ;;  %v14192_v47 = vmul.f32 %v5220_v38, %v5200_v60  ;;  %v5885_v34 = vld [vmem:[%s15164_s15 + $0xb58] sm:$0xff]  ;;  %v5932_v37 = vld [vmem:[%s15164_s15 + $0xcd0] sm:$0xff] }
 0x7a4   :  { %6555 = vmatprep.subr.mxu0 %v5843_v0  ;;  %6481 = vmatpush2.msra.mxu1 %v5834_v28  ;;  %v5813_v0 = vld [vmem:[%s15164_s15 + $0x918] sm:$0xff]  ;;  %v5931_v60 = vld [vmem:[%s15164_s15 + $0xcc8] sm:$0xff] }
 0x7a5   :  { %6556 = vmatpush1.msra.mxu0 %v5842_v63  ;;  %6482 = vmatprep.subr.mxu1 %v5833_v44  ;;  %v14200_v28 = vld [vmem:[#allocation2 + $0x18] sm:$0xff]  ;;  %v5199_v44 = vld [vmem:[#allocation2 + $0x8] sm:$0x3f] }
 0x7a6   :  { %6557 = vmatprep.subr.mxu0 %v5905_v10  ;;  %6483 = vmatpush2.msra.mxu1 %v5832_v3  ;;  %v5226_v63 = vmul.f32 %v14200_v28, %v13821_v8  ;;  %v14204_v10 = vpop.permute.xlu1 %5276  ;;  %v5812_v3 = vld [vmem:[%s15164_s15 + $0x910] sm:$0xff]  ;;  %v5811_v8 = vld [vmem:[%s15164_s15 + $0x908] sm:$0xff] }
 0x7a7   :  { %6558 = vmatpush2.msra.mxu0 %v5904_v59  ;;  %6484 = vmatprep.subr.mxu1 %v5831_v2  ;;  %v5884_v59 = vld [vmem:[%s15164_s15 + $0xb50] sm:$0xff]  ;;  %v5248_v2 = vpop.permute.xlu0 %5247 }
 0x7a8   :  { %6559 = vmatprep.subr.mxu0 %v5903_v42  ;;  %6485 = vmatpush2.msra.mxu1 %v5830_v23  ;;  %v5883_v42 = vld [vmem:[%s15164_s15 + $0xb48] sm:$0xff]  ;;  %v5434_v23 = vrot.slane %v5224_v19, 4  ;;  %v8481_v19 = vld [vmem:[#allocation2 + $0x10] sm:$0xff] }
 0x7a9   :  { %6560 = vmatpush2.msra.mxu0 %v5902_v14  ;;  %6486 = vmatprep.subr.mxu1 %v5829_v56  ;;  %v5810_v14 = vld [vmem:[%s15164_s15 + $0x900] sm:$0xff] }
 0x7aa   :  { %6561 = vmatprep.subr.mxu0 %v5901_v62  ;;  %6487 = vmatpush2.msra.mxu1 %v5828_v30  ;;  %v5882_v56 = vld [vmem:[%s15164_s15 + $0xb40] sm:$0xff]  ;;  %v5442_v62 = vrot.slane %v14192_v47, 4  ;;  %v14225_v30 = vmul.f32 %v5220_v38, %v5199_v44 }
 0x7ab   :  { %6562 = vmatpush2.msra.mxu0 %v5900_v27  ;;  %6488 = vmatprep.subr.mxu1 %v5827_v22  ;;  %v5435_v27 = vrot.slane %v5226_v63, 4  ;;  %v5881_v22 = vld [vmem:[%s15164_s15 + $0xb38] sm:$0xff] }
 0x7ac   :  { %6563 = vmatprep.subr.mxu0 %v5899_v32  ;;  %6489 = vmatpush2.msra.mxu1 %v5826_v57  ;;  %v5252_v32 = vrot.slane %v5248_v2, 3  ;;  %v5937_v57 = vld [vmem:[%s15164_s15 + $0xcf8] sm:$0xff] }
 0x7ad   :  { %6564 = vmatpush2.msra.mxu0 %v5898_v1  ;;  %6490 = vmatprep.subr.mxu1 %v5825_v26  ;;  %v5230_v1 = vld [vmem:[#allocation2 + $0x30] sm:$0xe0]  ;;  %v5436_v26 = vsel %vm391_vm2, %v5434_v23, %v5435_v27  ;;  %v6001_v63 = vld [vmem:[%s15164_s15 + $0xef8] sm:$0xff] }
 0x7ae   :  { %6565 = vmatprep.subr.mxu0 %v5897_v49  ;;  %6491 = vmatpush2.msra.mxu1 %v5824_v25  ;;  %v5880_v49 = vld [vmem:[%s15164_s15 + $0xb30] sm:$0xff] }
 0x7af   :  { %6566 = vmatpush2.msra.mxu0 %v5896_v35  ;;  %6492 = vmatprep.subr.mxu1 %v5823_v4  ;;  %v5936_v25 = vld [vmem:[%s15164_s15 + $0xcf0] sm:$0xff]  ;;  %v14240_v35 = vpop.permute.xlu1 %5280  ;;  %v5443_v4 = vsel %vm391_vm2, %v5438_v36, %v5442_v62  ;;  %v5934_v36 = vld [vmem:[%s15164_s15 + $0xce0] sm:$0xff] }
 0x7b0   :  { %6567 = vmatprep.subr.mxu0 %v5895_v20  ;;  %6493 = vmatpush2.msra.mxu1 %v5822_v33  ;;  %v5879_v20 = vld [vmem:[%s15164_s15 + $0xb28] sm:$0xff]  ;;  %v6000_v23 = vld [vmem:[%s15164_s15 + $0xef0] sm:$0xff] }
 0x7b1   :  { %6568 = vmatpush2.msra.mxu0 %v5894_v31  ;;  %6494 = vmatprep.subr.mxu1 %v5821_v17  ;;  %v5935_v33 = vld [vmem:[%s15164_s15 + $0xce8] sm:$0xff]  ;;  %v5440_v31 = vrot.slane %v14225_v30, 4  ;;  %v5233_v17 = vld [vmem:[#allocation2 + $0x20] sm:$0x7f] }
 0x7b2   :  { %6569 = vmatprep.subr.mxu0 %v5893_v48  ;;  %6495 = vmatpush2.msra.mxu1 %v5820_v5  ;;  %v14253_v48 = vrot.slane %v14162_v21, 2  ;;  %v5283_v5 = vrot.slane %v14204_v10, 2  ;;  %v5942_v10 = vld [vmem:[%s15164_s15 + $0xd20] sm:$0xff] }
 0x7b3   :  { %6570 = vmatpush2.msra.mxu0 %v5892_v6  ;;  %6496 = vmatprep.subr.mxu1 %v5819_v29  ;;  %v5257_v6 = vmul.f32 %v13855_v52, %v5230_v1  ;;  %v5253_v29 = vsel %vm564_vm5, %v5250_v58, %v5252_v32  ;;  %v14274_v52 = vmul.f32 %v14200_v28, %v13892_v50  ;;  %v5876_v58 = vld [vmem:[%s15164_s15 + $0xb10] sm:$0xff]  ;;  %v14298_v38 = vpop.permute.xlu1 %5313  ;;  %v5297_v1 = vld [vmem:[#allocation2] sm:$0x80] }
 0x7b4   :  { %6571 = vmatprep.subr.mxu0 %v5891_v55  ;;  %6497 = vmatpush2.msra.mxu1 %v5818_v43  ;;  %v5877_v55 = vld [vmem:[%s15164_s15 + $0xb18] sm:$0xff]  ;;  %v5441_v7 = vsel %vm391_vm2, %v5435_v27, %v5440_v31  ;;  %v5291_v21 = vmul.f32 %v14253_v48, %v5264_v39  ;;  %v14290_v50 = vsel %vm594_vm7, %v14253_v48, %v5283_v5  ;;  %v14340_v27 = vld [vmem:[#allocation2 + $0x10] sm:$0xff] }
 0x7b5   :  { %6572 = vmatpush2.msra.mxu0 %v5890_v45  ;;  %6498 = vmatprep.subr.mxu1 %v5817_v9  ;;  %v5933_v43 = vld [vmem:[%s15164_s15 + $0xcd8] sm:$0xff]  ;;  %v14276_v45 = vmul.f32 %v5253_v29, %v5233_v17  ;;  %v5232_v9 = vld [vmem:[#allocation2 + $0x8] sm:$0x7f] }
 0x7b6   :  { %6573 = vmatprep.subr.mxu0 %v5889_v15  ;;  %6499 = vmatpush2.msra.mxu1 %v5816_v54  ;;  %v5875_v15 = vld [vmem:[%s15164_s15 + $0xb08] sm:$0xff]  ;;  %v5456_v54 = vrot.slane %v5257_v6, 5  ;;  %v5481_v44 = vrot.slane %v5291_v21, 6  ;;  %v5921_v6 = vld [vmem:[%s15164_s15 + $0xc78] sm:$0xff]  ;;  %v5990_v21 = vld [vmem:[%s15164_s15 + $0xea0] sm:$0xff] }
 0x7b7   :  { %6574 = vmatpush2.msra.mxu0 %v5888_v24  ;;  %6500 = vmatprep.subr.mxu1 %v5815_v53  ;;  %v5310_v24 = vpop.permute.xlu0 %5309  ;;  %v5874_v53 = vld [vmem:[%s15164_s15 + $0xb00] sm:$0xff]  ;;  %v5464_v47 = vrot.slane %v14276_v45, 5  ;;  %v5919_v45 = vld [vmem:[%s15164_s15 + $0xc68] sm:$0xff] }
 0x7b8   :  { %6575 = vmatprep.subr.mxu0 %v5887_v16  ;;  %6501 = vmatpush2.msra.mxu1 %v5814_v46  ;;  %v5930_v16 = vld [vmem:[%s15164_s15 + $0xcc0] sm:$0xff]  ;;  %v14307_v46 = vmul.f32 %v8481_v19, %v14290_v50 }
 0x7b9   :  { %6576 = vmatpush2.msra.mxu0 %v5886_v18  ;;  %6502 = vmatprep.subr.mxu1 %v5813_v0  ;;  %v5457_v18 = vrot.slane %v14274_v52, 5  ;;  %v14311_v0 = vmul.f32 %v5253_v29, %v5232_v9  ;;  %v5993_v29 = vld [vmem:[%s15164_s15 + $0xeb8] sm:$0xff]  ;;  %v5986_v19 = vld [vmem:[%s15164_s15 + $0xe80] sm:$0xff] }
 0x7ba   :  { %6577 = vmatprep.subr.mxu0 %v5885_v34  ;;  %6503 = vmatpush2.msra.mxu1 %v5812_v3  ;;  %v5929_v34 = vld [vmem:[%s15164_s15 + $0xcb8] sm:$0xff]  ;;  %v14319_v3 = vrot.slane %v5310_v24, 1  ;;  %v5915_v24 = vld [vmem:[%s15164_s15 + $0xc48] sm:$0xff] }
 0x7bb   :  { %6578 = vmatpush2.msra.mxu0 %v5884_v59  ;;  %6504 = vmatprep.subr.mxu1 %v5811_v8  ;;  %v5320_v59 = vrot.slane %v14298_v38, 1  ;;  %v5458_v2 = vsel %vm505_vm4, %v5456_v54, %v5457_v18  ;;  %v5928_v8 = vld [vmem:[%s15164_s15 + $0xcb0] sm:$0xff]  ;;  %v5462_v30 = vrot.slane %v14311_v0, 5  ;;  %v5917_v9 = vld [vmem:[%s15164_s15 + $0xc58] sm:$0xff] }
 0x7bc   :  { %6579 = vmatprep.subr.mxu0 %v5883_v42  ;;  %6505 = vmatpush2.msra.mxu1 %v5810_v14  ;;  %v5482_v42 = vrot.slane %v14307_v46, 6  ;;  %v5465_v14 = vsel %vm505_vm4, %v5460_v11, %v5464_v47  ;;  %v5926_v11 = vld [vmem:[%s15164_s15 + $0xca0] sm:$0xff]  ;;  %v5329_v17 = vmul.f32 %v14319_v3, %v5297_v1  ;;  %v5988_v54 = vld [vmem:[%s15164_s15 + $0xe90] sm:$0xff]  ;;  %v5977_v1 = vld [vmem:[%s15164_s15 + $0xe38] sm:$0xff] }
 0x7bd   :  { %6580 = vmatpush2.msra.mxu0 %v5882_v56  ;;  %6507 = vmatmul.mubr.f32.vlgmr.msra.gmra.mxu1 %v5436_v26  ;;  %v5927_v56 = vld [vmem:[%s15164_s15 + $0xca8] sm:$0xff]  ;;  %v14355_v32 = vsel %vm626_vm3, %v14319_v3, %v5320_v59  ;;  %v5997_v26 = vld [vmem:[%s15164_s15 + $0xed8] sm:$0xff]  ;;  %v5912_v0 = vld [vmem:[%s15164_s15 + $0xc30] sm:$0xff] }
 0x7be   :  { %6581 = vmatprep.subr.mxu0 %v5881_v22  ;;  %6608 = vmatprep.subr.mxu1 %v5937_v57  ;;  %v5483_v61 = vsel %vm475_vm6, %v5481_v44, %v5482_v42  ;;  %v5998_v22 = vld [vmem:[%s15164_s15 + $0xee0] sm:$0xff]  ;;  %v5925_v57 = vld [vmem:[%s15164_s15 + $0xc98] sm:$0xff]  ;;  %v5505_v52 = vrot.slane %v5329_v17, 7  ;;  %v5983_v44 = vld [vmem:[%s15164_s15 + $0xe68] sm:$0xff] }
 0x7bf   :  { %6512 = vmatprep.mubr.f32.mxu1 %v5443_v4  ;;  %6582 = vmatpush2.msra.mxu0 %v5880_v49  ;;  %v14365_v49 = vmul.f32 %v14355_v32, %v14340_v27  ;;  %v5924_v4 = vld [vmem:[%s15164_s15 + $0xc90] sm:$0xff]  ;;  %v5965_v17 = vld [vmem:[%s15164_s15 + $0xdd8] sm:$0xff]  ;;  %v6006_v46 = vld [vmem:[%s15164_s15 + $0xf20] sm:$0xff] }
 0x7c0   :  { %6609 = vmatpush1.msra.mxu1 %v5936_v25  ;;  %6583 = vmatprep.subr.mxu0 %v5879_v20  ;;  %v5463_v25 = vsel %vm505_vm4, %v5457_v18, %v5462_v30  ;;  %v5996_v20 = vld [vmem:[%s15164_s15 + $0xed0] sm:$0xff]  ;;  %v5913_v18 = vld [vmem:[%s15164_s15 + $0xc38] sm:$0xff] }
 0x7c1   :  { %6610 = vmatprep.subr.mxu1 %v5935_v33  ;;  %6584 = vmatpush2.msra.mxu0 %v5878_v41  ;;  %v5923_v33 = vld [vmem:[%s15164_s15 + $0xc88] sm:$0xff]  ;;  %v5922_v41 = vld [vmem:[%s15164_s15 + $0xc80] sm:$0xff]  ;;  %v5506_v39 = vrot.slane %v14365_v49, 7  ;;  %v6005_v38 = vld [vmem:[%s15164_s15 + $0xf18] sm:$0xff] }
 0x7c2   :  { %6611 = vmatpush1.msra.mxu1 %v5934_v36  ;;  %6585 = vmatprep.subr.mxu0 %v5877_v55  ;;  %v5994_v36 = vld [vmem:[%s15164_s15 + $0xec0] sm:$0xff]  ;;  %v5920_v55 = vld [vmem:[%s15164_s15 + $0xc70] sm:$0xff]  ;;  %v6053_v49 = vld [vmem:[%s15164_s15 + $0x1098] sm:$0xff] }
 0x7c3   :  { %6513 = vmatmul.mubr.f32.gmra.mxu1 %v5441_v7  ;;  %6612 = vmatprep.subr.mxu1 %v5933_v43  ;;  %v5992_v43 = vld [vmem:[%s15164_s15 + $0xeb0] sm:$0xff]  ;;  %v5991_v7 = vld [vmem:[%s15164_s15 + $0xea8] sm:$0xff] }
 0x7c4   :  { %6518 = vmatprep.mubr.f32.mxu1 %v5442_v62  ;;  %6586 = vmatpush2.msra.mxu0 %v5876_v58  ;;  %v5999_v62 = vld [vmem:[%s15164_s15 + $0xee8] sm:$0xff]  ;;  %v5507_v58 = vsel %vm445_vm1, %v5505_v52, %v5506_v39  ;;  %v5970_v52 = vld [vmem:[%s15164_s15 + $0xe00] sm:$0xff] }
 0x7c5   :  { %6613 = vmatpush1.msra.mxu1 %v5932_v37  ;;  %6587 = vmatprep.subr.mxu0 %v5875_v15  ;;  %v5918_v37 = vld [vmem:[%s15164_s15 + $0xc60] sm:$0xff]  ;;  %v5989_v15 = vld [vmem:[%s15164_s15 + $0xe98] sm:$0xff] }
 0x7c6   :  { %6614 = vmatprep.subr.mxu1 %v5931_v60  ;;  %6588 = vmatpush2.msra.mxu0 %v5874_v53  ;;  %v5916_v60 = vld [vmem:[%s15164_s15 + $0xc50] sm:$0xff]  ;;  %v5987_v53 = vld [vmem:[%s15164_s15 + $0xe88] sm:$0xff] }
 0x7c7   :  { %6615 = vmatpush1.msra.mxu1 %v5930_v16  ;;  %6590 = vmatmul.mubr.f32.vlgmr.msra.gmra.mxu0 %v5458_v2  ;;  %v5914_v16 = vld [vmem:[%s15164_s15 + $0xc40] sm:$0xff] }
 0x7c8   :  { %6519 = vmatmul.mubr.f32.gmra.mxu1 %v5440_v31  ;;  %6616 = vmatprep.subr.mxu1 %v5929_v34  ;;  %v5995_v31 = vld [vmem:[%s15164_s15 + $0xec8] sm:$0xff]  ;;  %v5984_v34 = vld [vmem:[%s15164_s15 + $0xe70] sm:$0xff]  ;;  %v5910_v2 = vld [vmem:[%s15164_s15 + $0xc20] sm:$0xff] }
 0x7c9   :  { %6691 = vmatprep.subr.mxu0 %v6001_v63  ;;  %6595 = vmatprep.mubr.f32.mxu0 %v5465_v14  ;;  %v5911_v63 = vld [vmem:[%s15164_s15 + $0xc28] sm:$0xff]  ;;  %v5981_v14 = vld [vmem:[%s15164_s15 + $0xe58] sm:$0xff] }
 0x7ca   :  { %6617 = vmatpush1.msra.mxu1 %v5928_v8  ;;  %6672 = vmatprep.mubr.f32.mxu1 %v5483_v61  ;;  %v5982_v8 = vld [vmem:[%s15164_s15 + $0xe60] sm:$0xff]  ;;  %v5979_v61 = vld [vmem:[%s15164_s15 + $0xe48] sm:$0xff] }
 0x7cb   :  { %6692 = vmatpush1.msra.mxu0 %v6000_v23  ;;  %6618 = vmatprep.subr.mxu1 %v5927_v56  ;;  %v5909_v23 = vld [vmem:[%s15164_s15 + $0xc18] sm:$0xff]  ;;  %v5908_v56 = vld [vmem:[%s15164_s15 + $0xc10] sm:$0xff] }
 0x7cc   :  { %6693 = vmatprep.subr.mxu0 %v5999_v62  ;;  %6619 = vmatpush1.msra.mxu1 %v5926_v11  ;;  %v5980_v62 = vld [vmem:[%s15164_s15 + $0xe50] sm:$0xff]  ;;  %v5906_v11 = vld [vmem:[%s15164_s15 + $0xc00] sm:$0xff] }
 0x7cd   :  { %6694 = vmatpush1.msra.mxu0 %v5998_v22  ;;  %6620 = vmatprep.subr.mxu1 %v5925_v57  ;;  %v5978_v22 = vld [vmem:[%s15164_s15 + $0xe40] sm:$0xff]  ;;  %v5969_v57 = vld [vmem:[%s15164_s15 + $0xdf8] sm:$0xff] }
 0x7ce   :  { %6596 = vmatmul.mubr.f32.gmra.mxu0 %v5463_v25  ;;  %6695 = vmatprep.subr.mxu0 %v5997_v26  ;;  %v5968_v26 = vld [vmem:[%s15164_s15 + $0xdf0] sm:$0xff] }
 0x7cf   :  { %6601 = vmatprep.mubr.f32.mxu0 %v5464_v47  ;;  %6621 = vmatpush1.msra.mxu1 %v5924_v4  ;;  %v5985_v47 = vld [vmem:[%s15164_s15 + $0xe78] sm:$0xff]  ;;  %v5976_v25 = vld [vmem:[%s15164_s15 + $0xe30] sm:$0xff]  ;;  %v5967_v4 = vld [vmem:[%s15164_s15 + $0xde8] sm:$0xff] }
 0x7d0   :  { %6696 = vmatpush1.msra.mxu0 %v5996_v20  ;;  %6622 = vmatprep.subr.mxu1 %v5923_v33  ;;  %v5975_v20 = vld [vmem:[%s15164_s15 + $0xe28] sm:$0xff]  ;;  %v5966_v33 = vld [vmem:[%s15164_s15 + $0xde0] sm:$0xff] }
 0x7d1   :  { %6697 = vmatprep.subr.mxu0 %v5995_v31  ;;  %6623 = vmatpush1.msra.mxu1 %v5922_v41  ;;  %v5974_v31 = vld [vmem:[%s15164_s15 + $0xe20] sm:$0xff]  ;;  %v5973_v41 = vld [vmem:[%s15164_s15 + $0xe18] sm:$0xff] }
 0x7d2   :  { %6698 = vmatpush1.msra.mxu0 %v5994_v36  ;;  %6624 = vmatprep.subr.mxu1 %v5921_v6  ;;  %v5964_v36 = vld [vmem:[%s15164_s15 + $0xdd0] sm:$0xff] }
 0x7d3   :  { %6602 = vmatmul.mubr.f32.gmra.mxu0 %v5462_v30  ;;  %6699 = vmatprep.subr.mxu0 %v5993_v29  ;;  %v5907_v30 = vld [vmem:[%s15164_s15 + $0xc08] sm:$0xff]  ;;  %v5972_v6 = vld [vmem:[%s15164_s15 + $0xe10] sm:$0xff] }
 0x7d4   :  { %6625 = vmatpush1.msra.mxu1 %v5920_v55  ;;  %6700 = vmatpush1.msra.mxu0 %v5992_v43  ;;  %v5963_v29 = vld [vmem:[%s15164_s15 + $0xdc8] sm:$0xff]  ;;  %v5962_v43 = vld [vmem:[%s15164_s15 + $0xdc0] sm:$0xff] }
 0x7d5   :  { %6755 = vmatprep.mubr.f32.mxu0 %v5507_v58  ;;  %6626 = vmatprep.subr.mxu1 %v5919_v45  ;;  %v5971_v55 = vld [vmem:[%s15164_s15 + $0xe08] sm:$0xff]  ;;  %v5961_v45 = vld [vmem:[%s15164_s15 + $0xdb8] sm:$0xff]  ;;  %v5960_v58 = vld [vmem:[%s15164_s15 + $0xdb0] sm:$0xff] }
 0x7d6   :  { %6701 = vmatprep.subr.mxu0 %v5991_v7  ;;  %6627 = vmatpush1.msra.mxu1 %v5918_v37  ;;  %v6033_v7 = vld [vmem:[%s15164_s15 + $0xff8] sm:$0xff]  ;;  %v6032_v37 = vld [vmem:[%s15164_s15 + $0xff0] sm:$0xff] }
 0x7d7   :  { %6702 = vmatpush1.msra.mxu0 %v5990_v21  ;;  %6628 = vmatprep.subr.mxu1 %v5917_v9  ;;  %v5959_v21 = vld [vmem:[%s15164_s15 + $0xda8] sm:$0xff] }
 0x7d8   :  { %6703 = vmatprep.subr.mxu0 %v5989_v15  ;;  %6629 = vmatpush1.msra.mxu1 %v5916_v60  ;;  %v6031_v9 = vld [vmem:[%s15164_s15 + $0xfe8] sm:$0xff]  ;;  %v5958_v15 = vld [vmem:[%s15164_s15 + $0xda0] sm:$0xff] }
 0x7d9   :  { %6704 = vmatpush1.msra.mxu0 %v5988_v54  ;;  %6630 = vmatprep.subr.mxu1 %v5915_v24  ;;  %v6030_v60 = vld [vmem:[%s15164_s15 + $0xfe0] sm:$0xff]  ;;  %v5957_v54 = vld [vmem:[%s15164_s15 + $0xd98] sm:$0xff] }
 0x7da   :  { %6705 = vmatprep.subr.mxu0 %v5987_v53  ;;  %6631 = vmatpush1.msra.mxu1 %v5914_v16  ;;  %v6029_v24 = vld [vmem:[%s15164_s15 + $0xfd8] sm:$0xff]  ;;  %v5956_v53 = vld [vmem:[%s15164_s15 + $0xd90] sm:$0xff] }
 0x7db   :  { %6706 = vmatpush1.msra.mxu0 %v5986_v19  ;;  %6632 = vmatprep.subr.mxu1 %v5913_v18  ;;  %v6028_v16 = vld [vmem:[%s15164_s15 + $0xfd0] sm:$0xff]  ;;  %v5955_v19 = vld [vmem:[%s15164_s15 + $0xd88] sm:$0xff] }
 0x7dc   :  { %6707 = vmatprep.subr.mxu0 %v5985_v47  ;;  %6633 = vmatpush1.msra.mxu1 %v5912_v0  ;;  %v6027_v18 = vld [vmem:[%s15164_s15 + $0xfc8] sm:$0xff]  ;;  %v5954_v47 = vld [vmem:[%s15164_s15 + $0xd80] sm:$0xff] }
 0x7dd   :  { %6708 = vmatpush1.msra.mxu0 %v5984_v34  ;;  %6634 = vmatprep.subr.mxu1 %v5911_v63  ;;  %v6026_v0 = vld [vmem:[%s15164_s15 + $0xfc0] sm:$0xff]  ;;  %v5953_v34 = vld [vmem:[%s15164_s15 + $0xd78] sm:$0xff] }
 0x7de   :  { %6709 = vmatprep.subr.mxu0 %v5983_v44  ;;  %6635 = vmatpush1.msra.mxu1 %v5910_v2  ;;  %v6025_v63 = vld [vmem:[%s15164_s15 + $0xfb8] sm:$0xff]  ;;  %v5952_v44 = vld [vmem:[%s15164_s15 + $0xd70] sm:$0xff] }
 0x7df   :  { %6710 = vmatpush1.msra.mxu0 %v5982_v8  ;;  %6636 = vmatprep.subr.mxu1 %v5909_v23  ;;  %v6024_v2 = vld [vmem:[%s15164_s15 + $0xfb0] sm:$0xff]  ;;  %v5951_v8 = vld [vmem:[%s15164_s15 + $0xd68] sm:$0xff] }
 0x7e0   :  { %6711 = vmatprep.subr.mxu0 %v5981_v14  ;;  %6637 = vmatpush1.msra.mxu1 %v5908_v56  ;;  %v6023_v23 = vld [vmem:[%s15164_s15 + $0xfa8] sm:$0xff]  ;;  %v5950_v14 = vld [vmem:[%s15164_s15 + $0xd60] sm:$0xff] }
 0x7e1   :  { %6712 = vmatpush1.msra.mxu0 %v5980_v62  ;;  %6638 = vmatprep.subr.mxu1 %v5907_v30  ;;  %v6022_v56 = vld [vmem:[%s15164_s15 + $0xfa0] sm:$0xff]  ;;  %v5949_v62 = vld [vmem:[%s15164_s15 + $0xd58] sm:$0xff] }
 0x7e2   :  { %6713 = vmatprep.subr.mxu0 %v5979_v61  ;;  %6639 = vmatpush1.msra.mxu1 %v5906_v11  ;;  %v6021_v30 = vld [vmem:[%s15164_s15 + $0xf98] sm:$0xff]  ;;  %v5948_v61 = vld [vmem:[%s15164_s15 + $0xd50] sm:$0xff] }
 0x7e3   :  { %6714 = vmatpush1.msra.mxu0 %v5978_v22  ;;  %6640 = vmatprep.subr.mxu1 %v5969_v57  ;;  %v6020_v11 = vld [vmem:[%s15164_s15 + $0xf90] sm:$0xff]  ;;  %v5285_v22 = vrot.slane %v14240_v35, 2  ;;  %v5947_v57 = vld [vmem:[%s15164_s15 + $0xd48] sm:$0xff]  ;;  %v6018_v35 = vld [vmem:[%s15164_s15 + $0xf80] sm:$0xff] }
 0x7e4   :  { %6715 = vmatprep.subr.mxu0 %v5977_v1  ;;  %6641 = vmatpush2.msra.mxu1 %v5968_v26  ;;  %v6019_v1 = vld [vmem:[%s15164_s15 + $0xf88] sm:$0xff]  ;;  %v5946_v26 = vld [vmem:[%s15164_s15 + $0xd40] sm:$0xff] }
 0x7e5   :  { %6716 = vmatpush1.msra.mxu0 %v5976_v25  ;;  %6642 = vmatprep.subr.mxu1 %v5967_v4  ;;  %v5263_v25 = vld [vmem:[#allocation2 + $0x30] sm:$0xc0]  ;;  %v5945_v4 = vld [vmem:[%s15164_s15 + $0xd38] sm:$0xff] }
 0x7e6   :  { %6717 = vmatprep.subr.mxu0 %v5975_v20  ;;  %6643 = vmatpush2.msra.mxu1 %v5966_v33  ;;  %v6017_v20 = vld [vmem:[%s15164_s15 + $0xf78] sm:$0xff]  ;;  %v14638_v33 = vld [vmem:[#allocation2 + $0x20] sm:$0xff] }
 0x7e7   :  { %6718 = vmatpush1.msra.mxu0 %v5974_v31  ;;  %6644 = vmatprep.subr.mxu1 %v5965_v17  ;;  %v5944_v31 = vld [vmem:[%s15164_s15 + $0xd30] sm:$0xff] }
 0x7e8   :  { %6719 = vmatprep.subr.mxu0 %v5973_v41  ;;  %6645 = vmatpush2.msra.mxu1 %v5964_v36  ;;  %v6016_v17 = vld [vmem:[%s15164_s15 + $0xf70] sm:$0xff]  ;;  %v5286_v41 = vsel %vm594_vm7, %v5283_v5, %v5285_v22  ;;  %v5943_v36 = vld [vmem:[%s15164_s15 + $0xd28] sm:$0xff]  ;;  %v6014_v5 = vld [vmem:[%s15164_s15 + $0xf60] sm:$0xff] }
 0x7e9   :  { %6720 = vmatpush1.msra.mxu0 %v5972_v6  ;;  %6646 = vmatprep.subr.mxu1 %v5963_v29  ;;  %v6015_v6 = vld [vmem:[%s15164_s15 + $0xf68] sm:$0xff]  ;;  %v5290_v29 = vmul.f32 %v14253_v48, %v5263_v25  ;;  %v6013_v48 = vld [vmem:[%s15164_s15 + $0xf58] sm:$0xff]  ;;  %v6058_v25 = vld [vmem:[%s15164_s15 + $0x10c0] sm:$0xff] }
 0x7ea   :  { %6721 = vmatprep.subr.mxu0 %v5971_v55  ;;  %6647 = vmatpush2.msra.mxu1 %v5962_v43  ;;  %v14663_v55 = vmul.f32 %v5286_v41, %v14638_v33  ;;  %v5941_v43 = vld [vmem:[%s15164_s15 + $0xd18] sm:$0xff] }
 0x7eb   :  { %6722 = vmatpush1.msra.mxu0 %v5970_v52  ;;  %6648 = vmatprep.subr.mxu1 %v5961_v45  ;;  %v5292_v52 = vmul.f32 %v14200_v28, %v14290_v50  ;;  %v14673_v45 = vld [vmem:[#allocation2 + $0x8] sm:$0xff]  ;;  %v5478_v50 = vrot.slane %v5290_v29, 6  ;;  %v5303_v22 = vld [vmem:[#allocation2 + $0x38] sm:$0x1]  ;;  %v6056_v29 = vld [vmem:[%s15164_s15 + $0x10b0] sm:$0xff] }
 0x7ec   :  { %6723 = vmatprep.subr.mxu0 %v6033_v7  ;;  %6649 = vmatpush2.msra.mxu1 %v5960_v58  ;;  %v5318_v7 = vpop.permute.xlu0 %5317  ;;  %v5940_v58 = vld [vmem:[%s15164_s15 + $0xd10] sm:$0xff]  ;;  %v6011_v28 = vld [vmem:[%s15164_s15 + $0xf48] sm:$0xff] }
 0x7ed   :  { %6724 = vmatpush2.msra.mxu0 %v6032_v37  ;;  %6650 = vmatprep.subr.mxu1 %v5959_v21  ;;  %v6012_v37 = vld [vmem:[%s15164_s15 + $0xf50] sm:$0xff]  ;;  %v5939_v21 = vld [vmem:[%s15164_s15 + $0xd08] sm:$0xff] }
 0x7ee   :  { %6725 = vmatprep.subr.mxu0 %v6031_v9  ;;  %6651 = vmatpush2.msra.mxu1 %v5958_v15  ;;  %v5938_v9 = vld [vmem:[%s15164_s15 + $0xd00] sm:$0xff] }
 0x7ef   :  { %6726 = vmatpush2.msra.mxu0 %v6030_v60  ;;  %6652 = vmatprep.subr.mxu1 %v5957_v54  ;;  %v6010_v15 = vld [vmem:[%s15164_s15 + $0xf40] sm:$0xff]  ;;  %v5486_v60 = vrot.slane %v14663_v55, 6  ;;  %v14695_v54 = vmul.f32 %v5286_v41, %v14673_v45  ;;  %v6057_v41 = vld [vmem:[%s15164_s15 + $0x10b8] sm:$0xff] }
 0x7f0   :  { %6727 = vmatprep.subr.mxu0 %v6029_v24  ;;  %6653 = vmatpush2.msra.mxu1 %v5956_v53  ;;  %v14697_v24 = vrot.slane %v5318_v7, 1  ;;  %v5479_v53 = vrot.slane %v5292_v52, 6  ;;  %v6054_v52 = vld [vmem:[%s15164_s15 + $0x10a0] sm:$0xff] }
 0x7f1   :  { %6728 = vmatpush2.msra.mxu0 %v6028_v16  ;;  %6654 = vmatprep.subr.mxu1 %v5955_v19  ;;  %v6009_v16 = vld [vmem:[%s15164_s15 + $0xf38] sm:$0xff] }
 0x7f2   :  { %6729 = vmatprep.subr.mxu0 %v6027_v18  ;;  %6655 = vmatpush2.msra.mxu1 %v5954_v47  ;;  %v6065_v19 = vld [vmem:[%s15164_s15 + $0x10f8] sm:$0xff]  ;;  %v5480_v47 = vsel %vm475_vm6, %v5478_v50, %v5479_v53 }
 0x7f3   :  { %6730 = vmatpush2.msra.mxu0 %v6026_v0  ;;  %6656 = vmatprep.subr.mxu1 %v5953_v34  ;;  %v14705_v18 = vld [vmem:[#allocation2 + $0x18] sm:$0xff]  ;;  %v6008_v0 = vld [vmem:[%s15164_s15 + $0xf30] sm:$0xff] }
 0x7f4   :  { %6731 = vmatprep.subr.mxu0 %v6025_v63  ;;  %6657 = vmatpush2.msra.mxu1 %v5952_v44  ;;  %v6064_v34 = vld [vmem:[%s15164_s15 + $0x10f0] sm:$0xff]  ;;  %v5487_v63 = vsel %vm475_vm6, %v5482_v42, %v5486_v60  ;;  %v6007_v44 = vld [vmem:[%s15164_s15 + $0xf28] sm:$0xff]  ;;  %v6062_v42 = vld [vmem:[%s15164_s15 + $0x10e0] sm:$0xff] }
 0x7f5   :  { %6732 = vmatpush2.msra.mxu0 %v6024_v2  ;;  %6658 = vmatprep.subr.mxu1 %v5951_v8  ;;  %v6063_v2 = vld [vmem:[%s15164_s15 + $0x10e8] sm:$0xff]  ;;  %v5484_v8 = vrot.slane %v14695_v54, 6  ;;  %v6049_v50 = vld [vmem:[%s15164_s15 + $0x1078] sm:$0xff]  ;;  %v6046_v54 = vld [vmem:[%s15164_s15 + $0x1060] sm:$0xff] }
 0x7f6   :  { %6733 = vmatprep.subr.mxu0 %v6023_v23  ;;  %6659 = vmatpush2.msra.mxu1 %v5950_v14  ;;  %v5296_v23 = vld [vmem:[#allocation2 + $0x30] sm:$0x80]  ;;  %v5323_v14 = vsel %vm626_vm3, %v5320_v59, %v14697_v24 }
 0x7f7   :  { %6734 = vmatpush2.msra.mxu0 %v6022_v56  ;;  %6660 = vmatprep.subr.mxu1 %v5949_v62  ;;  %v5330_v56 = vmul.f32 %v14355_v32, %v14705_v18  ;;  %v5333_v59 = vmul.f32 %v5323_v14, %v14638_v33  ;;  %v6061_v62 = vld [vmem:[%s15164_s15 + $0x10d8] sm:$0xff]  ;;  %v5485_v32 = vsel %vm475_vm6, %v5479_v53, %v5484_v8  ;;  %v6044_v53 = vld [vmem:[%s15164_s15 + $0x1050] sm:$0xff] }
 0x7f8   :  { %6735 = vmatprep.subr.mxu0 %v6021_v30  ;;  %6661 = vmatpush2.msra.mxu1 %v5948_v61  ;;  %v5328_v30 = vmul.f32 %v14319_v3, %v5296_v23  ;;  %v6004_v61 = vld [vmem:[%s15164_s15 + $0xf10] sm:$0xff]  ;;  %v6059_v3 = vld [vmem:[%s15164_s15 + $0x10c8] sm:$0xff]  ;;  %v6034_v23 = vld [vmem:[%s15164_s15 + $0x1000] sm:$0xff] }
 0x7f9   :  { %6736 = vmatpush2.msra.mxu0 %v6020_v11  ;;  %6662 = vmatprep.subr.mxu1 %v5947_v57  ;;  %v6060_v11 = vld [vmem:[%s15164_s15 + $0x10d0] sm:$0xff]  ;;  %v6003_v57 = vld [vmem:[%s15164_s15 + $0xf08] sm:$0xff] }
 0x7fa   :  { %6737 = vmatprep.subr.mxu0 %v6019_v1  ;;  %6663 = vmatpush2.msra.mxu1 %v5946_v26  ;;  %v5503_v1 = vrot.slane %v5330_v56, 7  ;;  %v5332_v26 = vmul.f32 %v5323_v14, %v14673_v45  ;;  %v6097_v14 = vld [vmem:[%s15164_s15 + $0x11f8] sm:$0xff]  ;;  %v6094_v56 = vld [vmem:[%s15164_s15 + $0x11e0] sm:$0xff] }
 0x7fb   :  { %6738 = vmatpush2.msra.mxu0 %v6018_v35  ;;  %6664 = vmatprep.subr.mxu1 %v5945_v4  ;;  %v6002_v35 = vld [vmem:[%s15164_s15 + $0xf00] sm:$0xff]  ;;  %v5510_v4 = vrot.slane %v5333_v59, 7  ;;  %v6092_v59 = vld [vmem:[%s15164_s15 + $0x11d0] sm:$0xff] }
 0x7fc   :  { %6739 = vmatprep.subr.mxu0 %v6017_v20  ;;  %6665 = vmatpush2.msra.mxu1 %v5944_v31  ;;  %v5502_v20 = vrot.slane %v5328_v30, 7  ;;  %v5302_v31 = vld [vmem:[#allocation2 + $0x28] sm:$0x1]  ;;  %v6090_v30 = vld [vmem:[%s15164_s15 + $0x11c0] sm:$0xff] }
 0x7fd   :  { %6740 = vmatpush2.msra.mxu0 %v6016_v17  ;;  %6666 = vmatprep.subr.mxu1 %v5943_v36  ;;  %v5335_v17 = vmul.f32 %v14697_v24, %v5303_v22  ;;  %v14768_v36 = vpop.permute.xlu1 %5343  ;;  %v6086_v22 = vld [vmem:[%s15164_s15 + $0x11a0] sm:$0xff] }
 0x7fe   :  { %6741 = vmatprep.subr.mxu0 %v6015_v6  ;;  %6667 = vmatpush2.msra.mxu1 %v5942_v10  ;;  %v5504_v6 = vsel %vm445_vm1, %v5502_v20, %v5503_v1  ;;  %v5508_v10 = vrot.slane %v5332_v26, 7  ;;  %v5357_v55 = vmul.f32 %v14768_v36, %v14340_v27  ;;  %v6082_v26 = vld [vmem:[%s15164_s15 + $0x1180] sm:$0xff] }
 0x7ff   :  { %6742 = vmatpush2.msra.mxu0 %v6014_v5  ;;  %6668 = vmatprep.subr.mxu1 %v5941_v43  ;;  %v5511_v5 = vsel %vm445_vm1, %v5506_v39, %v5510_v4  ;;  %v6055_v43 = vld [vmem:[%s15164_s15 + $0x10a8] sm:$0xff]  ;;  %v5514_v7 = vrot.slane %v5335_v17, 7  ;;  %v6052_v39 = vld [vmem:[%s15164_s15 + $0x1090] sm:$0xff]  ;;  %v6078_v20 = vld [vmem:[%s15164_s15 + $0x1160] sm:$0xff] }
 0x800   :  { %6743 = vmatprep.subr.mxu0 %v6013_v48  ;;  %6669 = vmatpush2.msra.mxu1 %v5940_v58  ;;  %v5334_v48 = vmul.f32 %v14697_v24, %v5302_v31  ;;  %v5509_v27 = vsel %vm445_vm1, %v5503_v1, %v5508_v10  ;;  %v6045_v24 = vld [vmem:[%s15164_s15 + $0x1058] sm:$0xff]  ;;  %v6083_v1 = vld [vmem:[%s15164_s15 + $0x1188] sm:$0xff]  ;;  %v6076_v17 = vld [vmem:[%s15164_s15 + $0x1150] sm:$0xff] }
 0x801   :  { %6744 = vmatpush2.msra.mxu0 %v6012_v37  ;;  %6670 = vmatprep.subr.mxu1 %v5939_v21  ;;  %v5515_v58 = vsel %vm445_vm1, %v5510_v4, %v5514_v7  ;;  %v6051_v37 = vld [vmem:[%s15164_s15 + $0x1088] sm:$0xff]  ;;  %v6077_v31 = vld [vmem:[%s15164_s15 + $0x1158] sm:$0xff]  ;;  %v6066_v7 = vld [vmem:[%s15164_s15 + $0x1100] sm:$0xff] }
 0x802   :  { %6745 = vmatprep.subr.mxu0 %v6011_v28  ;;  %6671 = vmatpush2.msra.mxu1 %v5938_v9  ;;  %v5512_v21 = vrot.slane %v5334_v48, 7  ;;  %v6050_v28 = vld [vmem:[%s15164_s15 + $0x1080] sm:$0xff]  ;;  %v6079_v4 = vld [vmem:[%s15164_s15 + $0x1168] sm:$0xff]  ;;  %v6068_v48 = vld [vmem:[%s15164_s15 + $0x1110] sm:$0xff] }
 0x803   :  { %6746 = vmatpush2.msra.mxu0 %v6010_v15  ;;  %6673 = vmatmul.mubr.f32.vlgmr.msra.gmra.mxu1 %v5480_v47  ;;  %v6048_v15 = vld [vmem:[%s15164_s15 + $0x1070] sm:$0xff]  ;;  %v6041_v47 = vld [vmem:[%s15164_s15 + $0x1038] sm:$0xff] }
 0x804   :  { %6747 = vmatprep.subr.mxu0 %v6009_v16  ;;  %6774 = vmatprep.subr.mxu1 %v6065_v19  ;;  %v5513_v9 = vsel %vm445_vm1, %v5508_v10, %v5512_v21  ;;  %v6043_v16 = vld [vmem:[%s15164_s15 + $0x1048] sm:$0xff]  ;;  %v6042_v19 = vld [vmem:[%s15164_s15 + $0x1040] sm:$0xff]  ;;  %v6072_v10 = vld [vmem:[%s15164_s15 + $0x1130] sm:$0xff] }
 0x805   :  { %6678 = vmatprep.mubr.f32.mxu1 %v5487_v63  ;;  %6748 = vmatpush2.msra.mxu0 %v6008_v0  ;;  %v6040_v0 = vld [vmem:[%s15164_s15 + $0x1030] sm:$0xff]  ;;  %v6038_v63 = vld [vmem:[%s15164_s15 + $0x1020] sm:$0xff] }
 0x806   :  { %6775 = vmatpush1.msra.mxu1 %v6064_v34  ;;  %6749 = vmatprep.subr.mxu0 %v6007_v44  ;;  %v6039_v34 = vld [vmem:[%s15164_s15 + $0x1028] sm:$0xff]  ;;  %v6037_v44 = vld [vmem:[%s15164_s15 + $0x1018] sm:$0xff] }
 0x807   :  { %6776 = vmatprep.subr.mxu1 %v6063_v2  ;;  %6750 = vmatpush2.msra.mxu0 %v6006_v46  ;;  %v6036_v2 = vld [vmem:[%s15164_s15 + $0x1010] sm:$0xff] }
 0x808   :  { %6777 = vmatpush1.msra.mxu1 %v6062_v42  ;;  %6751 = vmatprep.subr.mxu0 %v6005_v38  ;;  %v6096_v46 = vld [vmem:[%s15164_s15 + $0x11f0] sm:$0xff]  ;;  %v6095_v42 = vld [vmem:[%s15164_s15 + $0x11e8] sm:$0xff]  ;;  %v6093_v38 = vld [vmem:[%s15164_s15 + $0x11d8] sm:$0xff] }
 0x809   :  { %6679 = vmatmul.mubr.f32.gmra.mxu1 %v5485_v32  ;;  %6778 = vmatprep.subr.mxu1 %v6061_v62  ;;  %v6091_v62 = vld [vmem:[%s15164_s15 + $0x11c8] sm:$0xff]  ;;  %v6089_v32 = vld [vmem:[%s15164_s15 + $0x11b8] sm:$0xff] }
 0x80a   :  { %6684 = vmatprep.mubr.f32.mxu1 %v5486_v60  ;;  %6752 = vmatpush2.msra.mxu0 %v6004_v61  ;;  %v6047_v60 = vld [vmem:[%s15164_s15 + $0x1068] sm:$0xff]  ;;  %v6088_v61 = vld [vmem:[%s15164_s15 + $0x11b0] sm:$0xff] }
 0x80b   :  { %6779 = vmatpush1.msra.mxu1 %v6060_v11  ;;  %6753 = vmatprep.subr.mxu0 %v6003_v57  ;;  %v6087_v11 = vld [vmem:[%s15164_s15 + $0x11a8] sm:$0xff]  ;;  %v6085_v57 = vld [vmem:[%s15164_s15 + $0x1198] sm:$0xff] }
 0x80c   :  { %6780 = vmatprep.subr.mxu1 %v6059_v3  ;;  %6754 = vmatpush2.msra.mxu0 %v6002_v35  ;;  %v6084_v3 = vld [vmem:[%s15164_s15 + $0x1190] sm:$0xff]  ;;  %v6081_v35 = vld [vmem:[%s15164_s15 + $0x1178] sm:$0xff] }
 0x80d   :  { %6781 = vmatpush1.msra.mxu1 %v6058_v25  ;;  %6756 = vmatmul.mubr.f32.vlgmr.msra.gmra.mxu0 %v5504_v6  ;;  %v6080_v25 = vld [vmem:[%s15164_s15 + $0x1170] sm:$0xff]  ;;  %v6074_v6 = vld [vmem:[%s15164_s15 + $0x1140] sm:$0xff] }
 0x80e   :  { %6685 = vmatmul.mubr.f32.gmra.mxu1 %v5484_v8  ;;  %6782 = vmatprep.subr.mxu1 %v6057_v41  ;;  %v6035_v8 = vld [vmem:[%s15164_s15 + $0x1008] sm:$0xff] }
 0x80f   :  { %6761 = vmatprep.mubr.f32.mxu0 %v5511_v5  ;;  %6783 = vmatpush1.msra.mxu1 %v6056_v29  ;;  %v6075_v41 = vld [vmem:[%s15164_s15 + $0x1148] sm:$0xff]  ;;  %v6073_v29 = vld [vmem:[%s15164_s15 + $0x1138] sm:$0xff] }
 0x810   :  { %6838 = vmatprep.mubr.f32.mxu1 %v5357_v55  ;;  %6784 = vmatprep.subr.mxu1 %v6055_v43  ;;  %v6071_v5 = vld [vmem:[%s15164_s15 + $0x1128] sm:$0xff]  ;;  %v6070_v55 = vld [vmem:[%s15164_s15 + $0x1120] sm:$0xff]  ;;  %v6069_v43 = vld [vmem:[%s15164_s15 + $0x1118] sm:$0xff] }
 0x811   :  { %6785 = vmatpush1.msra.mxu1 %v6054_v52  ;;  %6762 = vmatmul.mubr.f32.gmra.mxu0 %v5509_v27  ;;  %v6067_v52 = vld [vmem:[%s15164_s15 + $0x1108] sm:$0xff]  ;;  %v5356_v27 = vmul.f32 %v14768_v36, %v14705_v18  ;;  %v6976_v18 = vld [vmem:[%s15166_s17 + $0xf8] sm:$0xff]  ;;  %v6959_v36 = vld [vmem:[%s15166_s17 + $0x70] sm:$0xff] }
 0x812   :  { %6786 = vmatprep.subr.mxu1 %v6053_v49  ;;  %6767 = vmatprep.mubr.f32.mxu0 %v5515_v58  ;;  %v5349_v49 = vpop.permute.xlu0 %5348  ;;  %v5337_v58 = vld [vmem:[#allocation2 + $0x38] sm:$0x3] }
 0x813   :  { %6787 = vmatpush1.msra.mxu1 %v6052_v39  ;;  %v5359_v39 = vmul.f32 %v5349_v49, %v14638_v33  ;;  %v5358_v21 = vmul.f32 %v5349_v49, %v14673_v45  ;;  %v6960_v33 = vld [vmem:[%s15166_s17 + $0x78] sm:$0xff]  ;;  %v6975_v45 = vld [vmem:[%s15166_s17 + $0xf0] sm:$0xff]  ;;  %8106 = vmatprep.subr.mxu0 %v6976_v18 }
 0x814   :  { %6788 = vmatprep.subr.mxu1 %v6051_v37  ;;  %v5354_v37 = vpop.permute.xlu1 %5353  ;;  %8107 = vmatpush3.msra.mxu0 %v6960_v33 }
 0x815   :  { %6789 = vmatpush1.msra.mxu1 %v6050_v28  ;;  %6768 = vmatmul.mubr.f32.gmra.mxu0 %v5513_v9  ;;  %v5336_v28 = vld [vmem:[#allocation2 + $0x28] sm:$0x3] }
 0x816   :  { %6790 = vmatprep.subr.mxu1 %v6049_v50  ;;  %v5361_v50 = vmul.f32 %v5354_v37, %v5337_v58  ;;  %v5360_v9 = vmul.f32 %v5354_v37, %v5336_v28  ;;  %8108 = vmatprep.subr.mxu0 %v6975_v45 }
 0x817   :  { %6791 = vmatpush1.msra.mxu1 %v6048_v15  ;;  %v6974_v15 = vld [vmem:[%s15166_s17 + $0xe8] sm:$0xff]  ;;  %8109 = vmatpush3.msra.mxu0 %v6959_v36 }
 0x818   :  { %6792 = vmatprep.subr.mxu1 %v6047_v60  ;;  %v6958_v60 = vld [vmem:[%s15166_s17 + $0x68] sm:$0xff]  ;;  %8110 = vmatprep.subr.mxu0 %v6974_v15 }
 0x819   :  { %6793 = vmatpush1.msra.mxu1 %v6046_v54  ;;  %v6973_v54 = vld [vmem:[%s15166_s17 + $0xe0] sm:$0xff]  ;;  %8111 = vmatpush3.msra.mxu0 %v6958_v60 }
 0x81a   :  { %6794 = vmatprep.subr.mxu1 %v6045_v24  ;;  %v6957_v24 = vld [vmem:[%s15166_s17 + $0x60] sm:$0xff]  ;;  %8112 = vmatprep.subr.mxu0 %v6973_v54 }
 0x81b   :  { %6795 = vmatpush1.msra.mxu1 %v6044_v53  ;;  %v6972_v53 = vld [vmem:[%s15166_s17 + $0xd8] sm:$0xff]  ;;  %8113 = vmatpush3.msra.mxu0 %v6957_v24  ;;  %v6098_v60 = vld [vmem:[%s15167_s16] sm:$0x3] }
 0x81c   :  { %6796 = vmatprep.subr.mxu1 %v6043_v16  ;;  %v6956_v16 = vld [vmem:[%s15166_s17 + $0x58] sm:$0xff]  ;;  %8114 = vmatprep.subr.mxu0 %v6972_v53  ;;  %v6107_v24 = vrot.slane %v6098_v60, %v4615_v51  ;;  %v6103_v53 = vrot.slane %v6098_v60, %v4611_v13 }
 0x81d   :  { %6797 = vmatpush1.msra.mxu1 %v6042_v19  ;;  %v6971_v19 = vld [vmem:[%s15166_s17 + $0xd0] sm:$0xff]  ;;  %8115 = vmatpush3.msra.mxu0 %v6956_v16 }
 0x81e   :  { %6798 = vmatprep.subr.mxu1 %v6041_v47  ;;  %v6955_v47 = vld [vmem:[%s15166_s17 + $0x50] sm:$0xff]  ;;  %8116 = vmatprep.subr.mxu0 %v6971_v19 }
 0x81f   :  { %6799 = vmatpush1.msra.mxu1 %v6040_v0  ;;  %v6970_v0 = vld [vmem:[%s15166_s17 + $0xc8] sm:$0xff]  ;;  %8117 = vmatpush3.msra.mxu0 %v6955_v47 }
 0x820   :  { %6800 = vmatprep.subr.mxu1 %v6039_v34  ;;  %v6954_v34 = vld [vmem:[%s15166_s17 + $0x48] sm:$0xff]  ;;  %8118 = vmatprep.subr.mxu0 %v6970_v0 }
 0x821   :  { %6801 = vmatpush1.msra.mxu1 %v6038_v63  ;;  %v6969_v63 = vld [vmem:[%s15166_s17 + $0xc0] sm:$0xff]  ;;  %8119 = vmatpush3.msra.mxu0 %v6954_v34 }
 0x822   :  { %6802 = vmatprep.subr.mxu1 %v6037_v44  ;;  %v6953_v44 = vld [vmem:[%s15166_s17 + $0x40] sm:$0xff]  ;;  %8120 = vmatprep.subr.mxu0 %v6969_v63 }
 0x823   :  { %6803 = vmatpush1.msra.mxu1 %v6036_v2  ;;  %v6968_v2 = vld [vmem:[%s15166_s17 + $0xb8] sm:$0xff]  ;;  %8121 = vmatpush3.msra.mxu0 %v6953_v44 }
 0x824   :  { %6804 = vmatprep.subr.mxu1 %v6035_v8  ;;  %v6952_v8 = vld [vmem:[%s15166_s17 + $0x38] sm:$0xff]  ;;  %8122 = vmatprep.subr.mxu0 %v6968_v2 }
 0x825   :  { %6805 = vmatpush1.msra.mxu1 %v6034_v23  ;;  %v6967_v23 = vld [vmem:[%s15166_s17 + $0xb0] sm:$0xff]  ;;  %8123 = vmatpush3.msra.mxu0 %v6952_v8 }
 0x826   :  { %6806 = vmatprep.subr.mxu1 %v6097_v14  ;;  %v6951_v14 = vld [vmem:[%s15166_s17 + $0x30] sm:$0xff]  ;;  %8124 = vmatprep.subr.mxu0 %v6967_v23 }
 0x827   :  { %6807 = vmatpush2.msra.mxu1 %v6096_v46  ;;  %v15010_v46 = vpop.f32.mrf.mxu1  ;;  %8125 = vmatpush3.msra.mxu0 %v6951_v14 }
 0x828   :  { %6808 = vmatprep.subr.mxu1 %v6095_v42  ;;  %v6966_v42 = vld [vmem:[%s15166_s17 + $0xa8] sm:$0xff]  ;;  %v6177_v44 = vadd.f32 %v15010_v46, %v6103_v53 }
 0x829   :  { %6809 = vmatpush2.msra.mxu1 %v6094_v56  ;;  %v6950_v56 = vld [vmem:[%s15166_s17 + $0x28] sm:$0xff]  ;;  %8126 = vmatprep.subr.mxu0 %v6966_v42 }
 0x82a   :  { %6810 = vmatprep.subr.mxu1 %v6093_v38  ;;  %v6965_v38 = vld [vmem:[%s15166_s17 + $0xa0] sm:$0xff]  ;;  %8127 = vmatpush3.msra.mxu0 %v6950_v56 }
 0x82b   :  { %6811 = vmatpush2.msra.mxu1 %v6092_v59  ;;  %v6949_v59 = vld [vmem:[%s15166_s17 + $0x20] sm:$0xff]  ;;  %8128 = vmatprep.subr.mxu0 %v6965_v38 }
 0x82c   :  { %6812 = vmatprep.subr.mxu1 %v6091_v62  ;;  %v6178_v62 = vpop.f32.mrf.mxu1  ;;  %8129 = vmatpush3.msra.mxu0 %v6949_v59 }
 0x82d   :  { %6813 = vmatpush2.msra.mxu1 %v6090_v30  ;;  %v6964_v30 = vld [vmem:[%s15166_s17 + $0x98] sm:$0xff]  ;;  %v6179_v0 = vadd.f32 %v6178_v62, %v6107_v24 }
 0x82e   :  { %6814 = vmatprep.subr.mxu1 %v6089_v32  ;;  %v6948_v32 = vld [vmem:[%s15166_s17 + $0x18] sm:$0xff]  ;;  %8130 = vmatprep.subr.mxu0 %v6964_v30 }
 0x82f   :  { %6815 = vmatpush2.msra.mxu1 %v6088_v61  ;;  %v6963_v61 = vld [vmem:[%s15166_s17 + $0x90] sm:$0xff]  ;;  %8131 = vmatpush3.msra.mxu0 %v6948_v32 }
 0x830   :  { %6816 = vmatprep.subr.mxu1 %v6087_v11  ;;  %v6947_v11 = vld [vmem:[%s15166_s17 + $0x10] sm:$0xff]  ;;  %8132 = vmatprep.subr.mxu0 %v6963_v61 }
 0x831   :  { %6817 = vmatpush2.msra.mxu1 %v6086_v22  ;;  %v6182_v22 = vpop.f32.mrf.mxu1  ;;  %8133 = vmatpush3.msra.mxu0 %v6947_v11 }
 0x832   :  { %6818 = vmatprep.subr.mxu1 %v6085_v57  ;;  %v6259_v57 = vpop.f32.mrf.mxu0  ;;  %v6183_v2 = vadd.f32 %v6182_v22, %v6103_v53 }
 0x833   :  { %6819 = vmatpush2.msra.mxu1 %v6084_v3  ;;  %v6184_v3 = vpop.f32.mrf.mxu1  ;;  %v6260_v30 = vadd.f32 %v6259_v57, %v6177_v44 }
 0x834   :  { %6820 = vmatprep.subr.mxu1 %v6083_v1  ;;  %v6261_v1 = vpop.f32.mrf.mxu0  ;;  %v6185_v34 = vadd.f32 %v6184_v3, %v6107_v24 }
 0x835   :  { %6821 = vmatpush2.msra.mxu1 %v6082_v26  ;;  %v6188_v26 = vpop.f32.mrf.mxu1  ;;  %v6262_v59 = vadd.f32 %v6261_v1, %v6179_v0 }
 0x836   :  { %6822 = vmatprep.subr.mxu1 %v6081_v35  ;;  %v6265_v35 = vpop.f32.mrf.mxu0  ;;  %v6189_v47 = vadd.f32 %v6188_v26, %v6103_v53 }
 0x837   :  { %6823 = vmatpush2.msra.mxu1 %v6080_v25  ;;  %v6190_v25 = vpop.f32.mrf.mxu1  ;;  %v6266_v38 = vadd.f32 %v6265_v35, %v6183_v2 }
 0x838   :  { %6824 = vmatprep.subr.mxu1 %v6079_v4  ;;  %v6267_v4 = vpop.f32.mrf.mxu0  ;;  %v6191_v63 = vadd.f32 %v6190_v25, %v6107_v24 }
 0x839   :  { %6825 = vmatpush2.msra.mxu1 %v6078_v20  ;;  %v6342_v20 = vpop.f32.mrf.mxu1  ;;  %v6268_v42 = vadd.f32 %v6267_v4, %v6185_v34 }
 0x83a   :  { %6826 = vmatprep.subr.mxu1 %v6077_v31  ;;  %v6271_v31 = vpop.f32.mrf.mxu0  ;;  %v6343_v3 = vadd.f32 %v6342_v20, %v6260_v30 }
 0x83b   :  { %6827 = vmatpush2.msra.mxu1 %v6076_v17  ;;  %v6344_v17 = vpop.f32.mrf.mxu1  ;;  %v6272_v8 = vadd.f32 %v6271_v31, %v6189_v47 }
 0x83c   :  { %6828 = vmatprep.subr.mxu1 %v6075_v41  ;;  %v6273_v41 = vpop.f32.mrf.mxu0  ;;  %v6345_v62 = vadd.f32 %v6344_v17, %v6262_v59  ;;  %v6946_v59 = vld [vmem:[%s15166_s17 + $0x8] sm:$0xff] }
 0x83d   :  { %6829 = vmatpush2.msra.mxu1 %v6074_v6  ;;  %v6348_v6 = vpop.f32.mrf.mxu1  ;;  %v6274_v56 = vadd.f32 %v6273_v41, %v6191_v63 }
 0x83e   :  { %6830 = vmatprep.subr.mxu1 %v6073_v29  ;;  %v6349_v32 = vadd.f32 %v6348_v6, %v6266_v38 }
 0x83f   :  { %6831 = vmatpush2.msra.mxu1 %v6072_v10  ;;  %v6350_v10 = vpop.f32.mrf.mxu1 }
 0x840   :  { %6832 = vmatprep.subr.mxu1 %v6071_v5  ;;  %v6351_v12 = vadd.f32 %v6350_v10, %v6268_v42 }
 0x841   :  { %6833 = vmatpush2.msra.mxu1 %v6070_v55  ;;  %v6425_v29 = vpop.f32.mrf.mxu0 }
 0x842   :  { %6834 = vmatprep.subr.mxu1 %v6069_v43  ;;  %v6354_v55 = vpop.f32.mrf.mxu1 }
 0x843   :  { %6835 = vmatpush2.msra.mxu1 %v6068_v48  ;;  %v6427_v5 = vpop.f32.mrf.mxu0  ;;  %v6355_v51 = vadd.f32 %v6354_v55, %v6272_v8  ;;  %v6426_v55 = vadd.f32 %v6425_v29, %v6343_v3  ;;  %v7067_v3 = vld [vmem:[%s15169_s19 + $0x60] sm:$0xff] }
 0x844   :  { %6836 = vmatprep.subr.mxu1 %v6067_v52  ;;  %v6356_v48 = vpop.f32.mrf.mxu1  ;;  %v6428_v4 = vadd.f32 %v6427_v5, %v6345_v62  ;;  %v7068_v62 = vld [vmem:[%s15169_s19 + $0x68] sm:$0xff] }
 0x845   :  { %6837 = vmatpush2.msra.mxu1 %v6066_v7  ;;  %v6357_v13 = vadd.f32 %v6356_v48, %v6274_v56 }
 0x846   :  { %6839 = vmatmul.mubr.f32.vlgmr.msra.gmra.mxu1 %v5356_v27 }
 0x847   :  { %6844 = vmatprep.mubr.f32.mxu1 %v5359_v39 }
 0x848   :  { %v6431_v43 = vpop.f32.mrf.mxu0 }
 0x849   :  { %v6432_v22 = vadd.f32 %v6431_v43, %v6349_v32 }
 0x84a   :  { %6845 = vmatmul.mubr.f32.gmra.mxu1 %v5358_v21  ;;  %v6433_v52 = vpop.f32.mrf.mxu0 }
 0x84b   :  { %6850 = vmatprep.mubr.f32.mxu1 %v5361_v50  ;;  %v6434_v25 = vadd.f32 %v6433_v52, %v6351_v12  ;;  %v6961_v12 = vld [vmem:[%s15166_s17 + $0x80] sm:$0xff] }
 0x84d   :  { %v6437_v49 = vpop.f32.mrf.mxu0 }
 0x84e   :  { %6851 = vmatmul.mubr.f32.gmra.mxu1 %v5360_v9  ;;  %v6438_v26 = vadd.f32 %v6437_v49, %v6355_v51 }
 0x84f   :  { %6938 = vmatprep.mubr.f32.mxu1 %v12828_v40  ;;  %v6439_v39 = vpop.f32.mrf.mxu0 }
 0x850   :  { %v6440_v46 = vadd.f32 %v6439_v39, %v6357_v13  ;;  %v6945_v13 = vld [vmem:[%s15166_s17] sm:$0xff] }
 0x87d   :  { %v6508_v7 = vpop.f32.mrf.mxu1 }
 0x87e   :  { %v6509_v57 = vadd.f32 %v6508_v7, %v6426_v55  ;;  %v7056_v55 = vld [vmem:[%s15169_s19 + $0x8] sm:$0xff] }
 0x87f   :  { %v6510_v27 = vpop.f32.mrf.mxu1 }
 0x880   :  { %v6511_v48 = vadd.f32 %v6510_v27, %v6428_v4  ;;  %v7059_v4 = vld [vmem:[%s15169_s19 + $0x20] sm:$0xff] }
 0x883   :  { %v6514_v58 = vpop.f32.mrf.mxu1 }
 0x884   :  { %v6515_v1 = vadd.f32 %v6514_v58, %v6432_v22  ;;  %v7063_v22 = vld [vmem:[%s15169_s19 + $0x40] sm:$0xff] }
 0x885   :  { %v6516_v21 = vpop.f32.mrf.mxu1 }
 0x886   :  { %v6517_v41 = vadd.f32 %v6516_v21, %v6434_v25  ;;  %v7065_v25 = vld [vmem:[%s15169_s19 + $0x50] sm:$0xff] }
 0x887   :  { %v15036_v37 = vpop.f32.mrf.mxu0 }
 0x888   :  { %v6520_v50 = vpop.f32.mrf.mxu1  ;;  %v6592_v5 = vadd.f32 %v15036_v37, %v6509_v57 }
 0x889   :  { %v6593_v28 = vpop.f32.mrf.mxu0  ;;  %v6521_v31 = vadd.f32 %v6520_v50, %v6438_v26  ;;  %v7066_v26 = vld [vmem:[%s15169_s19 + $0x58] sm:$0xff] }
 0x88a   :  { %v6522_v18 = vpop.f32.mrf.mxu1  ;;  %v6594_v43 = vadd.f32 %v6593_v28, %v6511_v48  ;;  %v7327_v48 = vld [vmem:[%s15170_s18] ss:$0 sm:$0xff] }
 0x88b   :  { %v6523_v35 = vadd.f32 %v6522_v18, %v6440_v46  ;;  %v7064_v46 = vld [vmem:[%s15169_s19 + $0x48] sm:$0xff] }
 0x88e   :  { %v6597_v9 = vpop.f32.mrf.mxu0 }
 0x88f   :  { %v6598_v49 = vadd.f32 %v6597_v9, %v6515_v1  ;;  %v7055_v1 = vld [vmem:[%s15169_s19] sm:$0xff] }
 0x890   :  { %v6599_v33 = vpop.f32.mrf.mxu0 }
 0x891   :  { %v6600_v17 = vadd.f32 %v6599_v33, %v6517_v41  ;;  %v7058_v41 = vld [vmem:[%s15169_s19 + $0x18] sm:$0xff] }
 0x893   :  { %v6603_v36 = vpop.f32.mrf.mxu0 }
 0x894   :  { %v6604_v6 = vadd.f32 %v6603_v36, %v6521_v31  ;;  %v7062_v31 = vld [vmem:[%s15169_s19 + $0x38] sm:$0xff] }
 0x895   :  { %v6605_v54 = vpop.f32.mrf.mxu0 }
 0x896   :  { %v6606_v20 = vadd.f32 %v6605_v54, %v6523_v35  ;;  %v7057_v35 = vld [vmem:[%s15169_s19 + $0x10] sm:$0xff] }
 0x8c3   :  { %v15038_v45 = vpop.f32.mrf.mxu1 }
 0x8c4   :  { %v6675_v27 = vadd.f32 %v15038_v45, %v6592_v5 }
 0x8c5   :  { %v6676_v15 = vpop.f32.mrf.mxu1 }
 0x8c6   :  { %v6677_v58 = vadd.f32 %v6676_v15, %v6594_v43 }
 0x8c9   :  { %v6680_v16 = vpop.f32.mrf.mxu1 }
 0x8ca   :  { %v6681_v21 = vadd.f32 %v6680_v16, %v6598_v49 }
 0x8cb   :  { %v6682_v23 = vpop.f32.mrf.mxu1 }
 0x8cc   :  { %v6683_v50 = vadd.f32 %v6682_v23, %v6600_v17  ;;  %v28_v17 = vstv %s15171_s22 }
 0x8cd   :  { %v15047_v19 = vpop.f32.mrf.mxu0  ;;  %29 = vst [vmem:[#allocation3] sm:$0x1] %v28_v17 }
 0x8ce   :  { %v6686_v61 = vpop.f32.mrf.mxu1  ;;  %v6758_v8 = vadd.f32 %v15047_v19, %v6675_v27  ;;  %v6962_v19 = vld [vmem:[%s15166_s17 + $0x88] sm:$0xff] }
 0x8cf   :  { %v6759_v14 = vpop.f32.mrf.mxu0  ;;  %v6687_v52 = vadd.f32 %v6686_v61, %v6604_v6  ;;  %8134 = vmatprep.subr.mxu0 %v6962_v19  ;;  %v7070_v61 = vld [vmem:[%s15169_s19 + $0x78] sm:$0xff] }
 0x8d0   :  { %v6688_v60 = vpop.f32.mrf.mxu1  ;;  %v6760_v44 = vadd.f32 %v6759_v14, %v6677_v58  ;;  %v6863_v14 = vld [vmem:[%s15168_s2] sm:$0x3]  ;;  %8135 = vmatpush3.msra.mxu0 %v6946_v59 }
 0x8d1   :  { %v6763_v11 = vpop.f32.mrf.mxu0  ;;  %v6689_v0 = vadd.f32 %v6688_v60, %v6606_v20  ;;  %8136 = vmatprep.subr.mxu0 %v6961_v12  ;;  %v7061_v60 = vld [vmem:[%s15169_s19 + $0x30] sm:$0xff] }
 0x8d2   :  { %v6764_v33 = vadd.f32 %v6763_v11, %v6681_v21  ;;  %8137 = vmatpush3.msra.mxu0 %v6945_v13  ;;  %v7069_v11 = vld [vmem:[%s15169_s19 + $0x70] sm:$0xff] }
 0x8d3   :  { %v6765_v24 = vpop.f32.mrf.mxu0  ;;  %8435 = vmatprep.subr.mxu0 %v12828_v40 }
 0x8d4   :  { %v6766_v34 = vadd.f32 %v6765_v24, %v6683_v50  ;;  %v7060_v24 = vld [vmem:[%s15169_s19 + $0x28] sm:$0xff]  ;;  %v7330_v5 = vld [vmem:[#allocation3] ss:$0 sm:$0xff] }
 0x8d5   :  { %v6769_v53 = vpop.f32.mrf.mxu0 }
 0x8d6   :  { %v6770_v7 = vadd.f32 %v6769_v53, %v6687_v52  ;;  %v7329_v52 = vld [vmem:[%s15173_s21] ss:$0 sm:$0xff] }
 0x8d7   :  { %v6771_v18 = vpop.f32.mrf.mxu0 }
 0x8d8   :  { %v6772_v63 = vadd.f32 %v6771_v18, %v6689_v0 }
 0x906   :  { %v6840_v10 = vpop.f32.mrf.mxu1 }
 0x907   :  { %v6841_v42 = vadd.f32 %v6840_v10, %v6758_v8 }
 0x908   :  { %v6842_v47 = vpop.f32.mrf.mxu1 }
 0x909   :  { %v6843_v37 = vadd.f32 %v6842_v47, %v6760_v44  ;;  %v6857_v51 = vmax.f32 %v6841_v42, 0.0 }
 0x90a   :  { %v6846_v39 = vpop.f32.mrf.mxu1 }
 0x90b   :  { %v6847_v23 = vadd.f32 %v6846_v39, %v6764_v33  ;;  %v6858_v38 = vmax.f32 %v6843_v37, 0.0 }
 0x90c   :  { %v6848_v29 = vpop.f32.mrf.mxu1 }
 0x90d   :  { %v6849_v2 = vadd.f32 %v6848_v29, %v6766_v34  ;;  %v6859_v45 = vmax.f32 %v6847_v23, 0.0 }
 0x90e   :  { %v6852_v36 = vpop.f32.mrf.mxu1 }
 0x90f   :  { %v6853_v54 = vadd.f32 %v6852_v36, %v6770_v7  ;;  %v6860_v15 = vmax.f32 %v6849_v2, 0.0 }
 0x910   :  { %v6854_v9 = vpop.f32.mrf.mxu1 }
 0x911   :  { %v6855_v28 = vadd.f32 %v6854_v9, %v6772_v63  ;;  %v6861_v56 = vmax.f32 %v6853_v54, 0.0 }
 0x913   :  { %v6862_v16 = vmax.f32 %v6855_v28, 0.0 }
 0x915   :  { %7324 = vmatprep.subr.msk.mxu1 %vm475_vm6, %v6862_v16 }
 0x916   :  { %7325 = vmatpush1.msk.msra.mxu1 %vm475_vm6, %v6861_v56 }
 0x917   :  { %6902 = vmatprep.subr.mxu1 %v6860_v15 }
 0x918   :  { %6903 = vmatpush1.msra.mxu1 %v6859_v45 }
 0x919   :  { %6904 = vmatprep.subr.mxu1 %v6858_v38 }
 0x91a   :  { %6905 = vmatpush1.msra.mxu1 %v6857_v51 }
 0x91b   :  { %7326 = vmatmul.mubr.msk.f32.vlgmr.msra.gmra.mxu1 %vm6864_vm8, %v6863_v14 }
 0x9db   :  { %v6940_v30 = vpop.f32.mrf.mxu1 }
 0x9dd   :  { %v6942_v32 = vpop.f32.mrf.mxu1 }
 0x9de   :  { %7048 = vmatprep.mubr.f32.mxu0 %v6942_v32 }
 0x9df   :  { %7049 = vmatmul.mubr.f32.vlgmr.msra.gmra.mxu0 %v6940_v30 }
 0x9e0   :  { %8436 = vmatpush3.msra.mxu0 %v7070_v61  ;;  %8467 = vmatprep.mubr.msk.f32.mxu0 %vm8484_vm0, %v12828_v40 }
 0x9e1   :  { %8437 = vmatprep.subr.mxu0 %v12828_v40 }
 0x9e2   :  { %8438 = vmatpush3.msra.mxu0 %v7069_v11 }
 0x9e3   :  { %8439 = vmatprep.subr.mxu0 %v12828_v40 }
 0x9e4   :  { %8440 = vmatpush3.msra.mxu0 %v7068_v62 }
 0x9e5   :  { %8441 = vmatprep.subr.mxu0 %v12828_v40 }
 0x9e6   :  { %8442 = vmatpush3.msra.mxu0 %v7067_v3 }
 0x9e7   :  { %8443 = vmatprep.subr.mxu0 %v12828_v40 }
 0x9e8   :  { %8444 = vmatpush3.msra.mxu0 %v7066_v26 }
 0x9e9   :  { %8445 = vmatprep.subr.mxu0 %v12828_v40 }
 0x9ea   :  { %8446 = vmatpush3.msra.mxu0 %v7065_v25 }
 0x9eb   :  { %8447 = vmatprep.subr.mxu0 %v12828_v40 }
 0x9ec   :  { %8448 = vmatpush3.msra.mxu0 %v7064_v46 }
 0x9ed   :  { %8449 = vmatprep.subr.mxu0 %v12828_v40 }
 0x9ee   :  { %8450 = vmatpush3.msra.mxu0 %v7063_v22 }
 0x9ef   :  { %8451 = vmatprep.subr.mxu0 %v12828_v40 }
 0x9f0   :  { %8452 = vmatpush3.msra.mxu0 %v7062_v31 }
 0x9f1   :  { %8453 = vmatprep.subr.mxu0 %v12828_v40 }
 0x9f2   :  { %8454 = vmatpush3.msra.mxu0 %v7061_v60 }
 0x9f3   :  { %8455 = vmatprep.subr.mxu0 %v12828_v40 }
 0x9f4   :  { %8456 = vmatpush3.msra.mxu0 %v7060_v24 }
 0x9f5   :  { %8457 = vmatprep.subr.mxu0 %v12828_v40 }
 0x9f6   :  { %8458 = vmatpush3.msra.mxu0 %v7059_v4 }
 0x9f7   :  { %8459 = vmatprep.subr.mxu0 %v12828_v40 }
 0x9f8   :  { %8460 = vmatpush3.msra.mxu0 %v7058_v41 }
 0x9f9   :  { %8461 = vmatprep.subr.mxu0 %v12828_v40 }
 0x9fa   :  { %8462 = vmatpush3.msra.mxu0 %v7057_v35 }
 0x9fb   :  { %8463 = vmatprep.subr.mxu0 %v12828_v40 }
 0x9fc   :  { %8464 = vmatpush3.msra.mxu0 %v7056_v55 }
 0x9fd   :  { %8465 = vmatprep.subr.mxu0 %v12828_v40  ;;  %v7328_v40 = vld [vmem:[%s15172_s20] ss:$0 sm:$0xff] }
 0x9fe   :  { %8466 = vmatpush3.msra.mxu0 %v7055_v1 }
 0xa9f   :  { %v8138_v10 = vpop.f32.mrf.mxu0 }
 0xaa1   :  { %v8139_v57 = vpop.f32.mrf.mxu0 }
 0xaa2   :  { %v8140_v6 = vadd.f32 %v8139_v57, %v8138_v10 }
 0xaa4   :  { %v7051_v53 = vadd.f32 %v8140_v6, %v7327_v48 }
 0xaa6   :  { %v7054_v47 = vmax.f32 %v7051_v53, 0.0 }
 0xaa8   :  { %8468 = vmatmul.mubr.f32.vlgmr.msra.gmra.mxu0 %v7054_v47 }
 0xb68   :  { %v7144_v20 = vpop.f32.mrf.mxu0 }
 0xb69   :  { %v7145_v49 = vadd.f32 %v7328_v40, %v7144_v20 }
 0xb6a   :  { %v8469_v39 = vpop.f32.mrf.mxu0 }
 0xb6b   :  { %v7148_v43 = vmax.f32 %v7145_v49, 0.0 }
 0xb6d   :  { %v7156_v50 = vmul.f32 %v7329_v52, %v7148_v43 }
 0xb6f   :  { %v7158_v0 = vsel %vm7157_vm9, %v7156_v50, 0.0 }
 0xb70   :  { %7159 = vadd.xlane.f32.xlu0 %v7158_v0 }
 0xbf9   :  { %v7160_v21 = vpop.xlane.xlu0 %7159 }
 0xbfa   :  { %v7168_v18 = vadd.f32 %v7330_v5, %v7160_v21 }
 0xbfc   :  { %7170 = vst.msk [vmem:[%s15174_s23] sm:$0x3] %vm7169_vm10, %v7168_v18 }

</bundles_post_ra>
